<compile_context>
chip_gen: v6e
topology: v6e:2x2x1
jax: 0.10.0
libtpu: 0.0.40
codegen_flags: <defaults>
</compile_context>

<pallas_src>
import functools
from collections import namedtuple

import jax
import jax.numpy as jnp
from jax.experimental import pallas as pl
from jax.experimental.pallas import tpu as pltpu

Genotype = namedtuple("Genotype", ["normal", "normal_concat", "reduce", "reduce_concat"])

GENOTYPE = Genotype(
    normal=[
        ("sep_conv_3x3", 0), ("skip_connect", 1),
        ("avg_pool_3x3", 0), ("sep_conv_3x3", 1),
        ("max_pool_3x3", 2), ("skip_connect", 0),
        ("avg_pool_3x3", 3), ("skip_connect", 1),
    ],
    normal_concat=[2, 3, 4, 5],
    reduce=[],
    reduce_concat=[],
)

BN_EPS = 1e-5
NEG_FILL = -1e30  # finite "-inf" stand-in for max-pool halo; stays f32, never downcast


# ----------------------- host-side structural constants -----------------------

def make_tap_matrices(h, w):
    """0/1 gather operators for 3x3, stride-1, pad-1 windows (tap-major rows k*hw+p).

    T    (9*hw, hw) bf16: row (k*hw + p) one-hot-selects tap k of output pixel p
                          (all-zero row if that tap falls in the zero padding).
    A    (hw, hw)  bf16 : 3x3 window-sum operator (sum of the 9 taps; entries 0/1).
    icnt (hw, 1)   f32  : 1 / (# in-bounds taps)  -> AvgPool count_include_pad=False.
    neg  (9*hw, 1) f32  : NEG_FILL on out-of-bounds taps -> MaxPool ignores padding.

    bf16 is lossless here because every entry is exactly 0 or 1; the rounding lands on
    the (bf16-cast) activation, matching the bf16 MXU path used everywhere else.
    """
    hw = h * w
    pi, pj = jnp.meshgrid(jnp.arange(h), jnp.arange(w), indexing="ij")
    pi = pi.reshape(-1)
    pj = pj.reshape(-1)
    taps = []
    for dh in (-1, 0, 1):
        for dw in (-1, 0, 1):
            qi, qj = pi + dh, pj + dw
            valid = ((qi >= 0) & (qi < h) & (qj >= 0) & (qj < w)).astype(jnp.float32)
            q = jnp.clip(qi, 0, h - 1) * w + jnp.clip(qj, 0, w - 1)
            taps.append(jax.nn.one_hot(q, hw, dtype=jnp.float32) * valid[:, None])
    T = jnp.concatenate(taps, axis=0)                       # (9*hw, hw), rows k*hw + p
    A = functools.reduce(lambda x, y: x + y, taps)          # (hw, hw)
    icnt = 1.0 / A.sum(axis=1, keepdims=True)               # (hw, 1)
    neg = (T.sum(axis=1, keepdims=True) == 0).astype(jnp.float32) * NEG_FILL
    return T.astype(jnp.bfloat16), A.astype(jnp.bfloat16), icnt, neg


def _pick_batch_block(n, hw, m_target=512):
    """Fold images into the matmul M dim (amortize ~0.35us/step, fill the MXU) while
    keeping an even number of grid steps when possible (2 TensorCores on v7x)."""
    divisors = [d for d in range(1, n + 1) if n % d == 0 and d * hw <= m_target]
    if not divisors:
        return 1
    even_steps = [d for d in divisors if (n // d) % 2 == 0]
    return max(even_steps) if even_steps else max(divisors)


# --------------------------- parameter utilities ------------------------------

def fold_bn(gamma, beta, mean, var):
    scale = gamma / jnp.sqrt(var + BN_EPS)
    return scale, beta - mean * scale


def init_bn(key, c, affine=True):
    k1, k2, k3, k4 = jax.random.split(key, 4)
    gamma = (1.0 + 0.1 * jax.random.normal(k1, (c,), jnp.float32)) if affine else jnp.ones((c,), jnp.float32)
    beta = (0.1 * jax.random.normal(k2, (c,), jnp.float32)) if affine else jnp.zeros((c,), jnp.float32)
    mean = 0.1 * jax.random.normal(k3, (c,), jnp.float32)
    var = 1.0 + 0.1 * jnp.abs(jax.random.normal(k4, (c,), jnp.float32))
    return fold_bn(gamma, beta, mean, var)


# -------------------------- the fused cell kernel ------------------------------

def _build_cell_kernel(plan, h, w, c, bb):
    hw = h * w

    def kernel(s0_ref, s1_ref, t_ref, a_ref, cnt_ref, neg_ref,
               w0_ref, w1_ref, sepw_ref, vec_ref, out_ref):
        # Hoist grid-invariant operands once (reused by every op below).
        T = t_ref[...]            # (9*hw, hw) bf16 tap-gather matrix (rows k*hw + p)
        A = a_ref[...]            # (hw, hw)   bf16 3x3 window-sum matrix
        icnt = cnt_ref[...]       # (hw, 1)    f32  1/count (count_include_pad=False)
        neg = neg_ref[...]        # (9*hw, 1)  f32  NEG_FILL at out-of-bounds taps
        V = vec_ref[...]          # (n_vec, c) f32  all folded BN scale/bias rows

        def vec(i):               # (1, c) broadcast row from the packed scale/bias table
            return V[i:i + 1, :]

        def relu_bf16(x):
            return jnp.maximum(x, 0.0).astype(jnp.bfloat16)

        def per_image(x):         # (bb*hw, C) -> bb static (hw, C) row slices
            return [x[b * hw:(b + 1) * hw, :] for b in range(bb)]

        def cat_rows(chunks):     # list of (hw, C) -> (bb*hw, C)
            return chunks[0] if bb == 1 else jnp.concatenate(chunks, axis=0)

        def preproc(x_ref, w_ref, bias_idx):   # ReLUConvBN(cin, c, 1, 1, 0), BN folded in W
            x = x_ref[...]
            x = x.reshape(bb * hw, x.shape[-1])
            y = jnp.dot(jnp.maximum(x, 0.0).astype(jnp.bfloat16), w_ref[...],
                        preferred_element_type=jnp.float32)
            return y + vec(bias_idx)

        def im2col(xb):
            # (hw, c) bf16 -> (hw, 9c) bf16: ONE MXU gather (T @ x) then the 9 tap row
            # slices are lane-concatenated in-register (cheaper than 9 separate matmuls
            # and avoids an unsupported-reshape risk on the (9hw,c)->(hw,9c) path).
            tb = jnp.dot(T, xb, preferred_element_type=jnp.float32).astype(jnp.bfloat16)
            return jnp.concatenate([tb[k * hw:(k + 1) * hw, :] for k in range(9)], axis=1)

        def dw_pw(x, w_idx, bias_idx):
            # relu -> depthwise3x3 -> pointwise1x1 -> BN, with dw * pw * BN-scale folded
            # host-side into one (9c, c) weight: whole block = bb gathers + ONE matmul
            # of shape (bb*hw, 9c) x (9c, c).
            cols = cat_rows([im2col(xb) for xb in per_image(relu_bf16(x))])
            y = jnp.dot(cols, sepw_ref[w_idx], preferred_element_type=jnp.float32)
            return y + vec(bias_idx)

        def sep_conv(x, p):
            return dw_pw(dw_pw(x, p[0], p[1]), p[2], p[3])

        def avg_pool(x, p):       # AvgPool2d(3,1,1,count_include_pad=False) + BN(affine=False)
            outs = [jnp.dot(A, xb, preferred_element_type=jnp.float32) * icnt
                    for xb in per_image(x.astype(jnp.bfloat16))]
            return cat_rows(outs) * vec(p[0]) + vec(p[1])

        def max_pool(x, p):       # MaxPool2d(3,1,1) + BN(affine=False)
            # TODO(synk): could move to exact shifted-window maxima on the VPU; the bf16
            #             gather is monotone so the max only picks up bf16 rounding of x.
            outs = []
            for xb in per_image(x.astype(jnp.bfloat16)):
                tb = jnp.dot(T, xb, preferred_element_type=jnp.float32) + neg
                m = tb[0:hw, :]
                for k in range(1, 9):
                    m = jnp.maximum(m, tb[k * hw:(k + 1) * hw, :])
                outs.append(m)
            return cat_rows(outs) * vec(p[0]) + vec(p[1])

        def apply_op(kind, p, x):
            if kind == "skip":    # Identity (Dropout wrapping Identity is a no-op in eval)
                return x
            if kind == "sep":
                return sep_conv(x, p)
            if kind == "avg":
                return avg_pool(x, p)
            return max_pool(x, p)

        s0 = preproc(s0_ref, w0_ref, plan["pre0_bias"])
        s1 = preproc(s1_ref, w1_ref, plan["pre1_bias"])
        states = [s0, s1]
        for (k1, p1, i1), (k2, p2, i2) in plan["nodes"]:
            # node add fused here (no separate add kernel / HBM round-trip)
            states.append(apply_op(k1, p1, states[i1]) + apply_op(k2, p2, states[i2]))

        # Channel-concat realized in the lane dimension of a lane-dense NHWC block.
        for j, si in enumerate(plan["concat"]):
            out_ref[:, :, :, j * c:(j + 1) * c] = states[si].reshape(bb, h, w, c)

    return kernel


class AugmentCellPallas:
    """Pallas / JAX port of AugmentCell (inference / eval-mode semantics), fully fused."""

    def __init__(self, genotype, c_prev_prev, c_prev, c, reduce, reduce_prev, dropout, key):
        # TODO(synk): FactorizedReduce (reduce_prev) / stride-2 reduction ops unsupported.
        assert not reduce and not reduce_prev
        op_names, indices = zip(*(genotype.reduce if reduce else genotype.normal))
        concat = list(genotype.reduce_concat if reduce else genotype.normal_concat)
        self.num_nodes = len(op_names) // 2
        self.multiplier = len(concat)
        self.c = c
        self._dropout = dropout  # Dropout wrapping Identity is a no-op in eval mode

        keys = iter(jax.random.split(key, 64))
        vec_rows, sep_ws = [], []

        def add_vec(v):                      # (c,) f32 scale/bias row
            vec_rows.append(v.astype(jnp.float32))
            return len(vec_rows) - 1

        def add_sepw(wmat):                  # (9c, c) bf16 folded dw*pw*scale weight
            sep_ws.append(wmat.astype(jnp.bfloat16))
            return len(sep_ws) - 1

        def relu_conv_bn(k, cin):            # ReLUConvBN(cin, c, 1, 1, 0); BN scale folded
            kw, kb = jax.random.split(k)
            wmat = 0.1 * jax.random.normal(kw, (cin, c), jnp.float32)
            scale, bias = init_bn(kb, c, affine=True)
            return (wmat * scale[None, :]).astype(jnp.bfloat16), add_vec(bias)

        def sep_conv_params(k):              # 2x (relu, dw3x3, pw1x1, BN); dw*pw*scale folded
            ks = jax.random.split(k, 6)
            out = []
            for kd, kp, kb in ((ks[0], ks[1], ks[2]), (ks[3], ks[4], ks[5])):
                dwk = 0.1 * jax.random.normal(kd, (9, c), jnp.float32)
                pw = 0.1 * jax.random.normal(kp, (c, c), jnp.float32)
                scale, bias = init_bn(kb, c, affine=True)
                # fold depthwise * pointwise * BN-scale:  Wc[(k,i), o] = dwk[k,i]*pw[i,o]*s[o]
                wc = (dwk[:, :, None] * pw[None, :, :]).reshape(9 * c, c) * scale[None, :]
                out += [add_sepw(wc), add_vec(bias)]
            return tuple(out)

        def pool_bn_params(k):               # BatchNorm2d(c, affine=False), running stats
            scale, bias = init_bn(k, c, affine=False)
            return (add_vec(scale), add_vec(bias))

        self._w_pre0, pre0_bias = relu_conv_bn(next(keys), c_prev_prev)
        self._w_pre1, pre1_bias = relu_conv_bn(next(keys), c_prev)

        ops = []
        for name in op_names:
            if name == "skip_connect":
                ops.append(("skip", ()))
            elif name == "avg_pool_3x3":
                ops.append(("avg", pool_bn_params(next(keys))))
            elif name == "max_pool_3x3":
                ops.append(("max", pool_bn_params(next(keys))))
            elif name == "sep_conv_3x3":
                ops.append(("sep", sep_conv_params(next(keys))))
            else:
                raise NotImplementedError(name)

        nodes = []
        for i in range(self.num_nodes):
            (k1, p1), (k2, p2) = ops[2 * i], ops[2 * i + 1]
            nodes.append(((k1, p1, indices[2 * i]), (k2, p2, indices[2 * i + 1])))

        self._plan = dict(pre0_bias=pre0_bias, pre1_bias=pre1_bias,
                          nodes=nodes, concat=concat)
        # Pack the ~30 tiny per-op tensors into 2 stacked arrays (2 DMAs, no per-tensor
        # (8,128) tile-padding waste).
        self._vecs = jnp.stack(vec_rows, axis=0)                       # (n_vec, c) f32
        self._sepw = (jnp.stack(sep_ws, axis=0) if sep_ws
                      else jnp.zeros((1, 9 * c, c), jnp.bfloat16))     # (n_sep, 9c, c) bf16

    def __call__(self, s0_nchw, s1_nchw, batch_block=None):
        n, _, h, w = s0_nchw.shape
        c, m = self.c, self.multiplier
        hw = h * w
        bb = batch_block if batch_block else _pick_batch_block(n, hw)
        assert n % bb == 0

        # NCHW (PyTorch) -> NHWC (channels on the TPU lane dimension)
        s0 = jnp.transpose(s0_nchw, (0, 2, 3, 1)).astype(jnp.float32)
        s1 = jnp.transpose(s1_nchw, (0, 2, 3, 1)).astype(jnp.float32)

        T, A, icnt, neg = make_tap_matrices(h, w)
        consts = [T, A, icnt, neg, self._w_pre0, self._w_pre1, self._sepw, self._vecs]
        kernel = _build_cell_kernel(self._plan, h, w, c, bb)

        def const_spec(a):
            # Grid-invariant operand (constant index_map -> DMA'd only once).
            # TODO(synk): at large H*W also request pipeline_mode=pl.Buffered(1) (or DMA
            #             these once into scratch) to stop double-buffering the constants.
            return pl.BlockSpec(a.shape, lambda i, nd=a.ndim: (0,) * nd)

        in_specs = (
            [pl.BlockSpec((bb, h, w, s0.shape[-1]), lambda i: (i, 0, 0, 0)),
             pl.BlockSpec((bb, h, w, s1.shape[-1]), lambda i: (i, 0, 0, 0))]
            + [const_spec(a) for a in consts]
        )
        out_nhwc = pl.pallas_call(
            kernel,
            out_shape=jax.ShapeDtypeStruct((n, h, w, m * c), jnp.float32),
            grid=(n // bb,),  # batch-block axis, "parallel" -> shards across v7x's 2 TCs
            in_specs=in_specs,
            # lane-dense output block: all m*c concat channels stored per pixel
            out_specs=pl.BlockSpec((bb, h, w, m * c), lambda i: (i, 0, 0, 0)),
            compiler_params=pltpu.CompilerParams(
                dimension_semantics=("parallel",),
                vmem_limit_bytes=32 * 1024 * 1024),
        )(s0, s1, *consts)

        # NHWC -> NCHW; channel blocks are already in torch.cat(dim=1) order.
        return jnp.transpose(out_nhwc, (0, 3, 1, 2))


# ---------------------------------- main ---------------------------------------

if __name__ == "__main__":
    key = jax.random.PRNGKey(0)
    k0, k1, kparams = jax.random.split(key, 3)

    n, c_prev_prev, c_prev, c, h, w = 4, 8, 16, 16, 8, 8
    s0 = jax.random.normal(k0, (n, c_prev_prev, h, w), jnp.float32)  # NCHW, like PyTorch
    s1 = jax.random.normal(k1, (n, c_prev, h, w), jnp.float32)

    cell = AugmentCellPallas(GENOTYPE, c_prev_prev, c_prev, c,
                             reduce=False, reduce_prev=False, dropout=0.0, key=kparams)
    out = jax.block_until_ready(cell(s0, s1))

    assert out.shape == (n, cell.multiplier * c, h, w), out.shape
    assert bool(jnp.all(jnp.isfinite(out)))
    print("KERNEL_OK")
</pallas_src>

<mosaic_0001>
module attributes {stable_mosaic.version = 11 : i64} {
  func.func @kernel(%arg0: i32, %arg1: memref<2x8x8x8xf32, #tpu.memory_space<vmem>>, %arg2: memref<2x8x8x16xf32, #tpu.memory_space<vmem>>, %arg3: memref<576x64xbf16, #tpu.memory_space<vmem>>, %arg4: memref<64x64xbf16, #tpu.memory_space<vmem>>, %arg5: memref<64x1xf32, #tpu.memory_space<vmem>>, %arg6: memref<576x1xf32, #tpu.memory_space<vmem>>, %arg7: memref<8x16xbf16, #tpu.memory_space<vmem>>, %arg8: memref<16x16xbf16, #tpu.memory_space<vmem>>, %arg9: memref<4x144x16xbf16, #tpu.memory_space<vmem>>, %arg10: memref<12x16xf32, #tpu.memory_space<vmem>>, %arg11: memref<2x8x8x64xf32, #tpu.memory_space<vmem>>) attributes {dimension_semantics = [#tpu.dimension_semantics<parallel>], iteration_bounds = array<i64: 2>, scalar_prefetch = 0 : i64, scratch_operands = 0 : i64, tpu.core_type = #tpu.core_type<tc>, window_params = [{transform_indices = @transform_0, window_bounds = array<i64: 2, 8, 8, 8>}, {transform_indices = @transform_1, window_bounds = array<i64: 2, 8, 8, 16>}, {pipeline_mode = #tpu.pipeline_mode<synchronous>, transform_indices = @transform_2, window_bounds = array<i64: 576, 64>}, {pipeline_mode = #tpu.pipeline_mode<synchronous>, transform_indices = @transform_3, window_bounds = array<i64: 64, 64>}, {pipeline_mode = #tpu.pipeline_mode<synchronous>, transform_indices = @transform_4, window_bounds = array<i64: 64, 1>}, {pipeline_mode = #tpu.pipeline_mode<synchronous>, transform_indices = @transform_5, window_bounds = array<i64: 576, 1>}, {pipeline_mode = #tpu.pipeline_mode<synchronous>, transform_indices = @transform_6, window_bounds = array<i64: 8, 16>}, {pipeline_mode = #tpu.pipeline_mode<synchronous>, transform_indices = @transform_7, window_bounds = array<i64: 16, 16>}, {pipeline_mode = #tpu.pipeline_mode<synchronous>, transform_indices = @transform_8, window_bounds = array<i64: 4, 144, 16>}, {pipeline_mode = #tpu.pipeline_mode<synchronous>, transform_indices = @transform_9, window_bounds = array<i64: 12, 16>}, {transform_indices = @transform_10, window_bounds = array<i64: 2, 8, 8, 64>}]} {
    %c0 = arith.constant 0 : index
    %c0_0 = arith.constant 0 : index
    %0 = vector.load %arg3[%c0, %c0_0] : memref<576x64xbf16, #tpu.memory_space<vmem>>, vector<576x64xbf16>
    %c0_1 = arith.constant 0 : index
    %c0_2 = arith.constant 0 : index
    %1 = vector.load %arg4[%c0_1, %c0_2] : memref<64x64xbf16, #tpu.memory_space<vmem>>, vector<64x64xbf16>
    %c0_3 = arith.constant 0 : index
    %c0_4 = arith.constant 0 : index
    %2 = vector.load %arg5[%c0_3, %c0_4] : memref<64x1xf32, #tpu.memory_space<vmem>>, vector<64x1xf32>
    %c0_5 = arith.constant 0 : index
    %c0_6 = arith.constant 0 : index
    %3 = vector.load %arg6[%c0_5, %c0_6] : memref<576x1xf32, #tpu.memory_space<vmem>>, vector<576x1xf32>
    %c0_7 = arith.constant 0 : index
    %c0_8 = arith.constant 0 : index
    %4 = vector.load %arg10[%c0_7, %c0_8] : memref<12x16xf32, #tpu.memory_space<vmem>>, vector<12x16xf32>
    %c0_9 = arith.constant 0 : index
    %c0_10 = arith.constant 0 : index
    %c0_11 = arith.constant 0 : index
    %c0_12 = arith.constant 0 : index
    %5 = vector.load %arg1[%c0_9, %c0_10, %c0_11, %c0_12] : memref<2x8x8x8xf32, #tpu.memory_space<vmem>>, vector<2x8x8x8xf32>
    %6 = vector.shape_cast %5 : vector<2x8x8x8xf32> to vector<128x8xf32>
    %cst = arith.constant 0.000000e+00 : f32
    %7 = vector.broadcast %cst : f32 to vector<128x8xf32>
    %8 = arith.maximumf %6, %7 : vector<128x8xf32>
    %9 = arith.truncf %8 : vector<128x8xf32> to vector<128x8xbf16>
    %c0_13 = arith.constant 0 : index
    %c0_14 = arith.constant 0 : index
    %10 = vector.load %arg7[%c0_13, %c0_14] : memref<8x16xbf16, #tpu.memory_space<vmem>>, vector<8x16xbf16>
    %cst_15 = arith.constant dense<0.000000e+00> : vector<128x16xf32>
    %11 = tpu.matmul %9, %10, %cst_15 {dimension_numbers = #tpu.dot_dimension_numbers<[1], [0], [0], [1], [0, 0, 1, 1], [], []>} : vector<128x8xbf16>, vector<8x16xbf16>, vector<128x16xf32> -> vector<128x16xf32>
    %12 = vector.extract_strided_slice %4 {offsets = [0, 0], sizes = [1, 16], strides = [1, 1]} : vector<12x16xf32> to vector<1x16xf32>
    %13 = vector.broadcast %12 : vector<1x16xf32> to vector<128x16xf32>
    %14 = arith.addf %11, %13 : vector<128x16xf32>
    %c0_16 = arith.constant 0 : index
    %c0_17 = arith.constant 0 : index
    %c0_18 = arith.constant 0 : index
    %c0_19 = arith.constant 0 : index
    %15 = vector.load %arg2[%c0_16, %c0_17, %c0_18, %c0_19] : memref<2x8x8x16xf32, #tpu.memory_space<vmem>>, vector<2x8x8x16xf32>
    %16 = vector.shape_cast %15 : vector<2x8x8x16xf32> to vector<128x16xf32>
    %cst_20 = arith.constant 0.000000e+00 : f32
    %17 = vector.broadcast %cst_20 : f32 to vector<128x16xf32>
    %18 = arith.maximumf %16, %17 : vector<128x16xf32>
    %19 = arith.truncf %18 : vector<128x16xf32> to vector<128x16xbf16>
    %c0_21 = arith.constant 0 : index
    %c0_22 = arith.constant 0 : index
    %20 = vector.load %arg8[%c0_21, %c0_22] : memref<16x16xbf16, #tpu.memory_space<vmem>>, vector<16x16xbf16>
    %cst_23 = arith.constant dense<0.000000e+00> : vector<128x16xf32>
    %21 = tpu.matmul %19, %20, %cst_23 {dimension_numbers = #tpu.dot_dimension_numbers<[1], [0], [0], [1], [0, 0, 1, 1], [], []>} : vector<128x16xbf16>, vector<16x16xbf16>, vector<128x16xf32> -> vector<128x16xf32>
    %22 = vector.extract_strided_slice %4 {offsets = [1, 0], sizes = [1, 16], strides = [1, 1]} : vector<12x16xf32> to vector<1x16xf32>
    %23 = vector.broadcast %22 : vector<1x16xf32> to vector<128x16xf32>
    %24 = arith.addf %21, %23 : vector<128x16xf32>
    %cst_24 = arith.constant 0.000000e+00 : f32
    %25 = vector.broadcast %cst_24 : f32 to vector<128x16xf32>
    %26 = arith.maximumf %14, %25 : vector<128x16xf32>
    %27 = arith.truncf %26 : vector<128x16xf32> to vector<128x16xbf16>
    %28 = vector.extract_strided_slice %27 {offsets = [0, 0], sizes = [64, 16], strides = [1, 1]} : vector<128x16xbf16> to vector<64x16xbf16>
    %29 = vector.extract_strided_slice %27 {offsets = [64, 0], sizes = [64, 16], strides = [1, 1]} : vector<128x16xbf16> to vector<64x16xbf16>
    %cst_25 = arith.constant dense<0.000000e+00> : vector<576x16xf32>
    %30 = tpu.matmul %0, %28, %cst_25 {dimension_numbers = #tpu.dot_dimension_numbers<[1], [0], [0], [1], [0, 0, 1, 1], [], []>} : vector<576x64xbf16>, vector<64x16xbf16>, vector<576x16xf32> -> vector<576x16xf32>
    %31 = arith.truncf %30 : vector<576x16xf32> to vector<576x16xbf16>
    %32 = vector.extract_strided_slice %31 {offsets = [0, 0], sizes = [64, 16], strides = [1, 1]} : vector<576x16xbf16> to vector<64x16xbf16>
    %33 = vector.extract_strided_slice %31 {offsets = [64, 0], sizes = [64, 16], strides = [1, 1]} : vector<576x16xbf16> to vector<64x16xbf16>
    %34 = vector.extract_strided_slice %31 {offsets = [128, 0], sizes = [64, 16], strides = [1, 1]} : vector<576x16xbf16> to vector<64x16xbf16>
    %35 = vector.extract_strided_slice %31 {offsets = [192, 0], sizes = [64, 16], strides = [1, 1]} : vector<576x16xbf16> to vector<64x16xbf16>
    %36 = vector.extract_strided_slice %31 {offsets = [256, 0], sizes = [64, 16], strides = [1, 1]} : vector<576x16xbf16> to vector<64x16xbf16>
    %37 = vector.extract_strided_slice %31 {offsets = [320, 0], sizes = [64, 16], strides = [1, 1]} : vector<576x16xbf16> to vector<64x16xbf16>
    %38 = vector.extract_strided_slice %31 {offsets = [384, 0], sizes = [64, 16], strides = [1, 1]} : vector<576x16xbf16> to vector<64x16xbf16>
    %39 = vector.extract_strided_slice %31 {offsets = [448, 0], sizes = [64, 16], strides = [1, 1]} : vector<576x16xbf16> to vector<64x16xbf16>
    %40 = vector.extract_strided_slice %31 {offsets = [512, 0], sizes = [64, 16], strides = [1, 1]} : vector<576x16xbf16> to vector<64x16xbf16>
    %41 = tpu.concatenate %32, %33, %34, %35, %36, %37, %38, %39, %40 in 1 : vector<64x16xbf16>, vector<64x16xbf16>, vector<64x16xbf16>, vector<64x16xbf16>, vector<64x16xbf16>, vector<64x16xbf16>, vector<64x16xbf16>, vector<64x16xbf16>, vector<64x16xbf16> -> vector<64x144xbf16>
    %cst_26 = arith.constant dense<0.000000e+00> : vector<576x16xf32>
    %42 = tpu.matmul %0, %29, %cst_26 {dimension_numbers = #tpu.dot_dimension_numbers<[1], [0], [0], [1], [0, 0, 1, 1], [], []>} : vector<576x64xbf16>, vector<64x16xbf16>, vector<576x16xf32> -> vector<576x16xf32>
    %43 = arith.truncf %42 : vector<576x16xf32> to vector<576x16xbf16>
    %44 = vector.extract_strided_slice %43 {offsets = [0, 0], sizes = [64, 16], strides = [1, 1]} : vector<576x16xbf16> to vector<64x16xbf16>
    %45 = vector.extract_strided_slice %43 {offsets = [64, 0], sizes = [64, 16], strides = [1, 1]} : vector<576x16xbf16> to vector<64x16xbf16>
    %46 = vector.extract_strided_slice %43 {offsets = [128, 0], sizes = [64, 16], strides = [1, 1]} : vector<576x16xbf16> to vector<64x16xbf16>
    %47 = vector.extract_strided_slice %43 {offsets = [192, 0], sizes = [64, 16], strides = [1, 1]} : vector<576x16xbf16> to vector<64x16xbf16>
    %48 = vector.extract_strided_slice %43 {offsets = [256, 0], sizes = [64, 16], strides = [1, 1]} : vector<576x16xbf16> to vector<64x16xbf16>
    %49 = vector.extract_strided_slice %43 {offsets = [320, 0], sizes = [64, 16], strides = [1, 1]} : vector<576x16xbf16> to vector<64x16xbf16>
    %50 = vector.extract_strided_slice %43 {offsets = [384, 0], sizes = [64, 16], strides = [1, 1]} : vector<576x16xbf16> to vector<64x16xbf16>
    %51 = vector.extract_strided_slice %43 {offsets = [448, 0], sizes = [64, 16], strides = [1, 1]} : vector<576x16xbf16> to vector<64x16xbf16>
    %52 = vector.extract_strided_slice %43 {offsets = [512, 0], sizes = [64, 16], strides = [1, 1]} : vector<576x16xbf16> to vector<64x16xbf16>
    %53 = tpu.concatenate %44, %45, %46, %47, %48, %49, %50, %51, %52 in 1 : vector<64x16xbf16>, vector<64x16xbf16>, vector<64x16xbf16>, vector<64x16xbf16>, vector<64x16xbf16>, vector<64x16xbf16>, vector<64x16xbf16>, vector<64x16xbf16>, vector<64x16xbf16> -> vector<64x144xbf16>
    %54 = tpu.concatenate %41, %53 in 0 : vector<64x144xbf16>, vector<64x144xbf16> -> vector<128x144xbf16>
    %c0_27 = arith.constant 0 : index
    %c0_28 = arith.constant 0 : index
    %c0_29 = arith.constant 0 : index
    %55 = vector.load %arg9[%c0_27, %c0_28, %c0_29] : memref<4x144x16xbf16, #tpu.memory_space<vmem>>, vector<1x144x16xbf16>
    %56 = vector.shape_cast %55 : vector<1x144x16xbf16> to vector<144x16xbf16>
    %cst_30 = arith.constant dense<0.000000e+00> : vector<128x16xf32>
    %57 = tpu.matmul %54, %56, %cst_30 {dimension_numbers = #tpu.dot_dimension_numbers<[1], [0], [0], [1], [0, 0, 1, 1], [], []>} : vector<128x144xbf16>, vector<144x16xbf16>, vector<128x16xf32> -> vector<128x16xf32>
    %58 = vector.extract_strided_slice %4 {offsets = [2, 0], sizes = [1, 16], strides = [1, 1]} : vector<12x16xf32> to vector<1x16xf32>
    %59 = vector.broadcast %58 : vector<1x16xf32> to vector<128x16xf32>
    %60 = arith.addf %57, %59 : vector<128x16xf32>
    %cst_31 = arith.constant 0.000000e+00 : f32
    %61 = vector.broadcast %cst_31 : f32 to vector<128x16xf32>
    %62 = arith.maximumf %60, %61 : vector<128x16xf32>
    %63 = arith.truncf %62 : vector<128x16xf32> to vector<128x16xbf16>
    %64 = vector.extract_strided_slice %63 {offsets = [0, 0], sizes = [64, 16], strides = [1, 1]} : vector<128x16xbf16> to vector<64x16xbf16>
    %65 = vector.extract_strided_slice %63 {offsets = [64, 0], sizes = [64, 16], strides = [1, 1]} : vector<128x16xbf16> to vector<64x16xbf16>
    %cst_32 = arith.constant dense<0.000000e+00> : vector<576x16xf32>
    %66 = tpu.matmul %0, %64, %cst_32 {dimension_numbers = #tpu.dot_dimension_numbers<[1], [0], [0], [1], [0, 0, 1, 1], [], []>} : vector<576x64xbf16>, vector<64x16xbf16>, vector<576x16xf32> -> vector<576x16xf32>
    %67 = arith.truncf %66 : vector<576x16xf32> to vector<576x16xbf16>
    %68 = vector.extract_strided_slice %67 {offsets = [0, 0], sizes = [64, 16], strides = [1, 1]} : vector<576x16xbf16> to vector<64x16xbf16>
    %69 = vector.extract_strided_slice %67 {offsets = [64, 0], sizes = [64, 16], strides = [1, 1]} : vector<576x16xbf16> to vector<64x16xbf16>
    %70 = vector.extract_strided_slice %67 {offsets = [128, 0], sizes = [64, 16], strides = [1, 1]} : vector<576x16xbf16> to vector<64x16xbf16>
    %71 = vector.extract_strided_slice %67 {offsets = [192, 0], sizes = [64, 16], strides = [1, 1]} : vector<576x16xbf16> to vector<64x16xbf16>
    %72 = vector.extract_strided_slice %67 {offsets = [256, 0], sizes = [64, 16], strides = [1, 1]} : vector<576x16xbf16> to vector<64x16xbf16>
    %73 = vector.extract_strided_slice %67 {offsets = [320, 0], sizes = [64, 16], strides = [1, 1]} : vector<576x16xbf16> to vector<64x16xbf16>
    %74 = vector.extract_strided_slice %67 {offsets = [384, 0], sizes = [64, 16], strides = [1, 1]} : vector<576x16xbf16> to vector<64x16xbf16>
    %75 = vector.extract_strided_slice %67 {offsets = [448, 0], sizes = [64, 16], strides = [1, 1]} : vector<576x16xbf16> to vector<64x16xbf16>
    %76 = vector.extract_strided_slice %67 {offsets = [512, 0], sizes = [64, 16], strides = [1, 1]} : vector<576x16xbf16> to vector<64x16xbf16>
    %77 = tpu.concatenate %68, %69, %70, %71, %72, %73, %74, %75, %76 in 1 : vector<64x16xbf16>, vector<64x16xbf16>, vector<64x16xbf16>, vector<64x16xbf16>, vector<64x16xbf16>, vector<64x16xbf16>, vector<64x16xbf16>, vector<64x16xbf16>, vector<64x16xbf16> -> vector<64x144xbf16>
    %cst_33 = arith.constant dense<0.000000e+00> : vector<576x16xf32>
    %78 = tpu.matmul %0, %65, %cst_33 {dimension_numbers = #tpu.dot_dimension_numbers<[1], [0], [0], [1], [0, 0, 1, 1], [], []>} : vector<576x64xbf16>, vector<64x16xbf16>, vector<576x16xf32> -> vector<576x16xf32>
    %79 = arith.truncf %78 : vector<576x16xf32> to vector<576x16xbf16>
    %80 = vector.extract_strided_slice %79 {offsets = [0, 0], sizes = [64, 16], strides = [1, 1]} : vector<576x16xbf16> to vector<64x16xbf16>
    %81 = vector.extract_strided_slice %79 {offsets = [64, 0], sizes = [64, 16], strides = [1, 1]} : vector<576x16xbf16> to vector<64x16xbf16>
    %82 = vector.extract_strided_slice %79 {offsets = [128, 0], sizes = [64, 16], strides = [1, 1]} : vector<576x16xbf16> to vector<64x16xbf16>
    %83 = vector.extract_strided_slice %79 {offsets = [192, 0], sizes = [64, 16], strides = [1, 1]} : vector<576x16xbf16> to vector<64x16xbf16>
    %84 = vector.extract_strided_slice %79 {offsets = [256, 0], sizes = [64, 16], strides = [1, 1]} : vector<576x16xbf16> to vector<64x16xbf16>
    %85 = vector.extract_strided_slice %79 {offsets = [320, 0], sizes = [64, 16], strides = [1, 1]} : vector<576x16xbf16> to vector<64x16xbf16>
    %86 = vector.extract_strided_slice %79 {offsets = [384, 0], sizes = [64, 16], strides = [1, 1]} : vector<576x16xbf16> to vector<64x16xbf16>
    %87 = vector.extract_strided_slice %79 {offsets = [448, 0], sizes = [64, 16], strides = [1, 1]} : vector<576x16xbf16> to vector<64x16xbf16>
    %88 = vector.extract_strided_slice %79 {offsets = [512, 0], sizes = [64, 16], strides = [1, 1]} : vector<576x16xbf16> to vector<64x16xbf16>
    %89 = tpu.concatenate %80, %81, %82, %83, %84, %85, %86, %87, %88 in 1 : vector<64x16xbf16>, vector<64x16xbf16>, vector<64x16xbf16>, vector<64x16xbf16>, vector<64x16xbf16>, vector<64x16xbf16>, vector<64x16xbf16>, vector<64x16xbf16>, vector<64x16xbf16> -> vector<64x144xbf16>
    %90 = tpu.concatenate %77, %89 in 0 : vector<64x144xbf16>, vector<64x144xbf16> -> vector<128x144xbf16>
    %c1 = arith.constant 1 : index
    %c0_34 = arith.constant 0 : index
    %c0_35 = arith.constant 0 : index
    %91 = vector.load %arg9[%c1, %c0_34, %c0_35] : memref<4x144x16xbf16, #tpu.memory_space<vmem>>, vector<1x144x16xbf16>
    %92 = vector.shape_cast %91 : vector<1x144x16xbf16> to vector<144x16xbf16>
    %cst_36 = arith.constant dense<0.000000e+00> : vector<128x16xf32>
    %93 = tpu.matmul %90, %92, %cst_36 {dimension_numbers = #tpu.dot_dimension_numbers<[1], [0], [0], [1], [0, 0, 1, 1], [], []>} : vector<128x144xbf16>, vector<144x16xbf16>, vector<128x16xf32> -> vector<128x16xf32>
    %94 = vector.extract_strided_slice %4 {offsets = [3, 0], sizes = [1, 16], strides = [1, 1]} : vector<12x16xf32> to vector<1x16xf32>
    %95 = vector.broadcast %94 : vector<1x16xf32> to vector<128x16xf32>
    %96 = arith.addf %93, %95 : vector<128x16xf32>
    %97 = arith.addf %96, %24 : vector<128x16xf32>
    %98 = arith.truncf %14 : vector<128x16xf32> to vector<128x16xbf16>
    %99 = vector.extract_strided_slice %98 {offsets = [0, 0], sizes = [64, 16], strides = [1, 1]} : vector<128x16xbf16> to vector<64x16xbf16>
    %100 = vector.extract_strided_slice %98 {offsets = [64, 0], sizes = [64, 16], strides = [1, 1]} : vector<128x16xbf16> to vector<64x16xbf16>
    %cst_37 = arith.constant dense<0.000000e+00> : vector<64x16xf32>
    %101 = tpu.matmul %1, %99, %cst_37 {dimension_numbers = #tpu.dot_dimension_numbers<[1], [0], [0], [1], [0, 0, 1, 1], [], []>} : vector<64x64xbf16>, vector<64x16xbf16>, vector<64x16xf32> -> vector<64x16xf32>
    %102 = vector.broadcast %2 : vector<64x1xf32> to vector<64x16xf32>
    %103 = arith.mulf %101, %102 : vector<64x16xf32>
    %cst_38 = arith.constant dense<0.000000e+00> : vector<64x16xf32>
    %104 = tpu.matmul %1, %100, %cst_38 {dimension_numbers = #tpu.dot_dimension_numbers<[1], [0], [0], [1], [0, 0, 1, 1], [], []>} : vector<64x64xbf16>, vector<64x16xbf16>, vector<64x16xf32> -> vector<64x16xf32>
    %105 = vector.broadcast %2 : vector<64x1xf32> to vector<64x16xf32>
    %106 = arith.mulf %104, %105 : vector<64x16xf32>
    %107 = tpu.concatenate %103, %106 in 0 : vector<64x16xf32>, vector<64x16xf32> -> vector<128x16xf32>
    %108 = vector.extract_strided_slice %4 {offsets = [4, 0], sizes = [1, 16], strides = [1, 1]} : vector<12x16xf32> to vector<1x16xf32>
    %109 = vector.broadcast %108 : vector<1x16xf32> to vector<128x16xf32>
    %110 = arith.mulf %107, %109 : vector<128x16xf32>
    %111 = vector.extract_strided_slice %4 {offsets = [5, 0], sizes = [1, 16], strides = [1, 1]} : vector<12x16xf32> to vector<1x16xf32>
    %112 = vector.broadcast %111 : vector<1x16xf32> to vector<128x16xf32>
    %113 = arith.addf %110, %112 : vector<128x16xf32>
    %cst_39 = arith.constant 0.000000e+00 : f32
    %114 = vector.broadcast %cst_39 : f32 to vector<128x16xf32>
    %115 = arith.maximumf %24, %114 : vector<128x16xf32>
    %116 = arith.truncf %115 : vector<128x16xf32> to vector<128x16xbf16>
    %117 = vector.extract_strided_slice %116 {offsets = [0, 0], sizes = [64, 16], strides = [1, 1]} : vector<128x16xbf16> to vector<64x16xbf16>
    %118 = vector.extract_strided_slice %116 {offsets = [64, 0], sizes = [64, 16], strides = [1, 1]} : vector<128x16xbf16> to vector<64x16xbf16>
    %cst_40 = arith.constant dense<0.000000e+00> : vector<576x16xf32>
    %119 = tpu.matmul %0, %117, %cst_40 {dimension_numbers = #tpu.dot_dimension_numbers<[1], [0], [0], [1], [0, 0, 1, 1], [], []>} : vector<576x64xbf16>, vector<64x16xbf16>, vector<576x16xf32> -> vector<576x16xf32>
    %120 = arith.truncf %119 : vector<576x16xf32> to vector<576x16xbf16>
    %121 = vector.extract_strided_slice %120 {offsets = [0, 0], sizes = [64, 16], strides = [1, 1]} : vector<576x16xbf16> to vector<64x16xbf16>
    %122 = vector.extract_strided_slice %120 {offsets = [64, 0], sizes = [64, 16], strides = [1, 1]} : vector<576x16xbf16> to vector<64x16xbf16>
    %123 = vector.extract_strided_slice %120 {offsets = [128, 0], sizes = [64, 16], strides = [1, 1]} : vector<576x16xbf16> to vector<64x16xbf16>
    %124 = vector.extract_strided_slice %120 {offsets = [192, 0], sizes = [64, 16], strides = [1, 1]} : vector<576x16xbf16> to vector<64x16xbf16>
    %125 = vector.extract_strided_slice %120 {offsets = [256, 0], sizes = [64, 16], strides = [1, 1]} : vector<576x16xbf16> to vector<64x16xbf16>
    %126 = vector.extract_strided_slice %120 {offsets = [320, 0], sizes = [64, 16], strides = [1, 1]} : vector<576x16xbf16> to vector<64x16xbf16>
    %127 = vector.extract_strided_slice %120 {offsets = [384, 0], sizes = [64, 16], strides = [1, 1]} : vector<576x16xbf16> to vector<64x16xbf16>
    %128 = vector.extract_strided_slice %120 {offsets = [448, 0], sizes = [64, 16], strides = [1, 1]} : vector<576x16xbf16> to vector<64x16xbf16>
    %129 = vector.extract_strided_slice %120 {offsets = [512, 0], sizes = [64, 16], strides = [1, 1]} : vector<576x16xbf16> to vector<64x16xbf16>
    %130 = tpu.concatenate %121, %122, %123, %124, %125, %126, %127, %128, %129 in 1 : vector<64x16xbf16>, vector<64x16xbf16>, vector<64x16xbf16>, vector<64x16xbf16>, vector<64x16xbf16>, vector<64x16xbf16>, vector<64x16xbf16>, vector<64x16xbf16>, vector<64x16xbf16> -> vector<64x144xbf16>
    %cst_41 = arith.constant dense<0.000000e+00> : vector<576x16xf32>
    %131 = tpu.matmul %0, %118, %cst_41 {dimension_numbers = #tpu.dot_dimension_numbers<[1], [0], [0], [1], [0, 0, 1, 1], [], []>} : vector<576x64xbf16>, vector<64x16xbf16>, vector<576x16xf32> -> vector<576x16xf32>
    %132 = arith.truncf %131 : vector<576x16xf32> to vector<576x16xbf16>
    %133 = vector.extract_strided_slice %132 {offsets = [0, 0], sizes = [64, 16], strides = [1, 1]} : vector<576x16xbf16> to vector<64x16xbf16>
    %134 = vector.extract_strided_slice %132 {offsets = [64, 0], sizes = [64, 16], strides = [1, 1]} : vector<576x16xbf16> to vector<64x16xbf16>
    %135 = vector.extract_strided_slice %132 {offsets = [128, 0], sizes = [64, 16], strides = [1, 1]} : vector<576x16xbf16> to vector<64x16xbf16>
    %136 = vector.extract_strided_slice %132 {offsets = [192, 0], sizes = [64, 16], strides = [1, 1]} : vector<576x16xbf16> to vector<64x16xbf16>
    %137 = vector.extract_strided_slice %132 {offsets = [256, 0], sizes = [64, 16], strides = [1, 1]} : vector<576x16xbf16> to vector<64x16xbf16>
    %138 = vector.extract_strided_slice %132 {offsets = [320, 0], sizes = [64, 16], strides = [1, 1]} : vector<576x16xbf16> to vector<64x16xbf16>
    %139 = vector.extract_strided_slice %132 {offsets = [384, 0], sizes = [64, 16], strides = [1, 1]} : vector<576x16xbf16> to vector<64x16xbf16>
    %140 = vector.extract_strided_slice %132 {offsets = [448, 0], sizes = [64, 16], strides = [1, 1]} : vector<576x16xbf16> to vector<64x16xbf16>
    %141 = vector.extract_strided_slice %132 {offsets = [512, 0], sizes = [64, 16], strides = [1, 1]} : vector<576x16xbf16> to vector<64x16xbf16>
    %142 = tpu.concatenate %133, %134, %135, %136, %137, %138, %139, %140, %141 in 1 : vector<64x16xbf16>, vector<64x16xbf16>, vector<64x16xbf16>, vector<64x16xbf16>, vector<64x16xbf16>, vector<64x16xbf16>, vector<64x16xbf16>, vector<64x16xbf16>, vector<64x16xbf16> -> vector<64x144xbf16>
    %143 = tpu.concatenate %130, %142 in 0 : vector<64x144xbf16>, vector<64x144xbf16> -> vector<128x144xbf16>
    %c2 = arith.constant 2 : index
    %c0_42 = arith.constant 0 : index
    %c0_43 = arith.constant 0 : index
    %144 = vector.load %arg9[%c2, %c0_42, %c0_43] : memref<4x144x16xbf16, #tpu.memory_space<vmem>>, vector<1x144x16xbf16>
    %145 = vector.shape_cast %144 : vector<1x144x16xbf16> to vector<144x16xbf16>
    %cst_44 = arith.constant dense<0.000000e+00> : vector<128x16xf32>
    %146 = tpu.matmul %143, %145, %cst_44 {dimension_numbers = #tpu.dot_dimension_numbers<[1], [0], [0], [1], [0, 0, 1, 1], [], []>} : vector<128x144xbf16>, vector<144x16xbf16>, vector<128x16xf32> -> vector<128x16xf32>
    %147 = vector.extract_strided_slice %4 {offsets = [6, 0], sizes = [1, 16], strides = [1, 1]} : vector<12x16xf32> to vector<1x16xf32>
    %148 = vector.broadcast %147 : vector<1x16xf32> to vector<128x16xf32>
    %149 = arith.addf %146, %148 : vector<128x16xf32>
    %cst_45 = arith.constant 0.000000e+00 : f32
    %150 = vector.broadcast %cst_45 : f32 to vector<128x16xf32>
    %151 = arith.maximumf %149, %150 : vector<128x16xf32>
    %152 = arith.truncf %151 : vector<128x16xf32> to vector<128x16xbf16>
    %153 = vector.extract_strided_slice %152 {offsets = [0, 0], sizes = [64, 16], strides = [1, 1]} : vector<128x16xbf16> to vector<64x16xbf16>
    %154 = vector.extract_strided_slice %152 {offsets = [64, 0], sizes = [64, 16], strides = [1, 1]} : vector<128x16xbf16> to vector<64x16xbf16>
    %cst_46 = arith.constant dense<0.000000e+00> : vector<576x16xf32>
    %155 = tpu.matmul %0, %153, %cst_46 {dimension_numbers = #tpu.dot_dimension_numbers<[1], [0], [0], [1], [0, 0, 1, 1], [], []>} : vector<576x64xbf16>, vector<64x16xbf16>, vector<576x16xf32> -> vector<576x16xf32>
    %156 = arith.truncf %155 : vector<576x16xf32> to vector<576x16xbf16>
    %157 = vector.extract_strided_slice %156 {offsets = [0, 0], sizes = [64, 16], strides = [1, 1]} : vector<576x16xbf16> to vector<64x16xbf16>
    %158 = vector.extract_strided_slice %156 {offsets = [64, 0], sizes = [64, 16], strides = [1, 1]} : vector<576x16xbf16> to vector<64x16xbf16>
    %159 = vector.extract_strided_slice %156 {offsets = [128, 0], sizes = [64, 16], strides = [1, 1]} : vector<576x16xbf16> to vector<64x16xbf16>
    %160 = vector.extract_strided_slice %156 {offsets = [192, 0], sizes = [64, 16], strides = [1, 1]} : vector<576x16xbf16> to vector<64x16xbf16>
    %161 = vector.extract_strided_slice %156 {offsets = [256, 0], sizes = [64, 16], strides = [1, 1]} : vector<576x16xbf16> to vector<64x16xbf16>
    %162 = vector.extract_strided_slice %156 {offsets = [320, 0], sizes = [64, 16], strides = [1, 1]} : vector<576x16xbf16> to vector<64x16xbf16>
    %163 = vector.extract_strided_slice %156 {offsets = [384, 0], sizes = [64, 16], strides = [1, 1]} : vector<576x16xbf16> to vector<64x16xbf16>
    %164 = vector.extract_strided_slice %156 {offsets = [448, 0], sizes = [64, 16], strides = [1, 1]} : vector<576x16xbf16> to vector<64x16xbf16>
    %165 = vector.extract_strided_slice %156 {offsets = [512, 0], sizes = [64, 16], strides = [1, 1]} : vector<576x16xbf16> to vector<64x16xbf16>
    %166 = tpu.concatenate %157, %158, %159, %160, %161, %162, %163, %164, %165 in 1 : vector<64x16xbf16>, vector<64x16xbf16>, vector<64x16xbf16>, vector<64x16xbf16>, vector<64x16xbf16>, vector<64x16xbf16>, vector<64x16xbf16>, vector<64x16xbf16>, vector<64x16xbf16> -> vector<64x144xbf16>
    %cst_47 = arith.constant dense<0.000000e+00> : vector<576x16xf32>
    %167 = tpu.matmul %0, %154, %cst_47 {dimension_numbers = #tpu.dot_dimension_numbers<[1], [0], [0], [1], [0, 0, 1, 1], [], []>} : vector<576x64xbf16>, vector<64x16xbf16>, vector<576x16xf32> -> vector<576x16xf32>
    %168 = arith.truncf %167 : vector<576x16xf32> to vector<576x16xbf16>
    %169 = vector.extract_strided_slice %168 {offsets = [0, 0], sizes = [64, 16], strides = [1, 1]} : vector<576x16xbf16> to vector<64x16xbf16>
    %170 = vector.extract_strided_slice %168 {offsets = [64, 0], sizes = [64, 16], strides = [1, 1]} : vector<576x16xbf16> to vector<64x16xbf16>
    %171 = vector.extract_strided_slice %168 {offsets = [128, 0], sizes = [64, 16], strides = [1, 1]} : vector<576x16xbf16> to vector<64x16xbf16>
    %172 = vector.extract_strided_slice %168 {offsets = [192, 0], sizes = [64, 16], strides = [1, 1]} : vector<576x16xbf16> to vector<64x16xbf16>
    %173 = vector.extract_strided_slice %168 {offsets = [256, 0], sizes = [64, 16], strides = [1, 1]} : vector<576x16xbf16> to vector<64x16xbf16>
    %174 = vector.extract_strided_slice %168 {offsets = [320, 0], sizes = [64, 16], strides = [1, 1]} : vector<576x16xbf16> to vector<64x16xbf16>
    %175 = vector.extract_strided_slice %168 {offsets = [384, 0], sizes = [64, 16], strides = [1, 1]} : vector<576x16xbf16> to vector<64x16xbf16>
    %176 = vector.extract_strided_slice %168 {offsets = [448, 0], sizes = [64, 16], strides = [1, 1]} : vector<576x16xbf16> to vector<64x16xbf16>
    %177 = vector.extract_strided_slice %168 {offsets = [512, 0], sizes = [64, 16], strides = [1, 1]} : vector<576x16xbf16> to vector<64x16xbf16>
    %178 = tpu.concatenate %169, %170, %171, %172, %173, %174, %175, %176, %177 in 1 : vector<64x16xbf16>, vector<64x16xbf16>, vector<64x16xbf16>, vector<64x16xbf16>, vector<64x16xbf16>, vector<64x16xbf16>, vector<64x16xbf16>, vector<64x16xbf16>, vector<64x16xbf16> -> vector<64x144xbf16>
    %179 = tpu.concatenate %166, %178 in 0 : vector<64x144xbf16>, vector<64x144xbf16> -> vector<128x144xbf16>
    %c3 = arith.constant 3 : index
    %c0_48 = arith.constant 0 : index
    %c0_49 = arith.constant 0 : index
    %180 = vector.load %arg9[%c3, %c0_48, %c0_49] : memref<4x144x16xbf16, #tpu.memory_space<vmem>>, vector<1x144x16xbf16>
    %181 = vector.shape_cast %180 : vector<1x144x16xbf16> to vector<144x16xbf16>
    %cst_50 = arith.constant dense<0.000000e+00> : vector<128x16xf32>
    %182 = tpu.matmul %179, %181, %cst_50 {dimension_numbers = #tpu.dot_dimension_numbers<[1], [0], [0], [1], [0, 0, 1, 1], [], []>} : vector<128x144xbf16>, vector<144x16xbf16>, vector<128x16xf32> -> vector<128x16xf32>
    %183 = vector.extract_strided_slice %4 {offsets = [7, 0], sizes = [1, 16], strides = [1, 1]} : vector<12x16xf32> to vector<1x16xf32>
    %184 = vector.broadcast %183 : vector<1x16xf32> to vector<128x16xf32>
    %185 = arith.addf %182, %184 : vector<128x16xf32>
    %186 = arith.addf %113, %185 : vector<128x16xf32>
    %187 = arith.truncf %97 : vector<128x16xf32> to vector<128x16xbf16>
    %188 = vector.extract_strided_slice %187 {offsets = [0, 0], sizes = [64, 16], strides = [1, 1]} : vector<128x16xbf16> to vector<64x16xbf16>
    %189 = vector.extract_strided_slice %187 {offsets = [64, 0], sizes = [64, 16], strides = [1, 1]} : vector<128x16xbf16> to vector<64x16xbf16>
    %cst_51 = arith.constant dense<0.000000e+00> : vector<576x16xf32>
    %190 = tpu.matmul %0, %188, %cst_51 {dimension_numbers = #tpu.dot_dimension_numbers<[1], [0], [0], [1], [0, 0, 1, 1], [], []>} : vector<576x64xbf16>, vector<64x16xbf16>, vector<576x16xf32> -> vector<576x16xf32>
    %191 = vector.broadcast %3 : vector<576x1xf32> to vector<576x16xf32>
    %192 = arith.addf %190, %191 : vector<576x16xf32>
    %193 = vector.extract_strided_slice %192 {offsets = [0, 0], sizes = [64, 16], strides = [1, 1]} : vector<576x16xf32> to vector<64x16xf32>
    %194 = vector.extract_strided_slice %192 {offsets = [64, 0], sizes = [64, 16], strides = [1, 1]} : vector<576x16xf32> to vector<64x16xf32>
    %195 = arith.maximumf %193, %194 : vector<64x16xf32>
    %196 = vector.extract_strided_slice %192 {offsets = [128, 0], sizes = [64, 16], strides = [1, 1]} : vector<576x16xf32> to vector<64x16xf32>
    %197 = arith.maximumf %195, %196 : vector<64x16xf32>
    %198 = vector.extract_strided_slice %192 {offsets = [192, 0], sizes = [64, 16], strides = [1, 1]} : vector<576x16xf32> to vector<64x16xf32>
    %199 = arith.maximumf %197, %198 : vector<64x16xf32>
    %200 = vector.extract_strided_slice %192 {offsets = [256, 0], sizes = [64, 16], strides = [1, 1]} : vector<576x16xf32> to vector<64x16xf32>
    %201 = arith.maximumf %199, %200 : vector<64x16xf32>
    %202 = vector.extract_strided_slice %192 {offsets = [320, 0], sizes = [64, 16], strides = [1, 1]} : vector<576x16xf32> to vector<64x16xf32>
    %203 = arith.maximumf %201, %202 : vector<64x16xf32>
    %204 = vector.extract_strided_slice %192 {offsets = [384, 0], sizes = [64, 16], strides = [1, 1]} : vector<576x16xf32> to vector<64x16xf32>
    %205 = arith.maximumf %203, %204 : vector<64x16xf32>
    %206 = vector.extract_strided_slice %192 {offsets = [448, 0], sizes = [64, 16], strides = [1, 1]} : vector<576x16xf32> to vector<64x16xf32>
    %207 = arith.maximumf %205, %206 : vector<64x16xf32>
    %208 = vector.extract_strided_slice %192 {offsets = [512, 0], sizes = [64, 16], strides = [1, 1]} : vector<576x16xf32> to vector<64x16xf32>
    %209 = arith.maximumf %207, %208 : vector<64x16xf32>
    %cst_52 = arith.constant dense<0.000000e+00> : vector<576x16xf32>
    %210 = tpu.matmul %0, %189, %cst_52 {dimension_numbers = #tpu.dot_dimension_numbers<[1], [0], [0], [1], [0, 0, 1, 1], [], []>} : vector<576x64xbf16>, vector<64x16xbf16>, vector<576x16xf32> -> vector<576x16xf32>
    %211 = vector.broadcast %3 : vector<576x1xf32> to vector<576x16xf32>
    %212 = arith.addf %210, %211 : vector<576x16xf32>
    %213 = vector.extract_strided_slice %212 {offsets = [0, 0], sizes = [64, 16], strides = [1, 1]} : vector<576x16xf32> to vector<64x16xf32>
    %214 = vector.extract_strided_slice %212 {offsets = [64, 0], sizes = [64, 16], strides = [1, 1]} : vector<576x16xf32> to vector<64x16xf32>
    %215 = arith.maximumf %213, %214 : vector<64x16xf32>
    %216 = vector.extract_strided_slice %212 {offsets = [128, 0], sizes = [64, 16], strides = [1, 1]} : vector<576x16xf32> to vector<64x16xf32>
    %217 = arith.maximumf %215, %216 : vector<64x16xf32>
    %218 = vector.extract_strided_slice %212 {offsets = [192, 0], sizes = [64, 16], strides = [1, 1]} : vector<576x16xf32> to vector<64x16xf32>
    %219 = arith.maximumf %217, %218 : vector<64x16xf32>
    %220 = vector.extract_strided_slice %212 {offsets = [256, 0], sizes = [64, 16], strides = [1, 1]} : vector<576x16xf32> to vector<64x16xf32>
    %221 = arith.maximumf %219, %220 : vector<64x16xf32>
    %222 = vector.extract_strided_slice %212 {offsets = [320, 0], sizes = [64, 16], strides = [1, 1]} : vector<576x16xf32> to vector<64x16xf32>
    %223 = arith.maximumf %221, %222 : vector<64x16xf32>
    %224 = vector.extract_strided_slice %212 {offsets = [384, 0], sizes = [64, 16], strides = [1, 1]} : vector<576x16xf32> to vector<64x16xf32>
    %225 = arith.maximumf %223, %224 : vector<64x16xf32>
    %226 = vector.extract_strided_slice %212 {offsets = [448, 0], sizes = [64, 16], strides = [1, 1]} : vector<576x16xf32> to vector<64x16xf32>
    %227 = arith.maximumf %225, %226 : vector<64x16xf32>
    %228 = vector.extract_strided_slice %212 {offsets = [512, 0], sizes = [64, 16], strides = [1, 1]} : vector<576x16xf32> to vector<64x16xf32>
    %229 = arith.maximumf %227, %228 : vector<64x16xf32>
    %230 = tpu.concatenate %209, %229 in 0 : vector<64x16xf32>, vector<64x16xf32> -> vector<128x16xf32>
    %231 = vector.extract_strided_slice %4 {offsets = [8, 0], sizes = [1, 16], strides = [1, 1]} : vector<12x16xf32> to vector<1x16xf32>
    %232 = vector.broadcast %231 : vector<1x16xf32> to vector<128x16xf32>
    %233 = arith.mulf %230, %232 : vector<128x16xf32>
    %234 = vector.extract_strided_slice %4 {offsets = [9, 0], sizes = [1, 16], strides = [1, 1]} : vector<12x16xf32> to vector<1x16xf32>
    %235 = vector.broadcast %234 : vector<1x16xf32> to vector<128x16xf32>
    %236 = arith.addf %233, %235 : vector<128x16xf32>
    %237 = arith.addf %236, %14 : vector<128x16xf32>
    %238 = arith.truncf %186 : vector<128x16xf32> to vector<128x16xbf16>
    %239 = vector.extract_strided_slice %238 {offsets = [0, 0], sizes = [64, 16], strides = [1, 1]} : vector<128x16xbf16> to vector<64x16xbf16>
    %240 = vector.extract_strided_slice %238 {offsets = [64, 0], sizes = [64, 16], strides = [1, 1]} : vector<128x16xbf16> to vector<64x16xbf16>
    %cst_53 = arith.constant dense<0.000000e+00> : vector<64x16xf32>
    %241 = tpu.matmul %1, %239, %cst_53 {dimension_numbers = #tpu.dot_dimension_numbers<[1], [0], [0], [1], [0, 0, 1, 1], [], []>} : vector<64x64xbf16>, vector<64x16xbf16>, vector<64x16xf32> -> vector<64x16xf32>
    %242 = vector.broadcast %2 : vector<64x1xf32> to vector<64x16xf32>
    %243 = arith.mulf %241, %242 : vector<64x16xf32>
    %cst_54 = arith.constant dense<0.000000e+00> : vector<64x16xf32>
    %244 = tpu.matmul %1, %240, %cst_54 {dimension_numbers = #tpu.dot_dimension_numbers<[1], [0], [0], [1], [0, 0, 1, 1], [], []>} : vector<64x64xbf16>, vector<64x16xbf16>, vector<64x16xf32> -> vector<64x16xf32>
    %245 = vector.broadcast %2 : vector<64x1xf32> to vector<64x16xf32>
    %246 = arith.mulf %244, %245 : vector<64x16xf32>
    %247 = tpu.concatenate %243, %246 in 0 : vector<64x16xf32>, vector<64x16xf32> -> vector<128x16xf32>
    %248 = vector.extract_strided_slice %4 {offsets = [10, 0], sizes = [1, 16], strides = [1, 1]} : vector<12x16xf32> to vector<1x16xf32>
    %249 = vector.broadcast %248 : vector<1x16xf32> to vector<128x16xf32>
    %250 = arith.mulf %247, %249 : vector<128x16xf32>
    %251 = vector.extract_strided_slice %4 {offsets = [11, 0], sizes = [1, 16], strides = [1, 1]} : vector<12x16xf32> to vector<1x16xf32>
    %252 = vector.broadcast %251 : vector<1x16xf32> to vector<128x16xf32>
    %253 = arith.addf %250, %252 : vector<128x16xf32>
    %254 = arith.addf %253, %24 : vector<128x16xf32>
    %255 = vector.shape_cast %97 : vector<128x16xf32> to vector<2x8x8x16xf32>
    %c0_55 = arith.constant 0 : index
    %c0_56 = arith.constant 0 : index
    %c0_57 = arith.constant 0 : index
    %c0_58 = arith.constant 0 : index
    %256 = vector.load %arg11[%c0_55, %c0_56, %c0_57, %c0_58] : memref<2x8x8x64xf32, #tpu.memory_space<vmem>>, vector<2x8x8x16xf32>
    tpu.vector_store %arg11[%c0_55, %c0_56, %c0_57, %c0_58], %255 {strides = array<i32>} : memref<2x8x8x64xf32, #tpu.memory_space<vmem>>, vector<2x8x8x16xf32>,
    %257 = vector.shape_cast %186 : vector<128x16xf32> to vector<2x8x8x16xf32>
    %c0_59 = arith.constant 0 : index
    %c0_60 = arith.constant 0 : index
    %c0_61 = arith.constant 0 : index
    %c16 = arith.constant 16 : index
    %258 = vector.load %arg11[%c0_59, %c0_60, %c0_61, %c16] : memref<2x8x8x64xf32, #tpu.memory_space<vmem>>, vector<2x8x8x16xf32>
    tpu.vector_store %arg11[%c0_59, %c0_60, %c0_61, %c16], %257 {strides = array<i32>} : memref<2x8x8x64xf32, #tpu.memory_space<vmem>>, vector<2x8x8x16xf32>,
    %259 = vector.shape_cast %237 : vector<128x16xf32> to vector<2x8x8x16xf32>
    %c0_62 = arith.constant 0 : index
    %c0_63 = arith.constant 0 : index
    %c0_64 = arith.constant 0 : index
    %c32 = arith.constant 32 : index
    %260 = vector.load %arg11[%c0_62, %c0_63, %c0_64, %c32] : memref<2x8x8x64xf32, #tpu.memory_space<vmem>>, vector<2x8x8x16xf32>
    tpu.vector_store %arg11[%c0_62, %c0_63, %c0_64, %c32], %259 {strides = array<i32>} : memref<2x8x8x64xf32, #tpu.memory_space<vmem>>, vector<2x8x8x16xf32>,
    %261 = vector.shape_cast %254 : vector<128x16xf32> to vector<2x8x8x16xf32>
    %c0_65 = arith.constant 0 : index
    %c0_66 = arith.constant 0 : index
    %c0_67 = arith.constant 0 : index
    %c48 = arith.constant 48 : index
    %262 = vector.load %arg11[%c0_65, %c0_66, %c0_67, %c48] : memref<2x8x8x64xf32, #tpu.memory_space<vmem>>, vector<2x8x8x16xf32>
    tpu.vector_store %arg11[%c0_65, %c0_66, %c0_67, %c48], %261 {strides = array<i32>} : memref<2x8x8x64xf32, #tpu.memory_space<vmem>>, vector<2x8x8x16xf32>,
    return
  }
  func.func @transform_0(%arg0: i32) -> (i32, i32, i32, i32) {
    %c0_i32 = arith.constant 0 : i32
    %c0_i32_0 = arith.constant 0 : i32
    %c0_i32_1 = arith.constant 0 : i32
    %c0_i32_2 = arith.constant 0 : i32
    return %arg0, %c0_i32, %c0_i32_0, %c0_i32_1 : i32, i32, i32, i32
  }
  func.func @transform_1(%arg0: i32) -> (i32, i32, i32, i32) {
    %c0_i32 = arith.constant 0 : i32
    %c0_i32_0 = arith.constant 0 : i32
    %c0_i32_1 = arith.constant 0 : i32
    %c0_i32_2 = arith.constant 0 : i32
    return %arg0, %c0_i32, %c0_i32_0, %c0_i32_1 : i32, i32, i32, i32
  }
  func.func @transform_2(%arg0: i32) -> (i32, i32) {
    %c0_i32 = arith.constant 0 : i32
    %c0_i32_0 = arith.constant 0 : i32
    %c0_i32_1 = arith.constant 0 : i32
    return %c0_i32, %c0_i32_0 : i32, i32
  }
  func.func @transform_3(%arg0: i32) -> (i32, i32) {
    %c0_i32 = arith.constant 0 : i32
    %c0_i32_0 = arith.constant 0 : i32
    %c0_i32_1 = arith.constant 0 : i32
    return %c0_i32, %c0_i32_0 : i32, i32
  }
  func.func @transform_4(%arg0: i32) -> (i32, i32) {
    %c0_i32 = arith.constant 0 : i32
    %c0_i32_0 = arith.constant 0 : i32
    %c0_i32_1 = arith.constant 0 : i32
    return %c0_i32, %c0_i32_0 : i32, i32
  }
  func.func @transform_5(%arg0: i32) -> (i32, i32) {
    %c0_i32 = arith.constant 0 : i32
    %c0_i32_0 = arith.constant 0 : i32
    %c0_i32_1 = arith.constant 0 : i32
    return %c0_i32, %c0_i32_0 : i32, i32
  }
  func.func @transform_6(%arg0: i32) -> (i32, i32) {
    %c0_i32 = arith.constant 0 : i32
    %c0_i32_0 = arith.constant 0 : i32
    %c0_i32_1 = arith.constant 0 : i32
    return %c0_i32, %c0_i32_0 : i32, i32
  }
  func.func @transform_7(%arg0: i32) -> (i32, i32) {
    %c0_i32 = arith.constant 0 : i32
    %c0_i32_0 = arith.constant 0 : i32
    %c0_i32_1 = arith.constant 0 : i32
    return %c0_i32, %c0_i32_0 : i32, i32
  }
  func.func @transform_8(%arg0: i32) -> (i32, i32, i32) {
    %c0_i32 = arith.constant 0 : i32
    %c0_i32_0 = arith.constant 0 : i32
    %c0_i32_1 = arith.constant 0 : i32
    %c0_i32_2 = arith.constant 0 : i32
    return %c0_i32, %c0_i32_0, %c0_i32_1 : i32, i32, i32
  }
  func.func @transform_9(%arg0: i32) -> (i32, i32) {
    %c0_i32 = arith.constant 0 : i32
    %c0_i32_0 = arith.constant 0 : i32
    %c0_i32_1 = arith.constant 0 : i32
    return %c0_i32, %c0_i32_0 : i32, i32
  }
  func.func @transform_10(%arg0: i32) -> (i32, i32, i32, i32) {
    %c0_i32 = arith.constant 0 : i32
    %c0_i32_0 = arith.constant 0 : i32
    %c0_i32_1 = arith.constant 0 : i32
    %c0_i32_2 = arith.constant 0 : i32
    return %arg0, %c0_i32, %c0_i32_0, %c0_i32_1 : i32, i32, i32, i32
  }
}

</mosaic_0001>

<bundles_post_ra>
// kernel: tpu_custom_call.1
= control target key start
LH: loop header
LB: loop body
LE: loop exit
PB: predicated region body
PF: predicated region fallthrough
CT: control target
= control target key end

     0   :  { %s15268_s0 = inlined_call_operand.vmem [shape: f32[4,8,8,8], index: 0, kind: input, shape index: {}]   ;;  %s15269_s1 = inlined_call_operand.vmem [shape: f32[4,8,8,16], index: 1, kind: input, shape index: {}]   ;;  %s15270_s2 = inlined_call_operand.vmem [shape: bf16[576,64], index: 2, kind: input, shape index: {}]   ;;  %s15271_s3 = inlined_call_operand.vmem [shape: bf16[64,64], index: 3, kind: input, shape index: {}]   ;;  %s15272_s4 = inlined_call_operand.vmem [shape: f32[64,1], index: 4, kind: input, shape index: {}]   ;;  %s15273_s5 = inlined_call_operand.vmem [shape: f32[576,1], index: 5, kind: input, shape index: {}]   ;;  %s15274_s6 = inlined_call_operand.vmem [shape: bf16[8,16], index: 6, kind: input, shape index: {}]   ;;  %s15275_s7 = inlined_call_operand.vmem [shape: bf16[16,16], index: 7, kind: input, shape index: {}]   ;;  %s15276_s8 = inlined_call_operand.vmem [shape: bf16[4,144,16], index: 8, kind: input, shape index: {}]   ;;  %s15277_s9 = inlined_call_operand.vmem [shape: f32[12,16], index: 9, kind: input, shape index: {}]   ;;  %s15278_s10 = inlined_call_operand.hbm [shape: f32[4,8,8,64], index: 10, kind: output, shape index: {}]  }
   0x1   :  { %15492 = sst [smem:[#allocation141_spill]] %s15268_s0 }
   0x2   :  { %15493 = sst [smem:[#allocation142_spill]] %s15269_s1 }
   0x3   :  { %15494 = sst [smem:[#allocation143_spill]] %s15274_s6 }
   0x4   :  { %15 = vsyncpa [#allocation3], 0 }
   0x5   :  { %17 = vsyncpa [#allocation3 + $0x1], 0  ;;  %s10507_s13 = smov 0   ;;  %s10509_s14 = smov 0  }
   0x6   :  { %s10511_s15 = smov 0   ;;  %s10513_s16 = smov 0  }
   0x7 LB: > { %s10528_s17 = sadd.s32 4294967295, %s10439_s16   ;;  %s8168_s18 = sadd.s32 4294967294, %s10439_s16   ;;  %s10439_s16 = sphi %s10513_s16, %s16072_s16   ;;  %s10435_s15 = sphi %s10511_s15, %s16071_s15   ;;  %s10431_s14 = sphi %s10509_s14, %s16070_s14   ;;  %s10427_s13 = sphi %s10507_s13, %s16069_s13  }
   0x8   : > { %s10532_s19 = sadd.s32 1, %s10439_s16   ;;  %s250_s20 = sadd.s32 1, %s10435_s15 }
   0x9   : > { %s247_s21 = ssub.s32 %s10439_s16, %s10532_s19  ;;  %p260_p0 = scmp.ne.s32.totalorder %s10435_s15, %s10431_s14 }
   0xa   : > { %p248_p1 = scmp.eq.s32.totalorder %s247_s21, 0  ;;  %p261_p2 = scmp.eq.s32.totalorder %s10528_s17, 1 }
   0xb   : > { %p266_p3 = scmp.ne.s32.totalorder %s10431_s14, %s10427_s13  ;;  %p267_p4 = scmp.eq.s32.totalorder %s8168_s18, 1 }
   0xc   : > { %s10543_s22 = scalar_select %p248_p1, %s10435_s15, %s250_s20  }
   0xd   : > { %p10545_p5 = por %p261_p2, %p260_p0  ;;  %p10549_p6 = por %p267_p4, %p266_p3 }
   0xe   : > { %p8171_p7 = scmp.ge.s32.totalorder %s10439_s16, 1  ;;  %p329_p8 = scmp.lt.s32.totalorder %s10439_s16, 3 }
  0x10   : > { %p330_p9 = pnand %p8171_p7, %p329_p8 }
  0x12   : > { %333 = sbr.rel (%p330_p9) target bundleno = 3141 (0xc45), region = 60 }
  0x17   : > { %s15497_s6 = sld [smem:[#allocation143_spill]]  ;;  %vm622_vm0 = vcmask 1043456   ;;  %s8173_s27 = sshll.u32 %s10528_s17, 1  ;;  %vm597_vm1 = vcmask 64512   ;;  %v10146_v42 = vld [vmem:[%s15275_s7] sm:$0xff]   ;;  %vm775_vm2 = vcmask 130048  }
  0x18   : > { %p375_p10 = scmp.lt.s32.totalorder %s8173_s27, 3  ;;  %s15498_s0 = sld [smem:[#allocation141_spill]]  ;;  %9212 = vmatprep.subr.bf16.mxu1 %v10146_v42  ;;  %v10617_v63 = vld [vmem:[%s15270_s2] sm:$0xff]   ;;  %vm1101_vm3 = vcmask 523264   ;;  %vm1663_vm4 = vcmask 261120   ;;  %vm1672_vm5 = vcmask 392192  }
  0x19   : > { %s15499_s1 = sld [smem:[#allocation142_spill]]  ;;  %9213 = vmatpush3.bf16.msra.mxu1 %v10146_v42  ;;  %s15398_s21 = smov 32   ;;  %vm1689_vm6 = vcmask 654336   ;;  %vm1698_vm7 = vcmask 785408   ;;  %vm1707_vm8 = vcmask 916480   ;;  %vm7900_vm9 = vcmask 261248  }
  0x1a   : > { %s16074_s27 = smov (!%p375_p10, %s8173_s27), 3  ;;  %s15359_s25 = smov 48   ;;  %vm7981_vm10 = vcmask 392448   ;;  %vm8062_vm11 = vcmask 523648  }
  0x1b   : > { %s8740_s28 = sshll.u32 %s16074_s27, 6  ;;  %s15357_s26 = smov 64  }
  0x1c   : > { %s15331_s27 = smov 112   ;;  %s15581_s18 = smov 96  }
  0x1d   : > { %v592_v0 = vld [vmem:[%s15497_s6] sm:$0xf]  ;;  %s15582_s29 = smov 112   ;;  %s15694_s30 = smov 64  }
  0x1e   : > { %10094 = vmatprep.subr.msk.bf16.mxu0 %vm622_vm0, %v592_v0  ;;  %v624_v1 = vsel %vm622_vm0, %v592_v0, 0  ;;  %s10567_s11 = scalar_lea.vmem %s15498_s0, %s8740_s28 }
  0x1f   : > { %9195 = vmatpush3.bf16.msra.mxu0 %v624_v1  ;;  %v552_v2 = vld [vmem:[%s10567_s11] sm:$0xff]  ;;  %v553_v3 = vld [vmem:[%s10567_s11 + $0x8] sm:$0xff]  ;;  %v554_v4 = vld [vmem:[%s10567_s11 + $0x10] sm:$0xff]  ;;  %s10598_s20 = scalar_lea.vmem %s15499_s1, %s8740_s28  ;;  %s15335_s28 = smov 80  }
  0x20   : > { %v568_v5 = vmax.f32 %v552_v2, 0.0  ;;  %v569_v6 = vmax.f32 %v553_v3, 0.0  ;;  %v555_v7 = vld [vmem:[%s10567_s11 + $0x18] sm:$0xff]  ;;  %v570_v8 = vmax.f32 %v554_v4, 0.0  ;;  %v556_v9 = vld [vmem:[%s10567_s11 + $0x20] sm:$0xff]  ;;  %v557_v10 = vld [vmem:[%s10567_s11 + $0x28] sm:$0xff] }
  0x21   : > { %v571_v11 = vmax.f32 %v555_v7, 0.0  ;;  %v572_v12 = vmax.f32 %v556_v9, 0.0  ;;  %v573_v13 = vmax.f32 %v557_v10, 0.0  ;;  %v558_v14 = vld [vmem:[%s10567_s11 + $0x30] sm:$0xff]  ;;  %v559_v15 = vld [vmem:[%s10567_s11 + $0x38] sm:$0xff]  ;;  %v560_v16 = vld [vmem:[%s10567_s11 + $0x40] sm:$0xff] }
  0x22   : > { %v584_v17 = vpack.c.bf16 %v569_v6, %v568_v5  ;;  %v574_v18 = vmax.f32 %v558_v14, 0.0  ;;  %v575_v19 = vmax.f32 %v559_v15, 0.0  ;;  %v561_v20 = vld [vmem:[%s10567_s11 + $0x48] sm:$0xff]  ;;  %v576_v21 = vmax.f32 %v560_v16, 0.0  ;;  %v562_v22 = vld [vmem:[%s10567_s11 + $0x50] sm:$0xff]  ;;  %v563_v23 = vld [vmem:[%s10567_s11 + $0x58] sm:$0xff] }
  0x23   : > { %v585_v24 = vpack.c.bf16 %v571_v11, %v570_v8  ;;  %v586_v25 = vpack.c.bf16 %v573_v13, %v572_v12  ;;  %v577_v26 = vmax.f32 %v561_v20, 0.0  ;;  %v578_v27 = vmax.f32 %v562_v22, 0.0  ;;  %v564_v28 = vld [vmem:[%s10567_s11 + $0x60] sm:$0xff]  ;;  %v565_v29 = vld [vmem:[%s10567_s11 + $0x68] sm:$0xff]  ;;  %v566_v30 = vld [vmem:[%s10567_s11 + $0x70] sm:$0xff] }
  0x24   : > { %9196 = vmatprep.mubr.msk.bf16.mxu0 %vm597_vm1, %v584_v17  ;;  %v579_v31 = vmax.f32 %v563_v23, 0.0  ;;  %v580_v32 = vmax.f32 %v564_v28, 0.0  ;;  %v581_v33 = vmax.f32 %v565_v29, 0.0  ;;  %v567_v34 = vld [vmem:[%s10567_s11 + $0x78] sm:$0xff]  ;;  %v582_v35 = vmax.f32 %v566_v30, 0.0  ;;  %v723_v43 = vld [vmem:[%s10598_s20] sm:$0xff] }
  0x25   : > { %9197 = vmatmul.mubr.msk.bf16.vlgmr.msra.gmra.mxu0 %vm597_vm1, %v585_v24  ;;  %v583_v36 = vmax.f32 %v567_v34, 0.0  ;;  %v587_v37 = vpack.c.bf16 %v575_v19, %v574_v18  ;;  %v588_v38 = vpack.c.bf16 %v577_v26, %v576_v21  ;;  %v724_v44 = vld [vmem:[%s10598_s20 + $0x8] sm:$0xff]  ;;  %v739_v45 = vmax.f32 %v723_v43, 0.0  ;;  %v725_v47 = vld [vmem:[%s10598_s20 + $0x10] sm:$0xff]  ;;  %v726_v48 = vld [vmem:[%s10598_s20 + $0x18] sm:$0xff]  ;;  %s15333_s11 = smov 96  }
  0x26   : > { %9200 = vmatprep.mubr.msk.bf16.mxu0 %vm597_vm1, %v586_v25  ;;  %v589_v39 = vpack.c.bf16 %v579_v31, %v578_v27  ;;  %v590_v40 = vpack.c.bf16 %v581_v33, %v580_v32  ;;  %v740_v46 = vmax.f32 %v724_v44, 0.0  ;;  %v741_v49 = vmax.f32 %v725_v47, 0.0  ;;  %v727_v53 = vld [vmem:[%s10598_s20 + $0x20] sm:$0xff]  ;;  %v728_v54 = vld [vmem:[%s10598_s20 + $0x28] sm:$0xff]  ;;  %v729_v57 = vld [vmem:[%s10598_s20 + $0x30] sm:$0xff] }
  0x27   : > { %v591_v41 = vpack.c.bf16 %v583_v36, %v582_v35  ;;  %v742_v50 = vmax.f32 %v726_v48, 0.0  ;;  %v743_v55 = vmax.f32 %v727_v53, 0.0  ;;  %v744_v56 = vmax.f32 %v728_v54, 0.0  ;;  %v730_v58 = vld [vmem:[%s10598_s20 + $0x38] sm:$0xff]  ;;  %v731_v0 = vld [vmem:[%s10598_s20 + $0x40] sm:$0xff]  ;;  %v732_v1 = vld [vmem:[%s10598_s20 + $0x48] sm:$0xff] }
  0x28   : > { %v755_v51 = vpack.c.bf16 %v740_v46, %v739_v45  ;;  %v745_v59 = vmax.f32 %v729_v57, 0.0  ;;  %v746_v60 = vmax.f32 %v730_v58, 0.0  ;;  %v747_v2 = vmax.f32 %v731_v0, 0.0  ;;  %v733_v4 = vld [vmem:[%s10598_s20 + $0x50] sm:$0xff]  ;;  %v734_v5 = vld [vmem:[%s10598_s20 + $0x58] sm:$0xff]  ;;  %v735_v10 = vld [vmem:[%s10598_s20 + $0x60] sm:$0xff] }
  0x29   : > { %v756_v52 = vpack.c.bf16 %v742_v50, %v741_v49  ;;  %v757_v61 = vpack.c.bf16 %v744_v56, %v743_v55  ;;  %v748_v3 = vmax.f32 %v732_v1, 0.0  ;;  %v749_v6 = vmax.f32 %v733_v4, 0.0  ;;  %v736_v11 = vld [vmem:[%s10598_s20 + $0x68] sm:$0xff]  ;;  %v737_v14 = vld [vmem:[%s10598_s20 + $0x70] sm:$0xff]  ;;  %v738_v15 = vld [vmem:[%s10598_s20 + $0x78] sm:$0xff]  ;;  %s15400_s20 = smov 16  }
  0x2a   : > { %9214 = vmatprep.mubr.msk.bf16.mxu1 %vm775_vm2, %v755_v51  ;;  %v758_v62 = vpack.c.bf16 %v746_v60, %v745_v59  ;;  %v750_v7 = vmax.f32 %v734_v5, 0.0  ;;  %v751_v12 = vmax.f32 %v735_v10, 0.0  ;;  %v752_v13 = vmax.f32 %v736_v11, 0.0  ;;  %v10642_v26 = vld [vmem:[%s15277_s9] sm:$0xff] }
  0x2b   : > { %9215 = vmatmul.mubr.msk.bf16.vlgmr.msra.gmra.mxu1 %vm775_vm2, %v756_v52  ;;  %v759_v8 = vpack.c.bf16 %v748_v3, %v747_v2  ;;  %v753_v16 = vmax.f32 %v737_v14, 0.0  ;;  %v754_v17 = vmax.f32 %v738_v15, 0.0  ;;  %v593_v20 = vlaneseq }
  0x2c   : > { %9218 = vmatprep.mubr.msk.bf16.mxu1 %vm775_vm2, %v757_v61  ;;  %v760_v9 = vpack.c.bf16 %v750_v7, %v749_v6  ;;  %v761_v18 = vpack.c.bf16 %v752_v13, %v751_v12  ;;  %v10148_v7 = vld [vmem:[%s15270_s2 + $0x8] sm:$0xff]  }
  0x2d   : > { %9201 = vmatmul.mubr.msk.bf16.gmra.mxu0 %vm597_vm1, %v587_v37  ;;  %v762_v19 = vpack.c.bf16 %v754_v17, %v753_v16  ;;  %v10636_v22 = vshrl.u32 %v593_v20, 7  ;;  %v10151_v20 = vld [vmem:[%s15270_s2 + $0x20] sm:$0xff]  }
  0x2e   : > { %9204 = vmatprep.mubr.msk.bf16.mxu0 %vm597_vm1, %v588_v38 }
  0x2f   : > { %15500 = vst [vmem:[#allocation5_spill] sm:$0xff] %v10636_v22  ;;  %v15280_v25 = vsub.s32 0, %v10636_v22 }
  0x31   : > { %v596_v29 = vrot.slane %v10642_v26, %v15280_v25 }
  0x33   : > { %9219 = vmatmul.mubr.msk.bf16.gmra.mxu1 %vm775_vm2, %v758_v62 }
  0x34   : > { %9222 = vmatprep.mubr.msk.bf16.mxu1 %vm775_vm2, %v759_v8  ;;  %v10149_v8 = vld [vmem:[%s15270_s2 + $0x10] sm:$0xff]  }
  0x35   : > { %9205 = vmatmul.mubr.msk.bf16.gmra.mxu0 %vm597_vm1, %v589_v39 }
  0x36   : > { %9208 = vmatprep.mubr.msk.bf16.mxu0 %vm597_vm1, %v590_v40 }
  0x3b   : > { %9223 = vmatmul.mubr.msk.bf16.gmra.mxu1 %vm775_vm2, %v760_v9 }
  0x3c   : > { %9226 = vmatprep.mubr.msk.bf16.mxu1 %vm775_vm2, %v761_v18  ;;  %v10150_v18 = vld [vmem:[%s15270_s2 + $0x18] sm:$0xff]  }
  0x3d   : > { %9209 = vmatmul.mubr.msk.bf16.gmra.mxu0 %vm597_vm1, %v591_v41 }
  0x3e   : > { %9238 = vmatprep.mubr.msk.bf16.mxu0 %vm1101_vm3, %v10617_v63 }
  0x43   : > { %9227 = vmatmul.mubr.msk.bf16.gmra.mxu1 %vm775_vm2, %v762_v19 }
  0x44   : > { %9318 = vmatprep.mubr.msk.bf16.mxu1 %vm1101_vm3, %v10617_v63 }
  0xe5   : > { %v9198_v21 = vpop.f32.mrf.mxu0 }
  0xe6   : > { %v10659_v41 = vadd.f32 %v9198_v21, %v596_v29 }
  0xe7   : > { %v660_v23 = vpop.f32.mrf.mxu0 }
  0xe8   : > { %15506 = vst [vmem:[#allocation11_spill] sm:$0xff] %v10659_v41  ;;  %v899_v50 = vmax.f32 %v10659_v41, 0.0  ;;  %v10667_v51 = vadd.f32 %v660_v23, %v596_v29  ;;  %v10152_v23 = vld [vmem:[%s15270_s2 + $0x28] sm:$0xff]  }
  0xe9   : > { %v9199_v24 = vpop.f32.mrf.mxu0 }
  0xea   : > { %v10653_v36 = vadd.f32 %v9199_v24, %v596_v29  ;;  %15508 = vst [vmem:[#allocation13_spill] sm:$0xff] %v10667_v51  ;;  %v897_v56 = vmax.f32 %v10667_v51, 0.0  ;;  %v10153_v24 = vld [vmem:[%s15270_s2 + $0x30] sm:$0xff]  }
  0xeb   : > { %v663_v27 = vpop.f32.mrf.mxu0 }
  0xec   : > { %15504 = vst [vmem:[#allocation9_spill] sm:$0xff] %v10653_v36  ;;  %v900_v46 = vmax.f32 %v10653_v36, 0.0  ;;  %v10664_v47 = vadd.f32 %v663_v27, %v596_v29  ;;  %v10154_v27 = vld [vmem:[%s15270_s2 + $0x38] sm:$0xff]  }
  0xed   : > { %v9202_v28 = vpop.f32.mrf.mxu0 }
  0xee   : > { %v10647_v31 = vadd.f32 %v9202_v28, %v596_v29  ;;  %15507 = vst [vmem:[#allocation12_spill] sm:$0xff] %v10664_v47  ;;  %v914_v53 = vpack.c.bf16 %v900_v46, %v899_v50  ;;  %v898_v54 = vmax.f32 %v10664_v47, 0.0  ;;  %v10155_v28 = vld [vmem:[%s15270_s2 + $0x40] sm:$0xff]   ;;  %v10187_v47 = vld [vmem:[%s15276_s8 + $0x18] sm:$0xff]  }
  0xef   : > { %v676_v30 = vpop.f32.mrf.mxu0 }
  0xf0   : > { %15501 = vst [vmem:[#allocation6_spill] sm:$0xff] %v10647_v31  ;;  %v10649_v33 = vadd.f32 %v676_v30, %v596_v29  ;;  %v903_v37 = vmax.f32 %v10647_v31, 0.0  ;;  %v913_v60 = vpack.c.bf16 %v898_v54, %v897_v56  ;;  %v10157_v30 = vld [vmem:[%s15270_s2 + $0x50] sm:$0xff]  }
  0xf1   : > { %v9203_v32 = vpop.f32.mrf.mxu0  ;;  %v10165_v54 = vld [vmem:[%s15270_s2 + $0x90] sm:$0xff]  }
  0xf2   : > { %15502 = vst [vmem:[#allocation7_spill] sm:$0xff] %v10649_v33  ;;  %v10651_v34 = vadd.f32 %v9203_v32, %v596_v29  ;;  %v901_v42 = vmax.f32 %v10649_v33, 0.0  ;;  %v10158_v32 = vld [vmem:[%s15270_s2 + $0x58] sm:$0xff]   ;;  %v10191_v33 = vld [vmem:[%s15276_s8 + $0x40] sm:$0xff]  }
  0xf3   : > { %v679_v35 = vpop.f32.mrf.mxu0 }
  0xf4   : > { %15503 = vst [vmem:[#allocation8_spill] sm:$0xff] %v10651_v34  ;;  %v904_v38 = vmax.f32 %v10651_v34, 0.0  ;;  %v10657_v39 = vadd.f32 %v679_v35, %v596_v29  ;;  %v10159_v35 = vld [vmem:[%s15270_s2 + $0x60] sm:$0xff]  }
  0xf5   : > { %v9206_v40 = vpop.f32.mrf.mxu0 }
  0xf6   : > { %15505 = vst [vmem:[#allocation10_spill] sm:$0xff] %v10657_v39  ;;  %v916_v43 = vpack.c.bf16 %v904_v38, %v903_v37  ;;  %v902_v44 = vmax.f32 %v10657_v39, 0.0  ;;  %v10678_v1 = vadd.f32 %v9206_v40, %v596_v29  ;;  %v10160_v37 = vld [vmem:[%s15270_s2 + $0x68] sm:$0xff]   ;;  %v10161_v38 = vld [vmem:[%s15270_s2 + $0x70] sm:$0xff]   ;;  %v15279_v40 = vsub.s32 1, %v10636_v22 }
  0xf7   : > { %v692_v45 = vpop.f32.mrf.mxu0 }
  0xf8   : > { %9230 = vmatprep.subr.bf16.mxu0 %v916_v43  ;;  %v915_v48 = vpack.c.bf16 %v902_v44, %v901_v42  ;;  %15512 = vst [vmem:[#allocation17_spill] sm:$0xff] %v10678_v1  ;;  %v907_v11 = vmax.f32 %v10678_v1, 0.0  ;;  %v10694_v12 = vadd.f32 %v692_v45, %v596_v29  ;;  %v10765_v42 = vrot.slane %v10642_v26, %v15279_v40  ;;  %v10163_v44 = vld [vmem:[%s15270_s2 + $0x80] sm:$0xff]   ;;  %v9216_v45 = vpop.f32.mrf.mxu1 }
  0xf9   : > { %v9207_v49 = vpop.f32.mrf.mxu0  ;;  %9231 = vmatpush3.bf16.msra.mxu0 %v916_v43  ;;  %v10162_v43 = vld [vmem:[%s15270_s2 + $0x78] sm:$0xff]  }
  0xfa   : > { %9232 = vmatprep.subr.bf16.mxu0 %v915_v48  ;;  %v10680_v3 = vadd.f32 %v9207_v49, %v596_v29  ;;  %15515 = vst [vmem:[#allocation20_spill] sm:$0xff] %v10694_v12  ;;  %v905_v16 = vmax.f32 %v10694_v12, 0.0  ;;  %15517 = vst [vmem:[#allocation22_spill] sm:$0xff] %v10765_v42  ;;  %v10774_v46 = vadd.f32 %v9216_v45, %v10765_v42  ;;  %v10182_v45 = vld [vmem:[%s15270_s2 + $0x118] sm:$0xff]  }
  0xfb   : > { %v695_v52 = vpop.f32.mrf.mxu0 }
  0xfc   : > { %15513 = vst [vmem:[#allocation18_spill] sm:$0xff] %v10680_v3  ;;  %v908_v13 = vmax.f32 %v10680_v3, 0.0  ;;  %v10697_v14 = vadd.f32 %v695_v52, %v596_v29  ;;  %15518 = vst [vmem:[#allocation23_spill] sm:$0xff] %v10774_v46  ;;  %v10164_v52 = vld [vmem:[%s15270_s2 + $0x88] sm:$0xff]  }
  0xfd   : > { %v9210_v55 = vpop.f32.mrf.mxu0  ;;  %9233 = vmatpush3.bf16.msra.mxu0 %v915_v48  ;;  %v834_v48 = vpop.f32.mrf.mxu1  ;;  %v10185_v46 = vld [vmem:[%s15276_s8 + $0x28] sm:$0xff]  }
  0xfe   : > { %v10671_v57 = vadd.f32 %v9210_v55, %v596_v29  ;;  %9234 = vmatprep.subr.bf16.mxu0 %v914_v53  ;;  %15516 = vst [vmem:[#allocation21_spill] sm:$0xff] %v10697_v14  ;;  %v918_v17 = vpack.c.bf16 %v908_v13, %v907_v11  ;;  %v906_v19 = vmax.f32 %v10697_v14, 0.0  ;;  %v10781_v26 = vadd.f32 %v834_v48, %v10765_v42  ;;  %v10168_v11 = vld [vmem:[%s15270_s2 + $0xa8] sm:$0xff]  }
  0xff   : > { %v708_v58 = vpop.f32.mrf.mxu0  ;;  %v9217_v49 = vpop.f32.mrf.mxu1 }
 0x100   : > { %15509 = vst [vmem:[#allocation14_spill] sm:$0xff] %v10671_v57  ;;  %v10673_v59 = vadd.f32 %v708_v58, %v596_v29  ;;  %v911_v62 = vmax.f32 %v10671_v57, 0.0  ;;  %v917_v21 = vpack.c.bf16 %v906_v19, %v905_v16  ;;  %15519 = vst [vmem:[#allocation24_spill] sm:$0xff] %v10781_v26  ;;  %v10784_v50 = vadd.f32 %v9217_v49, %v10765_v42 }
 0x101   : > { %v9211_v61 = vpop.f32.mrf.mxu0  ;;  %9235 = vmatpush3.bf16.msra.mxu0 %v914_v53  ;;  %v10789_v53 = vpop.f32.mrf.mxu1 }
 0x102   : > { %15510 = vst [vmem:[#allocation15_spill] sm:$0xff] %v10673_v59  ;;  %v10676_v0 = vadd.f32 %v9211_v61, %v596_v29  ;;  %9236 = vmatprep.subr.bf16.mxu0 %v913_v60  ;;  %v909_v4 = vmax.f32 %v10673_v59, 0.0  ;;  %15520 = vst [vmem:[#allocation25_spill] sm:$0xff] %v10784_v50  ;;  %v10166_v61 = vld [vmem:[%s15270_s2 + $0x98] sm:$0xff]  }
 0x103   : > { %v711_v2 = vpop.f32.mrf.mxu0  ;;  %15521 = vst [vmem:[#allocation26_spill] sm:$0xff] %v10789_v53  ;;  %v10794_v55 = vpop.f32.mrf.mxu1 }
 0x104   : > { %15511 = vst [vmem:[#allocation16_spill] sm:$0xff] %v10676_v0  ;;  %v912_v5 = vmax.f32 %v10676_v0, 0.0  ;;  %v10684_v6 = vadd.f32 %v711_v2, %v596_v29  ;;  %v10156_v29 = vld [vmem:[%s15270_s2 + $0x48] sm:$0xff]   ;;  %15522 = vst [vmem:[#allocation27_spill] sm:$0xff] %v10794_v55  ;;  %v10167_v2 = vld [vmem:[%s15270_s2 + $0xa0] sm:$0xff]  }
 0x105   : > { %9237 = vmatpush3.bf16.msra.mxu0 %v913_v60  ;;  %v850_v56 = vpop.f32.mrf.mxu1  ;;  %v10189_v55 = vld [vmem:[%s15276_s8 + $0x8] sm:$0xff]  }
 0x106   : > { %15514 = vst [vmem:[#allocation19_spill] sm:$0xff] %v10684_v6  ;;  %v920_v9 = vpack.c.bf16 %v912_v5, %v911_v62  ;;  %v910_v10 = vmax.f32 %v10684_v6, 0.0  ;;  %v10801_v58 = vadd.f32 %v850_v56, %v10765_v42  ;;  %v15319_v6 = vmov 0  }
 0x107   : > { %v10803_v60 = vpop.f32.mrf.mxu1  ;;  %2325 = vmatprep.subr.bf16.mxu0 %v15319_v6  ;;  %10145 = vset.pattern.permute.xlu1 %v15319_v6 }
 0x108   : > { %9239 = vmatmul.mubr.msk.bf16.vlgmr.msra.gmra.mxu0 %vm1101_vm3, %v10148_v7  ;;  %9310 = vmatprep.subr.bf16.mxu1 %v920_v9  ;;  %v919_v15 = vpack.c.bf16 %v910_v10, %v909_v4  ;;  %15523 = vst [vmem:[#allocation28_spill] sm:$0xff] %v10801_v58  ;;  %15524 = vst [vmem:[#allocation29_spill] sm:$0xff] %v10803_v60 }
 0x109   : > { %9311 = vmatpush3.bf16.msra.mxu1 %v920_v9  ;;  %9242 = vmatprep.mubr.msk.bf16.mxu0 %vm1101_vm3, %v10149_v8  ;;  %v10808_v62 = vpop.f32.mrf.mxu1 }
 0x10a   : > { %9312 = vmatprep.subr.bf16.mxu1 %v919_v15  ;;  %15525 = vst [vmem:[#allocation30_spill] sm:$0xff] %v10808_v62  ;;  %10144 = vset.pattern.permute.xlu0 %v15319_v6 }
 0x10b   : > { %v9224_v4 = vpop.f32.mrf.mxu1 }
 0x10c   : > { %v10814_v5 = vadd.f32 %v9224_v4, %v10765_v42 }
 0x10d   : > { %9313 = vmatpush3.bf16.msra.mxu1 %v919_v15  ;;  %v10169_v15 = vld [vmem:[%s15270_s2 + $0xb0] sm:$0xff]  }
 0x10e   : > { %9314 = vmatprep.subr.bf16.mxu1 %v918_v17  ;;  %15526 = vst [vmem:[#allocation31_spill] sm:$0xff] %v10814_v5 }
 0x110   : > { %9243 = vmatmul.mubr.msk.bf16.gmra.mxu0 %vm1101_vm3, %v10150_v18 }
 0x111   : > { %9315 = vmatpush3.bf16.msra.mxu1 %v918_v17  ;;  %9246 = vmatprep.mubr.msk.bf16.mxu0 %vm1101_vm3, %v10151_v20 }
 0x112   : > { %9316 = vmatprep.subr.bf16.mxu1 %v917_v21 }
 0x115   : > { %9317 = vmatpush3.bf16.msra.mxu1 %v917_v21 }
 0x118   : > { %9247 = vmatmul.mubr.msk.bf16.gmra.mxu0 %vm1101_vm3, %v10152_v23  ;;  %9319 = vmatmul.mubr.msk.bf16.vlgmr.msra.gmra.mxu1 %vm1101_vm3, %v10148_v7  ;;  %v866_v7 = vpop.f32.mrf.mxu1 }
 0x119   : > { %9250 = vmatprep.mubr.msk.bf16.mxu0 %vm1101_vm3, %v10153_v24  ;;  %9322 = vmatprep.mubr.msk.bf16.mxu1 %vm1101_vm3, %v10149_v8  ;;  %v10821_v8 = vadd.f32 %v866_v7, %v10765_v42 }
 0x11a   : > { %v9225_v9 = vpop.f32.mrf.mxu1 }
 0x11b   : > { %15527 = vst [vmem:[#allocation32_spill] sm:$0xff] %v10821_v8  ;;  %v10824_v10 = vadd.f32 %v9225_v9, %v10765_v42 }
 0x11c   : > { %v10829_v13 = vpop.f32.mrf.mxu1 }
 0x11d   : > { %15528 = vst [vmem:[#allocation33_spill] sm:$0xff] %v10824_v10  ;;  %15529 = vst [vmem:[#allocation34_spill] sm:$0xff] %v10829_v13 }
 0x11e   : > { %v9228_v16 = vpop.f32.mrf.mxu1 }
 0x11f   : > { %v10835_v17 = vadd.f32 %v9228_v16, %v10765_v42 }
 0x120   : > { %9251 = vmatmul.mubr.msk.bf16.gmra.mxu0 %vm1101_vm3, %v10154_v27  ;;  %9323 = vmatmul.mubr.msk.bf16.gmra.mxu1 %vm1101_vm3, %v10150_v18  ;;  %v882_v18 = vpop.f32.mrf.mxu1 }
 0x121   : > { %9254 = vmatprep.mubr.msk.bf16.mxu0 %vm1101_vm3, %v10155_v28  ;;  %9326 = vmatprep.mubr.msk.bf16.mxu1 %vm1101_vm3, %v10151_v20  ;;  %15530 = vst [vmem:[#allocation35_spill] sm:$0xff] %v10835_v17  ;;  %v10842_v19 = vadd.f32 %v882_v18, %v10765_v42 }
 0x122   : > { %v9229_v20 = vpop.f32.mrf.mxu1 }
 0x123   : > { %15531 = vst [vmem:[#allocation36_spill] sm:$0xff] %v10842_v19  ;;  %v10845_v21 = vadd.f32 %v9229_v20, %v10765_v42 }
 0x124   : > { %v10934_v7 = vpop.f32.mrf.mxu1 }
 0x125   : > { %15532 = vst [vmem:[#allocation37_spill] sm:$0xff] %v10845_v21  ;;  %15533 = vst [vmem:[#allocation38_spill] sm:$0xff] %v10934_v7 }
 0x128   : > { %9255 = vmatmul.mubr.msk.bf16.gmra.mxu0 %vm1101_vm3, %v10156_v29  ;;  %9327 = vmatmul.mubr.msk.bf16.gmra.mxu1 %vm1101_vm3, %v10152_v23  ;;  %v10170_v23 = vld [vmem:[%s15270_s2 + $0xb8] sm:$0xff]  }
 0x129   : > { %9258 = vmatprep.mubr.msk.bf16.mxu0 %vm1101_vm3, %v10157_v30  ;;  %9330 = vmatprep.mubr.msk.bf16.mxu1 %vm1101_vm3, %v10153_v24  ;;  %v10171_v24 = vld [vmem:[%s15270_s2 + $0xc0] sm:$0xff]  }
 0x130   : > { %9259 = vmatmul.mubr.msk.bf16.gmra.mxu0 %vm1101_vm3, %v10158_v32  ;;  %9331 = vmatmul.mubr.msk.bf16.gmra.mxu1 %vm1101_vm3, %v10154_v27  ;;  %v10172_v27 = vld [vmem:[%s15270_s2 + $0xc8] sm:$0xff]  }
 0x131   : > { %9262 = vmatprep.mubr.msk.bf16.mxu0 %vm1101_vm3, %v10159_v35  ;;  %9334 = vmatprep.mubr.msk.bf16.mxu1 %vm1101_vm3, %v10155_v28  ;;  %v10173_v28 = vld [vmem:[%s15270_s2 + $0xd0] sm:$0xff]  }
 0x138   : > { %9263 = vmatmul.mubr.msk.bf16.gmra.mxu0 %vm1101_vm3, %v10160_v37  ;;  %9335 = vmatmul.mubr.msk.bf16.gmra.mxu1 %vm1101_vm3, %v10156_v29  ;;  %v10174_v29 = vld [vmem:[%s15270_s2 + $0xd8] sm:$0xff]  }
 0x139   : > { %9266 = vmatprep.mubr.msk.bf16.mxu0 %vm1101_vm3, %v10161_v38  ;;  %9338 = vmatprep.mubr.msk.bf16.mxu1 %vm1101_vm3, %v10157_v30  ;;  %v10175_v30 = vld [vmem:[%s15270_s2 + $0xe0] sm:$0xff]  }
 0x140   : > { %9267 = vmatmul.mubr.msk.bf16.gmra.mxu0 %vm1101_vm3, %v10162_v43  ;;  %9339 = vmatmul.mubr.msk.bf16.gmra.mxu1 %vm1101_vm3, %v10158_v32  ;;  %v10176_v32 = vld [vmem:[%s15270_s2 + $0xe8] sm:$0xff]  }
 0x141   : > { %9270 = vmatprep.mubr.msk.bf16.mxu0 %vm1101_vm3, %v10163_v44  ;;  %9342 = vmatprep.mubr.msk.bf16.mxu1 %vm1101_vm3, %v10159_v35  ;;  %v10177_v35 = vld [vmem:[%s15270_s2 + $0xf0] sm:$0xff]  }
 0x148   : > { %9271 = vmatmul.mubr.msk.bf16.gmra.mxu0 %vm1101_vm3, %v10164_v52  ;;  %9343 = vmatmul.mubr.msk.bf16.gmra.mxu1 %vm1101_vm3, %v10160_v37  ;;  %v10178_v37 = vld [vmem:[%s15270_s2 + $0xf8] sm:$0xff]  }
 0x149   : > { %9274 = vmatprep.mubr.msk.bf16.mxu0 %vm1101_vm3, %v10165_v54  ;;  %9346 = vmatprep.mubr.msk.bf16.mxu1 %vm1101_vm3, %v10161_v38  ;;  %v10179_v38 = vld [vmem:[%s15270_s2 + $0x100] sm:$0xff]  }
 0x150   : > { %9275 = vmatmul.mubr.msk.bf16.gmra.mxu0 %vm1101_vm3, %v10166_v61  ;;  %9347 = vmatmul.mubr.msk.bf16.gmra.mxu1 %vm1101_vm3, %v10162_v43  ;;  %v10180_v43 = vld [vmem:[%s15270_s2 + $0x108] sm:$0xff]  }
 0x151   : > { %9278 = vmatprep.mubr.msk.bf16.mxu0 %vm1101_vm3, %v10167_v2  ;;  %9350 = vmatprep.mubr.msk.bf16.mxu1 %vm1101_vm3, %v10163_v44  ;;  %v10181_v44 = vld [vmem:[%s15270_s2 + $0x110] sm:$0xff]  }
 0x158   : > { %9279 = vmatmul.mubr.msk.bf16.gmra.mxu0 %vm1101_vm3, %v10168_v11  ;;  %9351 = vmatmul.mubr.msk.bf16.gmra.mxu1 %vm1101_vm3, %v10164_v52 }
 0x159   : > { %9282 = vmatprep.mubr.msk.bf16.mxu0 %vm1101_vm3, %v10169_v15  ;;  %9354 = vmatprep.mubr.msk.bf16.mxu1 %vm1101_vm3, %v10165_v54 }
 0x160   : > { %9283 = vmatmul.mubr.msk.bf16.gmra.mxu0 %vm1101_vm3, %v10170_v23  ;;  %9355 = vmatmul.mubr.msk.bf16.gmra.mxu1 %vm1101_vm3, %v10166_v61 }
 0x161   : > { %9286 = vmatprep.mubr.msk.bf16.mxu0 %vm1101_vm3, %v10171_v24  ;;  %9358 = vmatprep.mubr.msk.bf16.mxu1 %vm1101_vm3, %v10167_v2 }
 0x168   : > { %9287 = vmatmul.mubr.msk.bf16.gmra.mxu0 %vm1101_vm3, %v10172_v27  ;;  %9359 = vmatmul.mubr.msk.bf16.gmra.mxu1 %vm1101_vm3, %v10168_v11 }
 0x169   : > { %9290 = vmatprep.mubr.msk.bf16.mxu0 %vm1101_vm3, %v10173_v28  ;;  %9362 = vmatprep.mubr.msk.bf16.mxu1 %vm1101_vm3, %v10169_v15 }
 0x170   : > { %9291 = vmatmul.mubr.msk.bf16.gmra.mxu0 %vm1101_vm3, %v10174_v29  ;;  %9363 = vmatmul.mubr.msk.bf16.gmra.mxu1 %vm1101_vm3, %v10170_v23 }
 0x171   : > { %9294 = vmatprep.mubr.msk.bf16.mxu0 %vm1101_vm3, %v10175_v30  ;;  %9366 = vmatprep.mubr.msk.bf16.mxu1 %vm1101_vm3, %v10171_v24 }
 0x178   : > { %9295 = vmatmul.mubr.msk.bf16.gmra.mxu0 %vm1101_vm3, %v10176_v32  ;;  %9367 = vmatmul.mubr.msk.bf16.gmra.mxu1 %vm1101_vm3, %v10172_v27 }
 0x179   : > { %9298 = vmatprep.mubr.msk.bf16.mxu0 %vm1101_vm3, %v10177_v35  ;;  %9370 = vmatprep.mubr.msk.bf16.mxu1 %vm1101_vm3, %v10173_v28 }
 0x180   : > { %9299 = vmatmul.mubr.msk.bf16.gmra.mxu0 %vm1101_vm3, %v10178_v37  ;;  %9371 = vmatmul.mubr.msk.bf16.gmra.mxu1 %vm1101_vm3, %v10174_v29 }
 0x181   : > { %9374 = vmatprep.mubr.msk.bf16.mxu1 %vm1101_vm3, %v10175_v30  ;;  %9302 = vmatprep.mubr.msk.bf16.mxu0 %vm1101_vm3, %v10179_v38 }
 0x188   : > { %9375 = vmatmul.mubr.msk.bf16.gmra.mxu1 %vm1101_vm3, %v10176_v32  ;;  %9303 = vmatmul.mubr.msk.bf16.gmra.mxu0 %vm1101_vm3, %v10180_v43 }
 0x189   : > { %9378 = vmatprep.mubr.msk.bf16.mxu1 %vm1101_vm3, %v10177_v35  ;;  %9306 = vmatprep.mubr.msk.bf16.mxu0 %vm1101_vm3, %v10181_v44 }
 0x190   : > { %9379 = vmatmul.mubr.msk.bf16.gmra.mxu1 %vm1101_vm3, %v10178_v37  ;;  %9307 = vmatmul.mubr.msk.bf16.gmra.mxu0 %vm1101_vm3, %v10182_v45 }
 0x191   : > { %9382 = vmatprep.mubr.msk.bf16.mxu1 %vm1101_vm3, %v10179_v38 }
 0x198   : > { %9383 = vmatmul.mubr.msk.bf16.gmra.mxu1 %vm1101_vm3, %v10180_v43 }
 0x199   : > { %9386 = vmatprep.mubr.msk.bf16.mxu1 %vm1101_vm3, %v10181_v44 }
 0x1a0   : > { %9387 = vmatmul.mubr.msk.bf16.gmra.mxu1 %vm1101_vm3, %v10182_v45 }
 0x1a1   : > { %9398 = vmatprep.mubr.msk.bf16.mxu1 %vm1101_vm3, %v10617_v63 }
 0x1c8   : > { %v10918_v48 = vpop.f32.mrf.mxu0 }
 0x1ca   : > { %v10920_v49 = vpop.f32.mrf.mxu0 }
 0x1cc   : > { %v10922_v52 = vpop.f32.mrf.mxu0 }
 0x1ce   : > { %v10926_v56 = vpop.f32.mrf.mxu0 }
 0x1d0   : > { %v10928_v61 = vpop.f32.mrf.mxu0 }
 0x1d2   : > { %v10930_v2 = vpop.f32.mrf.mxu0 }
 0x1d4   : > { %v10932_v4 = vpop.f32.mrf.mxu0 }
 0x1d6   : > { %v10938_v9 = vpop.f32.mrf.mxu0 }
 0x1d8   : > { %v9248_v11 = vpop.f32.mrf.mxu0  ;;  %v10940_v15 = vpop.f32.mrf.mxu1 }
 0x1da   : > { %v1276_v16 = vpop.f32.mrf.mxu0  ;;  %v10942_v18 = vpop.f32.mrf.mxu1 }
 0x1dc   : > { %v9249_v20 = vpop.f32.mrf.mxu0  ;;  %v10944_v23 = vpop.f32.mrf.mxu1 }
 0x1dd   : > { %v1536_v24 = vpack.c.bf16 %v9249_v20, %v9248_v11 }
 0x1de   : > { %v1279_v28 = vpop.f32.mrf.mxu0  ;;  %v10948_v29 = vpop.f32.mrf.mxu1 }
 0x1df   : > { %1573 = vrot.lane.b32.xlu1 %v1536_v24, %s15400_s20  ;;  %v1535_v30 = vpack.c.bf16 %v1279_v28, %v1276_v16 }
 0x1e0   : > { %v9252_v32 = vpop.f32.mrf.mxu0  ;;  %v10951_v35 = vpop.f32.mrf.mxu1 }
 0x1e1   : > { %15534 = vst [vmem:[#allocation39_spill] sm:$0xff] %v10951_v35  ;;  %1571 = vrot.lane.b32.xlu0 %v1535_v30, %s15400_s20 }
 0x1e2   : > { %v1292_v37 = vpop.f32.mrf.mxu0  ;;  %v10954_v38 = vpop.f32.mrf.mxu1 }
 0x1e3   : > { %15535 = vst [vmem:[#allocation40_spill] sm:$0xff] %v10954_v38 }
 0x1e4   : > { %v9253_v43 = vpop.f32.mrf.mxu0  ;;  %v10956_v44 = vpop.f32.mrf.mxu1 }
 0x1e5   : > { %15536 = vst [vmem:[#allocation41_spill] sm:$0xff] %v10956_v44  ;;  %v1538_v45 = vpack.c.bf16 %v9253_v43, %v9252_v32 }
 0x1e6   : > { %v1295_v20 = vpop.f32.mrf.mxu0  ;;  %v10960_v40 = vpop.f32.mrf.mxu1 }
 0x1e7   : > { %15537 = vst [vmem:[#allocation42_spill] sm:$0xff] %v10960_v40  ;;  %v1537_v24 = vpack.c.bf16 %v1295_v20, %v1292_v37  ;;  %1577 = vrot.lane.b32.xlu1 %v1538_v45, %s15400_s20 }
 0x1e8   : > { %v9256_v16 = vpop.f32.mrf.mxu0  ;;  %v10963_v28 = vpop.f32.mrf.mxu1 }
 0x1e9   : > { %1575 = vrot.lane.b32.xlu0 %v1537_v24, %s15400_s20 }
 0x1ea   : > { %v1308_v30 = vpop.f32.mrf.mxu0  ;;  %v1786_v25 = vpop.f32.mrf.mxu1 }
 0x1ec   : > { %v9257_v27 = vpop.f32.mrf.mxu0  ;;  %v10966_v63 = vpop.f32.mrf.mxu1 }
 0x1ed   : > { %v1540_v32 = vpack.c.bf16 %v9257_v27, %v9256_v16 }
 0x1ee   : > { %v1311_v11 = vpop.f32.mrf.mxu0  ;;  %v1789_v54 = vpop.f32.mrf.mxu1 }
 0x1ef   : > { %1585 = vrot.lane.b32.xlu0 %v1540_v32, %s15398_s21  ;;  %v1539_v20 = vpack.c.bf16 %v1311_v11, %v1308_v30  ;;  %v2045_v13 = vpack.c.bf16 %v1789_v54, %v1786_v25 }
 0x1f0   : > { %v9260_v37 = vpop.f32.mrf.mxu0  ;;  %v10971_v45 = vpop.f32.mrf.mxu1 }
 0x1f2   : > { %v1324_v8 = vpop.f32.mrf.mxu0  ;;  %v10973_v24 = vpop.f32.mrf.mxu1 }
 0x1f3   : > { %1583 = vrot.lane.b32.xlu0 %v1539_v20, %s15398_s21 }
 0x1f4   : > { %v9261_v10 = vpop.f32.mrf.mxu0  ;;  %v10976_v27 = vpop.f32.mrf.mxu1 }
 0x1f5   : > { %v1542_v30 = vpack.c.bf16 %v9261_v10, %v9260_v37 }
 0x1f6   : > { %v1327_v43 = vpop.f32.mrf.mxu0  ;;  %v10980_v5 = vpop.f32.mrf.mxu1 }
 0x1f7   : > { %v1541_v32 = vpack.c.bf16 %v1327_v43, %v1324_v8  ;;  %2081 = vrot.lane.b32.xlu0 %v2045_v13, %s15400_s20 }
 0x1f8   : > { %v9264_v19 = vpop.f32.mrf.mxu0  ;;  %v10983_v11 = vpop.f32.mrf.mxu1 }
 0x1f9   : > { %1587 = vrot.lane.b32.xlu1 %v1541_v32, %s15398_s21 }
 0x1fa   : > { %v1340_v20 = vpop.f32.mrf.mxu0  ;;  %v1818_v25 = vpop.f32.mrf.mxu1 }
 0x1fb   : > { %1589 = vrot.lane.b32.xlu0 %v1542_v30, %s15398_s21 }
 0x1fc   : > { %v9265_v54 = vpop.f32.mrf.mxu0  ;;  %v10987_v7 = vpop.f32.mrf.mxu1 }
 0x1fd   : > { %v1544_v16 = vpack.c.bf16 %v9265_v54, %v9264_v19 }
 0x1fe   : > { %v1343_v8 = vpop.f32.mrf.mxu0  ;;  %v1821_v43 = vpop.f32.mrf.mxu1 }
 0x1ff   : > { %1597 = vrot.lane.b32.xlu1 %v1544_v16, %s15359_s25  ;;  %v1543_v37 = vpack.c.bf16 %v1343_v8, %v1340_v20  ;;  %v2049_v30 = vpack.c.bf16 %v1821_v43, %v1818_v25 }
 0x200   : > { %v9268_v13 = vpop.f32.mrf.mxu0  ;;  %v10992_v10 = vpop.f32.mrf.mxu1 }
 0x202   : > { %v1356_v32 = vpop.f32.mrf.mxu0  ;;  %v10994_v12 = vpop.f32.mrf.mxu1 }
 0x203   : > { %1595 = vrot.lane.b32.xlu1 %v1543_v37, %s15359_s25 }
 0x204   : > { %v9269_v21 = vpop.f32.mrf.mxu0  ;;  %v10997_v19 = vpop.f32.mrf.mxu1 }
 0x205   : > { %v1546_v8 = vpack.c.bf16 %v9269_v21, %v9268_v13 }
 0x206   : > { %v1359_v14 = vpop.f32.mrf.mxu0  ;;  %v11001_v17 = vpop.f32.mrf.mxu1 }
 0x207   : > { %v1545_v16 = vpack.c.bf16 %v1359_v14, %v1356_v32  ;;  %2093 = vrot.lane.b32.xlu1 %v2049_v30, %s15398_s21 }
 0x208   : > { %v9272_v3 = vpop.f32.mrf.mxu0  ;;  %v11004_v20 = vpop.f32.mrf.mxu1 }
 0x209   : > { %1599 = vrot.lane.b32.xlu0 %v1545_v16, %s15359_s25 }
 0x20a   : > { %v1372_v37 = vpop.f32.mrf.mxu0  ;;  %v11007_v25 = vpop.f32.mrf.mxu1 }
 0x20b   : > { %1601 = vrot.lane.b32.xlu1 %v1546_v8, %s15359_s25 }
 0x20c   : > { %v9273_v43 = vpop.f32.mrf.mxu0  ;;  %v11010_v1 = vpop.f32.mrf.mxu1 }
 0x20d   : > { %v1548_v54 = vpack.c.bf16 %v9273_v43, %v9272_v3  ;;  %v10183_v3 = vld [vmem:[%s15276_s8 + $0x38] sm:$0xff]  }
 0x20e   : > { %v1375_v14 = vpop.f32.mrf.mxu0  ;;  %v11014_v32 = vpop.f32.mrf.mxu1  ;;  %2326 = vmatpush1.bf16.msra.mxu0 %v10183_v3 }
 0x20f   : > { %v1547_v21 = vpack.c.bf16 %v1375_v14, %v1372_v37  ;;  %1609 = vrot.lane.b32.xlu0 %v1548_v54, %s15357_s26  ;;  %2327 = vmatprep.subr.bf16.mxu0 %v15319_v6  ;;  %v10184_v54 = vld [vmem:[%s15276_s8 + $0x30] sm:$0xff]  }
 0x210   : > { %v9276_v13 = vpop.f32.mrf.mxu0  ;;  %v11018_v30 = vpop.f32.mrf.mxu1 }
 0x211   : > { %1607 = vrot.lane.b32.xlu1 %v1547_v21, %s15357_s26 }
 0x212   : > { %v1388_v16 = vpop.f32.mrf.mxu0  ;;  %v11024_v8 = vpop.f32.mrf.mxu1  ;;  %2328 = vmatpush1.bf16.msra.mxu0 %v10184_v54  ;;  %v10186_v54 = vld [vmem:[%s15276_s8 + $0x20] sm:$0xff]  }
 0x213   : > { %2329 = vmatprep.subr.bf16.mxu0 %v15319_v6 }
 0x214   : > { %v9277_v43 = vpop.f32.mrf.mxu0  ;;  %v11027_v37 = vpop.f32.mrf.mxu1 }
 0x215   : > { %v1550_v14 = vpack.c.bf16 %v9277_v43, %v9276_v13 }
 0x216   : > { %v1391_v26 = vpop.f32.mrf.mxu0  ;;  %v11034_v53 = vpop.f32.mrf.mxu1  ;;  %2330 = vmatpush1.bf16.msra.mxu0 %v10185_v46 }
 0x217   : > { %v1549_v21 = vpack.c.bf16 %v1391_v26, %v1388_v16  ;;  %1613 = vrot.lane.b32.xlu0 %v1550_v14, %s15357_s26  ;;  %2331 = vmatprep.subr.bf16.mxu0 %v15319_v6 }
 0x218   : > { %v9280_v3 = vpop.f32.mrf.mxu0  ;;  %v11038_v50 = vpop.f32.mrf.mxu1 }
 0x219   : > { %1611 = vrot.lane.b32.xlu1 %v1549_v21, %s15357_s26 }
 0x21a   : > { %v1404_v13 = vpop.f32.mrf.mxu0  ;;  %v11044_v43 = vpop.f32.mrf.mxu1  ;;  %2332 = vmatpush1.bf16.msra.mxu0 %v10186_v54  ;;  %v10188_v54 = vld [vmem:[%s15276_s8 + $0x10] sm:$0xff]  }
 0x21b   : > { %2333 = vmatprep.subr.bf16.mxu0 %v15319_v6 }
 0x21c   : > { %v9281_v26 = vpop.f32.mrf.mxu0  ;;  %v11047_v16 = vpop.f32.mrf.mxu1 }
 0x21d   : > { %v1552_v14 = vpack.c.bf16 %v9281_v26, %v9280_v3 }
 0x21e   : > { %v1407_v59 = vpop.f32.mrf.mxu0  ;;  %v11052_v58 = vpop.f32.mrf.mxu1  ;;  %2334 = vmatpush1.bf16.msra.mxu0 %v10187_v47 }
 0x21f   : > { %v1551_v62 = vpack.c.bf16 %v1407_v59, %v1404_v13  ;;  %1621 = vrot.lane.b32.xlu1 %v1552_v14, %s15335_s28  ;;  %2335 = vmatprep.subr.bf16.mxu0 %v15319_v6 }
 0x220   : > { %v9284_v46 = vpop.f32.mrf.mxu0  ;;  %v11056_v21 = vpop.f32.mrf.mxu1 }
 0x221   : > { %1619 = vrot.lane.b32.xlu0 %v1551_v62, %s15335_s28 }
 0x222   : > { %v1420_v3 = vpop.f32.mrf.mxu0  ;;  %v11062_v26 = vpop.f32.mrf.mxu1  ;;  %2336 = vmatpush1.bf16.msra.mxu0 %v10188_v54 }
 0x223   : > { %2337 = vmatprep.subr.bf16.mxu0 %v15319_v6 }
 0x224   : > { %v9285_v59 = vpop.f32.mrf.mxu0  ;;  %v11065_v13 = vpop.f32.mrf.mxu1 }
 0x225   : > { %v1554_v14 = vpack.c.bf16 %v9285_v59, %v9284_v46 }
 0x226   : > { %v1423_v36 = vpop.f32.mrf.mxu0  ;;  %v11072_v41 = vpop.f32.mrf.mxu1  ;;  %2338 = vmatpush1.bf16.msra.mxu0 %v10189_v55 }
 0x227   : > { %v1553_v62 = vpack.c.bf16 %v1423_v36, %v1420_v3  ;;  %1625 = vrot.lane.b32.xlu1 %v1554_v14, %s15335_s28  ;;  %2339 = vmatprep.subr.bf16.mxu0 %v15319_v6  ;;  %v10190_v3 = vld [vmem:[%s15276_s8] sm:$0xff]  }
 0x228   : > { %v9288_v47 = vpop.f32.mrf.mxu0  ;;  %v11076_v60 = vpop.f32.mrf.mxu1 }
 0x229   : > { %1623 = vrot.lane.b32.xlu0 %v1553_v62, %s15335_s28 }
 0x22a   : > { %v1436_v46 = vpop.f32.mrf.mxu0  ;;  %v1914_v59 = vpop.f32.mrf.mxu1  ;;  %2340 = vmatpush1.bf16.msra.mxu0 %v10190_v3 }
 0x22b   : > { %2355 = vmatprep.subr.bf16.mxu0 %v15319_v6 }
 0x22c   : > { %v9289_v54 = vpop.f32.mrf.mxu0  ;;  %v11083_v36 = vpop.f32.mrf.mxu1 }
 0x22d   : > { %v1556_v14 = vpack.c.bf16 %v9289_v54, %v9288_v47 }
 0x22e   : > { %v1439_v51 = vpop.f32.mrf.mxu0  ;;  %v1917_v42 = vpop.f32.mrf.mxu1  ;;  %2356 = vmatpush2.bf16.msra.mxu0 %v10191_v33 }
 0x22f   : > { %v1555_v39 = vpack.c.bf16 %v1439_v51, %v1436_v46  ;;  %1633 = vrot.lane.b32.xlu0 %v1556_v14, %s15333_s11 }
 0x230   : > { %v9292_v55 = vpop.f32.mrf.mxu0  ;;  %v11090_v62 = vpop.f32.mrf.mxu1 }
 0x231   : > { %1631 = vrot.lane.b32.xlu1 %v1555_v39, %s15333_s11 }
 0x232   : > { %v1452_v0 = vpop.f32.mrf.mxu0  ;;  %v11096_v47 = vpop.f32.mrf.mxu1 }
 0x234   : > { %v9293_v54 = vpop.f32.mrf.mxu0  ;;  %v11098_v51 = vpop.f32.mrf.mxu1 }
 0x235   : > { %v1558_v46 = vpack.c.bf16 %v9293_v54, %v9292_v55 }
 0x236   : > { %v1455_v3 = vpop.f32.mrf.mxu0  ;;  %v11100_v14 = vpop.f32.mrf.mxu1 }
 0x237   : > { %v1557_v6 = vpack.c.bf16 %v1455_v3, %v1452_v0  ;;  %1637 = vrot.lane.b32.xlu0 %v1558_v46, %s15333_s11  ;;  %v2057_v0 = vpack.c.bf16 %v11052_v58, %v11044_v43  ;;  %v2053_v46 = vpack.c.bf16 %v11014_v32, %v11007_v25  ;;  %v15538_v3 = vpack.c.bf16 %v10966_v63, %v10963_v28 }
 0x238   : > { %v9296_v57 = vpop.f32.mrf.mxu0  ;;  %v9368_v34 = vpop.f32.mrf.mxu1  ;;  %v15539_v63 = vpack.c.bf16 %v10987_v7, %v10983_v11  ;;  %v2062_v11 = vpack.c.bf16 %v11083_v36, %v11076_v60 }
 0x239   : > { %1635 = vrot.lane.b32.xlu1 %v1557_v6, %s15333_s11 }
 0x23a   : > { %v1468_v31 = vpop.f32.mrf.mxu0  ;;  %v1946_v39 = vpop.f32.mrf.mxu1 }
 0x23c   : > { %v9297_v22 = vpop.f32.mrf.mxu0  ;;  %v9369_v35 = vpop.f32.mrf.mxu1 }
 0x23d   : > { %v1560_v44 = vpack.c.bf16 %v9297_v22, %v9296_v57 }
 0x23e   : > { %v1471_v33 = vpop.f32.mrf.mxu0  ;;  %v1949_v40 = vpop.f32.mrf.mxu1 }
 0x23f   : > { %v1559_v38 = vpack.c.bf16 %v1471_v33, %v1468_v31  ;;  %1645 = vrot.lane.b32.xlu1 %v1560_v44, %s15331_s27  ;;  %v2061_v44 = vpack.c.bf16 %v1917_v42, %v1914_v59  ;;  %v2065_v42 = vpack.c.bf16 %v1949_v40, %v1946_v39  ;;  %v2058_v40 = vpack.c.bf16 %v11047_v16, %v11038_v50 }
 0x240   : > { %v9300_v55 = vpop.f32.mrf.mxu0  ;;  %v11105_v54 = vpop.f32.mrf.mxu1  ;;  %v2066_v39 = vpack.c.bf16 %v9369_v35, %v9368_v34  ;;  %v2047_v50 = vpack.c.bf16 %v10980_v5, %v10973_v24  ;;  %v2059_v35 = vpack.c.bf16 %v11072_v41, %v11062_v26  ;;  %v2063_v24 = vpack.c.bf16 %v11100_v14, %v11096_v47 }
 0x241   : > { %1643 = vrot.lane.b32.xlu0 %v1559_v38, %s15331_s27  ;;  %v2054_v38 = vpack.c.bf16 %v11010_v1, %v11004_v20  ;;  %v15540_v41 = vpack.c.bf16 %v10976_v27, %v10971_v45  ;;  %v15542_v47 = vpack.c.bf16 %v11027_v37, %v11018_v30  ;;  %v2064_v14 = vpack.c.bf16 %v11098_v51, %v11090_v62 }
 0x242   : > { %v1484_v6 = vpop.f32.mrf.mxu0  ;;  %v1962_v57 = vpop.f32.mrf.mxu1  ;;  %v15543_v27 = vpack.c.bf16 %v11065_v13, %v11056_v21 }
 0x243   : > { %2117 = vrot.lane.b32.xlu1 %v2057_v0, %s15357_s26 }
 0x244   : > { %v9301_v22 = vpop.f32.mrf.mxu0  ;;  %v9373_v58 = vpop.f32.mrf.mxu1 }
 0x245   : > { %2105 = vrot.lane.b32.xlu0 %v2053_v46, %s15359_s25  ;;  %v1562_v46 = vpack.c.bf16 %v9301_v22, %v9300_v55  ;;  %v2051_v55 = vpack.c.bf16 %v11001_v17, %v10994_v12  ;;  %v2055_v12 = vpack.c.bf16 %v11034_v53, %v11024_v8  ;;  %v15541_v8 = vpack.c.bf16 %v10997_v19, %v10992_v10 }
 0x246   : > { %v1487_v31 = vpop.f32.mrf.mxu0  ;;  %v1965_v32 = vpop.f32.mrf.mxu1  ;;  %v2068_v10 = vpack.c.bf16 %v9373_v58, %v11105_v54 }
 0x247   : > { %2083 = vrot.lane.b32.xlu1 %v15538_v3, %s15400_s20  ;;  %v1561_v0 = vpack.c.bf16 %v1487_v31, %v1484_v6  ;;  %v2067_v17 = vpack.c.bf16 %v1965_v32, %v1962_v57 }
 0x248   : > { %v11118_v43 = vpop.f32.mrf.mxu0  ;;  %v9376_v20 = vpop.f32.mrf.mxu1 }
 0x249   : > { %2129 = vrot.lane.b32.xlu0 %v2061_v44, %s15335_s28 }
 0x24a   : > { %v1500_v25 = vpop.f32.mrf.mxu0  ;;  %v1978_v7 = vpop.f32.mrf.mxu1 }
 0x24b   : > { %2107 = vrot.lane.b32.xlu1 %v2054_v38, %s15359_s25 }
 0x24c   : > { %v11124_v33 = vpop.f32.mrf.mxu0  ;;  %v9377_v6 = vpop.f32.mrf.mxu1 }
 0x24d   : > { %2095 = vrot.lane.b32.xlu0 %v15539_v63, %s15398_s21  ;;  %v1564_v28 = vpack.c.bf16 %v11124_v33, %v11118_v43  ;;  %v2070_v22 = vpack.c.bf16 %v9377_v6, %v9376_v20  ;;  %v1533_v43 = vpack.c.bf16 %v10938_v9, %v10930_v2 }
 0x24e   : > { %v1503_v59 = vpop.f32.mrf.mxu0  ;;  %v1981_v16 = vpop.f32.mrf.mxu1 }
 0x24f   : > { %2141 = vrot.lane.b32.xlu1 %v2065_v42, %s15333_s11  ;;  %v1563_v1 = vpack.c.bf16 %v1503_v59, %v1500_v25  ;;  %v2069_v60 = vpack.c.bf16 %v1981_v16, %v1978_v7 }
 0x250   : > { %v9380_v34 = vpop.f32.mrf.mxu1  ;;  %v9308_v7 = vpop.f32.mrf.mxu0 }
 0x251   : > { %1647 = vrot.lane.b32.xlu0 %v1561_v0, %s15331_s27  ;;  %8313 = vmatprep.mubr.msk.bf16.mxu0 %vm775_vm2, %v1563_v1  ;;  %v1574_v19 = vpop.permute.xlu1 %1573 }
 0x252   : > { %v1994_v5 = vpop.f32.mrf.mxu1  ;;  %v1516_v16 = vpop.f32.mrf.mxu0 }
 0x253   : > { %1649 = vrot.lane.b32.xlu1 %v1562_v46, %s15331_s27  ;;  %v1572_v30 = vpop.permute.xlu0 %1571 }
 0x254   : > { %v9381_v36 = vpop.f32.mrf.mxu1 }
 0x255   : > { %2119 = vrot.lane.b32.xlu0 %v2058_v40, %s15357_s26  ;;  %v2072_v45 = vpack.c.bf16 %v9381_v36, %v9380_v34 }
 0x256   : > { %v1997_v53 = vpop.f32.mrf.mxu1 }
 0x257   : > { %2131 = vrot.lane.b32.xlu1 %v2062_v11, %s15335_s28  ;;  %v2071_v26 = vpack.c.bf16 %v1997_v53, %v1994_v5  ;;  %v1531_v11 = vpack.c.bf16 %v10926_v56, %v10920_v49 }
 0x259   : > { %2143 = vrot.lane.b32.xlu0 %v2066_v39, %s15333_s11  ;;  %v11184_v37 = vpop.permute.xlu1 %1577  ;;  %v1653_v6 = vsel %vm775_vm2, %v1531_v11, %v1572_v30 }
 0x25b   : > { %2097 = vrot.lane.b32.xlu1 %v2051_v55, %s15398_s21  ;;  %v1576_v62 = vpop.permute.xlu0 %1575 }
 0x25d   : > { %2085 = vrot.lane.b32.xlu0 %v2047_v50, %s15400_s20 }
 0x25f   : > { %2155 = vrot.lane.b32.xlu1 %v2070_v22, %s15331_s27 }
 0x261   : > { %2153 = vrot.lane.b32.xlu0 %v2069_v60, %s15331_s27  ;;  %v1586_v57 = vpop.permute.xlu0 %1585 }
 0x263   : > { %2121 = vrot.lane.b32.xlu1 %v2059_v35, %s15357_s26 }
 0x265   : > { %2109 = vrot.lane.b32.xlu0 %v2055_v12, %s15359_s25  ;;  %v1584_v44 = vpop.permute.xlu0 %1583  ;;  %v9309_v12 = vpop.f32.mrf.mxu0 }
 0x266   : > { %v1665_v55 = vsel %vm1663_vm4, %v1653_v6, %v1584_v44  ;;  %v2041_v6 = vpack.c.bf16 %v10948_v29, %v10942_v18 }
 0x267   : > { %2145 = vrot.lane.b32.xlu1 %v2067_v17, %s15333_s11 }
 0x269   : > { %2133 = vrot.lane.b32.xlu0 %v2063_v24, %s15335_s28  ;;  %v11186_v38 = vpop.permute.xlu0 %2081  ;;  %v15544_v24 = vpack.c.bf16 %v10922_v52, %v10918_v48 }
 0x26b   : > { %2087 = vrot.lane.b32.xlu1 %v15540_v41, %s15400_s20  ;;  %v1588_v51 = vpop.permute.xlu1 %1587  ;;  %v1656_v36 = vsel %vm775_vm2, %v15544_v24, %v1574_v19  ;;  %v1659_v19 = vsel %vm775_vm2, %v1533_v43, %v1576_v62 }
 0x26c   : > { %v1667_v41 = vsel %vm1663_vm4, %v1656_v36, %v1586_v57  ;;  %v1669_v30 = vsel %vm1663_vm4, %v1659_v19, %v1588_v51  ;;  %v15545_v51 = vpack.c.bf16 %v10932_v4, %v10928_v61 }
 0x26d   : > { %2099 = vrot.lane.b32.xlu0 %v15541_v8, %s15398_s21  ;;  %v11190_v13 = vpop.permute.xlu0 %1589  ;;  %v1519_v8 = vpop.f32.mrf.mxu0 }
 0x26f   : > { %2111 = vrot.lane.b32.xlu1 %v15542_v47, %s15359_s25 }
 0x271   : > { %2157 = vrot.lane.b32.xlu0 %v2071_v26, %s15331_s27  ;;  %v1598_v31 = vpop.permute.xlu1 %1597 }
 0x272   : > { %v1676_v26 = vsel %vm1672_vm5, %v1667_v41, %v1598_v31  ;;  %v15547_v41 = vld [vmem:[#allocation40_spill] sm:$0xff] }
 0x273   : > { %2135 = vrot.lane.b32.xlu1 %v2064_v14, %s15335_s28  ;;  %s15580_s28 = smov 80  }
 0x275   : > { %2123 = vrot.lane.b32.xlu0 %v15543_v27, %s15357_s26  ;;  %v1596_v3 = vpop.permute.xlu1 %1595  ;;  %v1565_v27 = vpack.c.bf16 %v1519_v8, %v1516_v16  ;;  %v2163_v16 = vsel %vm775_vm2, %v2041_v6, %v11186_v38  ;;  %v11294_v6 = vld [vmem:[%s15270_s2] sm:$0xff]  }
 0x276   : > { %v1674_v22 = vsel %vm1672_vm5, %v1665_v55, %v1596_v3 }
 0x277   : > { %2159 = vrot.lane.b32.xlu1 %v2072_v45, %s15331_s27 }
 0x279   : > { %2147 = vrot.lane.b32.xlu0 %v2068_v10, %s15333_s11  ;;  %v11188_v21 = vpop.permute.xlu1 %2093  ;;  %v9384_v10 = vpop.f32.mrf.mxu1 }
 0x27b   : > { %v1600_v58 = vpop.permute.xlu0 %1599  ;;  %v2010_v31 = vpop.f32.mrf.mxu1 }
 0x27c   : > { %v1678_v44 = vsel %vm1672_vm5, %v1669_v30, %v1600_v58  ;;  %v1662_v58 = vsel %vm775_vm2, %v15545_v51, %v11184_v37 }
 0x27d   : > { %v11192_v54 = vpop.permute.xlu1 %1601 }
 0x281   : > { %v1610_v32 = vpop.permute.xlu0 %1609 }
 0x282   : > { %v1684_v47 = vsel %vm1101_vm3, %v1676_v26, %v1610_v32 }
 0x283   : > { %v1608_v25 = vpop.permute.xlu1 %1607 }
 0x284   : > { %v1682_v60 = vsel %vm1101_vm3, %v1674_v22, %v1608_v25 }
 0x289   : > { %v11194_v63 = vpop.permute.xlu0 %1613 }
 0x28b   : > { %v1612_v42 = vpop.permute.xlu1 %1611 }
 0x28c   : > { %v1686_v3 = vsel %vm1101_vm3, %v1678_v44, %v1612_v42  ;;  %v1671_v42 = vsel %vm1663_vm4, %v1662_v58, %v11190_v13  ;;  %v15550_v44 = vld [vmem:[#allocation39_spill] sm:$0xff] }
 0x291   : > { %v1622_v59 = vpop.permute.xlu1 %1621 }
 0x292   : > { %v1693_v45 = vsel %vm1689_vm6, %v1684_v47, %v1622_v59  ;;  %v9385_v59 = vpop.f32.mrf.mxu1 }
 0x293   : > { %v1620_v0 = vpop.permute.xlu0 %1619  ;;  %v2074_v24 = vpack.c.bf16 %v9385_v59, %v9384_v10 }
 0x294   : > { %v1691_v35 = vsel %vm1689_vm6, %v1682_v60, %v1620_v0  ;;  %v1566_v0 = vpack.c.bf16 %v9309_v12, %v9308_v7  ;;  %v1680_v7 = vsel %vm1672_vm5, %v1671_v42, %v11192_v54 }
 0x295   : > { %v1688_v11 = vsel %vm1101_vm3, %v1680_v7, %v11194_v63  ;;  %v2174_v63 = vsel %vm1663_vm4, %v2163_v16, %v11188_v21 }
 0x299   : > { %v11196_v1 = vpop.permute.xlu1 %1625 }
 0x29a   : > { %v1697_v61 = vsel %vm1689_vm6, %v1688_v11, %v11196_v1 }
 0x29b   : > { %v1624_v20 = vpop.permute.xlu0 %1623 }
 0x29c   : > { %v1695_v32 = vsel %vm1689_vm6, %v1686_v3, %v1624_v20 }
 0x2a1   : > { %v1634_v40 = vpop.permute.xlu0 %1633 }
 0x2a2   : > { %v1702_v48 = vsel %vm1698_vm7, %v1693_v45, %v1634_v40  ;;  %v2013_v40 = vpop.f32.mrf.mxu1 }
 0x2a3   : > { %v1632_v46 = vpop.permute.xlu1 %1631  ;;  %v2073_v4 = vpack.c.bf16 %v2013_v40, %v2010_v31  ;;  %v15549_v31 = vld [vmem:[#allocation41_spill] sm:$0xff] }
 0x2a4   : > { %v1700_v49 = vsel %vm1698_vm7, %v1691_v35, %v1632_v46  ;;  %v9388_v13 = vpop.f32.mrf.mxu1  ;;  %v15551_v3 = vpack.c.bf16 %v15549_v31, %v15550_v44 }
 0x2a6   : > { %v2026_v1 = vpop.f32.mrf.mxu1 }
 0x2a8   : > { %v9389_v12 = vpop.f32.mrf.mxu1 }
 0x2a9   : > { %v1638_v50 = vpop.permute.xlu0 %1637  ;;  %v2076_v59 = vpack.c.bf16 %v9389_v12, %v9388_v13 }
 0x2aa   : > { %v1706_v37 = vsel %vm1698_vm7, %v1697_v61, %v1638_v50  ;;  %v15546_v50 = vpack.c.bf16 %v10944_v23, %v10940_v15  ;;  %v2029_v26 = vpop.f32.mrf.mxu1 }
 0x2ab   : > { %v1636_v39 = vpop.permute.xlu1 %1635 }
 0x2ac   : > { %v1704_v2 = vsel %vm1698_vm7, %v1695_v32, %v1636_v39 }
 0x2b1   : > { %v1646_v34 = vpop.permute.xlu1 %1645 }
 0x2b2   : > { %v1712_v33 = vsel %vm1707_vm8, %v1702_v48, %v1646_v34 }
 0x2b3   : > { %v1644_v56 = vpop.permute.xlu0 %1643 }
 0x2b4   : > { %v1709_v5 = vsel %vm1707_vm8, %v1700_v49, %v1644_v56 }
 0x2b5   : > { %v2118_v17 = vpop.permute.xlu1 %2117  ;;  %2358 = vmatmul.mubr.bf16.vlgmr.msra.gmra.mxu0 %v1709_v5 }
 0x2b6   : > { %8314 = vmatprep.mubr.msk.bf16.mxu0 %vm775_vm2, %v1564_v28 }
 0x2b7   : > { %v2106_v53 = vpop.permute.xlu0 %2105 }
 0x2b8   : > { %v2182_v18 = vsel %vm1672_vm5, %v2174_v63, %v2106_v53 }
 0x2b9   : > { %v2084_v14 = vpop.permute.xlu1 %2083  ;;  %v2190_v38 = vsel %vm1101_vm3, %v2182_v18, %v2118_v17  ;;  %v15548_v17 = vld [vmem:[#allocation42_spill] sm:$0xff] }
 0x2ba   : > { %v2166_v60 = vsel %vm775_vm2, %v15546_v50, %v2084_v14  ;;  %v2043_v53 = vpack.c.bf16 %v15548_v17, %v15547_v41 }
 0x2bb   : > { %v2130_v52 = vpop.permute.xlu0 %2129 }
 0x2bc   : > { %v2198_v21 = vsel %vm1689_vm6, %v2190_v38, %v2130_v52 }
 0x2bd   : > { %v2108_v28 = vpop.permute.xlu1 %2107  ;;  %2366 = vmatmul.mubr.bf16.gmra.mxu0 %v1712_v33 }
 0x2be   : > { %8315 = vmatprep.mubr.msk.bf16.mxu0 %vm775_vm2, %v1565_v27  ;;  %v2075_v27 = vpack.c.bf16 %v2029_v26, %v2026_v1  ;;  %v15552_v1 = vld [vmem:[#allocation5_spill] sm:$0xff] }
 0x2bf   : > { %v2096_v57 = vpop.permute.xlu0 %2095  ;;  %v15337_v50 = vsub.s32 2, %v15552_v1 }
 0x2c0   : > { %v2176_v34 = vsel %vm1663_vm4, %v2166_v60, %v2096_v57 }
 0x2c1   : > { %v2142_v25 = vpop.permute.xlu1 %2141  ;;  %v2184_v5 = vsel %vm1672_vm5, %v2176_v34, %v2108_v28  ;;  %v10224_v34 = vld [vmem:[%s15277_s9] sm:$0xff] }
 0x2c2   : > { %v2206_v49 = vsel %vm1698_vm7, %v2198_v21, %v2142_v25 }
 0x2c3   : > { %v1648_v9 = vpop.permute.xlu0 %1647 }
 0x2c4   : > { %v1715_v62 = vsel %vm1707_vm8, %v1704_v2, %v1648_v9 }
 0x2c5   : > { %v1650_v46 = vpop.permute.xlu1 %1649  ;;  %2374 = vmatmul.mubr.bf16.gmra.mxu0 %v1715_v62 }
 0x2c6   : > { %8316 = vmatprep.mubr.msk.bf16.mxu0 %vm775_vm2, %v1566_v0  ;;  %v1718_v54 = vsel %vm1707_vm8, %v1706_v37, %v1650_v46 }
 0x2c7   : > { %v2120_v20 = vpop.permute.xlu0 %2119 }
 0x2c8   : > { %v2192_v15 = vsel %vm1101_vm3, %v2184_v5, %v2120_v20 }
 0x2c9   : > { %v2132_v39 = vpop.permute.xlu1 %2131 }
 0x2ca   : > { %v2200_v47 = vsel %vm1689_vm6, %v2192_v15, %v2132_v39 }
 0x2cb   : > { %v2144_v55 = vpop.permute.xlu0 %2143 }
 0x2cc   : > { %v2208_v48 = vsel %vm1698_vm7, %v2200_v47, %v2144_v55 }
 0x2cd   : > { %v2098_v22 = vpop.permute.xlu1 %2097  ;;  %2382 = vmatmul.mubr.bf16.gmra.mxu0 %v1718_v54 }
 0x2ce   : > { %8317 = vmatprep.mubr.msk.bf16.mxu0 %vm775_vm2, %v2073_v4 }
 0x2cf   : > { %v2086_v29 = vpop.permute.xlu0 %2085 }
 0x2d0   : > { %v2169_v14 = vsel %vm775_vm2, %v2043_v53, %v2086_v29 }
 0x2d1   : > { %v2156_v35 = vpop.permute.xlu1 %2155  ;;  %v2178_v52 = vsel %vm1663_vm4, %v2169_v14, %v2098_v22 }
 0x2d2   : > { %v2217_v33 = vsel %vm1707_vm8, %v2208_v48, %v2156_v35  ;;  %v11304_v35 = vrot.slane %v10224_v34, %v15337_v50 }
 0x2d3   : > { %v2154_v56 = vpop.permute.xlu0 %2153 }
 0x2d4   : > { %v2214_v36 = vsel %vm1707_vm8, %v2206_v49, %v2154_v56 }
 0x2d5   : > { %v2122_v23 = vpop.permute.xlu1 %2121  ;;  %2390 = vmatmul.mubr.bf16.gmra.mxu0 %v2214_v36 }
 0x2d6   : > { %8318 = vmatprep.mubr.msk.bf16.mxu0 %vm775_vm2, %v2074_v24 }
 0x2d7   : > { %v2110_v8 = vpop.permute.xlu0 %2109 }
 0x2d8   : > { %v2186_v43 = vsel %vm1672_vm5, %v2178_v52, %v2110_v8 }
 0x2d9   : > { %v2146_v45 = vpop.permute.xlu1 %2145  ;;  %v2194_v19 = vsel %vm1101_vm3, %v2186_v43, %v2122_v23 }
 0x2db   : > { %v2134_v10 = vpop.permute.xlu0 %2133 }
 0x2dc   : > { %v2202_v57 = vsel %vm1689_vm6, %v2194_v19, %v2134_v10 }
 0x2dd   : > { %v2088_v28 = vpop.permute.xlu1 %2087  ;;  %2398 = vmatmul.mubr.bf16.gmra.mxu0 %v2217_v33  ;;  %v2210_v2 = vsel %vm1698_vm7, %v2202_v57, %v2146_v45 }
 0x2de   : > { %8319 = vmatprep.mubr.msk.bf16.mxu0 %vm775_vm2, %v2075_v27  ;;  %v2172_v25 = vsel %vm775_vm2, %v15551_v3, %v2088_v28 }
 0x2df   : > { %v2100_v30 = vpop.permute.xlu0 %2099 }
 0x2e0   : > { %v2180_v0 = vsel %vm1663_vm4, %v2172_v25, %v2100_v30 }
 0x2e1   : > { %v2112_v32 = vpop.permute.xlu1 %2111 }
 0x2e2   : > { %v2188_v51 = vsel %vm1672_vm5, %v2180_v0, %v2112_v32  ;;  %v11323_v0 = vld [vmem:[%s15270_s2 + $0x8] sm:$0xff]  }
 0x2e3   : > { %v2158_v9 = vpop.permute.xlu0 %2157 }
 0x2e4   : > { %v2220_v62 = vsel %vm1707_vm8, %v2210_v2, %v2158_v9  ;;  %v10192_v2 = vld [vmem:[%s15276_s8 + $0x80] sm:$0xff]   ;;  %v15553_v9 = vmov 0  }
 0x2e5   : > { %2406 = vmatmul.mubr.bf16.gmra.mxu0 %v2220_v62  ;;  %v2136_v46 = vpop.permute.xlu1 %2135 }
 0x2e6   : > { %8320 = vmatprep.mubr.msk.bf16.mxu0 %vm775_vm2, %v2076_v59 }
 0x2e7   : > { %v2124_v58 = vpop.permute.xlu0 %2123 }
 0x2e8   : > { %v2196_v42 = vsel %vm1101_vm3, %v2188_v51, %v2124_v58  ;;  %v11333_v51 = vld [vmem:[%s15270_s2 + $0x10] sm:$0xff]  }
 0x2e9   : > { %v2204_v20 = vsel %vm1689_vm6, %v2196_v42, %v2136_v46  ;;  %v2160_v7 = vpop.permute.xlu1 %2159  ;;  %v10193_v46 = vld [vmem:[%s15276_s8 + $0x78] sm:$0xff]   ;;  %v10194_v42 = vld [vmem:[%s15276_s8 + $0x70] sm:$0xff]  }
 0x2eb   : > { %v2148_v40 = vpop.permute.xlu0 %2147 }
 0x2ec   : > { %v2212_v11 = vsel %vm1698_vm7, %v2204_v20, %v2148_v40 }
 0x2ed   : > { %v2223_v39 = vsel %vm1707_vm8, %v2212_v11, %v2160_v7  ;;  %v11345_v7 = vld [vmem:[%s15270_s2 + $0x18] sm:$0xff]  }
 0x2ee   : > { %2414 = vmatmul.mubr.bf16.gmra.mxu0 %v2223_v39 }
 0x2ef   : > { %9478 = vmatprep.mubr.msk.bf16.mxu0 %vm1101_vm3, %v11294_v6 }
 0x375   : > { %v2359_v61 = vpop.f32.mrf.mxu0 }
 0x376   : > { %v2360_v10 = vadd.f32 %v2359_v61, %v11304_v35  ;;  %v10195_v61 = vld [vmem:[%s15276_s8 + $0x68] sm:$0xff]  }
 0x377   : > { %v2361_v4 = vpop.f32.mrf.mxu0 }
 0x378   : > { %v2422_v57 = vmax.f32 %v2360_v10, 0.0  ;;  %v11357_v4 = vld [vmem:[%s15270_s2 + $0x20] sm:$0xff]   ;;  %v15556_v10 = vld [vmem:[#allocation14_spill] sm:$0xff] }
 0x379   : > { %v2362_v37 = vpop.f32.mrf.mxu0 }
 0x37a   : > { %v2363_v45 = vadd.f32 %v2362_v37, %v11304_v35 }
 0x37b   : > { %v2364_v55 = vpop.f32.mrf.mxu0 }
 0x37c   : > { %v2423_v28 = vmax.f32 %v2363_v45, 0.0  ;;  %v15555_v45 = vld [vmem:[#allocation8_spill] sm:$0xff] }
 0x37d   : > { %v2367_v13 = vpop.f32.mrf.mxu0 }
 0x37e   : > { %v2368_v8 = vadd.f32 %v2367_v13, %v11304_v35  ;;  %v2438_v44 = vpack.c.bf16 %v2423_v28, %v2422_v57  ;;  %v15558_v28 = vld [vmem:[#allocation7_spill] sm:$0xff] }
 0x37f   : > { %v2369_v16 = vpop.f32.mrf.mxu0  ;;  %v11438_v57 = vld [vmem:[%s15270_s2 + $0x50] sm:$0xff]  }
 0x380   : > { %v2424_v43 = vmax.f32 %v2368_v8, 0.0 }
 0x381   : > { %v2370_v54 = vpop.f32.mrf.mxu0 }
 0x382   : > { %v2371_v15 = vadd.f32 %v2370_v54, %v11304_v35 }
 0x383   : > { %v2372_v63 = vpop.f32.mrf.mxu0 }
 0x384   : > { %v2425_v27 = vmax.f32 %v2371_v15, 0.0  ;;  %v11387_v15 = vld [vmem:[%s15270_s2 + $0x30] sm:$0xff]  }
 0x385   : > { %v2375_v22 = vpop.f32.mrf.mxu0 }
 0x386   : > { %v2376_v5 = vadd.f32 %v2375_v22, %v11304_v35  ;;  %v2439_v19 = vpack.c.bf16 %v2425_v27, %v2424_v43  ;;  %v15557_v43 = vld [vmem:[#allocation16_spill] sm:$0xff] }
 0x387   : > { %v2377_v18 = vpop.f32.mrf.mxu0 }
 0x388   : > { %v2426_v26 = vmax.f32 %v2376_v5, 0.0  ;;  %v10197_v5 = vld [vmem:[%s15276_s8 + $0x58] sm:$0xff]  }
 0x389   : > { %v2378_v29 = vpop.f32.mrf.mxu0 }
 0x38a   : > { %v2379_v49 = vadd.f32 %v2378_v29, %v11304_v35  ;;  %v10196_v29 = vld [vmem:[%s15276_s8 + $0x60] sm:$0xff]  }
 0x38b   : > { %v2380_v60 = vpop.f32.mrf.mxu0 }
 0x38c   : > { %v2427_v23 = vmax.f32 %v2379_v49, 0.0 }
 0x38d   : > { %v2383_v38 = vpop.f32.mrf.mxu0 }
 0x38e   : > { %v2384_v56 = vadd.f32 %v2383_v38, %v11304_v35  ;;  %v2440_v48 = vpack.c.bf16 %v2427_v23, %v2426_v26  ;;  %v10199_v26 = vld [vmem:[%s15276_s8 + $0x48] sm:$0xff]  }
 0x38f   : > { %v2385_v21 = vpop.f32.mrf.mxu0 }
 0x390   : > { %v2428_v41 = vmax.f32 %v2384_v56, 0.0  ;;  %v11373_v21 = vld [vmem:[%s15270_s2 + $0x28] sm:$0xff]  }
 0x391   : > { %v2386_v12 = vpop.f32.mrf.mxu0 }
 0x392   : > { %v2387_v24 = vadd.f32 %v2386_v12, %v11304_v35 }
 0x393   : > { %v2388_v36 = vpop.f32.mrf.mxu0 }
 0x394   : > { %v2429_v17 = vmax.f32 %v2387_v24, 0.0 }
 0x395   : > { %v11311_v53 = vpop.f32.mrf.mxu0 }
 0x396   : > { %v2441_v47 = vpack.c.bf16 %v2429_v17, %v2428_v41  ;;  %v2392_v24 = vadd.f32 %v11311_v53, %v11304_v35  ;;  %v10198_v17 = vld [vmem:[%s15276_s8 + $0x50] sm:$0xff]   ;;  %v11398_v53 = vld [vmem:[%s15270_s2 + $0x38] sm:$0xff]  }
 0x397   : > { %v2393_v14 = vpop.f32.mrf.mxu0 }
 0x398   : > { %9390 = vmatprep.subr.bf16.mxu1 %v2441_v47  ;;  %v15554_v14 = vld [vmem:[#allocation6_spill] sm:$0xff] }
 0x399   : > { %v2394_v52 = vpop.f32.mrf.mxu0  ;;  %9391 = vmatpush3.bf16.msra.mxu1 %v2441_v47  ;;  %v11408_v47 = vld [vmem:[%s15270_s2 + $0x40] sm:$0xff]   ;;  %v3673_v27 = vpack.c.bf16 %v15555_v45, %v15554_v14  ;;  %v10204_v14 = vld [vmem:[%s15271_s3 + $0x18] sm:$0xff]  }
 0x39a   : > { %9392 = vmatprep.subr.bf16.mxu1 %v2440_v48  ;;  %v2395_v49 = vadd.f32 %v2394_v52, %v11304_v35  ;;  %v11422_v52 = vld [vmem:[%s15270_s2 + $0x48] sm:$0xff]  }
 0x39b   : > { %v2396_v33 = vpop.f32.mrf.mxu0 }
 0x39c   : > { %v2431_v23 = vmax.f32 %v2395_v49, 0.0  ;;  %v11428_v33 = vpack.c.bf16 %v15557_v43, %v15556_v10  ;;  %v11590_v49 = vld [vmem:[%s15270_s2 + $0xc8] sm:$0xff]  }
 0x39d   : > { %v2399_v30 = vpop.f32.mrf.mxu0  ;;  %9393 = vmatpush3.bf16.msra.mxu1 %v2440_v48  ;;  %v10200_v48 = vld [vmem:[%s15276_s8 + $0x88] sm:$0xff]  }
 0x39e   : > { %9394 = vmatprep.subr.bf16.mxu1 %v2439_v19  ;;  %v2400_v60 = vadd.f32 %v2399_v30, %v11304_v35  ;;  %v15574_v43 = vld [vmem:[#allocation26_spill] sm:$0xff] }
 0x39f   : > { %v2401_v31 = vpop.f32.mrf.mxu0 }
 0x3a0   : > { %v2432_v36 = vmax.f32 %v2400_v60, 0.0  ;;  %v15560_v31 = vld [vmem:[#allocation22_spill] sm:$0xff]  ;;  %v11563_v60 = vld [vmem:[%s15270_s2 + $0xb0] sm:$0xff]  }
 0x3a1   : > { %v2402_v3 = vpop.f32.mrf.mxu0  ;;  %9395 = vmatpush3.bf16.msra.mxu1 %v2439_v19  ;;  %v15559_v19 = vld [vmem:[#allocation10_spill] sm:$0xff]  ;;  %v11722_v10 = vadd.f32 %v15574_v43, %v15560_v31 }
 0x3a2   : > { %9396 = vmatprep.subr.bf16.mxu1 %v2438_v44  ;;  %v2403_v54 = vadd.f32 %v2402_v3, %v11304_v35  ;;  %v3672_v30 = vpack.c.bf16 %v15559_v19, %v15558_v28  ;;  %v15576_v19 = vld [vmem:[#allocation24_spill] sm:$0xff] }
 0x3a3   : > { %v2404_v25 = vpop.f32.mrf.mxu0  ;;  %15575 = vst [vmem:[#allocation39_spill] sm:$0xff] %v11722_v10  ;;  %v3936_v28 = vmax.f32 %v15576_v19, 0.0 }
 0x3a4   : > { %v2433_v56 = vmax.f32 %v2403_v54, 0.0  ;;  %v15563_v25 = vld [vmem:[#allocation29_spill] sm:$0xff]  ;;  %v11518_v54 = vld [vmem:[%s15270_s2 + $0x88] sm:$0xff]  }
 0x3a5   : > { %v2407_v32 = vpop.f32.mrf.mxu0  ;;  %9397 = vmatpush3.bf16.msra.mxu1 %v2438_v44  ;;  %v15561_v44 = vld [vmem:[#allocation27_spill] sm:$0xff] }
 0x3a6   : > { %3557 = vmatprep.subr.bf16.mxu1 %v15553_v9  ;;  %v2408_v55 = vadd.f32 %v2407_v32, %v11304_v35  ;;  %v2443_v41 = vpack.c.bf16 %v2433_v56, %v2432_v36  ;;  %v11446_v3 = vadd.f32 %v15561_v44, %v15560_v31  ;;  %v11450_v32 = vadd.f32 %v15563_v25, %v15560_v31  ;;  %v11599_v56 = vld [vmem:[%s15270_s2 + $0xd0] sm:$0xff]   ;;  %v10202_v25 = vld [vmem:[%s15271_s3 + $0x8] sm:$0xff]  }
 0x3a7   : > { %v2409_v59 = vpop.f32.mrf.mxu0  ;;  %v11635_v36 = vld [vmem:[%s15270_s2 + $0xf0] sm:$0xff]  }
 0x3a8   : > { %9399 = vmatmul.mubr.msk.bf16.vlgmr.msra.gmra.mxu1 %vm1101_vm3, %v11323_v0  ;;  %v2434_v38 = vmax.f32 %v2408_v55, 0.0  ;;  %15562 = vst [vmem:[#allocation40_spill] sm:$0xff] %v11446_v3  ;;  %15564 = vst [vmem:[#allocation42_spill] sm:$0xff] %v11450_v32  ;;  %v15566_v59 = vld [vmem:[#allocation9_spill] sm:$0xff]  ;;  %v11491_v55 = vld [vmem:[%s15270_s2 + $0x70] sm:$0xff]  }
 0x3a9   : > { %v2410_v62 = vpop.f32.mrf.mxu0  ;;  %3558 = vmatpush1.bf16.msra.mxu1 %v10192_v2  ;;  %9402 = vmatprep.mubr.msk.bf16.mxu1 %vm1101_vm3, %v11333_v51  ;;  %v15565_v2 = vld [vmem:[#allocation11_spill] sm:$0xff] }
 0x3aa   : > { %3559 = vmatprep.subr.bf16.mxu1 %v15553_v9  ;;  %v2411_v11 = vadd.f32 %v2410_v62, %v11304_v35  ;;  %v3671_v62 = vpack.c.bf16 %v15566_v59, %v15565_v2 }
 0x3ab   : > { %v2412_v58 = vpop.f32.mrf.mxu0 }
 0x3ac   : > { %v2435_v63 = vmax.f32 %v2411_v11, 0.0  ;;  %v3942_v58 = vmax.f32 %v11446_v3, 0.0 }
 0x3ad   : > { %3560 = vmatpush1.bf16.msra.mxu1 %v10193_v46  ;;  %v11457_v46 = vld [vmem:[%s15270_s2 + $0x58] sm:$0xff]  }
 0x3ae   : > { %v2415_v20 = vpop.f32.mrf.mxu0  ;;  %3561 = vmatprep.subr.bf16.mxu1 %v15553_v9  ;;  %v2444_v12 = vpack.c.bf16 %v2435_v63, %v2434_v38  ;;  %v11527_v63 = vld [vmem:[%s15270_s2 + $0x90] sm:$0xff]   ;;  %v11572_v38 = vld [vmem:[%s15270_s2 + $0xb8] sm:$0xff]  }
 0x3af   : > { %v2416_v39 = vadd.f32 %v2415_v20, %v11304_v35  ;;  %v15567_v20 = vld [vmem:[#allocation13_spill] sm:$0xff] }
 0x3b0   : > { %v2417_v40 = vpop.f32.mrf.mxu0  ;;  %9403 = vmatmul.mubr.msk.bf16.gmra.mxu1 %vm1101_vm3, %v11345_v7 }
 0x3b1   : > { %3562 = vmatpush1.bf16.msra.mxu1 %v10194_v42  ;;  %9406 = vmatprep.mubr.msk.bf16.mxu1 %vm1101_vm3, %v11357_v4  ;;  %v2436_v22 = vmax.f32 %v2416_v39, 0.0  ;;  %v3943_v42 = vmax.f32 %v11450_v32, 0.0  ;;  %v15568_v40 = vld [vmem:[#allocation12_spill] sm:$0xff]  ;;  %v11470_v39 = vld [vmem:[%s15270_s2 + $0x60] sm:$0xff]  }
 0x3b2   : > { %v2418_v37 = vpop.f32.mrf.mxu0  ;;  %3563 = vmatprep.subr.bf16.mxu1 %v15553_v9  ;;  %v3670_v11 = vpack.c.bf16 %v15568_v40, %v15567_v20  ;;  %v3937_v40 = vmax.f32 %v11722_v10, 0.0 }
 0x3b3   : > { %v2419_v13 = vadd.f32 %v2418_v37, %v11304_v35  ;;  %v2430_v35 = vmax.f32 %v2392_v24, 0.0  ;;  %v11482_v37 = vld [vmem:[%s15270_s2 + $0x68] sm:$0xff]  }
 0x3b4   : > { %v2420_v16 = vpop.f32.mrf.mxu0  ;;  %v11626_v24 = vld [vmem:[%s15270_s2 + $0xe8] sm:$0xff]   ;;  %v3952_v43 = vpack.c.bf16 %v3937_v40, %v3936_v28 }
 0x3b5   : > { %v2437_v18 = vmax.f32 %v2419_v13, 0.0  ;;  %3564 = vmatpush1.bf16.msra.mxu1 %v10195_v61  ;;  %v2442_v8 = vpack.c.bf16 %v2431_v23, %v2430_v35  ;;  %v11476_v61 = vpack.c.bf16 %v3943_v42, %v3942_v58  ;;  %v11500_v13 = vld [vmem:[%s15270_s2 + $0x78] sm:$0xff]   ;;  %v11509_v16 = vld [vmem:[%s15270_s2 + $0x80] sm:$0xff]   ;;  %v11671_v35 = vld [vmem:[%s15270_s2 + $0x110] sm:$0xff]  }
 0x3b6   : > { %3565 = vmatprep.subr.bf16.mxu1 %v15553_v9  ;;  %v11644_v23 = vld [vmem:[%s15270_s2 + $0xf8] sm:$0xff]   ;;  %v10203_v58 = vld [vmem:[%s15271_s3 + $0x10] sm:$0xff]  }
 0x3b7   : > { %v2445_v34 = vpack.c.bf16 %v2437_v18, %v2436_v22  ;;  %v11536_v22 = vld [vmem:[%s15270_s2 + $0x98] sm:$0xff]   ;;  %v11545_v18 = vld [vmem:[%s15270_s2 + $0xa0] sm:$0xff]   ;;  %v15572_v42 = vld [vmem:[#allocation23_spill] sm:$0xff] }
 0x3b8   : > { %9407 = vmatmul.mubr.msk.bf16.gmra.mxu1 %vm1101_vm3, %v11373_v21 }
 0x3b9   : > { %9470 = vmatprep.subr.bf16.mxu0 %v2445_v34  ;;  %3566 = vmatpush1.bf16.msra.mxu1 %v10196_v29  ;;  %v11554_v29 = vld [vmem:[%s15270_s2 + $0xa8] sm:$0xff]  }
 0x3ba   : > { %9471 = vmatpush3.bf16.msra.mxu0 %v2445_v34  ;;  %3567 = vmatprep.subr.bf16.mxu1 %v15553_v9  ;;  %v11581_v34 = vld [vmem:[%s15270_s2 + $0xc0] sm:$0xff]  }
 0x3bb   : > { %9472 = vmatprep.subr.bf16.mxu0 %v2444_v12  ;;  %9410 = vmatprep.mubr.msk.bf16.mxu1 %vm1101_vm3, %v11387_v15 }
 0x3bd   : > { %3568 = vmatpush1.bf16.msra.mxu1 %v10197_v5  ;;  %v11617_v5 = vld [vmem:[%s15270_s2 + $0xe0] sm:$0xff]  }
 0x3be   : > { %9473 = vmatpush3.bf16.msra.mxu0 %v2444_v12  ;;  %3569 = vmatprep.subr.bf16.mxu1 %v15553_v9  ;;  %v11608_v12 = vld [vmem:[%s15270_s2 + $0xd8] sm:$0xff]  }
 0x3bf   : > { %9474 = vmatprep.subr.bf16.mxu0 %v2443_v41 }
 0x3c0   : > { %9411 = vmatmul.mubr.msk.bf16.gmra.mxu1 %vm1101_vm3, %v11398_v53 }
 0x3c1   : > { %3570 = vmatpush1.bf16.msra.mxu1 %v10198_v17  ;;  %9414 = vmatprep.mubr.msk.bf16.mxu1 %vm1101_vm3, %v11408_v47  ;;  %v11662_v17 = vld [vmem:[%s15270_s2 + $0x108] sm:$0xff]  }
 0x3c2   : > { %9475 = vmatpush3.bf16.msra.mxu0 %v2443_v41  ;;  %3571 = vmatprep.subr.bf16.mxu1 %v15553_v9  ;;  %v11653_v41 = vld [vmem:[%s15270_s2 + $0x100] sm:$0xff]  }
 0x3c3   : > { %9476 = vmatprep.subr.bf16.mxu0 %v2442_v8 }
 0x3c5   : > { %3572 = vmatpush1.bf16.msra.mxu1 %v10199_v26  ;;  %v10201_v26 = vld [vmem:[%s15271_s3] sm:$0xff]  }
 0x3c6   : > { %9477 = vmatpush3.bf16.msra.mxu0 %v2442_v8  ;;  %3587 = vmatprep.subr.bf16.mxu1 %v15553_v9  ;;  %v11680_v8 = vld [vmem:[%s15270_s2 + $0x118] sm:$0xff]  }
 0x3c7   : > { %9550 = vmatprep.subr.bf16.mxu0 %v3673_v27 }
 0x3c8   : > { %9415 = vmatmul.mubr.msk.bf16.gmra.mxu1 %vm1101_vm3, %v11422_v52 }
 0x3c9   : > { %9479 = vmatmul.mubr.msk.bf16.vlgmr.msra.gmra.mxu0 %vm1101_vm3, %v11323_v0  ;;  %3588 = vmatpush2.bf16.msra.mxu1 %v10200_v48 }
 0x3ca   : > { %9551 = vmatpush3.bf16.msra.mxu0 %v3673_v27  ;;  %9566 = vmatprep.subr.bf16.mxu1 %v11428_v33  ;;  %v15569_v27 = vld [vmem:[#allocation30_spill] sm:$0xff] }
 0x3cb   : > { %9552 = vmatprep.subr.bf16.mxu0 %v3672_v30  ;;  %9418 = vmatprep.mubr.msk.bf16.mxu1 %vm1101_vm3, %v11438_v57  ;;  %v11705_v48 = vadd.f32 %v15569_v27, %v15560_v31  ;;  %v15573_v27 = vld [vmem:[#allocation25_spill] sm:$0xff] }
 0x3cc   : > { %9482 = vmatprep.mubr.msk.bf16.mxu0 %vm1101_vm3, %v11333_v51  ;;  %v3939_v50 = vmax.f32 %v15573_v27, 0.0 }
 0x3cd   : > { %15570 = vst [vmem:[#allocation41_spill] sm:$0xff] %v11705_v48 }
 0x3ce   : > { %9553 = vmatpush3.bf16.msra.mxu0 %v3672_v30  ;;  %v15571_v30 = vld [vmem:[#allocation28_spill] sm:$0xff] }
 0x3cf   : > { %9554 = vmatprep.subr.bf16.mxu0 %v3671_v62  ;;  %v3940_v44 = vmax.f32 %v15571_v30, 0.0 }
 0x3d0   : > { %9419 = vmatmul.mubr.msk.bf16.gmra.mxu1 %vm1101_vm3, %v11457_v46 }
 0x3d1   : > { %9483 = vmatmul.mubr.msk.bf16.gmra.mxu0 %vm1101_vm3, %v11345_v7  ;;  %9422 = vmatprep.mubr.msk.bf16.mxu1 %vm1101_vm3, %v11470_v39 }
 0x3d2   : > { %9555 = vmatpush3.bf16.msra.mxu0 %v3671_v62  ;;  %9486 = vmatprep.mubr.msk.bf16.mxu0 %vm1101_vm3, %v11357_v4  ;;  %v3941_v62 = vmax.f32 %v11705_v48, 0.0 }
 0x3d3   : > { %9556 = vmatprep.subr.bf16.mxu0 %v3670_v11 }
 0x3d6   : > { %9557 = vmatpush3.bf16.msra.mxu0 %v3670_v11  ;;  %v3938_v11 = vmax.f32 %v15572_v42, 0.0 }
 0x3d7   : > { %9582 = vmatprep.subr.bf16.mxu0 %v11476_v61 }
 0x3d8   : > { %9423 = vmatmul.mubr.msk.bf16.gmra.mxu1 %vm1101_vm3, %v11482_v37  ;;  %v3953_v45 = vpack.c.bf16 %v3939_v50, %v3938_v11 }
 0x3d9   : > { %9487 = vmatmul.mubr.msk.bf16.gmra.mxu0 %vm1101_vm3, %v11373_v21  ;;  %9426 = vmatprep.mubr.msk.bf16.mxu1 %vm1101_vm3, %v11491_v55 }
 0x3da   : > { %9490 = vmatprep.mubr.msk.bf16.mxu0 %vm1101_vm3, %v11387_v15 }
 0x3e0   : > { %9427 = vmatmul.mubr.msk.bf16.gmra.mxu1 %vm1101_vm3, %v11500_v13 }
 0x3e1   : > { %9491 = vmatmul.mubr.msk.bf16.gmra.mxu0 %vm1101_vm3, %v11398_v53  ;;  %9430 = vmatprep.mubr.msk.bf16.mxu1 %vm1101_vm3, %v11509_v16 }
 0x3e2   : > { %9494 = vmatprep.mubr.msk.bf16.mxu0 %vm1101_vm3, %v11408_v47 }
 0x3e8   : > { %9431 = vmatmul.mubr.msk.bf16.gmra.mxu1 %vm1101_vm3, %v11518_v54 }
 0x3e9   : > { %9495 = vmatmul.mubr.msk.bf16.gmra.mxu0 %vm1101_vm3, %v11422_v52  ;;  %9434 = vmatprep.mubr.msk.bf16.mxu1 %vm1101_vm3, %v11527_v63 }
 0x3ea   : > { %9498 = vmatprep.mubr.msk.bf16.mxu0 %vm1101_vm3, %v11438_v57 }
 0x3f0   : > { %9435 = vmatmul.mubr.msk.bf16.gmra.mxu1 %vm1101_vm3, %v11536_v22 }
 0x3f1   : > { %9499 = vmatmul.mubr.msk.bf16.gmra.mxu0 %vm1101_vm3, %v11457_v46  ;;  %9438 = vmatprep.mubr.msk.bf16.mxu1 %vm1101_vm3, %v11545_v18 }
 0x3f2   : > { %9502 = vmatprep.mubr.msk.bf16.mxu0 %vm1101_vm3, %v11470_v39 }
 0x3f8   : > { %9439 = vmatmul.mubr.msk.bf16.gmra.mxu1 %vm1101_vm3, %v11554_v29 }
 0x3f9   : > { %9503 = vmatmul.mubr.msk.bf16.gmra.mxu0 %vm1101_vm3, %v11482_v37  ;;  %9442 = vmatprep.mubr.msk.bf16.mxu1 %vm1101_vm3, %v11563_v60 }
 0x3fa   : > { %9506 = vmatprep.mubr.msk.bf16.mxu0 %vm1101_vm3, %v11491_v55 }
 0x400   : > { %9443 = vmatmul.mubr.msk.bf16.gmra.mxu1 %vm1101_vm3, %v11572_v38 }
 0x401   : > { %9507 = vmatmul.mubr.msk.bf16.gmra.mxu0 %vm1101_vm3, %v11500_v13  ;;  %9446 = vmatprep.mubr.msk.bf16.mxu1 %vm1101_vm3, %v11581_v34 }
 0x402   : > { %9510 = vmatprep.mubr.msk.bf16.mxu0 %vm1101_vm3, %v11509_v16 }
 0x408   : > { %9447 = vmatmul.mubr.msk.bf16.gmra.mxu1 %vm1101_vm3, %v11590_v49 }
 0x409   : > { %9511 = vmatmul.mubr.msk.bf16.gmra.mxu0 %vm1101_vm3, %v11518_v54  ;;  %9450 = vmatprep.mubr.msk.bf16.mxu1 %vm1101_vm3, %v11599_v56 }
 0x40a   : > { %9514 = vmatprep.mubr.msk.bf16.mxu0 %vm1101_vm3, %v11527_v63 }
 0x410   : > { %9451 = vmatmul.mubr.msk.bf16.gmra.mxu1 %vm1101_vm3, %v11608_v12 }
 0x411   : > { %9515 = vmatmul.mubr.msk.bf16.gmra.mxu0 %vm1101_vm3, %v11536_v22  ;;  %9454 = vmatprep.mubr.msk.bf16.mxu1 %vm1101_vm3, %v11617_v5 }
 0x412   : > { %9518 = vmatprep.mubr.msk.bf16.mxu0 %vm1101_vm3, %v11545_v18 }
 0x418   : > { %9455 = vmatmul.mubr.msk.bf16.gmra.mxu1 %vm1101_vm3, %v11626_v24 }
 0x419   : > { %9519 = vmatmul.mubr.msk.bf16.gmra.mxu0 %vm1101_vm3, %v11554_v29  ;;  %9458 = vmatprep.mubr.msk.bf16.mxu1 %vm1101_vm3, %v11635_v36 }
 0x41a   : > { %9522 = vmatprep.mubr.msk.bf16.mxu0 %vm1101_vm3, %v11563_v60 }
 0x420   : > { %9459 = vmatmul.mubr.msk.bf16.gmra.mxu1 %vm1101_vm3, %v11644_v23 }
 0x421   : > { %9523 = vmatmul.mubr.msk.bf16.gmra.mxu0 %vm1101_vm3, %v11572_v38  ;;  %9462 = vmatprep.mubr.msk.bf16.mxu1 %vm1101_vm3, %v11653_v41 }
 0x422   : > { %9526 = vmatprep.mubr.msk.bf16.mxu0 %vm1101_vm3, %v11581_v34 }
 0x428   : > { %9463 = vmatmul.mubr.msk.bf16.gmra.mxu1 %vm1101_vm3, %v11662_v17 }
 0x429   : > { %9527 = vmatmul.mubr.msk.bf16.gmra.mxu0 %vm1101_vm3, %v11590_v49  ;;  %9466 = vmatprep.mubr.msk.bf16.mxu1 %vm1101_vm3, %v11671_v35 }
 0x42a   : > { %9530 = vmatprep.mubr.msk.bf16.mxu0 %vm1101_vm3, %v11599_v56 }
 0x430   : > { %9467 = vmatmul.mubr.msk.bf16.gmra.mxu1 %vm1101_vm3, %v11680_v8 }
 0x431   : > { %9531 = vmatmul.mubr.msk.bf16.gmra.mxu0 %vm1101_vm3, %v11608_v12 }
 0x432   : > { %9534 = vmatprep.mubr.msk.bf16.mxu0 %vm1101_vm3, %v11617_v5 }
 0x439   : > { %9535 = vmatmul.mubr.msk.bf16.gmra.mxu0 %vm1101_vm3, %v11626_v24 }
 0x43a   : > { %9538 = vmatprep.mubr.msk.bf16.mxu0 %vm1101_vm3, %v11635_v36 }
 0x441   : > { %9539 = vmatmul.mubr.msk.bf16.gmra.mxu0 %vm1101_vm3, %v11644_v23 }
 0x442   : > { %9542 = vmatprep.mubr.msk.bf16.mxu0 %vm1101_vm3, %v11653_v41 }
 0x449   : > { %9543 = vmatmul.mubr.msk.bf16.gmra.mxu0 %vm1101_vm3, %v11662_v17 }
 0x44a   : > { %9546 = vmatprep.mubr.msk.bf16.mxu0 %vm1101_vm3, %v11671_v35 }
 0x451   : > { %9547 = vmatmul.mubr.msk.bf16.gmra.mxu0 %vm1101_vm3, %v11680_v8 }
 0x452   : > { %9558 = vmatprep.mubr.msk.bf16.mxu0 %vm1101_vm3, %v10201_v26  ;;  %v3954_v26 = vpack.c.bf16 %v3941_v62, %v3940_v44 }
 0x459   : > { %9559 = vmatmul.mubr.msk.bf16.vlgmr.msra.gmra.mxu0 %vm1101_vm3, %v10202_v25 }
 0x45a   : > { %9583 = vmatpush3.bf16.msra.mxu0 %v11476_v61  ;;  %9562 = vmatprep.mubr.msk.bf16.mxu0 %vm1101_vm3, %v10203_v58 }
 0x45b   : > { %9584 = vmatprep.subr.bf16.mxu0 %v3954_v26 }
 0x45e   : > { %9585 = vmatpush3.bf16.msra.mxu0 %v3954_v26 }
 0x45f   : > { %9586 = vmatprep.subr.bf16.mxu0 %v3953_v45 }
 0x461   : > { %9563 = vmatmul.mubr.msk.bf16.gmra.mxu0 %vm1101_vm3, %v10204_v14 }
 0x462   : > { %9587 = vmatpush3.bf16.msra.mxu0 %v3953_v45  ;;  %9590 = vmatprep.mubr.msk.bf16.mxu0 %vm1101_vm3, %v11294_v6 }
 0x463   : > { %9588 = vmatprep.subr.bf16.mxu0 %v3952_v43 }
 0x466   : > { %9589 = vmatpush3.bf16.msra.mxu0 %v3952_v43 }
 0x467   : > { %5071 = vmatprep.subr.bf16.mxu0 %v15553_v9 }
 0x468   : > { %v11736_v50 = vpop.f32.mrf.mxu1 }
 0x469   : > { %9591 = vmatmul.mubr.msk.bf16.vlgmr.msra.gmra.mxu0 %vm1101_vm3, %v11323_v0 }
 0x46a   : > { %v11740_v61 = vpop.f32.mrf.mxu1  ;;  %9594 = vmatprep.mubr.msk.bf16.mxu0 %vm1101_vm3, %v11333_v51 }
 0x46c   : > { %v11744_v14 = vpop.f32.mrf.mxu1 }
 0x46e   : > { %v11748_v6 = vpop.f32.mrf.mxu1 }
 0x470   : > { %v11750_v28 = vpop.f32.mrf.mxu1 }
 0x471   : > { %9595 = vmatmul.mubr.msk.bf16.gmra.mxu0 %vm1101_vm3, %v11345_v7 }
 0x472   : > { %v11754_v40 = vpop.f32.mrf.mxu1  ;;  %9598 = vmatprep.mubr.msk.bf16.mxu0 %vm1101_vm3, %v11357_v4 }
 0x474   : > { %v11758_v0 = vpop.f32.mrf.mxu1 }
 0x476   : > { %v11762_v44 = vpop.f32.mrf.mxu1 }
 0x478   : > { %v9408_v25 = vpop.f32.mrf.mxu1 }
 0x479   : > { %9599 = vmatmul.mubr.msk.bf16.gmra.mxu0 %vm1101_vm3, %v11373_v21 }
 0x47a   : > { %v2512_v62 = vpop.f32.mrf.mxu1  ;;  %9602 = vmatprep.mubr.msk.bf16.mxu0 %vm1101_vm3, %v11387_v15 }
 0x47c   : > { %v9409_v7 = vpop.f32.mrf.mxu1 }
 0x47d   : > { %v2772_v58 = vpack.c.bf16 %v9409_v7, %v9408_v25 }
 0x47e   : > { %v2515_v11 = vpop.f32.mrf.mxu1 }
 0x47f   : > { %v2771_v26 = vpack.c.bf16 %v2515_v11, %v2512_v62  ;;  %2809 = vrot.lane.b32.xlu1 %v2772_v58, %s15400_s20 }
 0x480   : > { %v9412_v4 = vpop.f32.mrf.mxu1 }
 0x481   : > { %9603 = vmatmul.mubr.msk.bf16.gmra.mxu0 %vm1101_vm3, %v11398_v53  ;;  %2807 = vrot.lane.b32.xlu0 %v2771_v26, %s15400_s20 }
 0x482   : > { %v2528_v43 = vpop.f32.mrf.mxu1  ;;  %9606 = vmatprep.mubr.msk.bf16.mxu0 %vm1101_vm3, %v11408_v47 }
 0x484   : > { %v9413_v21 = vpop.f32.mrf.mxu1 }
 0x485   : > { %v2774_v51 = vpack.c.bf16 %v9413_v21, %v9412_v4 }
 0x486   : > { %v2531_v45 = vpop.f32.mrf.mxu1 }
 0x487   : > { %v2773_v15 = vpack.c.bf16 %v2531_v45, %v2528_v43  ;;  %2813 = vrot.lane.b32.xlu1 %v2774_v51, %s15400_s20 }
 0x488   : > { %v9416_v25 = vpop.f32.mrf.mxu1 }
 0x489   : > { %v11775_v62 = vpop.f32.mrf.mxu0  ;;  %9607 = vmatmul.mubr.msk.bf16.gmra.mxu0 %vm1101_vm3, %v11422_v52  ;;  %2811 = vrot.lane.b32.xlu0 %v2773_v15, %s15400_s20 }
 0x48a   : > { %v2544_v53 = vpop.f32.mrf.mxu1  ;;  %9610 = vmatprep.mubr.msk.bf16.mxu0 %vm1101_vm3, %v11438_v57 }
 0x48b   : > { %v11782_v7 = vpop.f32.mrf.mxu0 }
 0x48c   : > { %v9417_v47 = vpop.f32.mrf.mxu1 }
 0x48d   : > { %v2776_v58 = vpack.c.bf16 %v9417_v47, %v9416_v25  ;;  %v11784_v11 = vpop.f32.mrf.mxu0 }
 0x48e   : > { %v2547_v51 = vpop.f32.mrf.mxu1 }
 0x48f   : > { %v2775_v26 = vpack.c.bf16 %v2547_v51, %v2544_v53  ;;  %v11788_v4 = vpop.f32.mrf.mxu0  ;;  %2821 = vrot.lane.b32.xlu0 %v2776_v58, %s15398_s21 }
 0x490   : > { %v9420_v43 = vpop.f32.mrf.mxu1 }
 0x491   : > { %v11793_v57 = vpop.f32.mrf.mxu0  ;;  %9611 = vmatmul.mubr.msk.bf16.gmra.mxu0 %vm1101_vm3, %v11457_v46  ;;  %2819 = vrot.lane.b32.xlu1 %v2775_v26, %s15398_s21 }
 0x492   : > { %15577 = vst [vmem:[#allocation27_spill] sm:$0xff] %v11793_v57  ;;  %v2560_v21 = vpop.f32.mrf.mxu1  ;;  %9614 = vmatprep.mubr.msk.bf16.mxu0 %vm1101_vm3, %v11470_v39 }
 0x493   : > { %v11800_v15 = vpop.f32.mrf.mxu0 }
 0x494   : > { %15578 = vst [vmem:[#allocation29_spill] sm:$0xff] %v11800_v15  ;;  %v9421_v25 = vpop.f32.mrf.mxu1 }
 0x495   : > { %v2778_v53 = vpack.c.bf16 %v9421_v25, %v9420_v43  ;;  %v11802_v47 = vpop.f32.mrf.mxu0 }
 0x496   : > { %15579 = vst [vmem:[#allocation30_spill] sm:$0xff] %v11802_v47  ;;  %v2563_v51 = vpop.f32.mrf.mxu1 }
 0x497   : > { %v2777_v45 = vpack.c.bf16 %v2563_v51, %v2560_v21  ;;  %v11806_v52 = vpop.f32.mrf.mxu0  ;;  %2825 = vrot.lane.b32.xlu0 %v2778_v53, %s15398_s21 }
 0x498   : > { %v9424_v26 = vpop.f32.mrf.mxu1 }
 0x499   : > { %v11811_v39 = vpop.f32.mrf.mxu0  ;;  %9615 = vmatmul.mubr.msk.bf16.gmra.mxu0 %vm1101_vm3, %v11482_v37  ;;  %2823 = vrot.lane.b32.xlu1 %v2777_v45, %s15398_s21 }
 0x49a   : > { %v2576_v43 = vpop.f32.mrf.mxu1  ;;  %9618 = vmatprep.mubr.msk.bf16.mxu0 %vm1101_vm3, %v11491_v55 }
 0x49b   : > { %v3017_v21 = vpop.f32.mrf.mxu0 }
 0x49c   : > { %v9425_v25 = vpop.f32.mrf.mxu1 }
 0x49d   : > { %v2780_v51 = vpack.c.bf16 %v9425_v25, %v9424_v26  ;;  %v11818_v58 = vpop.f32.mrf.mxu0 }
 0x49e   : > { %v2579_v46 = vpop.f32.mrf.mxu1 }
 0x49f   : > { %v2779_v20 = vpack.c.bf16 %v2579_v46, %v2576_v43  ;;  %v3020_v59 = vpop.f32.mrf.mxu0  ;;  %2833 = vrot.lane.b32.xlu1 %v2780_v51, %s15359_s25 }
 0x4a0   : > { %v9428_v37 = vpop.f32.mrf.mxu1  ;;  %v3276_v45 = vpack.c.bf16 %v3020_v59, %v3017_v21 }
 0x4a1   : > { %v11823_v2 = vpop.f32.mrf.mxu0  ;;  %9619 = vmatmul.mubr.msk.bf16.gmra.mxu0 %vm1101_vm3, %v11500_v13  ;;  %2831 = vrot.lane.b32.xlu0 %v2779_v20, %s15359_s25 }
 0x4a2   : > { %v2592_v55 = vpop.f32.mrf.mxu1  ;;  %9622 = vmatprep.mubr.msk.bf16.mxu0 %vm1101_vm3, %v11509_v16 }
 0x4a3   : > { %v11830_v26 = vpop.f32.mrf.mxu0 }
 0x4a4   : > { %v9429_v25 = vpop.f32.mrf.mxu1 }
 0x4a5   : > { %v2782_v46 = vpack.c.bf16 %v9429_v25, %v9428_v37  ;;  %v11832_v43 = vpop.f32.mrf.mxu0  ;;  %3312 = vrot.lane.b32.xlu0 %v3276_v45, %s15400_s20 }
 0x4a6   : > { %v2595_v53 = vpop.f32.mrf.mxu1 }
 0x4a7   : > { %v2781_v13 = vpack.c.bf16 %v2595_v53, %v2592_v55  ;;  %v11837_v32 = vpop.f32.mrf.mxu0  ;;  %2837 = vrot.lane.b32.xlu1 %v2782_v46, %s15359_s25 }
 0x4a8   : > { %v9432_v20 = vpop.f32.mrf.mxu1 }
 0x4a9   : > { %v11842_v16 = vpop.f32.mrf.mxu0  ;;  %9623 = vmatmul.mubr.msk.bf16.gmra.mxu0 %vm1101_vm3, %v11518_v54  ;;  %2835 = vrot.lane.b32.xlu0 %v2781_v13, %s15359_s25 }
 0x4aa   : > { %v2608_v21 = vpop.f32.mrf.mxu1  ;;  %9626 = vmatprep.mubr.msk.bf16.mxu0 %vm1101_vm3, %v11527_v63 }
 0x4ab   : > { %v3049_v53 = vpop.f32.mrf.mxu0 }
 0x4ac   : > { %v9433_v37 = vpop.f32.mrf.mxu1 }
 0x4ad   : > { %v2784_v55 = vpack.c.bf16 %v9433_v37, %v9432_v20  ;;  %v11849_v45 = vpop.f32.mrf.mxu0 }
 0x4ae   : > { %v2611_v25 = vpop.f32.mrf.mxu1 }
 0x4af   : > { %v2783_v46 = vpack.c.bf16 %v2611_v25, %v2608_v21  ;;  %v3052_v51 = vpop.f32.mrf.mxu0  ;;  %2845 = vrot.lane.b32.xlu0 %v2784_v55, %s15357_s26 }
 0x4b0   : > { %v9436_v59 = vpop.f32.mrf.mxu1  ;;  %v3280_v63 = vpack.c.bf16 %v3052_v51, %v3049_v53 }
 0x4b1   : > { %v11852_v3 = vpop.f32.mrf.mxu0  ;;  %9627 = vmatmul.mubr.msk.bf16.gmra.mxu0 %vm1101_vm3, %v11536_v22  ;;  %2843 = vrot.lane.b32.xlu1 %v2783_v46, %s15357_s26 }
 0x4b2   : > { %v2624_v54 = vpop.f32.mrf.mxu1  ;;  %9630 = vmatprep.mubr.msk.bf16.mxu0 %vm1101_vm3, %v11545_v18 }
 0x4b3   : > { %v11859_v13 = vpop.f32.mrf.mxu0 }
 0x4b4   : > { %v9437_v20 = vpop.f32.mrf.mxu1 }
 0x4b5   : > { %v2786_v21 = vpack.c.bf16 %v9437_v20, %v9436_v59  ;;  %v11861_v37 = vpop.f32.mrf.mxu0  ;;  %3324 = vrot.lane.b32.xlu1 %v3280_v63, %s15398_s21 }
 0x4b6   : > { %v2627_v25 = vpop.f32.mrf.mxu1 }
 0x4b7   : > { %v2785_v22 = vpack.c.bf16 %v2627_v25, %v2624_v54  ;;  %v11866_v48 = vpop.f32.mrf.mxu0  ;;  %2849 = vrot.lane.b32.xlu0 %v2786_v21, %s15357_s26 }
 0x4b8   : > { %v9440_v46 = vpop.f32.mrf.mxu1 }
 0x4b9   : > { %v11869_v18 = vpop.f32.mrf.mxu0  ;;  %9631 = vmatmul.mubr.msk.bf16.gmra.mxu0 %vm1101_vm3, %v11554_v29  ;;  %2847 = vrot.lane.b32.xlu1 %v2785_v22, %s15357_s26 }
 0x4ba   : > { %v2640_v51 = vpop.f32.mrf.mxu1  ;;  %9634 = vmatprep.mubr.msk.bf16.mxu0 %vm1101_vm3, %v11563_v60 }
 0x4bb   : > { %v11876_v59 = vpop.f32.mrf.mxu0 }
 0x4bc   : > { %v9441_v53 = vpop.f32.mrf.mxu1 }
 0x4bd   : > { %v2788_v54 = vpack.c.bf16 %v9441_v53, %v9440_v46  ;;  %v11878_v63 = vpop.f32.mrf.mxu0 }
 0x4be   : > { %v2643_v20 = vpop.f32.mrf.mxu1 }
 0x4bf   : > { %v2787_v21 = vpack.c.bf16 %v2643_v20, %v2640_v51  ;;  %v11880_v25 = vpop.f32.mrf.mxu0  ;;  %2857 = vrot.lane.b32.xlu1 %v2788_v54, %s15580_s28 }
 0x4c0   : > { %v9444_v55 = vpop.f32.mrf.mxu1 }
 0x4c1   : > { %v11883_v29 = vpop.f32.mrf.mxu0  ;;  %9635 = vmatmul.mubr.msk.bf16.gmra.mxu0 %vm1101_vm3, %v11572_v38  ;;  %2855 = vrot.lane.b32.xlu0 %v2787_v21, %s15580_s28 }
 0x4c2   : > { %v2656_v60 = vpop.f32.mrf.mxu1  ;;  %9638 = vmatprep.mubr.msk.bf16.mxu0 %vm1101_vm3, %v11581_v34 }
 0x4c3   : > { %v11890_v22 = vpop.f32.mrf.mxu0 }
 0x4c4   : > { %v9445_v46 = vpop.f32.mrf.mxu1 }
 0x4c5   : > { %v2790_v51 = vpack.c.bf16 %v9445_v46, %v9444_v55  ;;  %v11892_v53 = vpop.f32.mrf.mxu0 }
 0x4c6   : > { %v2659_v20 = vpop.f32.mrf.mxu1 }
 0x4c7   : > { %v2789_v30 = vpack.c.bf16 %v2659_v20, %v2656_v60  ;;  %v11896_v27 = vpop.f32.mrf.mxu0  ;;  %2861 = vrot.lane.b32.xlu1 %v2790_v51, %s15580_s28 }
 0x4c8   : > { %v9448_v38 = vpop.f32.mrf.mxu1 }
 0x4c9   : > { %v11899_v21 = vpop.f32.mrf.mxu0  ;;  %9639 = vmatmul.mubr.msk.bf16.gmra.mxu0 %vm1101_vm3, %v11590_v49  ;;  %2859 = vrot.lane.b32.xlu0 %v2789_v30, %s15580_s28 }
 0x4ca   : > { %v2672_v34 = vpop.f32.mrf.mxu1  ;;  %9642 = vmatprep.mubr.msk.bf16.mxu0 %vm1101_vm3, %v11599_v56 }
 0x4cb   : > { %v3113_v55 = vpop.f32.mrf.mxu0 }
 0x4cc   : > { %v9449_v46 = vpop.f32.mrf.mxu1 }
 0x4cd   : > { %v2792_v54 = vpack.c.bf16 %v9449_v46, %v9448_v38  ;;  %v11906_v60 = vpop.f32.mrf.mxu0 }
 0x4ce   : > { %v2675_v20 = vpop.f32.mrf.mxu1 }
 0x4cf   : > { %v2791_v42 = vpack.c.bf16 %v2675_v20, %v2672_v34  ;;  %v3116_v51 = vpop.f32.mrf.mxu0  ;;  %2869 = vrot.lane.b32.xlu0 %v2792_v54, %s15581_s18 }
 0x4d0   : > { %v9452_v10 = vpop.f32.mrf.mxu1  ;;  %v3288_v47 = vpack.c.bf16 %v3116_v51, %v3113_v55 }
 0x4d1   : > { %v11909_v19 = vpop.f32.mrf.mxu0  ;;  %9643 = vmatmul.mubr.msk.bf16.gmra.mxu0 %vm1101_vm3, %v11608_v12  ;;  %2867 = vrot.lane.b32.xlu1 %v2791_v42, %s15581_s18 }
 0x4d2   : > { %v2688_v49 = vpop.f32.mrf.mxu1  ;;  %9646 = vmatprep.mubr.msk.bf16.mxu0 %vm1101_vm3, %v11617_v5 }
 0x4d3   : > { %v11916_v56 = vpop.f32.mrf.mxu0 }
 0x4d4   : > { %v9453_v30 = vpop.f32.mrf.mxu1 }
 0x4d5   : > { %v2794_v38 = vpack.c.bf16 %v9453_v30, %v9452_v10  ;;  %v11918_v34 = vpop.f32.mrf.mxu0 }
 0x4d6   : > { %v2691_v46 = vpop.f32.mrf.mxu1 }
 0x4d7   : > { %v2793_v54 = vpack.c.bf16 %v2691_v46, %v2688_v49  ;;  %v11920_v20 = vpop.f32.mrf.mxu0  ;;  %2873 = vrot.lane.b32.xlu0 %v2794_v38, %s15581_s18 }
 0x4d8   : > { %v9456_v1 = vpop.f32.mrf.mxu1 }
 0x4d9   : > { %v9520_v12 = vpop.f32.mrf.mxu0  ;;  %9647 = vmatmul.mubr.msk.bf16.gmra.mxu0 %vm1101_vm3, %v11626_v24  ;;  %2871 = vrot.lane.b32.xlu1 %v2793_v54, %s15581_s18 }
 0x4da   : > { %v2704_v5 = vpop.f32.mrf.mxu1  ;;  %9650 = vmatprep.mubr.msk.bf16.mxu0 %vm1101_vm3, %v11635_v36 }
 0x4db   : > { %v3145_v10 = vpop.f32.mrf.mxu0 }
 0x4dc   : > { %v9457_v42 = vpop.f32.mrf.mxu1 }
 0x4dd   : > { %v2796_v30 = vpack.c.bf16 %v9457_v42, %v9456_v1  ;;  %v9521_v31 = vpop.f32.mrf.mxu0  ;;  %v3284_v1 = vpack.c.bf16 %v11880_v25, %v11876_v59 }
 0x4de   : > { %v2707_v49 = vpop.f32.mrf.mxu1 }
 0x4df   : > { %v2795_v46 = vpack.c.bf16 %v2707_v49, %v2704_v5  ;;  %v3148_v57 = vpop.f32.mrf.mxu0  ;;  %2881 = vrot.lane.b32.xlu1 %v2796_v30, %s15582_s29 }
 0x4e0   : > { %v9460_v38 = vpop.f32.mrf.mxu1 }
 0x4e1   : > { %v11929_v15 = vpop.f32.mrf.mxu0  ;;  %2879 = vrot.lane.b32.xlu0 %v2795_v46, %s15582_s29  ;;  %9651 = vmatmul.mubr.msk.bf16.gmra.mxu0 %vm1101_vm3, %v11644_v23  ;;  %v3281_v23 = vpack.c.bf16 %v11849_v45, %v11842_v16  ;;  %v3292_v16 = vpack.c.bf16 %v3148_v57, %v3145_v10  ;;  %v3289_v10 = vpack.c.bf16 %v11906_v60, %v11899_v21 }
 0x4e2   : > { %v2720_v24 = vpop.f32.mrf.mxu1  ;;  %9654 = vmatprep.mubr.msk.bf16.mxu0 %vm1101_vm3, %v11653_v41  ;;  %v15583_v41 = vpack.c.bf16 %v11818_v58, %v11811_v39 }
 0x4e3   : > { %v11938_v36 = vpop.f32.mrf.mxu0  ;;  %3348 = vrot.lane.b32.xlu1 %v3288_v47, %s15357_s26  ;;  %v3285_v47 = vpack.c.bf16 %v11878_v63, %v11869_v18 }
 0x4e4   : > { %v9461_v54 = vpop.f32.mrf.mxu1 }
 0x4e5   : > { %v11941_v55 = vpop.f32.mrf.mxu0  ;;  %3336 = vrot.lane.b32.xlu0 %v3284_v1, %s15359_s25  ;;  %v2798_v39 = vpack.c.bf16 %v9461_v54, %v9460_v38 }
 0x4e6   : > { %v2723_v51 = vpop.f32.mrf.mxu1 }
 0x4e7   : > { %v3164_v5 = vpop.f32.mrf.mxu0  ;;  %3314 = vrot.lane.b32.xlu1 %v15583_v41, %s15400_s20  ;;  %v2797_v49 = vpack.c.bf16 %v2723_v51, %v2720_v24  ;;  %v3282_v24 = vpack.c.bf16 %v11866_v48, %v11859_v13 }
 0x4e8   : > { %v11950_v59 = vpop.f32.mrf.mxu1 }
 0x4e9   : > { %v9528_v25 = vpop.f32.mrf.mxu0  ;;  %3326 = vrot.lane.b32.xlu0 %v3281_v23, %s15398_s21  ;;  %9655 = vmatmul.mubr.msk.bf16.gmra.mxu0 %vm1101_vm3, %v11662_v17 }
 0x4ea   : > { %v2736_v42 = vpop.f32.mrf.mxu1  ;;  %9658 = vmatprep.mubr.msk.bf16.mxu0 %vm1101_vm3, %v11671_v35  ;;  %v3293_v35 = vpack.c.bf16 %v9521_v31, %v9520_v12 }
 0x4eb   : > { %v3177_v45 = vpop.f32.mrf.mxu0  ;;  %3338 = vrot.lane.b32.xlu1 %v3285_v47, %s15359_s25  ;;  %v3290_v47 = vpack.c.bf16 %v11920_v20, %v11916_v56 }
 0x4ec   : > { %v11960_v58 = vpop.f32.mrf.mxu1 }
 0x4ed   : > { %v9529_v30 = vpop.f32.mrf.mxu0  ;;  %3360 = vrot.lane.b32.xlu0 %v3292_v16, %s15580_s28 }
 0x4ee   : > { %v2739_v63 = vpop.f32.mrf.mxu1  ;;  %v3297_v21 = vpack.c.bf16 %v9529_v30, %v9528_v25 }
 0x4ef   : > { %v3180_v17 = vpop.f32.mrf.mxu0  ;;  %2885 = vrot.lane.b32.xlu1 %v2798_v39, %s15582_s29  ;;  %v2799_v46 = vpack.c.bf16 %v2739_v63, %v2736_v42  ;;  %v15587_v63 = vpack.c.bf16 %v11892_v53, %v11883_v29 }
 0x4f0   : > { %v3296_v12 = vpack.c.bf16 %v3180_v17, %v3177_v45  ;;  %v3294_v45 = vpack.c.bf16 %v3164_v5, %v11938_v36  ;;  %v15586_v36 = vpack.c.bf16 %v11861_v37, %v11852_v3  ;;  %v3291_v3 = vpack.c.bf16 %v11918_v34, %v11909_v19 }
 0x4f1   : > { %v9532_v57 = vpop.f32.mrf.mxu0  ;;  %2883 = vrot.lane.b32.xlu0 %v2797_v49, %s15582_s29  ;;  %8420 = vmatprep.mubr.msk.bf16.mxu1 %vm775_vm2, %v2799_v46 }
 0x4f2   : > { %9659 = vmatmul.mubr.msk.bf16.gmra.mxu0 %vm1101_vm3, %v11680_v8  ;;  %v15584_v8 = vpack.c.bf16 %v11837_v32, %v11830_v26  ;;  %v3286_v26 = vpack.c.bf16 %v11896_v27, %v11890_v22  ;;  %v15585_v27 = vpack.c.bf16 %v11832_v43, %v11823_v2  ;;  %v3295_v43 = vpack.c.bf16 %v11941_v55, %v11929_v15  ;;  %v12034_v55 = vpop.permute.xlu1 %2809 }
 0x4f3   : > { %v3193_v38 = vpop.f32.mrf.mxu0  ;;  %3362 = vrot.lane.b32.xlu1 %v3293_v35, %s15580_s28  ;;  %v12038_v19 = vpop.permute.xlu0 %2807 }
 0x4f5   : > { %v9533_v1 = vpop.f32.mrf.mxu0  ;;  %3350 = vrot.lane.b32.xlu0 %v3289_v10, %s15357_s26 }
 0x4f6   : > { %v3299_v15 = vpack.c.bf16 %v9533_v1, %v9532_v57 }
 0x4f7   : > { %v3196_v31 = vpop.f32.mrf.mxu0  ;;  %3328 = vrot.lane.b32.xlu1 %v3282_v24, %s15398_s21 }
 0x4f8   : > { %v3298_v42 = vpack.c.bf16 %v3196_v31, %v3193_v38 }
 0x4f9   : > { %v9536_v54 = vpop.f32.mrf.mxu0  ;;  %3316 = vrot.lane.b32.xlu0 %v15584_v8, %s15400_s20  ;;  %v12043_v35 = vpop.permute.xlu1 %2813 }
 0x4fb   : > { %v3209_v60 = vpop.f32.mrf.mxu0  ;;  %3372 = vrot.lane.b32.xlu1 %v3296_v12, %s15581_s18  ;;  %v12047_v38 = vpop.permute.xlu0 %2811 }
 0x4fd   : > { %v9537_v51 = vpop.f32.mrf.mxu0  ;;  %3374 = vrot.lane.b32.xlu0 %v3297_v21, %s15581_s18 }
 0x4fe   : > { %v3301_v48 = vpack.c.bf16 %v9537_v51, %v9536_v54 }
 0x4ff   : > { %v3212_v13 = vpop.f32.mrf.mxu0 }
 0x500   : > { %v3300_v23 = vpack.c.bf16 %v3212_v13, %v3209_v60  ;;  %3386 = vrot.lane.b32.xlu1 %v3301_v48, %s15582_s29 }
 0x501   : > { %v9540_v41 = vpop.f32.mrf.mxu0  ;;  %v12053_v31 = vpop.permute.xlu0 %2821 }
 0x502   : > { %3384 = vrot.lane.b32.xlu0 %v3300_v23, %s15582_s29 }
 0x503   : > { %v3225_v32 = vpop.f32.mrf.mxu0  ;;  %v2820_v57 = vpop.permute.xlu1 %2819 }
 0x504   : > { %3352 = vrot.lane.b32.xlu1 %v3290_v47, %s15357_s26 }
 0x505   : > { %v9541_v25 = vpop.f32.mrf.mxu0 }
 0x506   : > { %3340 = vrot.lane.b32.xlu0 %v3286_v26, %s15359_s25  ;;  %v3303_v17 = vpack.c.bf16 %v9541_v25, %v9540_v41 }
 0x507   : > { %v3228_v16 = vpop.f32.mrf.mxu0 }
 0x508   : > { %3376 = vrot.lane.b32.xlu1 %v3298_v42, %s15581_s18  ;;  %v3302_v30 = vpack.c.bf16 %v3228_v16, %v3225_v32 }
 0x509   : > { %v11993_v39 = vpop.f32.mrf.mxu0  ;;  %v12061_v21 = vpop.permute.xlu0 %2825 }
 0x50a   : > { %3364 = vrot.lane.b32.xlu0 %v3294_v45, %s15580_s28 }
 0x50b   : > { %v11996_v56 = vpop.f32.mrf.mxu0  ;;  %v12057_v54 = vpop.permute.xlu1 %2823 }
 0x50c   : > { %3318 = vrot.lane.b32.xlu1 %v15585_v27, %s15400_s20 }
 0x50d   : > { %v12002_v22 = vpop.f32.mrf.mxu0 }
 0x50e   : > { %3330 = vrot.lane.b32.xlu0 %v15586_v36, %s15398_s21 }
 0x50f   : > { %v12010_v5 = vpop.f32.mrf.mxu0 }
 0x510   : > { %3342 = vrot.lane.b32.xlu1 %v15587_v63, %s15359_s25 }
 0x511   : > { %v12016_v2 = vpop.f32.mrf.mxu0  ;;  %v12065_v51 = vpop.permute.xlu1 %2833 }
 0x512   : > { %15588 = vst [vmem:[#allocation26_spill] sm:$0xff] %v12016_v2  ;;  %3388 = vrot.lane.b32.xlu0 %v3302_v30, %s15582_s29 }
 0x513   : > { %v12021_v49 = vpop.f32.mrf.mxu0  ;;  %v2832_v13 = vpop.permute.xlu0 %2831 }
 0x514   : > { %3366 = vrot.lane.b32.xlu1 %v3295_v43, %s15580_s28 }
 0x515   : > { %v12026_v37 = vpop.f32.mrf.mxu0 }
 0x516   : > { %15589 = vst [vmem:[#allocation43_spill] sm:$0xff] %v12026_v37  ;;  %3354 = vrot.lane.b32.xlu0 %v3291_v3, %s15357_s26 }
 0x517   : > { %v12031_v53 = vpop.f32.mrf.mxu0  ;;  %v12079_v25 = vpop.permute.xlu0 %3312 }
 0x518   : > { %3390 = vrot.lane.b32.xlu1 %v3303_v17, %s15582_s29 }
 0x519   : > { %v12036_v46 = vpop.f32.mrf.mxu0  ;;  %v12071_v41 = vpop.permute.xlu1 %2837 }
 0x51a   : > { %15590 = vst [vmem:[#allocation44_spill] sm:$0xff] %v12036_v46  ;;  %3378 = vrot.lane.b32.xlu0 %v3299_v15, %s15581_s18 }
 0x51b   : > { %v12041_v34 = vpop.f32.mrf.mxu0  ;;  %v12087_v36 = vpop.permute.xlu0 %2835 }
 0x51c   : > { %15591 = vst [vmem:[#allocation45_spill] sm:$0xff] %v12041_v34 }
 0x51d   : > { %v12045_v10 = vpop.f32.mrf.mxu0 }
 0x51e   : > { %15592 = vst [vmem:[#allocation46_spill] sm:$0xff] %v12045_v10 }
 0x51f   : > { %v12049_v24 = vpop.f32.mrf.mxu0 }
 0x520   : > { %15593 = vst [vmem:[#allocation47_spill] sm:$0xff] %v12049_v24 }
 0x521   : > { %v12051_v1 = vpop.f32.mrf.mxu0  ;;  %v12095_v17 = vpop.permute.xlu0 %2845 }
 0x522   : > { %15594 = vst [vmem:[#allocation48_spill] sm:$0xff] %v12051_v1 }
 0x523   : > { %v12055_v12 = vpop.f32.mrf.mxu0  ;;  %v2844_v42 = vpop.permute.xlu1 %2843 }
 0x524   : > { %15595 = vst [vmem:[#allocation49_spill] sm:$0xff] %v12055_v12 }
 0x525   : > { %v12059_v8 = vpop.f32.mrf.mxu0 }
 0x526   : > { %15596 = vst [vmem:[#allocation50_spill] sm:$0xff] %v12059_v8 }
 0x527   : > { %v12063_v60 = vpop.f32.mrf.mxu0  ;;  %v12091_v63 = vpop.permute.xlu1 %3324 }
 0x528   : > { %15597 = vst [vmem:[#allocation51_spill] sm:$0xff] %v12063_v60 }
 0x529   : > { %v12067_v48 = vpop.f32.mrf.mxu0  ;;  %v12099_v18 = vpop.permute.xlu0 %2849 }
 0x52a   : > { %15598 = vst [vmem:[#allocation52_spill] sm:$0xff] %v12067_v48 }
 0x52b   : > { %v12069_v23 = vpop.f32.mrf.mxu0  ;;  %v12097_v32 = vpop.permute.xlu1 %2847 }
 0x52c   : > { %15599 = vst [vmem:[#allocation53_spill] sm:$0xff] %v12069_v23 }
 0x52d   : > { %v12073_v47 = vpop.f32.mrf.mxu0 }
 0x52e   : > { %15600 = vst [vmem:[#allocation54_spill] sm:$0xff] %v12073_v47 }
 0x52f   : > { %v12077_v26 = vpop.f32.mrf.mxu0 }
 0x530   : > { %15601 = vst [vmem:[#allocation55_spill] sm:$0xff] %v12077_v26 }
 0x531   : > { %v12081_v16 = vpop.f32.mrf.mxu0  ;;  %v2858_v60 = vpop.permute.xlu1 %2857 }
 0x532   : > { %15602 = vst [vmem:[#allocation56_spill] sm:$0xff] %v12081_v16 }
 0x533   : > { %v12083_v45 = vpop.f32.mrf.mxu0  ;;  %v2856_v12 = vpop.permute.xlu0 %2855 }
 0x534   : > { %15603 = vst [vmem:[#allocation57_spill] sm:$0xff] %v12083_v45 }
 0x535   : > { %v12085_v27 = vpop.f32.mrf.mxu0 }
 0x536   : > { %15604 = vst [vmem:[#allocation58_spill] sm:$0xff] %v12085_v27 }
 0x537   : > { %v12093_v43 = vpop.f32.mrf.mxu0 }
 0x538   : > { %15605 = vst [vmem:[#allocation59_spill] sm:$0xff] %v12093_v43  ;;  %v2767_v43 = vpack.c.bf16 %v11748_v6, %v11740_v61 }
 0x539   : > { %v9600_v3 = vpop.f32.mrf.mxu0  ;;  %v12103_v46 = vpop.permute.xlu1 %2861 }
 0x53b   : > { %v4026_v15 = vpop.f32.mrf.mxu0  ;;  %v12105_v16 = vpop.permute.xlu0 %2859 }
 0x53d   : > { %v9601_v29 = vpop.f32.mrf.mxu0 }
 0x53e   : > { %v4286_v20 = vpack.c.bf16 %v9601_v29, %v9600_v3 }
 0x53f   : > { %v4029_v8 = vpop.f32.mrf.mxu0 }
 0x540   : > { %v4285_v1 = vpack.c.bf16 %v4029_v8, %v4026_v15  ;;  %4323 = vrot.lane.b32.xlu1 %v4286_v20, %s15400_s20  ;;  %v12108_v15 = vpop.f32.mrf.mxu1 }
 0x541   : > { %v9604_v30 = vpop.f32.mrf.mxu0  ;;  %v2870_v20 = vpop.permute.xlu0 %2869 }
 0x542   : > { %4321 = vrot.lane.b32.xlu0 %v4285_v1, %s15400_s20 }
 0x543   : > { %v4042_v10 = vpop.f32.mrf.mxu0  ;;  %v2868_v3 = vpop.permute.xlu1 %2867 }
 0x545   : > { %v9605_v34 = vpop.f32.mrf.mxu0 }
 0x546   : > { %v4288_v24 = vpack.c.bf16 %v9605_v34, %v9604_v30  ;;  %v2889_v30 = vsel %vm775_vm2, %v2767_v43, %v12038_v19 }
 0x547   : > { %v4045_v27 = vpop.f32.mrf.mxu0 }
 0x548   : > { %v4287_v29 = vpack.c.bf16 %v4045_v27, %v4042_v10  ;;  %4327 = vrot.lane.b32.xlu1 %v4288_v24, %s15400_s20  ;;  %v2752_v27 = vpop.f32.mrf.mxu1  ;;  %v2900_v24 = vsel %vm1663_vm4, %v2889_v30, %v2820_v57 }
 0x549   : > { %v9608_v8 = vpop.f32.mrf.mxu0  ;;  %v12118_v48 = vpop.permute.xlu0 %2873 }
 0x54a   : > { %4325 = vrot.lane.b32.xlu0 %v4287_v29, %s15400_s20  ;;  %v2908_v29 = vsel %vm1672_vm5, %v2900_v24, %v2832_v13  ;;  %v12124_v37 = vpop.f32.mrf.mxu1 }
 0x54b   : > { %v4058_v1 = vpop.f32.mrf.mxu0  ;;  %v12113_v45 = vpop.permute.xlu1 %2871  ;;  %v2916_v61 = vsel %vm1101_vm3, %v2908_v29, %v2844_v42  ;;  %v15607_v42 = vld [vmem:[#allocation19_spill] sm:$0xff] }
 0x54c   : > { %v2924_v2 = vsel %vm1689_vm6, %v2916_v61, %v2856_v12  ;;  %v15608_v12 = vpack.c.bf16 %v11744_v14, %v11736_v50  ;;  %v15611_v61 = vld [vmem:[#allocation18_spill] sm:$0xff] }
 0x54d   : > { %v9609_v34 = vpop.f32.mrf.mxu0  ;;  %v2932_v19 = vsel %vm1698_vm7, %v2924_v2, %v2868_v3  ;;  %v15609_v2 = vpack.c.bf16 %v11960_v58, %v11950_v59  ;;  %v2755_v3 = vpop.f32.mrf.mxu1 }
 0x54e   : > { %v4290_v10 = vpack.c.bf16 %v9609_v34, %v9608_v8  ;;  %v2892_v30 = vsel %vm775_vm2, %v15608_v12, %v12034_v55  ;;  %v15610_v55 = vld [vmem:[#allocation17_spill] sm:$0xff] }
 0x54f   : > { %v4061_v47 = vpop.f32.mrf.mxu0 }
 0x550   : > { %v4289_v26 = vpack.c.bf16 %v4061_v47, %v4058_v1  ;;  %4335 = vrot.lane.b32.xlu0 %v4290_v10, %s15398_s21  ;;  %v15606_v1 = vld [vmem:[#allocation15_spill] sm:$0xff]  ;;  %v2902_v10 = vsel %vm1663_vm4, %v2892_v30, %v12053_v31  ;;  %v15613_v30 = vld [vmem:[#allocation37_spill] sm:$0xff] }
 0x551   : > { %v9612_v6 = vpop.f32.mrf.mxu0  ;;  %v2882_v23 = vpop.permute.xlu1 %2881  ;;  %v3676_v34 = vpack.c.bf16 %v15607_v42, %v15606_v1  ;;  %v2910_v50 = vsel %vm1672_vm5, %v2902_v10, %v12065_v51  ;;  %v12563_v1 = vld [vmem:[%s15270_s2 + $0xc8] sm:$0xff]  }
 0x552   : > { %4333 = vrot.lane.b32.xlu1 %v4289_v26, %s15398_s21 }
 0x553   : > { %v4074_v57 = vpop.f32.mrf.mxu0  ;;  %v2880_v43 = vpop.permute.xlu0 %2879 }
 0x554   : > { %v2940_v8 = vsel %vm1707_vm8, %v2932_v19, %v2880_v43  ;;  %v2801_v19 = vpack.c.bf16 %v2755_v3, %v2752_v27  ;;  %v15614_v27 = vld [vmem:[#allocation20_spill] sm:$0xff] }
 0x555   : > { %v9613_v13 = vpop.f32.mrf.mxu0  ;;  %v12129_v47 = vpop.permute.xlu1 %3348  ;;  %3590 = vmatmul.mubr.bf16.vlgmr.msra.gmra.mxu1 %v2940_v8 }
 0x556   : > { %v4292_v26 = vpack.c.bf16 %v9613_v13, %v9612_v6  ;;  %9567 = vmatpush3.bf16.msra.mxu1 %v11428_v33  ;;  %8421 = vmatprep.mubr.msk.bf16.mxu1 %vm775_vm2, %v15609_v2  ;;  %v2918_v33 = vsel %vm1101_vm3, %v2910_v50, %v12095_v17  ;;  %v3675_v6 = vpack.c.bf16 %v15611_v61, %v15610_v55  ;;  %v15612_v13 = vld [vmem:[#allocation35_spill] sm:$0xff]  ;;  %v15615_v2 = vld [vmem:[#allocation21_spill] sm:$0xff] }
 0x557   : > { %9568 = vmatprep.subr.bf16.mxu1 %v3676_v34  ;;  %v4077_v24 = vpop.f32.mrf.mxu0  ;;  %v12145_v29 = vpop.permute.xlu0 %3336  ;;  %v2926_v31 = vsel %vm1689_vm6, %v2918_v33, %v2858_v60  ;;  %v2769_v17 = vpack.c.bf16 %v11762_v44, %v11754_v40  ;;  %v3950_v12 = vmax.f32 %v15612_v13, 0.0 }
 0x558   : > { %v4291_v14 = vpack.c.bf16 %v4077_v24, %v4074_v57  ;;  %4339 = vrot.lane.b32.xlu0 %v4292_v26, %s15398_s21  ;;  %v2934_v51 = vsel %vm1698_vm7, %v2926_v31, %v2870_v20  ;;  %v3951_v26 = vmax.f32 %v15613_v30, 0.0  ;;  %v3674_v20 = vpack.c.bf16 %v15615_v2, %v15614_v27  ;;  %v12570_v27 = vld [vmem:[%s15270_s2 + $0xd0] sm:$0xff]  }
 0x559   : > { %v9616_v59 = vpop.f32.mrf.mxu0  ;;  %v12152_v58 = vpop.permute.xlu1 %3314  ;;  %v2943_v8 = vsel %vm1707_vm8, %v2934_v51, %v2882_v23  ;;  %v2895_v3 = vsel %vm775_vm2, %v2769_v17, %v12047_v38  ;;  %15647 = vst [vmem:[#allocation60_spill] sm:$0xff] %v12570_v27 }
 0x55a   : > { %9569 = vmatpush3.bf16.msra.mxu1 %v3676_v34  ;;  %4337 = vrot.lane.b32.xlu1 %v4291_v14, %s15398_s21  ;;  %v2904_v40 = vsel %vm1663_vm4, %v2895_v3, %v12057_v54 }
 0x55b   : > { %9570 = vmatprep.subr.bf16.mxu1 %v3675_v6  ;;  %v4090_v57 = vpop.f32.mrf.mxu0  ;;  %v12159_v43 = vpop.permute.xlu0 %3326  ;;  %v2912_v24 = vsel %vm1672_vm5, %v2904_v40, %v12087_v36 }
 0x55c   : > { %v2920_v14 = vsel %vm1101_vm3, %v2912_v24, %v12097_v32  ;;  %v2802_v32 = vpack.c.bf16 %v12124_v37, %v12108_v15 }
 0x55d   : > { %v9617_v60 = vpop.f32.mrf.mxu0  ;;  %v12166_v34 = vpop.permute.xlu1 %3338  ;;  %3598 = vmatmul.mubr.bf16.gmra.mxu1 %v2943_v8 }
 0x55e   : > { %v4294_v10 = vpack.c.bf16 %v9617_v60, %v9616_v59  ;;  %9571 = vmatpush3.bf16.msra.mxu1 %v3675_v6  ;;  %8422 = vmatprep.mubr.msk.bf16.mxu1 %vm775_vm2, %v2801_v19  ;;  %v12180_v59 = vpack.c.bf16 %v3951_v26, %v3950_v12  ;;  %v2928_v6 = vsel %vm1689_vm6, %v2920_v14, %v12105_v16 }
 0x55f   : > { %9572 = vmatprep.subr.bf16.mxu1 %v3674_v20  ;;  %v4093_v44 = vpop.f32.mrf.mxu0  ;;  %v3361_v23 = vpop.permute.xlu0 %3360  ;;  %v2936_v54 = vsel %vm1698_vm7, %v2928_v6, %v12113_v45  ;;  %v15616_v16 = vpack.c.bf16 %v11758_v0, %v11750_v28 }
 0x560   : > { %v4293_v50 = vpack.c.bf16 %v4093_v44, %v4090_v57  ;;  %4347 = vrot.lane.b32.xlu1 %v4294_v10, %s15359_s25 }
 0x561   : > { %v9620_v38 = vpop.f32.mrf.mxu0  ;;  %v2886_v33 = vpop.permute.xlu1 %2885  ;;  %v2898_v17 = vsel %vm775_vm2, %v15616_v16, %v12043_v35  ;;  %v3304_v35 = vpack.c.bf16 %v12010_v5, %v11996_v56 }
 0x562   : > { %9573 = vmatpush3.bf16.msra.mxu1 %v3674_v20  ;;  %4345 = vrot.lane.b32.xlu0 %v4293_v50, %s15359_s25  ;;  %v2906_v8 = vsel %vm1663_vm4, %v2898_v17, %v12061_v21 }
 0x563   : > { %9662 = vmatprep.subr.bf16.mxu1 %v12180_v59  ;;  %v4106_v36 = vpop.f32.mrf.mxu0  ;;  %v2884_v31 = vpop.permute.xlu0 %2883  ;;  %v2914_v15 = vsel %vm1672_vm5, %v2906_v8, %v12071_v41  ;;  %v15620_v8 = vld [vmem:[#allocation29_spill] sm:$0xff] }
 0x564   : > { %v2946_v19 = vsel %vm1707_vm8, %v2936_v54, %v2884_v31  ;;  %v2922_v60 = vsel %vm1101_vm3, %v2914_v15, %v12099_v18  ;;  %v15617_v18 = vpack.c.bf16 %v11788_v4, %v11782_v7  ;;  %v10205_v7 = vld [vmem:[%s15276_s8 + $0xc8] sm:$0xff]  }
 0x565   : > { %v9621_v51 = vpop.f32.mrf.mxu0  ;;  %v12191_v57 = vpop.permute.xlu1 %3362  ;;  %3606 = vmatmul.mubr.bf16.gmra.mxu1 %v2946_v19  ;;  %v2930_v20 = vsel %vm1689_vm6, %v2922_v60, %v12103_v46  ;;  %5072 = vmatpush1.bf16.msra.mxu0 %v10205_v7 }
 0x566   : > { %v4296_v45 = vpack.c.bf16 %v9621_v51, %v9620_v38  ;;  %8423 = vmatprep.mubr.msk.bf16.mxu1 %vm775_vm2, %v2802_v32  ;;  %v2938_v21 = vsel %vm1698_vm7, %v2930_v20, %v12118_v48  ;;  %v3394_v40 = vsel %vm775_vm2, %v15617_v18, %v12079_v25  ;;  %v15618_v25 = vpack.c.bf16 %v11784_v11, %v11775_v62  ;;  %v10207_v51 = vld [vmem:[%s15276_s8 + $0xb8] sm:$0xff]  }
 0x567   : > { %v4109_v12 = vpop.f32.mrf.mxu0  ;;  %v3351_v37 = vpop.permute.xlu0 %3350  ;;  %v2949_v10 = vsel %vm1707_vm8, %v2938_v21, %v2886_v33  ;;  %v3405_v5 = vsel %vm1663_vm4, %v3394_v40, %v12091_v63  ;;  %5073 = vmatprep.subr.bf16.mxu0 %v15553_v9 }
 0x568   : > { %v4295_v26 = vpack.c.bf16 %v4109_v12, %v4106_v36  ;;  %4351 = vrot.lane.b32.xlu1 %v4296_v45, %s15359_s25  ;;  %v3413_v48 = vsel %vm1672_vm5, %v3405_v5, %v12145_v29  ;;  %v3397_v63 = vsel %vm775_vm2, %v15618_v25, %v12152_v58  ;;  %v10206_v29 = vld [vmem:[%s15276_s8 + $0xc0] sm:$0xff]   ;;  %v15621_v12 = vpack.c.bf16 %v11806_v52, %v15620_v8  ;;  %v15622_v5 = vld [vmem:[#allocation30_spill] sm:$0xff] }
 0x569   : > { %v9624_v28 = vpop.f32.mrf.mxu0  ;;  %v3329_v0 = vpop.permute.xlu1 %3328  ;;  %v3421_v38 = vsel %vm1101_vm3, %v3413_v48, %v12129_v47  ;;  %v3407_v62 = vsel %vm1663_vm4, %v3397_v63, %v12159_v43  ;;  %5074 = vmatpush1.bf16.msra.mxu0 %v10206_v29 }
 0x56a   : > { %4349 = vrot.lane.b32.xlu0 %v4295_v26, %s15359_s25  ;;  %v3429_v6 = vsel %vm1689_vm6, %v3421_v38, %v3361_v23  ;;  %5075 = vmatprep.subr.bf16.mxu0 %v15553_v9  ;;  %v3415_v19 = vsel %vm1672_vm5, %v3407_v62, %v12166_v34  ;;  %v15619_v23 = vpack.c.bf16 %v12002_v22, %v11993_v39  ;;  %v10208_v39 = vld [vmem:[%s15276_s8 + $0xb0] sm:$0xff]   ;;  %s15397_s25 = sand.u32 1, %s10431_s14  }
 0x56b   : > { %v4122_v41 = vpop.f32.mrf.mxu0  ;;  %v3317_v3 = vpop.permute.xlu0 %3316  ;;  %v3423_v16 = vsel %vm1101_vm3, %v3415_v19, %v3351_v37  ;;  %v3306_v37 = vpack.c.bf16 %v12031_v53, %v12021_v49  ;;  %v10209_v53 = vld [vmem:[%s15276_s8 + $0xa8] sm:$0xff]   ;;  %s8172_s12 = sshll.u32 %s15397_s25, 7  ;;  %s15722_s25 = smov 32  }
 0x56c   : > { %v3400_v34 = vsel %vm775_vm2, %v15621_v12, %v3317_v3  ;;  %v3431_v26 = vsel %vm1689_vm6, %v3423_v16, %v12191_v57  ;;  %s12654_s11 = scalar_lea.vmem [#allocation2], %s8172_s12 }
 0x56d   : > { %v9625_v44 = vpop.f32.mrf.mxu0  ;;  %v3373_v56 = vpop.permute.xlu1 %3372  ;;  %3614 = vmatmul.mubr.bf16.gmra.mxu1 %v2949_v10  ;;  %5076 = vmatpush1.bf16.msra.mxu0 %v10207_v51 }
 0x56e   : > { %v4298_v46 = vpack.c.bf16 %v9625_v44, %v9624_v28  ;;  %8424 = vmatprep.mubr.msk.bf16.mxu1 %vm775_vm2, %v3304_v35  ;;  %v3437_v11 = vsel %vm1698_vm7, %v3429_v6, %v3373_v56  ;;  %5077 = vmatprep.subr.bf16.mxu0 %v15553_v9  ;;  %v3409_v28 = vsel %vm1663_vm4, %v3400_v34, %v3329_v0  ;;  %v10210_v56 = vld [vmem:[%s15276_s8 + $0xa0] sm:$0xff]   ;;  %v15625_v6 = vld [vmem:[#allocation43_spill] sm:$0xff] }
 0x56f   : > { %v4125_v24 = vpop.f32.mrf.mxu0  ;;  %v3375_v50 = vpop.permute.xlu0 %3374 }
 0x570   : > { %v4297_v4 = vpack.c.bf16 %v4125_v24, %v4122_v41  ;;  %4359 = vrot.lane.b32.xlu0 %v4298_v46, %s15357_s26  ;;  %v3439_v60 = vsel %vm1698_vm7, %v3431_v26, %v3375_v50  ;;  %v15623_v46 = vld [vmem:[#allocation27_spill] sm:$0xff] }
 0x571   : > { %v9628_v14 = vpop.f32.mrf.mxu0  ;;  %5078 = vmatpush1.bf16.msra.mxu0 %v10208_v39  ;;  %v15624_v48 = vpack.c.bf16 %v15622_v5, %v15623_v46  ;;  %v15629_v39 = vld [vmem:[#allocation38_spill] sm:$0xff]  ;;  %v10213_v26 = vld [vmem:[%s15276_s8 + $0xd0] sm:$0xff]  }
 0x572   : > { %v3387_v33 = vpop.permute.xlu1 %3386  ;;  %4357 = vrot.lane.b32.xlu1 %v4297_v4, %s15357_s26  ;;  %5079 = vmatprep.subr.bf16.mxu0 %v15553_v9 }
 0x573   : > { %v4138_v54 = vpop.f32.mrf.mxu0  ;;  %v3448_v20 = vsel %vm1707_vm8, %v3439_v60, %v3387_v33  ;;  %v10260_v60 = vld [vmem:[%s15271_s3] sm:$0xff]  }
 0x574   : > { %v3385_v58 = vpop.permute.xlu0 %3384 }
 0x575   : > { %v3445_v36 = vsel %vm1707_vm8, %v3437_v11, %v3385_v58  ;;  %v9629_v31 = vpop.f32.mrf.mxu0  ;;  %5080 = vmatpush1.bf16.msra.mxu0 %v10209_v53  ;;  %v10211_v58 = vld [vmem:[%s15276_s8 + $0x98] sm:$0xff]  }
 0x576   : > { %v4300_v32 = vpack.c.bf16 %v9629_v31, %v9628_v14  ;;  %v3353_v47 = vpop.permute.xlu1 %3352  ;;  %3622 = vmatmul.mubr.bf16.gmra.mxu1 %v3445_v36  ;;  %5081 = vmatprep.subr.bf16.mxu0 %v15553_v9 }
 0x577   : > { %8425 = vmatprep.mubr.msk.bf16.mxu1 %vm775_vm2, %v15619_v23  ;;  %v4141_v43 = vpop.f32.mrf.mxu0  ;;  %v10212_v23 = vld [vmem:[%s15276_s8 + $0x90] sm:$0xff]  }
 0x578   : > { %v4299_v17 = vpack.c.bf16 %v4141_v43, %v4138_v54  ;;  %v3341_v45 = vpop.permute.xlu0 %3340  ;;  %4363 = vrot.lane.b32.xlu0 %v4300_v32, %s15357_s26  ;;  %v15626_v54 = vld [vmem:[#allocation26_spill] sm:$0xff] }
 0x579   : > { %v9632_v15 = vpop.f32.mrf.mxu0  ;;  %v3417_v21 = vsel %vm1672_vm5, %v3409_v28, %v3341_v45  ;;  %5082 = vmatpush1.bf16.msra.mxu0 %v10210_v56  ;;  %v15627_v62 = vpack.c.bf16 %v15625_v6, %v15626_v54  ;;  %v12355_v54 = vld [vmem:[%s15270_s2] sm:$0xff]  }
 0x57a   : > { %v3377_v22 = vpop.permute.xlu1 %3376  ;;  %4361 = vrot.lane.b32.xlu1 %v4299_v17, %s15357_s26  ;;  %v3425_v57 = vsel %vm1101_vm3, %v3417_v21, %v3353_v47  ;;  %5083 = vmatprep.subr.bf16.mxu0 %v15553_v9  ;;  %s15693_s26 = smov 48  }
 0x57b   : > { %v4154_v52 = vpop.f32.mrf.mxu0 }
 0x57c   : > { %v3365_v35 = vpop.permute.xlu0 %3364 }
 0x57d   : > { %v9633_v41 = vpop.f32.mrf.mxu0  ;;  %v3433_v40 = vsel %vm1689_vm6, %v3425_v57, %v3365_v35  ;;  %5084 = vmatpush1.bf16.msra.mxu0 %v10211_v58  ;;  %v15631_v35 = vld [vmem:[#allocation36_spill] sm:$0xff]  ;;  %v15633_v57 = vld [vmem:[#allocation33_spill] sm:$0xff] }
 0x57e   : > { %v4302_v3 = vpack.c.bf16 %v9633_v41, %v9632_v15  ;;  %v3319_v10 = vpop.permute.xlu1 %3318  ;;  %3630 = vmatmul.mubr.bf16.gmra.mxu1 %v3448_v20  ;;  %v3441_v4 = vsel %vm1698_vm7, %v3433_v40, %v3377_v22  ;;  %5085 = vmatprep.subr.bf16.mxu0 %v15553_v9  ;;  %v15628_v15 = vld [vmem:[#allocation22_spill] sm:$0xff]  ;;  %v3948_v20 = vmax.f32 %v15631_v35, 0.0 }
 0x57f   : > { %v4157_v49 = vpop.f32.mrf.mxu0  ;;  %8426 = vmatprep.mubr.msk.bf16.mxu1 %vm775_vm2, %v3306_v37  ;;  %v3403_v24 = vsel %vm775_vm2, %v15624_v48, %v3319_v10  ;;  %v12316_v22 = vadd.f32 %v15629_v39, %v15628_v15  ;;  %v12415_v39 = vld [vmem:[%s15270_s2 + $0x38] sm:$0xff]  }
 0x580   : > { %v4301_v0 = vpack.c.bf16 %v4157_v49, %v4154_v52  ;;  %v3331_v18 = vpop.permute.xlu0 %3330  ;;  %4371 = vrot.lane.b32.xlu1 %v4302_v3, %s15580_s28  ;;  %v15632_v49 = vld [vmem:[#allocation31_spill] sm:$0xff] }
 0x581   : > { %v9636_v44 = vpop.f32.mrf.mxu0  ;;  %v3411_v63 = vsel %vm1663_vm4, %v3403_v24, %v3331_v18  ;;  %5086 = vmatpush1.bf16.msra.mxu0 %v10212_v23  ;;  %15630 = vst [vmem:[#allocation29_spill] sm:$0xff] %v12316_v22  ;;  %v3949_v41 = vmax.f32 %v12316_v22, 0.0  ;;  %v3946_v53 = vmax.f32 %v15632_v49, 0.0  ;;  %v15634_v18 = vld [vmem:[#allocation34_spill] sm:$0xff]  ;;  %v10262_v24 = vld [vmem:[%s15271_s3 + $0x10] sm:$0xff]  }
 0x582   : > { %v3343_v50 = vpop.permute.xlu1 %3342  ;;  %4369 = vrot.lane.b32.xlu0 %v4301_v0, %s15580_s28  ;;  %5101 = vmatprep.subr.bf16.mxu0 %v15553_v9  ;;  %v3947_v0 = vmax.f32 %v15633_v57, 0.0  ;;  %v12333_v40 = vadd.f32 %v15634_v18, %v15628_v15  ;;  %v12408_v15 = vld [vmem:[%s15270_s2 + $0x30] sm:$0xff]  }
 0x583   : > { %v4170_v7 = vpop.f32.mrf.mxu0  ;;  %v3419_v36 = vsel %vm1672_vm5, %v3411_v63, %v3343_v50  ;;  %v3958_v5 = vpack.c.bf16 %v3949_v41, %v3948_v20  ;;  %v15636_v50 = vld [vmem:[#allocation32_spill] sm:$0xff]  ;;  %v12450_v20 = vld [vmem:[%s15270_s2 + $0x60] sm:$0xff]  }
 0x584   : > { %v3389_v25 = vpop.permute.xlu0 %3388  ;;  %15635 = vst [vmem:[#allocation30_spill] sm:$0xff] %v12333_v40  ;;  %v3945_v63 = vmax.f32 %v12333_v40, 0.0 }
 0x585   : > { %v3451_v14 = vsel %vm1707_vm8, %v3441_v4, %v3389_v25  ;;  %v9637_v29 = vpop.f32.mrf.mxu0  ;;  %5102 = vmatpush2.bf16.msra.mxu0 %v10213_v26  ;;  %v3957_v25 = vpack.c.bf16 %v3947_v0, %v3946_v53  ;;  %v12429_v26 = vld [vmem:[%s15270_s2 + $0x48] sm:$0xff]   ;;  %v12468_v53 = vld [vmem:[%s15270_s2 + $0x70] sm:$0xff]  }
 0x586   : > { %v4304_v38 = vpack.c.bf16 %v9637_v29, %v9636_v44  ;;  %3638 = vmatmul.mubr.bf16.gmra.mxu1 %v3451_v14  ;;  %v3367_v33 = vpop.permute.xlu1 %3366  ;;  %v10261_v44 = vld [vmem:[%s15271_s3 + $0x8] sm:$0xff]   ;;  %v10263_v29 = vld [vmem:[%s15271_s3 + $0x18] sm:$0xff]  }
 0x587   : > { %8427 = vmatprep.mubr.msk.bf16.mxu1 %vm775_vm2, %v15627_v62  ;;  %v4173_v11 = vpop.f32.mrf.mxu0 }
 0x588   : > { %v4303_v31 = vpack.c.bf16 %v4173_v11, %v4170_v7  ;;  %v3355_v32 = vpop.permute.xlu0 %3354  ;;  %4375 = vrot.lane.b32.xlu1 %v4304_v38, %s15580_s28  ;;  %v3944_v7 = vmax.f32 %v15636_v50, 0.0 }
 0x589   : > { %v3427_v47 = vsel %vm1101_vm3, %v3419_v36, %v3355_v32  ;;  %v9640_v19 = vpop.f32.mrf.mxu0 }
 0x58a   : > { %4373 = vrot.lane.b32.xlu0 %v4303_v31, %s15580_s28  ;;  %v3435_v51 = vsel %vm1689_vm6, %v3427_v47, %v3367_v33  ;;  %v3391_v17 = vpop.permute.xlu1 %3390  ;;  %v3956_v33 = vpack.c.bf16 %v3945_v63, %v3944_v7  ;;  %v12364_v31 = vld [vmem:[%s15270_s2 + $0x8] sm:$0xff]   ;;  %v12371_v47 = vld [vmem:[%s15270_s2 + $0x10] sm:$0xff]  }
 0x58b   : > { %v4186_v43 = vpop.f32.mrf.mxu0  ;;  %v12498_v7 = vld [vmem:[%s15270_s2 + $0x90] sm:$0xff]  }
 0x58c   : > { %v3379_v16 = vpop.permute.xlu0 %3378  ;;  %15637 = vst [vmem:[#allocation27_spill] sm:$0xff] %v12498_v7 }
 0x58d   : > { %v3443_v45 = vsel %vm1698_vm7, %v3435_v51, %v3379_v16  ;;  %v9641_v8 = vpop.f32.mrf.mxu0 }
 0x58e   : > { %v4306_v12 = vpack.c.bf16 %v9641_v8, %v9640_v19  ;;  %v3454_v34 = vsel %vm1707_vm8, %v3443_v45, %v3391_v17  ;;  %v12386_v17 = vld [vmem:[%s15270_s2 + $0x18] sm:$0xff]   ;;  %v12393_v8 = vld [vmem:[%s15270_s2 + $0x20] sm:$0xff]  }
 0x58f   : > { %3646 = vmatmul.mubr.bf16.gmra.mxu1 %v3454_v34  ;;  %v4189_v37 = vpop.f32.mrf.mxu0  ;;  %v12401_v34 = vld [vmem:[%s15270_s2 + $0x28] sm:$0xff]  }
 0x590   : > { %v4305_v52 = vpack.c.bf16 %v4189_v37, %v4186_v43  ;;  %9574 = vmatprep.mubr.msk.bf16.mxu1 %vm1101_vm3, %v10260_v60  ;;  %4383 = vrot.lane.b32.xlu0 %v4306_v12, %s15581_s18  ;;  %v12422_v37 = vld [vmem:[%s15270_s2 + $0x40] sm:$0xff]  }
 0x591   : > { %v9644_v28 = vpop.f32.mrf.mxu0 }
 0x592   : > { %4381 = vrot.lane.b32.xlu1 %v4305_v52, %s15581_s18  ;;  %v12436_v52 = vld [vmem:[%s15270_s2 + $0x50] sm:$0xff]  }
 0x593   : > { %v4202_v21 = vpop.f32.mrf.mxu0 }
 0x595   : > { %v9645_v3 = vpop.f32.mrf.mxu0 }
 0x596   : > { %v4308_v10 = vpack.c.bf16 %v9645_v3, %v9644_v28  ;;  %v12443_v28 = vld [vmem:[%s15270_s2 + $0x58] sm:$0xff]  }
 0x597   : > { %9575 = vmatmul.mubr.msk.bf16.vlgmr.msra.gmra.mxu1 %vm1101_vm3, %v10261_v44  ;;  %v4205_v56 = vpop.f32.mrf.mxu0 }
 0x598   : > { %v4307_v46 = vpack.c.bf16 %v4205_v56, %v4202_v21  ;;  %9663 = vmatpush3.bf16.msra.mxu1 %v12180_v59  ;;  %4387 = vrot.lane.b32.xlu0 %v4308_v10, %s15581_s18  ;;  %v12461_v10 = vld [vmem:[%s15270_s2 + $0x68] sm:$0xff]   ;;  %v12477_v56 = vld [vmem:[%s15270_s2 + $0x78] sm:$0xff]  }
 0x599   : > { %9664 = vmatprep.subr.bf16.mxu1 %v3958_v5  ;;  %v9648_v48 = vpop.f32.mrf.mxu0  ;;  %9578 = vmatprep.mubr.msk.bf16.mxu1 %vm1101_vm3, %v10262_v24  ;;  %v12491_v24 = vld [vmem:[%s15270_s2 + $0x88] sm:$0xff]  }
 0x59a   : > { %4385 = vrot.lane.b32.xlu1 %v4307_v46, %s15581_s18 }
 0x59b   : > { %v4218_v4 = vpop.f32.mrf.mxu0 }
 0x59c   : > { %9665 = vmatpush3.bf16.msra.mxu1 %v3958_v5  ;;  %v12484_v5 = vld [vmem:[%s15270_s2 + $0x80] sm:$0xff]  }
 0x59d   : > { %9666 = vmatprep.subr.bf16.mxu1 %v3957_v25  ;;  %v9649_v59 = vpop.f32.mrf.mxu0 }
 0x59e   : > { %v4310_v14 = vpack.c.bf16 %v9649_v59, %v9648_v48  ;;  %v12509_v59 = vld [vmem:[%s15270_s2 + $0x98] sm:$0xff]  }
 0x59f   : > { %9579 = vmatmul.mubr.msk.bf16.gmra.mxu1 %vm1101_vm3, %v10263_v29  ;;  %v4221_v38 = vpop.f32.mrf.mxu0  ;;  %15638 = vst [vmem:[#allocation43_spill] sm:$0xff] %v12509_v59 }
 0x5a0   : > { %v4309_v6 = vpack.c.bf16 %v4221_v38, %v4218_v4  ;;  %9667 = vmatpush3.bf16.msra.mxu1 %v3957_v25  ;;  %9670 = vmatprep.mubr.msk.bf16.mxu1 %vm1101_vm3, %v12355_v54 }
 0x5a1   : > { %9668 = vmatprep.subr.bf16.mxu1 %v3956_v33  ;;  %v9652_v62 = vpop.f32.mrf.mxu0  ;;  %4395 = vrot.lane.b32.xlu1 %v4310_v14, %s15582_s29  ;;  %v12516_v14 = vld [vmem:[%s15270_s2 + $0xa0] sm:$0xff]  }
 0x5a2   : > { %4393 = vrot.lane.b32.xlu0 %v4309_v6, %s15582_s29  ;;  %15639 = vst [vmem:[#allocation26_spill] sm:$0xff] %v12516_v14  ;;  %v12525_v6 = vld [vmem:[%s15270_s2 + $0xa8] sm:$0xff]  }
 0x5a3   : > { %v4234_v11 = vpop.f32.mrf.mxu0  ;;  %15640 = vst [vmem:[#allocation22_spill] sm:$0xff] %v12525_v6 }
 0x5a4   : > { %9669 = vmatpush3.bf16.msra.mxu1 %v3956_v33 }
 0x5a5   : > { %v9653_v58 = vpop.f32.mrf.mxu0 }
 0x5a6   : > { %v4312_v36 = vpack.c.bf16 %v9653_v58, %v9652_v62  ;;  %v12532_v62 = vld [vmem:[%s15270_s2 + $0xb0] sm:$0xff]  }
 0x5a7   : > { %9671 = vmatmul.mubr.msk.bf16.vlgmr.msra.gmra.mxu1 %vm1101_vm3, %v12364_v31  ;;  %v4237_v32 = vpop.f32.mrf.mxu0  ;;  %15641 = vst [vmem:[#allocation38_spill] sm:$0xff] %v12532_v62 }
 0x5a8   : > { %9674 = vmatprep.mubr.msk.bf16.mxu1 %vm1101_vm3, %v12371_v47  ;;  %v4311_v19 = vpack.c.bf16 %v4237_v32, %v4234_v11  ;;  %4399 = vrot.lane.b32.xlu1 %v4312_v36, %s15582_s29  ;;  %v15642_v36 = vld [vmem:[#allocation53_spill] sm:$0xff]  ;;  %v15643_v32 = vld [vmem:[#allocation55_spill] sm:$0xff] }
 0x5a9   : > { %v12376_v23 = vpop.f32.mrf.mxu0  ;;  %15646 = vst [vmem:[#allocation55_spill] sm:$0xff] %v12563_v1 }
 0x5aa   : > { %4397 = vrot.lane.b32.xlu0 %v4311_v19, %s15582_s29  ;;  %v4281_v19 = vpack.c.bf16 %v15643_v32, %v15642_v36 }
 0x5ab   : > { %v4250_v43 = vpop.f32.mrf.mxu0 }
 0x5ad   : > { %v12379_v51 = vpop.f32.mrf.mxu0 }
 0x5af   : > { %9675 = vmatmul.mubr.msk.bf16.gmra.mxu1 %vm1101_vm3, %v12386_v17  ;;  %v4253_v45 = vpop.f32.mrf.mxu0 }
 0x5b0   : > { %9678 = vmatprep.mubr.msk.bf16.mxu1 %vm1101_vm3, %v12393_v8  ;;  %v4313_v12 = vpack.c.bf16 %v4253_v45, %v4250_v43  ;;  %v12543_v43 = vld [vmem:[%s15270_s2 + $0xb8] sm:$0xff]   ;;  %v12550_v45 = vld [vmem:[%s15270_s2 + $0xc0] sm:$0xff]  }
 0x5b1   : > { %15644 = vst [vmem:[#allocation34_spill] sm:$0xff] %v12543_v43  ;;  %15645 = vst [vmem:[#allocation53_spill] sm:$0xff] %v12550_v45 }
 0x5b2   : > { %8539 = vmatprep.mubr.msk.bf16.mxu0 %vm775_vm2, %v4313_v12  ;;  %v4324_v21 = vpop.permute.xlu1 %4323 }
 0x5b4   : > { %v4322_v60 = vpop.permute.xlu0 %4321 }
 0x5b5   : > { %v4403_v36 = vsel %vm775_vm2, %v4281_v19, %v4322_v60  ;;  %v15648_v60 = vld [vmem:[#allocation54_spill] sm:$0xff] }
 0x5b7   : > { %9679 = vmatmul.mubr.msk.bf16.gmra.mxu1 %vm1101_vm3, %v12401_v34 }
 0x5b8   : > { %9682 = vmatprep.mubr.msk.bf16.mxu1 %vm1101_vm3, %v12408_v15 }
 0x5ba   : > { %v12456_v3 = vpop.permute.xlu1 %4327 }
 0x5bc   : > { %v12454_v41 = vpop.permute.xlu0 %4325 }
 0x5bf   : > { %9683 = vmatmul.mubr.msk.bf16.gmra.mxu1 %vm1101_vm3, %v12415_v39 }
 0x5c0   : > { %9686 = vmatprep.mubr.msk.bf16.mxu1 %vm1101_vm3, %v12422_v37 }
 0x5c2   : > { %v4336_v0 = vpop.permute.xlu0 %4335 }
 0x5c4   : > { %v4334_v18 = vpop.permute.xlu1 %4333 }
 0x5c5   : > { %v4414_v32 = vsel %vm1663_vm4, %v4403_v36, %v4334_v18  ;;  %v15649_v18 = vld [vmem:[#allocation52_spill] sm:$0xff] }
 0x5c6   : > { %v15650_v19 = vpack.c.bf16 %v15648_v60, %v15649_v18 }
 0x5c7   : > { %9687 = vmatmul.mubr.msk.bf16.gmra.mxu1 %vm1101_vm3, %v12429_v26 }
 0x5c8   : > { %9690 = vmatprep.mubr.msk.bf16.mxu1 %vm1101_vm3, %v12436_v52  ;;  %v4406_v36 = vsel %vm775_vm2, %v15650_v19, %v4324_v21 }
 0x5c9   : > { %v4416_v55 = vsel %vm1663_vm4, %v4406_v36, %v4336_v0  ;;  %v12593_v0 = vld [vmem:[%s15270_s2 + $0xd8] sm:$0xff]  }
 0x5ca   : > { %v12472_v44 = vpop.permute.xlu0 %4339  ;;  %15654 = vst [vmem:[#allocation54_spill] sm:$0xff] %v12593_v0 }
 0x5cc   : > { %v4338_v46 = vpop.permute.xlu1 %4337 }
 0x5cf   : > { %9691 = vmatmul.mubr.msk.bf16.gmra.mxu1 %vm1101_vm3, %v12443_v28 }
 0x5d0   : > { %9694 = vmatprep.mubr.msk.bf16.mxu1 %vm1101_vm3, %v12450_v20 }
 0x5d2   : > { %v4348_v4 = vpop.permute.xlu1 %4347 }
 0x5d3   : > { %v4424_v60 = vsel %vm1672_vm5, %v4416_v55, %v4348_v4 }
 0x5d4   : > { %v4346_v48 = vpop.permute.xlu0 %4345 }
 0x5d5   : > { %v4422_v61 = vsel %vm1672_vm5, %v4414_v32, %v4346_v48 }
 0x5d7   : > { %9695 = vmatmul.mubr.msk.bf16.gmra.mxu1 %vm1101_vm3, %v12461_v10 }
 0x5d8   : > { %9698 = vmatprep.mubr.msk.bf16.mxu1 %vm1101_vm3, %v12468_v53 }
 0x5da   : > { %v12504_v63 = vpop.permute.xlu1 %4351 }
 0x5dc   : > { %v12502_v25 = vpop.permute.xlu0 %4349 }
 0x5df   : > { %9699 = vmatmul.mubr.msk.bf16.gmra.mxu1 %vm1101_vm3, %v12477_v56 }
 0x5e0   : > { %9702 = vmatprep.mubr.msk.bf16.mxu1 %vm1101_vm3, %v12484_v5 }
 0x5e2   : > { %v4360_v29 = vpop.permute.xlu0 %4359 }
 0x5e3   : > { %v4432_v48 = vsel %vm1101_vm3, %v4424_v60, %v4360_v29 }
 0x5e4   : > { %v4358_v38 = vpop.permute.xlu1 %4357 }
 0x5e7   : > { %9703 = vmatmul.mubr.msk.bf16.gmra.mxu1 %vm1101_vm3, %v12491_v24 }
 0x5e8   : > { %9706 = vmatprep.mubr.msk.bf16.mxu1 %vm1101_vm3, %v12498_v7 }
 0x5ea   : > { %v12520_v33 = vpop.permute.xlu0 %4363 }
 0x5ec   : > { %v12536_v11 = vpop.permute.xlu1 %4361 }
 0x5ef   : > { %9707 = vmatmul.mubr.msk.bf16.gmra.mxu1 %vm1101_vm3, %v12509_v59 }
 0x5f0   : > { %9710 = vmatprep.mubr.msk.bf16.mxu1 %vm1101_vm3, %v12516_v14 }
 0x5f2   : > { %v4372_v12 = vpop.permute.xlu1 %4371 }
 0x5f4   : > { %v4370_v58 = vpop.permute.xlu0 %4369 }
 0x5f7   : > { %9711 = vmatmul.mubr.msk.bf16.gmra.mxu1 %vm1101_vm3, %v12525_v6  ;;  %v15652_v6 = vld [vmem:[#allocation59_spill] sm:$0xff] }
 0x5f8   : > { %9714 = vmatprep.mubr.msk.bf16.mxu1 %vm1101_vm3, %v12532_v62  ;;  %v15651_v62 = vld [vmem:[#allocation57_spill] sm:$0xff] }
 0x5f9   : > { %v4283_v14 = vpack.c.bf16 %v15652_v6, %v15651_v62 }
 0x5fa   : > { %v12558_v42 = vpop.permute.xlu1 %4375 }
 0x5fc   : > { %v12554_v16 = vpop.permute.xlu0 %4373 }
 0x5ff   : > { %9715 = vmatmul.mubr.msk.bf16.gmra.mxu1 %vm1101_vm3, %v12543_v43  ;;  %v12581_v43 = vpop.f32.mrf.mxu0 }
 0x600   : > { %9718 = vmatprep.mubr.msk.bf16.mxu1 %vm1101_vm3, %v12550_v45 }
 0x601   : > { %v4266_v55 = vpop.f32.mrf.mxu0 }
 0x602   : > { %v4384_v2 = vpop.permute.xlu0 %4383 }
 0x604   : > { %v4382_v45 = vpop.permute.xlu1 %4381 }
 0x607   : > { %9719 = vmatmul.mubr.msk.bf16.gmra.mxu1 %vm1101_vm3, %v12563_v1  ;;  %v4430_v1 = vsel %vm1101_vm3, %v4422_v61, %v4358_v38  ;;  %v12600_v61 = vld [vmem:[%s15270_s2 + $0xe0] sm:$0xff]  }
 0x608   : > { %9722 = vmatprep.mubr.msk.bf16.mxu1 %vm1101_vm3, %v12570_v27  ;;  %v15653_v27 = vld [vmem:[#allocation5_spill] sm:$0xff]  ;;  %v4438_v21 = vsel %vm1689_vm6, %v4430_v1, %v4370_v58  ;;  %15655 = vst [vmem:[#allocation52_spill] sm:$0xff] %v12600_v61  ;;  %v4409_v1 = vsel %vm775_vm2, %v4283_v14, %v12454_v41  ;;  %v9661_v41 = vpop.f32.mrf.mxu0  ;;  %v4440_v14 = vsel %vm1689_vm6, %v4432_v48, %v4372_v12 }
 0x609   : > { %v15370_v7 = vsub.s32 3, %v15653_v27  ;;  %v4446_v4 = vsel %vm1698_vm7, %v4438_v21, %v4382_v45  ;;  %v12612_v38 = vld [vmem:[%s15277_s9] sm:$0xff]  ;;  %v4418_v58 = vsel %vm1663_vm4, %v4409_v1, %v4338_v46  ;;  %v12630_v46 = vld [vmem:[%s15270_s2 + $0xe8] sm:$0xff]   ;;  %v15657_v12 = vpack.c.bf16 %v12379_v51, %v12376_v23  ;;  %v15658_v21 = vld [vmem:[#allocation24_spill] sm:$0xff] }
 0x60a   : > { %v12585_v59 = vpop.permute.xlu0 %4387  ;;  %v4426_v19 = vsel %vm1672_vm5, %v4418_v58, %v12502_v25  ;;  %15656 = vst [vmem:[#allocation57_spill] sm:$0xff] %v12630_v46  ;;  %v4448_v60 = vsel %vm1698_vm7, %v4440_v14, %v4384_v2  ;;  %v12643_v25 = vld [vmem:[%s15270_s2 + $0xf0] sm:$0xff]   ;;  %v15660_v58 = vld [vmem:[#allocation58_spill] sm:$0xff] }
 0x60b   : > { %v12617_v6 = vrot.slane %v12612_v38, %v15370_v7  ;;  %15659 = vst [vmem:[#allocation59_spill] sm:$0xff] %v12643_v25  ;;  %v4434_v2 = vsel %vm1101_vm3, %v4426_v19, %v12536_v11 }
 0x60c   : > { %v4386_v62 = vpop.permute.xlu1 %4385  ;;  %v4442_v11 = vsel %vm1689_vm6, %v4434_v2, %v12554_v16 }
 0x60d   : > { %v4450_v16 = vsel %vm1698_vm7, %v4442_v11, %v4386_v62  ;;  %v4316_v62 = vpack.c.bf16 %v9661_v41, %v12581_v43  ;;  %v12708_v43 = vld [vmem:[%s15270_s2 + $0x108] sm:$0xff]   ;;  %v15671_v41 = vld [vmem:[#allocation28_spill] sm:$0xff] }
 0x60e   : > { %15670 = vst [vmem:[#allocation63_spill] sm:$0xff] %v12708_v43 }
 0x60f   : > { %9723 = vmatmul.mubr.msk.bf16.gmra.mxu1 %vm1101_vm3, %v12593_v0 }
 0x610   : > { %9726 = vmatprep.mubr.msk.bf16.mxu1 %vm1101_vm3, %v12600_v61 }
 0x613   : > { %v4396_v48 = vpop.permute.xlu1 %4395 }
 0x614   : > { %v4394_v32 = vpop.permute.xlu0 %4393 }
 0x615   : > { %v4454_v29 = vsel %vm1707_vm8, %v4446_v4, %v4394_v32  ;;  %v3591_v45 = vpop.f32.mrf.mxu1  ;;  %v4269_v4 = vpop.f32.mrf.mxu0  ;;  %v15661_v32 = vld [vmem:[#allocation56_spill] sm:$0xff] }
 0x616   : > { %v3592_v18 = vadd.f32 %v3591_v45, %v12617_v6  ;;  %5104 = vmatmul.mubr.bf16.vlgmr.msra.gmra.mxu0 %v4454_v29  ;;  %v15662_v23 = vpack.c.bf16 %v15660_v58, %v15661_v32 }
 0x617   : > { %v3593_v36 = vpop.f32.mrf.mxu1  ;;  %9727 = vmatmul.mubr.msk.bf16.gmra.mxu1 %vm1101_vm3, %v12630_v46  ;;  %8540 = vmatprep.mubr.msk.bf16.mxu0 %vm775_vm2, %v15657_v12 }
 0x618   : > { %v3654_v1 = vadd.f32 %v3592_v18, %v15658_v21  ;;  %9730 = vmatprep.mubr.msk.bf16.mxu1 %vm1101_vm3, %v12643_v25  ;;  %v4412_v51 = vsel %vm775_vm2, %v15662_v23, %v12456_v3  ;;  %v4457_v18 = vsel %vm1707_vm8, %v4448_v60, %v4396_v48  ;;  %v4315_v36 = vpack.c.bf16 %v4269_v4, %v4266_v55  ;;  %v15663_v3 = vld [vmem:[#allocation39_spill] sm:$0xff] }
 0x619   : > { %v3594_v29 = vpop.f32.mrf.mxu1  ;;  %v4420_v12 = vsel %vm1663_vm4, %v4412_v51, %v12472_v44  ;;  %v12675_v44 = vld [vmem:[%s15270_s2 + $0xf8] sm:$0xff]   ;;  %v15666_v48 = vld [vmem:[#allocation23_spill] sm:$0xff] }
 0x61a   : > { %7820 = vst.msk [vmem:[%s12654_s11] sm:$0xff] %vm775_vm2, %v3654_v1  ;;  %v3595_v14 = vadd.f32 %v3594_v29, %v12617_v6  ;;  %v4428_v55 = vsel %vm1672_vm5, %v4420_v12, %v12504_v63  ;;  %15665 = vst [vmem:[#allocation56_spill] sm:$0xff] %v12675_v44  ;;  %v12685_v63 = vld [vmem:[%s15270_s2 + $0x100] sm:$0xff]  }
 0x61b   : > { %v3596_v45 = vpop.f32.mrf.mxu1  ;;  %15667 = vst [vmem:[#allocation61_spill] sm:$0xff] %v12685_v63  ;;  %v4436_v29 = vsel %vm1101_vm3, %v4428_v55, %v12520_v33  ;;  %v4400_v55 = vpop.permute.xlu1 %4399 }
 0x61c   : > { %v3655_v58 = vadd.f32 %v3595_v14, %v15663_v3  ;;  %v4398_v4 = vpop.permute.xlu0 %4397  ;;  %v4444_v12 = vsel %vm1689_vm6, %v4436_v29, %v12558_v42 }
 0x61d   : > { %v3599_v19 = vpop.f32.mrf.mxu1  ;;  %v4460_v45 = vsel %vm1707_vm8, %v4450_v16, %v4398_v4  ;;  %v4452_v42 = vsel %vm1698_vm7, %v4444_v12, %v12585_v59  ;;  %v15676_v12 = vld [vmem:[#allocation40_spill] sm:$0xff] }
 0x61e   : > { %7821 = vst.msk [vmem:[%s12654_s11 + $0x8] sm:$0xff] %vm775_vm2, %v3655_v58  ;;  %v3600_v32 = vadd.f32 %v3599_v19, %v12617_v6  ;;  %5112 = vmatmul.mubr.bf16.gmra.mxu0 %v4457_v18  ;;  %v12668_v23 = vpack.c.bf16 %v3655_v58, %v3654_v1  ;;  %v15668_v18 = vld [vmem:[#allocation25_spill] sm:$0xff]  ;;  %v4463_v59 = vsel %vm1707_vm8, %v4452_v42, %v4400_v55 }
 0x61f   : > { %v3601_v60 = vpop.f32.mrf.mxu1  ;;  %9731 = vmatmul.mubr.msk.bf16.gmra.mxu1 %vm1101_vm3, %v12675_v44  ;;  %8541 = vmatprep.mubr.msk.bf16.mxu0 %vm775_vm2, %v4315_v36 }
 0x620   : > { %15664 = vst [vmem:[#allocation58_spill] sm:$0xff] %v12668_v23  ;;  %v3656_v1 = vadd.f32 %v3600_v32, %v15666_v48  ;;  %9734 = vmatprep.mubr.msk.bf16.mxu1 %vm1101_vm3, %v12685_v63  ;;  %v12718_v60 = vld [vmem:[%s15270_s2 + $0x110] sm:$0xff]  }
 0x621   : > { %v3602_v51 = vpop.f32.mrf.mxu1  ;;  %15672 = vst [vmem:[#allocation64_spill] sm:$0xff] %v12718_v60 }
 0x622   : > { %7822 = vst.msk [vmem:[%s12654_s11 + $0x10] sm:$0xff] %vm775_vm2, %v3656_v1  ;;  %v3603_v2 = vadd.f32 %v3602_v51, %v12617_v6  ;;  %v15673_v51 = vld [vmem:[#allocation41_spill] sm:$0xff] }
 0x623   : > { %v3604_v14 = vpop.f32.mrf.mxu1 }
 0x624   : > { %v3657_v36 = vadd.f32 %v3603_v2, %v15668_v18 }
 0x625   : > { %v3607_v58 = vpop.f32.mrf.mxu1 }
 0x626   : > { %7823 = vst.msk [vmem:[%s12654_s11 + $0x18] sm:$0xff] %vm775_vm2, %v3657_v36  ;;  %v3608_v33 = vadd.f32 %v3607_v58, %v12617_v6  ;;  %5120 = vmatmul.mubr.bf16.gmra.mxu0 %v4460_v45  ;;  %v12702_v11 = vpack.c.bf16 %v3657_v36, %v3656_v1  ;;  %v12735_v36 = vld [vmem:[%s15270_s2 + $0x118] sm:$0xff]  }
 0x627   : > { %v3609_v19 = vpop.f32.mrf.mxu1  ;;  %8542 = vmatprep.mubr.msk.bf16.mxu0 %vm775_vm2, %v4316_v62  ;;  %9735 = vmatmul.mubr.msk.bf16.gmra.mxu1 %vm1101_vm3, %v12708_v43  ;;  %15675 = vst [vmem:[#allocation66_spill] sm:$0xff] %v12735_v36 }
 0x628   : > { %15669 = vst [vmem:[#allocation62_spill] sm:$0xff] %v12702_v11  ;;  %v3658_v32 = vadd.f32 %v3608_v33, %v15671_v41  ;;  %9738 = vmatprep.mubr.msk.bf16.mxu1 %vm1101_vm3, %v12718_v60 }
 0x629   : > { %v3610_v16 = vpop.f32.mrf.mxu1 }
 0x62a   : > { %7824 = vst.msk [vmem:[%s12654_s11 + $0x20] sm:$0xff] %vm775_vm2, %v3658_v32  ;;  %v3611_v1 = vadd.f32 %v3610_v16, %v12617_v6 }
 0x62b   : > { %v3612_v4 = vpop.f32.mrf.mxu1 }
 0x62c   : > { %v3659_v29 = vadd.f32 %v3611_v1, %v15673_v51 }
 0x62d   : > { %v3615_v2 = vpop.f32.mrf.mxu1 }
 0x62e   : > { %7825 = vst.msk [vmem:[%s12654_s11 + $0x28] sm:$0xff] %vm775_vm2, %v3659_v29  ;;  %v3616_v62 = vadd.f32 %v3615_v2, %v12617_v6  ;;  %5128 = vmatmul.mubr.bf16.gmra.mxu0 %v4463_v59  ;;  %v12730_v14 = vpack.c.bf16 %v3659_v29, %v3658_v32  ;;  %v15677_v32 = vld [vmem:[#allocation42_spill] sm:$0xff] }
 0x62f   : > { %v3617_v45 = vpop.f32.mrf.mxu1  ;;  %9739 = vmatmul.mubr.msk.bf16.gmra.mxu1 %vm1101_vm3, %v12735_v36 }
 0x630   : > { %15674 = vst [vmem:[#allocation65_spill] sm:$0xff] %v12730_v14  ;;  %v3660_v58 = vadd.f32 %v3616_v62, %v15676_v12  ;;  %9750 = vmatprep.mubr.msk.bf16.mxu1 %vm1101_vm3, %v12355_v54 }
 0x631   : > { %v3618_v33 = vpop.f32.mrf.mxu1 }
 0x632   : > { %7826 = vst.msk [vmem:[%s12654_s11 + $0x30] sm:$0xff] %vm775_vm2, %v3660_v58  ;;  %v3619_v19 = vadd.f32 %v3618_v33, %v12617_v6 }
 0x633   : > { %v3620_v42 = vpop.f32.mrf.mxu1 }
 0x634   : > { %v3661_v55 = vadd.f32 %v3619_v19, %v15677_v32 }
 0x636   : > { %7827 = vst.msk [vmem:[%s12654_s11 + $0x38] sm:$0xff] %vm775_vm2, %v3661_v55  ;;  %v3623_v16 = vpop.f32.mrf.mxu1  ;;  %v12748_v1 = vpack.c.bf16 %v3661_v55, %v3660_v58 }
 0x637   : > { %v3624_v4 = vadd.f32 %v3623_v16, %v12617_v6 }
 0x638   : > { %15678 = vst [vmem:[#allocation67_spill] sm:$0xff] %v12748_v1  ;;  %v3625_v59 = vpop.f32.mrf.mxu1 }
 0x639   : > { %v3662_v54 = vadd.f32 %v3624_v4, %v15636_v50 }
 0x63a   : > { %v3626_v29 = vpop.f32.mrf.mxu1 }
 0x63b   : > { %7828 = vst.msk [vmem:[%s12654_s11 + $0x40] sm:$0xff] %vm775_vm2, %v3662_v54  ;;  %v3627_v2 = vadd.f32 %v3626_v29, %v12617_v6 }
 0x63c   : > { %v3628_v62 = vpop.f32.mrf.mxu1 }
 0x63d   : > { %v3663_v45 = vadd.f32 %v3627_v2, %v12333_v40 }
 0x63e   : > { %v3631_v33 = vpop.f32.mrf.mxu1 }
 0x63f   : > { %7829 = vst.msk [vmem:[%s12654_s11 + $0x48] sm:$0xff] %vm775_vm2, %v3663_v45  ;;  %v3632_v58 = vadd.f32 %v3631_v33, %v12617_v6  ;;  %v12759_v19 = vpack.c.bf16 %v3663_v45, %v3662_v54 }
 0x640   : > { %v3633_v42 = vpop.f32.mrf.mxu1 }
 0x641   : > { %15679 = vst [vmem:[#allocation68_spill] sm:$0xff] %v12759_v19  ;;  %v3664_v55 = vadd.f32 %v3632_v58, %v15632_v49 }
 0x642   : > { %v3634_v16 = vpop.f32.mrf.mxu1 }
 0x643   : > { %7830 = vst.msk [vmem:[%s12654_s11 + $0x50] sm:$0xff] %vm775_vm2, %v3664_v55  ;;  %v3635_v4 = vadd.f32 %v3634_v16, %v12617_v6 }
 0x644   : > { %v3636_v59 = vpop.f32.mrf.mxu1 }
 0x645   : > { %v3665_v29 = vadd.f32 %v3635_v4, %v15633_v57 }
 0x646   : > { %v3639_v2 = vpop.f32.mrf.mxu1 }
 0x647   : > { %7831 = vst.msk [vmem:[%s12654_s11 + $0x58] sm:$0xff] %vm775_vm2, %v3665_v29  ;;  %v3640_v62 = vadd.f32 %v3639_v2, %v12617_v6  ;;  %v12769_v54 = vpack.c.bf16 %v3665_v29, %v3664_v55 }
 0x648   : > { %v3641_v45 = vpop.f32.mrf.mxu1 }
 0x649   : > { %15680 = vst [vmem:[#allocation69_spill] sm:$0xff] %v12769_v54  ;;  %v3666_v33 = vadd.f32 %v3640_v62, %v15631_v35 }
 0x64a   : > { %v3642_v58 = vpop.f32.mrf.mxu1 }
 0x64b   : > { %7832 = vst.msk [vmem:[%s12654_s11 + $0x60] sm:$0xff] %vm775_vm2, %v3666_v33  ;;  %v3643_v42 = vadd.f32 %v3642_v58, %v12617_v6 }
 0x64c   : > { %v3644_v16 = vpop.f32.mrf.mxu1 }
 0x64d   : > { %v3667_v4 = vadd.f32 %v3643_v42, %v12316_v22 }
 0x64f   : > { %7833 = vst.msk [vmem:[%s12654_s11 + $0x68] sm:$0xff] %vm775_vm2, %v3667_v4  ;;  %v3647_v59 = vpop.f32.mrf.mxu1  ;;  %v12778_v7 = vpack.c.bf16 %v3667_v4, %v3666_v33 }
 0x650   : > { %v3648_v55 = vadd.f32 %v3647_v59, %v12617_v6 }
 0x651   : > { %15681 = vst [vmem:[#allocation70_spill] sm:$0xff] %v12778_v7  ;;  %v3649_v29 = vpop.f32.mrf.mxu1 }
 0x652   : > { %v3668_v2 = vadd.f32 %v3648_v55, %v15612_v13 }
 0x653   : > { %v3650_v62 = vpop.f32.mrf.mxu1 }
 0x654   : > { %7834 = vst.msk [vmem:[%s12654_s11 + $0x70] sm:$0xff] %vm775_vm2, %v3668_v2  ;;  %v3651_v45 = vadd.f32 %v3650_v62, %v12617_v6 }
 0x655   : > { %v3652_v35 = vpop.f32.mrf.mxu1 }
 0x656   : > { %v3669_v58 = vadd.f32 %v3651_v45, %v15613_v30 }
 0x657   : > { %v12786_v16 = vpop.f32.mrf.mxu1 }
 0x658   : > { %15682 = vst [vmem:[#allocation71_spill] sm:$0xff] %v12786_v16  ;;  %7835 = vst.msk [vmem:[%s12654_s11 + $0x78] sm:$0xff] %vm775_vm2, %v3669_v58  ;;  %v12790_v42 = vpack.c.bf16 %v3669_v58, %v3668_v2 }
 0x659   : > { %v12792_v33 = vpop.f32.mrf.mxu1 }
 0x65a   : > { %15683 = vst [vmem:[#allocation72_spill] sm:$0xff] %v12792_v33 }
 0x65b   : > { %v12794_v4 = vpop.f32.mrf.mxu1 }
 0x65c   : > { %15684 = vst [vmem:[#allocation73_spill] sm:$0xff] %v12794_v4 }
 0x65d   : > { %v12796_v59 = vpop.f32.mrf.mxu1 }
 0x65e   : > { %15685 = vst [vmem:[#allocation74_spill] sm:$0xff] %v12796_v59 }
 0x65f   : > { %v12798_v55 = vpop.f32.mrf.mxu1 }
 0x660   : > { %15686 = vst [vmem:[#allocation75_spill] sm:$0xff] %v12798_v55 }
 0x661   : > { %v12800_v29 = vpop.f32.mrf.mxu1 }
 0x662   : > { %15687 = vst [vmem:[#allocation76_spill] sm:$0xff] %v12800_v29 }
 0x663   : > { %v12802_v6 = vpop.f32.mrf.mxu1 }
 0x664   : > { %15688 = vst [vmem:[#allocation77_spill] sm:$0xff] %v12802_v6 }
 0x665   : > { %v12804_v35 = vpop.f32.mrf.mxu1 }
 0x666   : > { %15689 = vst [vmem:[#allocation78_spill] sm:$0xff] %v12804_v35 }
 0x667   : > { %v12806_v62 = vpop.f32.mrf.mxu1 }
 0x669   : > { %v12808_v45 = vpop.f32.mrf.mxu1 }
 0x66b   : > { %v12810_v2 = vpop.f32.mrf.mxu1 }
 0x66d   : > { %v12814_v30 = vpop.f32.mrf.mxu1 }
 0x66f   : > { %v12816_v22 = vpop.f32.mrf.mxu1 }
 0x670   : > { %15690 = vst [vmem:[#allocation79_spill] sm:$0xff] %v12816_v22 }
 0x671   : > { %v12818_v13 = vpop.f32.mrf.mxu1 }
 0x673   : > { %v12820_v40 = vpop.f32.mrf.mxu1 }
 0x674   : > { %15691 = vst [vmem:[#allocation80_spill] sm:$0xff] %v12820_v40 }
 0x675   : > { %v12824_v57 = vpop.f32.mrf.mxu1 }
 0x676   : > { %15692 = vst [vmem:[#allocation81_spill] sm:$0xff] %v12824_v57 }
 0x677   : > { %v9680_v49 = vpop.f32.mrf.mxu1 }
 0x679   : > { %v4531_v51 = vpop.f32.mrf.mxu1 }
 0x67b   : > { %v9681_v41 = vpop.f32.mrf.mxu1 }
 0x67c   : > { %v4791_v32 = vpack.c.bf16 %v9681_v41, %v9680_v49 }
 0x67d   : > { %v4534_v12 = vpop.f32.mrf.mxu1 }
 0x67e   : > { %v4790_v3 = vpack.c.bf16 %v4534_v12, %v4531_v51  ;;  %4828 = vrot.lane.b32.xlu1 %v4791_v32, %s15400_s20 }
 0x67f   : > { %v12827_v58 = vpop.f32.mrf.mxu1 }
 0x680   : > { %4826 = vrot.lane.b32.xlu0 %v4790_v3, %s15400_s20 }
 0x681   : > { %v4547_v21 = vpop.f32.mrf.mxu1 }
 0x683   : > { %v12830_v18 = vpop.f32.mrf.mxu1 }
 0x685   : > { %v4550_v48 = vpop.f32.mrf.mxu1 }
 0x686   : > { %v4792_v6 = vpack.c.bf16 %v4550_v48, %v4547_v21 }
 0x687   : > { %v9688_v55 = vpop.f32.mrf.mxu1 }
 0x688   : > { %4830 = vrot.lane.b32.xlu0 %v4792_v6, %s15400_s20 }
 0x689   : > { %v4563_v49 = vpop.f32.mrf.mxu1 }
 0x68b   : > { %v9689_v41 = vpop.f32.mrf.mxu1 }
 0x68c   : > { %v4795_v51 = vpack.c.bf16 %v9689_v41, %v9688_v55 }
 0x68d   : > { %v4566_v12 = vpop.f32.mrf.mxu1 }
 0x68e   : > { %v4794_v32 = vpack.c.bf16 %v4566_v12, %v4563_v49  ;;  %4840 = vrot.lane.b32.xlu0 %v4795_v51, %s15398_s21 }
 0x68f   : > { %v12836_v35 = vpop.f32.mrf.mxu1 }
 0x690   : > { %4838 = vrot.lane.b32.xlu1 %v4794_v32, %s15398_s21 }
 0x691   : > { %v4579_v3 = vpop.f32.mrf.mxu1 }
 0x693   : > { %v12839_v29 = vpop.f32.mrf.mxu1 }
 0x695   : > { %v4582_v48 = vpop.f32.mrf.mxu1 }
 0x696   : > { %v4796_v50 = vpack.c.bf16 %v4582_v48, %v4579_v3 }
 0x697   : > { %v9696_v6 = vpop.f32.mrf.mxu1 }
 0x698   : > { %4842 = vrot.lane.b32.xlu1 %v4796_v50, %s15398_s21 }
 0x699   : > { %v4595_v55 = vpop.f32.mrf.mxu1 }
 0x69b   : > { %v9697_v41 = vpop.f32.mrf.mxu1 }
 0x69c   : > { %v4799_v49 = vpack.c.bf16 %v9697_v41, %v9696_v6 }
 0x69d   : > { %v4598_v12 = vpop.f32.mrf.mxu1 }
 0x69e   : > { %v4798_v51 = vpack.c.bf16 %v4598_v12, %v4595_v55  ;;  %4852 = vrot.lane.b32.xlu1 %v4799_v49, %s15693_s26 }
 0x69f   : > { %v12845_v4 = vpop.f32.mrf.mxu1 }
 0x6a0   : > { %4850 = vrot.lane.b32.xlu0 %v4798_v51, %s15693_s26 }
 0x6a1   : > { %v12848_v32 = vpop.f32.mrf.mxu1 }
 0x6a3   : > { %v12850_v16 = vpop.f32.mrf.mxu1 }
 0x6a5   : > { %v4614_v48 = vpop.f32.mrf.mxu1 }
 0x6a6   : > { %v4800_v22 = vpack.c.bf16 %v4614_v48, %v12848_v32 }
 0x6a7   : > { %v9704_v50 = vpop.f32.mrf.mxu1 }
 0x6a9   : > { %v4627_v21 = vpop.f32.mrf.mxu1 }
 0x6ab   : > { %v9705_v33 = vpop.f32.mrf.mxu1 }
 0x6ac   : > { %v4803_v6 = vpack.c.bf16 %v9705_v33, %v9704_v50 }
 0x6ad   : > { %v4630_v41 = vpop.f32.mrf.mxu1 }
 0x6ae   : > { %v4802_v55 = vpack.c.bf16 %v4630_v41, %v4627_v21  ;;  %4864 = vrot.lane.b32.xlu0 %v4803_v6, %s15694_s30 }
 0x6af   : > { %v12855_v49 = vpop.f32.mrf.mxu1 }
 0x6b0   : > { %4862 = vrot.lane.b32.xlu1 %v4802_v55, %s15694_s30 }
 0x6b1   : > { %v4643_v12 = vpop.f32.mrf.mxu1 }
 0x6b3   : > { %v12858_v51 = vpop.f32.mrf.mxu1 }
 0x6b5   : > { %v4646_v59 = vpop.f32.mrf.mxu1 }
 0x6b6   : > { %v4804_v46 = vpack.c.bf16 %v4646_v59, %v4643_v12 }
 0x6b7   : > { %v9712_v19 = vpop.f32.mrf.mxu1 }
 0x6b9   : > { %v4659_v54 = vpop.f32.mrf.mxu1 }
 0x6bb   : > { %v9713_v3 = vpop.f32.mrf.mxu1 }
 0x6bc   : > { %v4807_v7 = vpack.c.bf16 %v9713_v3, %v9712_v19 }
 0x6bd   : > { %v4662_v23 = vpop.f32.mrf.mxu1 }
 0x6be   : > { %v4806_v11 = vpack.c.bf16 %v4662_v23, %v4659_v54  ;;  %4876 = vrot.lane.b32.xlu1 %v4807_v7, %s15580_s28 }
 0x6bf   : > { %v12861_v33 = vpop.f32.mrf.mxu1 }
 0x6c0   : > { %4874 = vrot.lane.b32.xlu0 %v4806_v11, %s15580_s28 }
 0x6c1   : > { %v4675_v21 = vpop.f32.mrf.mxu1 }
 0x6c3   : > { %v12864_v50 = vpop.f32.mrf.mxu1 }
 0x6c5   : > { %v4678_v6 = vpop.f32.mrf.mxu1 }
 0x6c7   : > { %v9720_v41 = vpop.f32.mrf.mxu1 }
 0x6c9   : > { %v4691_v55 = vpop.f32.mrf.mxu1 }
 0x6cb   : > { %v9721_v14 = vpop.f32.mrf.mxu1 }
 0x6cc   : > { %v4811_v1 = vpack.c.bf16 %v9721_v14, %v9720_v41 }
 0x6cd   : > { %v4694_v36 = vpop.f32.mrf.mxu1 }
 0x6ce   : > { %v4810_v60 = vpack.c.bf16 %v4694_v36, %v4691_v55  ;;  %4888 = vrot.lane.b32.xlu0 %v4811_v1, %s15581_s18 }
 0x6cf   : > { %v12867_v19 = vpop.f32.mrf.mxu1 }
 0x6d0   : > { %4886 = vrot.lane.b32.xlu1 %v4810_v60, %s15581_s18 }
 0x6d1   : > { %v4707_v7 = vpop.f32.mrf.mxu1 }
 0x6d3   : > { %v12870_v23 = vpop.f32.mrf.mxu1 }
 0x6d5   : > { %v4710_v11 = vpop.f32.mrf.mxu1 }
 0x6d6   : > { %v12872_v54 = vpop.f32.mrf.mxu0  ;;  %v4812_v57 = vpack.c.bf16 %v4710_v11, %v4707_v7 }
 0x6d7   : > { %v9728_v3 = vpop.f32.mrf.mxu1 }
 0x6d8   : > { %v5107_v43 = vpop.f32.mrf.mxu0 }
 0x6d9   : > { %v4723_v63 = vpop.f32.mrf.mxu1 }
 0x6da   : > { %v12874_v44 = vpop.f32.mrf.mxu0 }
 0x6db   : > { %v9729_v14 = vpop.f32.mrf.mxu1 }
 0x6dc   : > { %v4815_v41 = vpack.c.bf16 %v9729_v14, %v9728_v3  ;;  %v5110_v36 = vpop.f32.mrf.mxu0  ;;  %v4808_v14 = vpack.c.bf16 %v4678_v6, %v4675_v21  ;;  %v15696_v6 = vpack.c.bf16 %v12839_v29, %v12836_v35  ;;  %v4809_v29 = vpack.c.bf16 %v12864_v50, %v12861_v33 }
 0x6dd   : > { %v4726_v55 = vpop.f32.mrf.mxu1 }
 0x6de   : > { %v4814_v1 = vpack.c.bf16 %v4726_v55, %v4723_v63  ;;  %v5113_v25 = vpop.f32.mrf.mxu0  ;;  %4900 = vrot.lane.b32.xlu1 %v4815_v41, %s15582_s29 }
 0x6df   : > { %v9732_v60 = vpop.f32.mrf.mxu1 }
 0x6e0   : > { %v5115_v61 = vpop.f32.mrf.mxu0  ;;  %4898 = vrot.lane.b32.xlu0 %v4814_v1, %s15582_s29 }
 0x6e1   : > { %v4739_v0 = vpop.f32.mrf.mxu1  ;;  %v4991_v61 = vsub.s32 6, %v15653_v27 }
 0x6e2   : > { %v5116_v43 = vpop.f32.mrf.mxu0  ;;  %4866 = vrot.lane.b32.xlu1 %v4804_v46, %s15694_s30  ;;  %v15695_v46 = vpack.c.bf16 %v12830_v18, %v12827_v58  ;;  %v15697_v18 = vpack.c.bf16 %v12850_v16, %v12845_v4 }
 0x6e3   : > { %v9733_v40 = vpop.f32.mrf.mxu1 }
 0x6e4   : > { %v5118_v3 = vpop.f32.mrf.mxu0  ;;  %4854 = vrot.lane.b32.xlu0 %v4800_v22, %s15693_s26  ;;  %v12891_v22 = vrot.slane %v12612_v38, %v4991_v61  ;;  %v4817_v50 = vpack.c.bf16 %v9733_v40, %v9732_v60 }
 0x6e5   : > { %v4742_v63 = vpop.f32.mrf.mxu1 }
 0x6e6   : > { %v5121_v36 = vpop.f32.mrf.mxu0  ;;  %4890 = vrot.lane.b32.xlu1 %v4812_v57, %s15581_s18  ;;  %v4816_v41 = vpack.c.bf16 %v4742_v63, %v4739_v0  ;;  %v4805_v0 = vpack.c.bf16 %v12858_v51, %v12855_v49  ;;  %v5114_v16 = vadd.f32 %v5113_v25, %v12891_v22  ;;  %v5117_v4 = vadd.f32 %v5116_v43, %v12891_v22 }
 0x6e7   : > { %v12883_v59 = vpop.f32.mrf.mxu1  ;;  %v5122_v58 = vadd.f32 %v5121_v36, %v12891_v22  ;;  %v4813_v49 = vpack.c.bf16 %v12870_v23, %v12867_v19  ;;  %v5106_v25 = vadd.f32 %v12872_v54, %v12891_v22  ;;  %v5109_v51 = vadd.f32 %v12874_v44, %v12891_v22  ;;  %v10214_v44 = vld [vmem:[%s15276_s8 + $0x110] sm:$0xff]   ;;  %v10215_v23 = vld [vmem:[%s15276_s8 + $0x108] sm:$0xff]   ;;  %v10216_v54 = vld [vmem:[%s15276_s8 + $0x100] sm:$0xff]  }
 0x6e8   : > { %v5123_v12 = vpop.f32.mrf.mxu0  ;;  %4878 = vrot.lane.b32.xlu0 %v4808_v14, %s15580_s28  ;;  %v5170_v43 = vmax.f32 %v5114_v16, 0.0 }
 0x6e9   : > { %v4755_v32 = vpop.f32.mrf.mxu1  ;;  %v5172_v14 = vmax.f32 %v5122_v58, 0.0  ;;  %v5168_v40 = vmax.f32 %v5106_v25, 0.0  ;;  %v5169_v60 = vmax.f32 %v5109_v51, 0.0  ;;  %v4786_v58 = vpack.c.bf16 %v12814_v30, %v12808_v45  ;;  %v15700_v45 = vld [vmem:[#allocation26_spill] sm:$0xff]  ;;  %v15702_v25 = vld [vmem:[#allocation81_spill] sm:$0xff] }
 0x6ea   : > { %v5124_v48 = vpop.f32.mrf.mxu0  ;;  %4832 = vrot.lane.b32.xlu1 %v15695_v46, %s15400_s20  ;;  %v4788_v51 = vpack.c.bf16 %v15702_v25, %v12818_v13 }
 0x6eb   : > { %v12893_v21 = vpop.f32.mrf.mxu1  ;;  %v5125_v1 = vadd.f32 %v5124_v48, %v12891_v22  ;;  %v5171_v48 = vmax.f32 %v5117_v4, 0.0  ;;  %v5184_v19 = vpack.c.bf16 %v5169_v60, %v5168_v40  ;;  %v15699_v4 = vld [vmem:[#allocation43_spill] sm:$0xff]  ;;  %v15704_v60 = vld [vmem:[#allocation38_spill] sm:$0xff] }
 0x6ec   : > { %v5126_v57 = vpop.f32.mrf.mxu0  ;;  %4844 = vrot.lane.b32.xlu0 %v15696_v6, %s15398_s21  ;;  %v4819_v7 = vpack.c.bf16 %v12893_v21, %v12883_v59  ;;  %s15721_s21 = smov 16  }
 0x6ed   : > { %v4758_v11 = vpop.f32.mrf.mxu1  ;;  %v5173_v36 = vmax.f32 %v5125_v1, 0.0  ;;  %v5185_v6 = vpack.c.bf16 %v5171_v48, %v5170_v43 }
 0x6ee   : > { %v5129_v55 = vpop.f32.mrf.mxu0  ;;  %4856 = vrot.lane.b32.xlu1 %v15697_v18, %s15693_s26  ;;  %v4818_v38 = vpack.c.bf16 %v4758_v11, %v4755_v32 }
 0x6ef   : > { %v5130_v3 = vadd.f32 %v5129_v55, %v12891_v22  ;;  %v5186_v46 = vpack.c.bf16 %v5173_v36, %v5172_v14 }
 0x6f0   : > { %v5131_v35 = vpop.f32.mrf.mxu0  ;;  %4902 = vrot.lane.b32.xlu0 %v4816_v41, %s15582_s29  ;;  %8543 = vmatprep.mubr.msk.bf16.mxu0 %vm775_vm2, %v4818_v38  ;;  %v15698_v38 = vld [vmem:[#allocation27_spill] sm:$0xff] }
 0x6f1   : > { %v5174_v61 = vmax.f32 %v5130_v3, 0.0 }
 0x6f2   : > { %v5132_v63 = vpop.f32.mrf.mxu0  ;;  %4880 = vrot.lane.b32.xlu1 %v4809_v29, %s15580_s28 }
 0x6f3   : > { %v5133_v33 = vadd.f32 %v5132_v63, %v12891_v22 }
 0x6f4   : > { %4868 = vrot.lane.b32.xlu0 %v4805_v0, %s15694_s30  ;;  %v5134_v12 = vpop.f32.mrf.mxu0 }
 0x6f5   : > { %v5175_v32 = vmax.f32 %v5133_v33, 0.0  ;;  %v15701_v33 = vpack.c.bf16 %v12810_v2, %v12806_v62 }
 0x6f6   : > { %4904 = vrot.lane.b32.xlu1 %v4817_v50, %s15582_s29 }
 0x6f7   : > { %v5187_v57 = vpack.c.bf16 %v5175_v32, %v5174_v61 }
 0x6f8   : > { %4892 = vrot.lane.b32.xlu0 %v4813_v49, %s15581_s18 }
 0x6f9   : > { %9742 = vmatprep.subr.bf16.mxu1 %v5187_v57 }
 0x6fa   : > { %9743 = vmatpush3.bf16.msra.mxu1 %v5187_v57  ;;  %v15703_v57 = vld [vmem:[#allocation22_spill] sm:$0xff] }
 0x6fb   : > { %9744 = vmatprep.subr.bf16.mxu1 %v5186_v46 }
 0x6fe   : > { %9745 = vmatpush3.bf16.msra.mxu1 %v5186_v46 }
 0x6ff   : > { %9746 = vmatprep.subr.bf16.mxu1 %v5185_v6 }
 0x702   : > { %9747 = vmatpush3.bf16.msra.mxu1 %v5185_v6 }
 0x703   : > { %9748 = vmatprep.subr.bf16.mxu1 %v5184_v19 }
 0x706   : > { %9749 = vmatpush3.bf16.msra.mxu1 %v5184_v19 }
 0x707   : > { %6303 = vmatprep.subr.bf16.mxu1 %v15553_v9 }
 0x709   : > { %9751 = vmatmul.mubr.msk.bf16.vlgmr.msra.gmra.mxu1 %vm1101_vm3, %v12364_v31  ;;  %v10217_v31 = vld [vmem:[%s15276_s8 + $0xf8] sm:$0xff]  }
 0x70a   : > { %6304 = vmatpush1.bf16.msra.mxu1 %v10214_v44  ;;  %9754 = vmatprep.mubr.msk.bf16.mxu1 %vm1101_vm3, %v12371_v47  ;;  %v10218_v47 = vld [vmem:[%s15276_s8 + $0xf0] sm:$0xff]  }
 0x70b   : > { %6305 = vmatprep.subr.bf16.mxu1 %v15553_v9 }
 0x70e   : > { %6306 = vmatpush1.bf16.msra.mxu1 %v10215_v23 }
 0x70f   : > { %6307 = vmatprep.subr.bf16.mxu1 %v15553_v9 }
 0x711   : > { %9755 = vmatmul.mubr.msk.bf16.gmra.mxu1 %vm1101_vm3, %v12386_v17  ;;  %v10219_v17 = vld [vmem:[%s15276_s8 + $0xe8] sm:$0xff]  }
 0x712   : > { %6308 = vmatpush1.bf16.msra.mxu1 %v10216_v54  ;;  %9758 = vmatprep.mubr.msk.bf16.mxu1 %vm1101_vm3, %v12393_v8  ;;  %v10220_v8 = vld [vmem:[%s15276_s8 + $0xe0] sm:$0xff]  }
 0x713   : > { %6309 = vmatprep.subr.bf16.mxu1 %v15553_v9 }
 0x716   : > { %6310 = vmatpush1.bf16.msra.mxu1 %v10217_v31  ;;  %v15705_v31 = vld [vmem:[#allocation80_spill] sm:$0xff] }
 0x717   : > { %6311 = vmatprep.subr.bf16.mxu1 %v15553_v9 }
 0x719   : > { %9759 = vmatmul.mubr.msk.bf16.gmra.mxu1 %vm1101_vm3, %v12401_v34  ;;  %v10221_v34 = vld [vmem:[%s15276_s8 + $0xd8] sm:$0xff]  }
 0x71a   : > { %6312 = vmatpush1.bf16.msra.mxu1 %v10218_v47  ;;  %9762 = vmatprep.mubr.msk.bf16.mxu1 %vm1101_vm3, %v12408_v15  ;;  %v10222_v15 = vld [vmem:[%s15276_s8 + $0x118] sm:$0xff]   ;;  %v15706_v47 = vld [vmem:[#allocation79_spill] sm:$0xff] }
 0x71b   : > { %6313 = vmatprep.subr.bf16.mxu1 %v15553_v9 }
 0x71e   : > { %6314 = vmatpush1.bf16.msra.mxu1 %v10219_v17  ;;  %v15707_v17 = vpack.c.bf16 %v15705_v31, %v15706_v47 }
 0x71f   : > { %6315 = vmatprep.subr.bf16.mxu1 %v15553_v9 }
 0x721   : > { %9763 = vmatmul.mubr.msk.bf16.gmra.mxu1 %vm1101_vm3, %v12415_v39  ;;  %v4829_v39 = vpop.permute.xlu1 %4828 }
 0x722   : > { %6316 = vmatpush1.bf16.msra.mxu1 %v10220_v8  ;;  %9766 = vmatprep.mubr.msk.bf16.mxu1 %vm1101_vm3, %v12422_v37  ;;  %v4827_v37 = vpop.permute.xlu0 %4826  ;;  %v4911_v50 = vsel %vm775_vm2, %v15701_v33, %v4829_v39 }
 0x723   : > { %6317 = vmatprep.subr.bf16.mxu1 %v15553_v9 }
 0x725   : > { %v4839_v11 = vpop.permute.xlu1 %4838 }
 0x726   : > { %6318 = vmatpush1.bf16.msra.mxu1 %v10221_v34 }
 0x727   : > { %6333 = vmatprep.subr.bf16.mxu1 %v15553_v9  ;;  %v4831_v9 = vpop.permute.xlu0 %4830 }
 0x728   : > { %v4914_v62 = vsel %vm775_vm2, %v4788_v51, %v4831_v9 }
 0x729   : > { %9767 = vmatmul.mubr.msk.bf16.gmra.mxu1 %vm1101_vm3, %v12429_v26  ;;  %v4843_v26 = vpop.permute.xlu1 %4842 }
 0x72a   : > { %6334 = vmatpush2.bf16.msra.mxu1 %v10222_v15  ;;  %9770 = vmatprep.mubr.msk.bf16.mxu1 %vm1101_vm3, %v12436_v52  ;;  %v4923_v21 = vsel %vm1663_vm4, %v4914_v62, %v4843_v26  ;;  %v15708_v15 = vld [vmem:[#allocation34_spill] sm:$0xff] }
 0x72b   : > { %9982 = vmatprep.subr.bf16.mxu1 %v12790_v42  ;;  %v4841_v52 = vpop.permute.xlu0 %4840 }
 0x72c   : > { %v4921_v12 = vsel %vm1663_vm4, %v4911_v50, %v4841_v52 }
 0x72d   : > { %v4853_v41 = vpop.permute.xlu1 %4852 }
 0x72e   : > { %v4929_v43 = vsel %vm1672_vm5, %v4921_v12, %v4853_v41 }
 0x731   : > { %9771 = vmatmul.mubr.msk.bf16.gmra.mxu1 %vm1101_vm3, %v12443_v28  ;;  %v4851_v28 = vpop.permute.xlu0 %4850 }
 0x732   : > { %9774 = vmatprep.mubr.msk.bf16.mxu1 %vm1101_vm3, %v12450_v20  ;;  %v4863_v20 = vpop.permute.xlu1 %4862 }
 0x735   : > { %v4865_v55 = vpop.permute.xlu0 %4864 }
 0x736   : > { %v4877_v18 = vpop.permute.xlu1 %4876  ;;  %v4937_v48 = vsel %vm1101_vm3, %v4929_v43, %v4865_v55 }
 0x737   : > { %v4945_v2 = vsel %vm1689_vm6, %v4937_v48, %v4877_v18  ;;  %v15710_v18 = vld [vmem:[#allocation55_spill] sm:$0xff] }
 0x739   : > { %9775 = vmatmul.mubr.msk.bf16.gmra.mxu1 %vm1101_vm3, %v12461_v10  ;;  %v4875_v10 = vpop.permute.xlu0 %4874 }
 0x73a   : > { %9778 = vmatprep.mubr.msk.bf16.mxu1 %vm1101_vm3, %v12468_v53  ;;  %v9740_v53 = vpop.f32.mrf.mxu1 }
 0x73c   : > { %v4771_v29 = vpop.f32.mrf.mxu1 }
 0x73e   : > { %v9741_v14 = vpop.f32.mrf.mxu1 }
 0x73f   : > { %v4821_v9 = vpack.c.bf16 %v9741_v14, %v9740_v53  ;;  %v15711_v53 = vld [vmem:[#allocation60_spill] sm:$0xff] }
 0x740   : > { %v4774_v49 = vpop.f32.mrf.mxu1 }
 0x741   : > { %9779 = vmatmul.mubr.msk.bf16.gmra.mxu1 %vm1101_vm3, %v12477_v56  ;;  %v4908_v56 = vsel %vm775_vm2, %v4786_v58, %v4827_v37  ;;  %v4820_v59 = vpack.c.bf16 %v4774_v49, %v4771_v29  ;;  %v15713_v29 = vld [vmem:[#allocation52_spill] sm:$0xff] }
 0x742   : > { %9782 = vmatprep.mubr.msk.bf16.mxu1 %vm1101_vm3, %v12484_v5  ;;  %v4887_v1 = vpop.permute.xlu1 %4886  ;;  %v4919_v3 = vsel %vm1663_vm4, %v4908_v56, %v4839_v11  ;;  %v4889_v5 = vpop.permute.xlu0 %4888  ;;  %v15709_v11 = vld [vmem:[#allocation53_spill] sm:$0xff] }
 0x743   : > { %v4927_v35 = vsel %vm1672_vm5, %v4919_v3, %v4851_v28  ;;  %v13063_v3 = vld [vmem:[%s15270_s2] sm:$0xff]  }
 0x744   : > { %v4935_v0 = vsel %vm1101_vm3, %v4927_v35, %v4863_v20  ;;  %v15714_v35 = vld [vmem:[#allocation57_spill] sm:$0xff] }
 0x745   : > { %v4943_v16 = vsel %vm1689_vm6, %v4935_v0, %v4875_v10  ;;  %v15715_v0 = vld [vmem:[#allocation59_spill] sm:$0xff] }
 0x746   : > { %v4951_v63 = vsel %vm1698_vm7, %v4943_v16, %v4887_v1  ;;  %v15717_v16 = vld [vmem:[#allocation61_spill] sm:$0xff] }
 0x749   : > { %9783 = vmatmul.mubr.msk.bf16.gmra.mxu1 %vm1101_vm3, %v12491_v24 }
 0x74a   : > { %9786 = vmatprep.mubr.msk.bf16.mxu1 %vm1101_vm3, %v15698_v38 }
 0x750   : > { %v4901_v24 = vpop.permute.xlu1 %4900 }
 0x751   : > { %9787 = vmatmul.mubr.msk.bf16.gmra.mxu1 %vm1101_vm3, %v15699_v4  ;;  %v15718_v4 = vld [vmem:[#allocation63_spill] sm:$0xff] }
 0x752   : > { %v4899_v30 = vpop.permute.xlu0 %4898  ;;  %9790 = vmatprep.mubr.msk.bf16.mxu1 %vm1101_vm3, %v15700_v45 }
 0x753   : > { %v4959_v36 = vsel %vm1707_vm8, %v4951_v63, %v4899_v30  ;;  %v15719_v63 = vld [vmem:[#allocation64_spill] sm:$0xff]  ;;  %v15720_v30 = vld [vmem:[#allocation66_spill] sm:$0xff] }
 0x754   : > { %v4867_v61 = vpop.permute.xlu1 %4866  ;;  %5136 = vmatmul.mubr.bf16.gmra.mxu0 %v4959_v36 }
 0x755   : > { %8544 = vmatprep.mubr.msk.bf16.mxu0 %vm775_vm2, %v4819_v7  ;;  %v4953_v7 = vsel %vm1698_vm7, %v4945_v2, %v4889_v5  ;;  %v15712_v5 = vld [vmem:[#allocation54_spill] sm:$0xff] }
 0x756   : > { %v4855_v32 = vpop.permute.xlu0 %4854  ;;  %v4962_v13 = vsel %vm1707_vm8, %v4953_v7, %v4901_v24  ;;  %v15716_v24 = vld [vmem:[#allocation56_spill] sm:$0xff] }
 0x757   : > { %v4931_v6 = vsel %vm1672_vm5, %v4923_v21, %v4855_v32 }
 0x758   : > { %v4891_v46 = vpop.permute.xlu1 %4890  ;;  %v4939_v44 = vsel %vm1101_vm3, %v4931_v6, %v4867_v61 }
 0x759   : > { %9791 = vmatmul.mubr.msk.bf16.gmra.mxu1 %vm1101_vm3, %v15703_v57 }
 0x75a   : > { %v4879_v40 = vpop.permute.xlu0 %4878  ;;  %9794 = vmatprep.mubr.msk.bf16.mxu1 %vm1101_vm3, %v15704_v60 }
 0x75b   : > { %v4947_v54 = vsel %vm1689_vm6, %v4939_v44, %v4879_v40 }
 0x75c   : > { %v4833_v19 = vpop.permute.xlu1 %4832  ;;  %5144 = vmatmul.mubr.bf16.gmra.mxu0 %v4962_v13  ;;  %v4955_v39 = vsel %vm1698_vm7, %v4947_v54, %v4891_v46 }
 0x75d   : > { %8545 = vmatprep.mubr.msk.bf16.mxu0 %vm775_vm2, %v4820_v59  ;;  %v4917_v8 = vsel %vm775_vm2, %v15707_v17, %v4833_v19 }
 0x75e   : > { %v4845_v23 = vpop.permute.xlu0 %4844 }
 0x75f   : > { %v4925_v26 = vsel %vm1663_vm4, %v4917_v8, %v4845_v23 }
 0x760   : > { %v4857_v34 = vpop.permute.xlu1 %4856 }
 0x761   : > { %9795 = vmatmul.mubr.msk.bf16.gmra.mxu1 %vm1101_vm3, %v15708_v15  ;;  %v4933_v28 = vsel %vm1672_vm5, %v4925_v26, %v4857_v34 }
 0x762   : > { %v4903_v37 = vpop.permute.xlu0 %4902  ;;  %9798 = vmatprep.mubr.msk.bf16.mxu1 %vm1101_vm3, %v15709_v11 }
 0x763   : > { %v4965_v52 = vsel %vm1707_vm8, %v4955_v39, %v4903_v37 }
 0x764   : > { %5152 = vmatmul.mubr.bf16.gmra.mxu0 %v4965_v52  ;;  %v4881_v41 = vpop.permute.xlu1 %4880 }
 0x765   : > { %8546 = vmatprep.mubr.msk.bf16.mxu0 %vm775_vm2, %v4821_v9 }
 0x766   : > { %v4869_v20 = vpop.permute.xlu0 %4868 }
 0x767   : > { %v4941_v55 = vsel %vm1101_vm3, %v4933_v28, %v4869_v20 }
 0x768   : > { %v4949_v10 = vsel %vm1689_vm6, %v4941_v55, %v4881_v41  ;;  %v4905_v58 = vpop.permute.xlu1 %4904 }
 0x769   : > { %9799 = vmatmul.mubr.msk.bf16.gmra.mxu1 %vm1101_vm3, %v15710_v18 }
 0x76a   : > { %v4893_v38 = vpop.permute.xlu0 %4892  ;;  %9802 = vmatprep.mubr.msk.bf16.mxu1 %vm1101_vm3, %v15711_v53 }
 0x76b   : > { %v4957_v1 = vsel %vm1698_vm7, %v4949_v10, %v4893_v38 }
 0x76c   : > { %v4968_v56 = vsel %vm1707_vm8, %v4957_v1, %v4905_v58 }
 0x76d   : > { %5160 = vmatmul.mubr.bf16.gmra.mxu0 %v4968_v56 }
 0x76e   : > { %9830 = vmatprep.mubr.msk.bf16.mxu0 %vm1101_vm3, %v13063_v3 }
 0x771   : > { %9803 = vmatmul.mubr.msk.bf16.gmra.mxu1 %vm1101_vm3, %v15712_v5 }
 0x772   : > { %9806 = vmatprep.mubr.msk.bf16.mxu1 %vm1101_vm3, %v15713_v29 }
 0x779   : > { %9807 = vmatmul.mubr.msk.bf16.gmra.mxu1 %vm1101_vm3, %v15714_v35 }
 0x77a   : > { %9810 = vmatprep.mubr.msk.bf16.mxu1 %vm1101_vm3, %v15715_v0 }
 0x781   : > { %9811 = vmatmul.mubr.msk.bf16.gmra.mxu1 %vm1101_vm3, %v15716_v24 }
 0x782   : > { %9814 = vmatprep.mubr.msk.bf16.mxu1 %vm1101_vm3, %v15717_v16 }
 0x789   : > { %9815 = vmatmul.mubr.msk.bf16.gmra.mxu1 %vm1101_vm3, %v15718_v4 }
 0x78a   : > { %9818 = vmatprep.mubr.msk.bf16.mxu1 %vm1101_vm3, %v15719_v63 }
 0x791   : > { %9819 = vmatmul.mubr.msk.bf16.gmra.mxu1 %vm1101_vm3, %v15720_v30 }
 0x7c9   : > { %v13085_v45 = vpop.f32.mrf.mxu1 }
 0x7cb   : > { %v13087_v14 = vpop.f32.mrf.mxu1 }
 0x7cd   : > { %v13089_v36 = vpop.f32.mrf.mxu1 }
 0x7ce   : > { %v5514_v61 = vpack.c.bf16 %v13089_v36, %v13085_v45 }
 0x7cf   : > { %v13093_v33 = vpop.f32.mrf.mxu1 }
 0x7d1   : > { %v13095_v50 = vpop.f32.mrf.mxu1 }
 0x7d3   : > { %v13097_v12 = vpop.f32.mrf.mxu1 }
 0x7d5   : > { %v13099_v32 = vpop.f32.mrf.mxu1 }
 0x7d7   : > { %v13103_v25 = vpop.f32.mrf.mxu1 }
 0x7d8   : > { %v5515_v45 = vpack.c.bf16 %v13103_v25, %v13097_v12  ;;  %v13380_v12 = vld [vmem:[%s15270_s2 + $0xe0] sm:$0xff]  }
 0x7d9   : > { %v9760_v51 = vpop.f32.mrf.mxu1 }
 0x7db   : > { %v5258_v43 = vpop.f32.mrf.mxu1 }
 0x7dd   : > { %v9761_v48 = vpop.f32.mrf.mxu1 }
 0x7de   : > { %v5518_v46 = vpack.c.bf16 %v9761_v48, %v9760_v51 }
 0x7df   : > { %v5261_v62 = vpop.f32.mrf.mxu1 }
 0x7e0   : > { %v5517_v2 = vpack.c.bf16 %v5261_v62, %v5258_v43  ;;  %5555 = vrot.lane.b32.xlu1 %v5518_v46, %s15721_s21 }
 0x7e1   : > { %v9764_v57 = vpop.f32.mrf.mxu1 }
 0x7e2   : > { %5553 = vrot.lane.b32.xlu0 %v5517_v2, %s15721_s21 }
 0x7e3   : > { %v5274_v59 = vpop.f32.mrf.mxu1 }
 0x7e5   : > { %v9765_v21 = vpop.f32.mrf.mxu1 }
 0x7e6   : > { %v5520_v7 = vpack.c.bf16 %v9765_v21, %v9764_v57 }
 0x7e7   : > { %v5277_v40 = vpop.f32.mrf.mxu1 }
 0x7e8   : > { %v5519_v60 = vpack.c.bf16 %v5277_v40, %v5274_v59  ;;  %5559 = vrot.lane.b32.xlu1 %v5520_v7, %s15721_s21 }
 0x7e9   : > { %v9768_v13 = vpop.f32.mrf.mxu1 }
 0x7ea   : > { %5557 = vrot.lane.b32.xlu0 %v5519_v60, %s15721_s21 }
 0x7eb   : > { %v5290_v6 = vpop.f32.mrf.mxu1 }
 0x7ed   : > { %v9769_v19 = vpop.f32.mrf.mxu1 }
 0x7ee   : > { %v5522_v44 = vpack.c.bf16 %v9769_v19, %v9768_v13 }
 0x7ef   : > { %v5293_v23 = vpop.f32.mrf.mxu1 }
 0x7f0   : > { %v5521_v54 = vpack.c.bf16 %v5293_v23, %v5290_v6  ;;  %5567 = vrot.lane.b32.xlu0 %v5522_v44, %s15722_s25 }
 0x7f1   : > { %v9772_v31 = vpop.f32.mrf.mxu1 }
 0x7f2   : > { %5565 = vrot.lane.b32.xlu1 %v5521_v54, %s15722_s25 }
 0x7f3   : > { %v5306_v47 = vpop.f32.mrf.mxu1 }
 0x7f5   : > { %v9773_v17 = vpop.f32.mrf.mxu1 }
 0x7f6   : > { %v5524_v8 = vpack.c.bf16 %v9773_v17, %v9772_v31 }
 0x7f7   : > { %v5309_v34 = vpop.f32.mrf.mxu1 }
 0x7f8   : > { %v5523_v15 = vpack.c.bf16 %v5309_v34, %v5306_v47  ;;  %5571 = vrot.lane.b32.xlu0 %v5524_v8, %s15722_s25 }
 0x7f9   : > { %v9776_v39 = vpop.f32.mrf.mxu1 }
 0x7fa   : > { %5569 = vrot.lane.b32.xlu1 %v5523_v15, %s15722_s25 }
 0x7fb   : > { %v5322_v37 = vpop.f32.mrf.mxu1 }
 0x7fd   : > { %v9777_v11 = vpop.f32.mrf.mxu1 }
 0x7fe   : > { %v5526_v9 = vpack.c.bf16 %v9777_v11, %v9776_v39 }
 0x7ff   : > { %v5325_v26 = vpop.f32.mrf.mxu1 }
 0x800   : > { %v5525_v52 = vpack.c.bf16 %v5325_v26, %v5322_v37  ;;  %5579 = vrot.lane.b32.xlu1 %v5526_v9, %s15693_s26 }
 0x801   : > { %v9780_v41 = vpop.f32.mrf.mxu1 }
 0x802   : > { %5577 = vrot.lane.b32.xlu0 %v5525_v52, %s15693_s26 }
 0x803   : > { %v5338_v28 = vpop.f32.mrf.mxu1 }
 0x805   : > { %v9781_v20 = vpop.f32.mrf.mxu1 }
 0x806   : > { %v5528_v55 = vpack.c.bf16 %v9781_v20, %v9780_v41 }
 0x807   : > { %v5341_v18 = vpop.f32.mrf.mxu1 }
 0x808   : > { %v5527_v10 = vpack.c.bf16 %v5341_v18, %v5338_v28  ;;  %5583 = vrot.lane.b32.xlu1 %v5528_v55, %s15693_s26 }
 0x809   : > { %v9784_v38 = vpop.f32.mrf.mxu1 }
 0x80a   : > { %5581 = vrot.lane.b32.xlu0 %v5527_v10, %s15693_s26 }
 0x80b   : > { %v5354_v53 = vpop.f32.mrf.mxu1 }
 0x80d   : > { %v9785_v58 = vpop.f32.mrf.mxu1 }
 0x80e   : > { %v5530_v1 = vpack.c.bf16 %v9785_v58, %v9784_v38 }
 0x80f   : > { %v5357_v56 = vpop.f32.mrf.mxu1 }
 0x810   : > { %v5529_v5 = vpack.c.bf16 %v5357_v56, %v5354_v53  ;;  %5591 = vrot.lane.b32.xlu0 %v5530_v1, %s15694_s30 }
 0x811   : > { %v9788_v29 = vpop.f32.mrf.mxu1 }
 0x812   : > { %5589 = vrot.lane.b32.xlu1 %v5529_v5, %s15694_s30 }
 0x813   : > { %v5370_v35 = vpop.f32.mrf.mxu1 }
 0x814   : > { %v13119_v0 = vpop.f32.mrf.mxu0 }
 0x815   : > { %v9789_v24 = vpop.f32.mrf.mxu1 }
 0x816   : > { %v5532_v16 = vpack.c.bf16 %v9789_v24, %v9788_v29  ;;  %v5139_v4 = vpop.f32.mrf.mxu0 }
 0x817   : > { %v5373_v63 = vpop.f32.mrf.mxu1 }
 0x818   : > { %v5531_v30 = vpack.c.bf16 %v5373_v63, %v5370_v35  ;;  %v5140_v51 = vpop.f32.mrf.mxu0  ;;  %5595 = vrot.lane.b32.xlu0 %v5532_v16, %s15694_s30 }
 0x819   : > { %v9792_v43 = vpop.f32.mrf.mxu1 }
 0x81a   : > { %v5142_v48 = vpop.f32.mrf.mxu0  ;;  %5593 = vrot.lane.b32.xlu1 %v5531_v30, %s15694_s30  ;;  %v5141_v30 = vadd.f32 %v5140_v51, %v12891_v22 }
 0x81b   : > { %v5386_v46 = vpop.f32.mrf.mxu1 }
 0x81c   : > { %v5145_v62 = vpop.f32.mrf.mxu0 }
 0x81d   : > { %v9793_v2 = vpop.f32.mrf.mxu1  ;;  %v5146_v35 = vadd.f32 %v5145_v62, %v12891_v22 }
 0x81e   : > { %v5534_v57 = vpack.c.bf16 %v9793_v2, %v9792_v43  ;;  %v5147_v59 = vpop.f32.mrf.mxu0 }
 0x81f   : > { %v5389_v21 = vpop.f32.mrf.mxu1  ;;  %v5178_v59 = vmax.f32 %v5146_v35, 0.0 }
 0x820   : > { %v5533_v7 = vpack.c.bf16 %v5389_v21, %v5386_v46  ;;  %v5148_v40 = vpop.f32.mrf.mxu0  ;;  %5603 = vrot.lane.b32.xlu1 %v5534_v57, %s15580_s28  ;;  %v5138_v57 = vadd.f32 %v13119_v0, %v12891_v22  ;;  %v5177_v21 = vmax.f32 %v5141_v30, 0.0 }
 0x821   : > { %v9796_v60 = vpop.f32.mrf.mxu1  ;;  %v5149_v58 = vadd.f32 %v5148_v40, %v12891_v22 }
 0x822   : > { %v5150_v13 = vpop.f32.mrf.mxu0  ;;  %5601 = vrot.lane.b32.xlu0 %v5533_v7, %s15580_s28  ;;  %v5176_v51 = vmax.f32 %v5138_v57, 0.0 }
 0x823   : > { %v5402_v6 = vpop.f32.mrf.mxu1  ;;  %v5179_v43 = vmax.f32 %v5149_v58, 0.0  ;;  %v13225_v58 = vld [vmem:[%s15270_s2 + $0x50] sm:$0xff]  }
 0x824   : > { %v5153_v19 = vpop.f32.mrf.mxu0 }
 0x825   : > { %v9797_v44 = vpop.f32.mrf.mxu1  ;;  %v5154_v18 = vadd.f32 %v5153_v19, %v12891_v22  ;;  %v5189_v7 = vpack.c.bf16 %v5179_v43, %v5178_v59  ;;  %v13280_v59 = vld [vmem:[%s15270_s2 + $0x88] sm:$0xff]  }
 0x826   : > { %v5536_v23 = vpack.c.bf16 %v9797_v44, %v9796_v60  ;;  %v5155_v54 = vpop.f32.mrf.mxu0 }
 0x827   : > { %v5405_v31 = vpop.f32.mrf.mxu1  ;;  %v5180_v24 = vmax.f32 %v5154_v18, 0.0  ;;  %v13197_v18 = vld [vmem:[%s15270_s2 + $0x30] sm:$0xff]  }
 0x828   : > { %v5535_v47 = vpack.c.bf16 %v5405_v31, %v5402_v6  ;;  %v5156_v17 = vpop.f32.mrf.mxu0  ;;  %5607 = vrot.lane.b32.xlu1 %v5536_v23, %s15580_s28  ;;  %v5188_v6 = vpack.c.bf16 %v5177_v21, %v5176_v51  ;;  %v15723_v23 = vld [vmem:[#allocation67_spill] sm:$0xff] }
 0x829   : > { %v9800_v8 = vpop.f32.mrf.mxu1  ;;  %v5157_v52 = vadd.f32 %v5156_v17, %v12891_v22 }
 0x82a   : > { %v5158_v34 = vpop.f32.mrf.mxu0  ;;  %5605 = vrot.lane.b32.xlu0 %v5535_v47, %s15580_s28  ;;  %v13146_v47 = vld [vmem:[%s15270_s2 + $0x8] sm:$0xff]  }
 0x82b   : > { %v5418_v15 = vpop.f32.mrf.mxu1  ;;  %v5181_v1 = vmax.f32 %v5157_v52, 0.0  ;;  %v13172_v52 = vld [vmem:[%s15270_s2 + $0x18] sm:$0xff]  }
 0x82d   : > { %v5161_v39 = vpop.f32.mrf.mxu0  ;;  %v9801_v37 = vpop.f32.mrf.mxu1  ;;  %v5190_v48 = vpack.c.bf16 %v5181_v1, %v5180_v24  ;;  %v13248_v24 = vld [vmem:[%s15270_s2 + $0x68] sm:$0xff]  }
 0x82e   : > { %v5538_v11 = vpack.c.bf16 %v9801_v37, %v9800_v8  ;;  %v5162_v41 = vadd.f32 %v5161_v39, %v12891_v22  ;;  %v13155_v8 = vld [vmem:[%s15270_s2 + $0x10] sm:$0xff]  }
 0x82f   : > { %v5163_v9 = vpop.f32.mrf.mxu0  ;;  %v5421_v26 = vpop.f32.mrf.mxu1 }
 0x830   : > { %v5537_v28 = vpack.c.bf16 %v5421_v26, %v5418_v15  ;;  %5615 = vrot.lane.b32.xlu0 %v5538_v11, %s15581_s18  ;;  %v5182_v56 = vmax.f32 %v5162_v41, 0.0  ;;  %v15724_v15 = vld [vmem:[#allocation65_spill] sm:$0xff]  ;;  %v15725_v11 = vld [vmem:[#allocation62_spill] sm:$0xff] }
 0x831   : > { %v5164_v20 = vpop.f32.mrf.mxu0  ;;  %v9804_v55 = vpop.f32.mrf.mxu1 }
 0x832   : > { %v5165_v10 = vadd.f32 %v5164_v20, %v12891_v22  ;;  %5613 = vrot.lane.b32.xlu1 %v5537_v28, %s15581_s18  ;;  %v13180_v28 = vld [vmem:[%s15270_s2 + $0x20] sm:$0xff]   ;;  %v15726_v20 = vld [vmem:[#allocation58_spill] sm:$0xff] }
 0x833   : > { %v5166_v38 = vpop.f32.mrf.mxu0  ;;  %v5434_v53 = vpop.f32.mrf.mxu1 }
 0x834   : > { %v5183_v5 = vmax.f32 %v5165_v10, 0.0  ;;  %v13204_v10 = vld [vmem:[%s15270_s2 + $0x38] sm:$0xff]   ;;  %v13211_v38 = vld [vmem:[%s15270_s2 + $0x40] sm:$0xff]  }
 0x835   : > { %v9805_v29 = vpop.f32.mrf.mxu1 }
 0x836   : > { %v5191_v16 = vpack.c.bf16 %v5183_v5, %v5182_v56  ;;  %v5540_v4 = vpack.c.bf16 %v9805_v29, %v9804_v55  ;;  %v13190_v55 = vld [vmem:[%s15270_s2 + $0x28] sm:$0xff]   ;;  %v13232_v56 = vld [vmem:[%s15270_s2 + $0x58] sm:$0xff]   ;;  %v13239_v5 = vld [vmem:[%s15270_s2 + $0x60] sm:$0xff]  }
 0x837   : > { %v5437_v63 = vpop.f32.mrf.mxu1 }
 0x838   : > { %v5539_v46 = vpack.c.bf16 %v5437_v63, %v5434_v53  ;;  %9822 = vmatprep.subr.bf16.mxu0 %v5191_v16  ;;  %5619 = vrot.lane.b32.xlu0 %v5540_v4, %s15581_s18  ;;  %v13218_v53 = vld [vmem:[%s15270_s2 + $0x48] sm:$0xff]   ;;  %v13257_v63 = vld [vmem:[%s15270_s2 + $0x70] sm:$0xff]  }
 0x839   : > { %v9808_v2 = vpop.f32.mrf.mxu1  ;;  %9823 = vmatpush3.bf16.msra.mxu0 %v5191_v16 }
 0x83a   : > { %9824 = vmatprep.subr.bf16.mxu0 %v5190_v48  ;;  %5617 = vrot.lane.b32.xlu1 %v5539_v46, %s15581_s18  ;;  %v13273_v46 = vld [vmem:[%s15270_s2 + $0x80] sm:$0xff]  }
 0x83b   : > { %v5450_v62 = vpop.f32.mrf.mxu1 }
 0x83d   : > { %v9809_v40 = vpop.f32.mrf.mxu1  ;;  %9825 = vmatpush3.bf16.msra.mxu0 %v5190_v48  ;;  %v13266_v48 = vld [vmem:[%s15270_s2 + $0x78] sm:$0xff]  }
 0x83e   : > { %v5542_v60 = vpack.c.bf16 %v9809_v40, %v9808_v2  ;;  %9826 = vmatprep.subr.bf16.mxu0 %v5189_v7  ;;  %v13294_v40 = vld [vmem:[%s15270_s2 + $0x98] sm:$0xff]  }
 0x83f   : > { %v5453_v13 = vpop.f32.mrf.mxu1 }
 0x840   : > { %v5541_v19 = vpack.c.bf16 %v5453_v13, %v5450_v62  ;;  %5627 = vrot.lane.b32.xlu1 %v5542_v60, %s15582_s29  ;;  %v13287_v62 = vld [vmem:[%s15270_s2 + $0x90] sm:$0xff]   ;;  %v13303_v13 = vld [vmem:[%s15270_s2 + $0xa0] sm:$0xff]  }
 0x841   : > { %9827 = vmatpush3.bf16.msra.mxu0 %v5189_v7  ;;  %v9812_v44 = vpop.f32.mrf.mxu1 }
 0x842   : > { %5625 = vrot.lane.b32.xlu0 %v5541_v19, %s15582_s29  ;;  %9828 = vmatprep.subr.bf16.mxu0 %v5188_v6 }
 0x843   : > { %v5466_v22 = vpop.f32.mrf.mxu1 }
 0x845   : > { %9829 = vmatpush3.bf16.msra.mxu0 %v5188_v6  ;;  %v9813_v0 = vpop.f32.mrf.mxu1 }
 0x846   : > { %9902 = vmatprep.subr.bf16.mxu0 %v15723_v23  ;;  %v5544_v54 = vpack.c.bf16 %v9813_v0, %v9812_v44  ;;  %v13312_v44 = vld [vmem:[%s15270_s2 + $0xa8] sm:$0xff]  }
 0x847   : > { %v5469_v31 = vpop.f32.mrf.mxu1 }
 0x848   : > { %9831 = vmatmul.mubr.msk.bf16.vlgmr.msra.gmra.mxu0 %vm1101_vm3, %v13146_v47  ;;  %v5543_v17 = vpack.c.bf16 %v5469_v31, %v5466_v22  ;;  %5631 = vrot.lane.b32.xlu1 %v5544_v54, %s15582_s29  ;;  %v13319_v22 = vld [vmem:[%s15270_s2 + $0xb0] sm:$0xff]   ;;  %v5513_v54 = vpack.c.bf16 %v13093_v33, %v13087_v14  ;;  %v13328_v31 = vld [vmem:[%s15270_s2 + $0xb8] sm:$0xff]  }
 0x849   : > { %9903 = vmatpush3.bf16.msra.mxu0 %v15723_v23  ;;  %9834 = vmatprep.mubr.msk.bf16.mxu0 %vm1101_vm3, %v13155_v8  ;;  %v13159_v34 = vpop.f32.mrf.mxu1 }
 0x84a   : > { %9904 = vmatprep.subr.bf16.mxu0 %v15724_v15  ;;  %5629 = vrot.lane.b32.xlu0 %v5543_v17, %s15582_s29  ;;  %v13335_v17 = vld [vmem:[%s15270_s2 + $0xc0] sm:$0xff]  }
 0x84b   : > { %v5482_v39 = vpop.f32.mrf.mxu1 }
 0x84d   : > { %9905 = vmatpush3.bf16.msra.mxu0 %v15724_v15  ;;  %v13164_v37 = vpop.f32.mrf.mxu1 }
 0x84e   : > { %9906 = vmatprep.subr.bf16.mxu0 %v15725_v11  ;;  %v5546_v9 = vpack.c.bf16 %v13164_v37, %v13159_v34  ;;  %v13412_v37 = vld [vmem:[%s15270_s2 + $0xf0] sm:$0xff]  }
 0x84f   : > { %v5485_v26 = vpop.f32.mrf.mxu1 }
 0x850   : > { %9835 = vmatmul.mubr.msk.bf16.gmra.mxu0 %vm1101_vm3, %v13172_v52  ;;  %v5545_v41 = vpack.c.bf16 %v5485_v26, %v5482_v39 }
 0x851   : > { %9907 = vmatpush3.bf16.msra.mxu0 %v15725_v11  ;;  %9838 = vmatprep.mubr.msk.bf16.mxu0 %vm1101_vm3, %v13180_v28  ;;  %v13344_v11 = vld [vmem:[%s15270_s2 + $0xc8] sm:$0xff]   ;;  %v9820_v49 = vpop.f32.mrf.mxu1 }
 0x852   : > { %9908 = vmatprep.subr.bf16.mxu0 %v15726_v20  ;;  %8646 = vmatprep.mubr.msk.bf16.mxu1 %vm775_vm2, %v5545_v41  ;;  %v5556_v35 = vpop.permute.xlu1 %5555 }
 0x854   : > { %v5554_v1 = vpop.permute.xlu0 %5553 }
 0x855   : > { %9909 = vmatpush3.bf16.msra.mxu0 %v15726_v20  ;;  %v5635_v14 = vsel %vm775_vm2, %v5513_v54, %v5554_v1  ;;  %v5638_v20 = vsel %vm775_vm2, %v5514_v61, %v5556_v35 }
 0x858   : > { %9839 = vmatmul.mubr.msk.bf16.gmra.mxu0 %vm1101_vm3, %v13190_v55 }
 0x859   : > { %9842 = vmatprep.mubr.msk.bf16.mxu0 %vm1101_vm3, %v13197_v18 }
 0x85a   : > { %v13252_v4 = vpop.permute.xlu1 %5559 }
 0x85c   : > { %v13243_v29 = vpop.permute.xlu0 %5557 }
 0x860   : > { %9843 = vmatmul.mubr.msk.bf16.gmra.mxu0 %vm1101_vm3, %v13204_v10 }
 0x861   : > { %9846 = vmatprep.mubr.msk.bf16.mxu0 %vm1101_vm3, %v13211_v38 }
 0x862   : > { %v5568_v16 = vpop.permute.xlu0 %5567 }
 0x863   : > { %v5648_v54 = vsel %vm1663_vm4, %v5638_v20, %v5568_v16  ;;  %v5498_v16 = vpop.f32.mrf.mxu1 }
 0x864   : > { %v5566_v43 = vpop.permute.xlu1 %5565 }
 0x865   : > { %v5646_v33 = vsel %vm1663_vm4, %v5635_v14, %v5566_v43  ;;  %v13358_v43 = vld [vmem:[%s15270_s2 + $0xd0] sm:$0xff]  }
 0x868   : > { %9847 = vmatmul.mubr.msk.bf16.gmra.mxu0 %vm1101_vm3, %v13218_v53 }
 0x869   : > { %9850 = vmatprep.mubr.msk.bf16.mxu0 %vm1101_vm3, %v13225_v58 }
 0x86a   : > { %v13261_v30 = vpop.permute.xlu0 %5571 }
 0x86c   : > { %v5570_v57 = vpop.permute.xlu1 %5569 }
 0x870   : > { %9851 = vmatmul.mubr.msk.bf16.gmra.mxu0 %vm1101_vm3, %v13232_v56 }
 0x871   : > { %9854 = vmatprep.mubr.msk.bf16.mxu0 %vm1101_vm3, %v13239_v5 }
 0x872   : > { %v5580_v7 = vpop.permute.xlu1 %5579 }
 0x873   : > { %v5656_v35 = vsel %vm1672_vm5, %v5648_v54, %v5580_v7  ;;  %v9821_v54 = vpop.f32.mrf.mxu1 }
 0x874   : > { %v5578_v2 = vpop.permute.xlu0 %5577 }
 0x875   : > { %v5654_v1 = vsel %vm1672_vm5, %v5646_v33, %v5578_v2  ;;  %v13371_v33 = vld [vmem:[%s15270_s2 + $0xd8] sm:$0xff]  }
 0x878   : > { %9855 = vmatmul.mubr.msk.bf16.gmra.mxu0 %vm1101_vm3, %v13248_v24 }
 0x879   : > { %9858 = vmatprep.mubr.msk.bf16.mxu0 %vm1101_vm3, %v13257_v63 }
 0x87a   : > { %v13298_v60 = vpop.permute.xlu1 %5583 }
 0x87c   : > { %v5582_v21 = vpop.permute.xlu0 %5581 }
 0x880   : > { %9859 = vmatmul.mubr.msk.bf16.gmra.mxu0 %vm1101_vm3, %v13266_v48 }
 0x881   : > { %9862 = vmatprep.mubr.msk.bf16.mxu0 %vm1101_vm3, %v13273_v46 }
 0x882   : > { %v5592_v51 = vpop.permute.xlu0 %5591 }
 0x883   : > { %v5664_v25 = vsel %vm1101_vm3, %v5656_v35, %v5592_v51 }
 0x884   : > { %v5590_v19 = vpop.permute.xlu1 %5589 }
 0x885   : > { %v5662_v14 = vsel %vm1101_vm3, %v5654_v1, %v5590_v19  ;;  %v5641_v19 = vsel %vm775_vm2, %v5515_v45, %v13243_v29 }
 0x886   : > { %v5650_v20 = vsel %vm1663_vm4, %v5641_v19, %v5570_v57  ;;  %v13400_v57 = vld [vmem:[%s15270_s2 + $0xe8] sm:$0xff]  }
 0x887   : > { %v5658_v45 = vsel %vm1672_vm5, %v5650_v20, %v5582_v21 }
 0x888   : > { %9863 = vmatmul.mubr.msk.bf16.gmra.mxu0 %vm1101_vm3, %v13280_v59 }
 0x889   : > { %9866 = vmatprep.mubr.msk.bf16.mxu0 %vm1101_vm3, %v13287_v62 }
 0x88a   : > { %v13307_v6 = vpop.permute.xlu0 %5595 }
 0x88c   : > { %v5594_v23 = vpop.permute.xlu1 %5593 }
 0x890   : > { %9867 = vmatmul.mubr.msk.bf16.gmra.mxu0 %vm1101_vm3, %v13294_v40 }
 0x891   : > { %9870 = vmatprep.mubr.msk.bf16.mxu0 %vm1101_vm3, %v13303_v13 }
 0x892   : > { %v5604_v39 = vpop.permute.xlu1 %5603 }
 0x894   : > { %v5602_v0 = vpop.permute.xlu0 %5601 }
 0x895   : > { %v5670_v2 = vsel %vm1689_vm6, %v5662_v14, %v5602_v0  ;;  %v5672_v14 = vsel %vm1689_vm6, %v5664_v25, %v5604_v39  ;;  %v5501_v39 = vpop.f32.mrf.mxu1  ;;  %v5548_v25 = vpack.c.bf16 %v9821_v54, %v9820_v49  ;;  %v13461_v49 = vld [vmem:[%s15270_s2 + $0x110] sm:$0xff]  }
 0x896   : > { %v5547_v35 = vpack.c.bf16 %v5501_v39, %v5498_v16  ;;  %v13431_v16 = vld [vmem:[%s15270_s2 + $0xf8] sm:$0xff]  }
 0x898   : > { %9871 = vmatmul.mubr.msk.bf16.gmra.mxu0 %vm1101_vm3, %v13312_v44 }
 0x899   : > { %9874 = vmatprep.mubr.msk.bf16.mxu0 %vm1101_vm3, %v13319_v22 }
 0x89a   : > { %v13348_v41 = vpop.permute.xlu1 %5607 }
 0x89c   : > { %v5606_v15 = vpop.permute.xlu0 %5605 }
 0x8a0   : > { %9875 = vmatmul.mubr.msk.bf16.gmra.mxu0 %vm1101_vm3, %v13328_v31 }
 0x8a1   : > { %9878 = vmatprep.mubr.msk.bf16.mxu0 %vm1101_vm3, %v13335_v17 }
 0x8a2   : > { %v5616_v26 = vpop.permute.xlu0 %5615 }
 0x8a3   : > { %v5680_v51 = vsel %vm1698_vm7, %v5672_v14, %v5616_v26  ;;  %v13454_v14 = vld [vmem:[%s15270_s2 + $0x108] sm:$0xff]  }
 0x8a4   : > { %v5614_v61 = vpop.permute.xlu1 %5613 }
 0x8a5   : > { %v5678_v7 = vsel %vm1698_vm7, %v5670_v2, %v5614_v61  ;;  %v15727_v61 = vld [vmem:[#allocation70_spill] sm:$0xff] }
 0x8a8   : > { %9879 = vmatmul.mubr.msk.bf16.gmra.mxu0 %vm1101_vm3, %v13344_v11 }
 0x8a9   : > { %9882 = vmatprep.mubr.msk.bf16.mxu0 %vm1101_vm3, %v13358_v43 }
 0x8aa   : > { %v5620_v36 = vpop.permute.xlu0 %5619 }
 0x8ac   : > { %v5618_v0 = vpop.permute.xlu1 %5617 }
 0x8b0   : > { %9883 = vmatmul.mubr.msk.bf16.gmra.mxu0 %vm1101_vm3, %v13371_v33 }
 0x8b1   : > { %9886 = vmatprep.mubr.msk.bf16.mxu0 %vm1101_vm3, %v13380_v12 }
 0x8b2   : > { %v5628_v21 = vpop.permute.xlu1 %5627 }
 0x8b3   : > { %v5689_v26 = vsel %vm1707_vm8, %v5680_v51, %v5628_v21 }
 0x8b4   : > { %v5626_v1 = vpop.permute.xlu0 %5625 }
 0x8b5   : > { %v5686_v29 = vsel %vm1707_vm8, %v5678_v7, %v5626_v1 }
 0x8b6   : > { %6336 = vmatmul.mubr.bf16.vlgmr.msra.gmra.mxu1 %v5686_v29 }
 0x8b7   : > { %9983 = vmatpush3.bf16.msra.mxu1 %v12790_v42  ;;  %8647 = vmatprep.mubr.msk.bf16.mxu1 %vm775_vm2, %v5546_v9  ;;  %v15728_v42 = vpack.c.bf16 %v13099_v32, %v13095_v50  ;;  %v5666_v9 = vsel %vm1101_vm3, %v5658_v45, %v5594_v23  ;;  %v15729_v32 = vld [vmem:[#allocation69_spill] sm:$0xff]  ;;  %v15730_v23 = vld [vmem:[#allocation68_spill] sm:$0xff] }
 0x8b8   : > { %9984 = vmatprep.subr.bf16.mxu1 %v15727_v61  ;;  %9887 = vmatmul.mubr.msk.bf16.gmra.mxu0 %vm1101_vm3, %v13400_v57 }
 0x8b9   : > { %v5644_v34 = vsel %vm775_vm2, %v15728_v42, %v13252_v4  ;;  %9890 = vmatprep.mubr.msk.bf16.mxu0 %vm1101_vm3, %v13412_v37  ;;  %v5674_v4 = vsel %vm1689_vm6, %v5666_v9, %v5606_v15 }
 0x8ba   : > { %v5652_v50 = vsel %vm1663_vm4, %v5644_v34, %v13261_v30  ;;  %v5682_v30 = vsel %vm1698_vm7, %v5674_v4, %v5618_v0  ;;  %v5632_v1 = vpop.permute.xlu1 %5631 }
 0x8bb   : > { %9985 = vmatpush3.bf16.msra.mxu1 %v15727_v61  ;;  %v5660_v2 = vsel %vm1672_vm5, %v5652_v50, %v13298_v60  ;;  %v13439_v60 = vld [vmem:[%s15270_s2 + $0x100] sm:$0xff]  }
 0x8bc   : > { %9986 = vmatprep.subr.bf16.mxu1 %v15729_v32  ;;  %v5630_v15 = vpop.permute.xlu0 %5629  ;;  %v5668_v19 = vsel %vm1101_vm3, %v5660_v2, %v13307_v6 }
 0x8bd   : > { %v5692_v7 = vsel %vm1707_vm8, %v5682_v30, %v5630_v15  ;;  %v5676_v0 = vsel %vm1689_vm6, %v5668_v19, %v13348_v41  ;;  %v13469_v41 = vld [vmem:[%s15270_s2 + $0x118] sm:$0xff]  }
 0x8be   : > { %6344 = vmatmul.mubr.bf16.gmra.mxu1 %v5689_v26  ;;  %v5684_v20 = vsel %vm1698_vm7, %v5676_v0, %v5620_v36 }
 0x8bf   : > { %9987 = vmatpush3.bf16.msra.mxu1 %v15729_v32  ;;  %8648 = vmatprep.mubr.msk.bf16.mxu1 %vm775_vm2, %v5547_v35  ;;  %v5695_v6 = vsel %vm1707_vm8, %v5684_v20, %v5632_v1 }
 0x8c0   : > { %9988 = vmatprep.subr.bf16.mxu1 %v15730_v23  ;;  %9891 = vmatmul.mubr.msk.bf16.gmra.mxu0 %vm1101_vm3, %v13431_v16 }
 0x8c1   : > { %9894 = vmatprep.mubr.msk.bf16.mxu0 %vm1101_vm3, %v13439_v60 }
 0x8c3   : > { %9989 = vmatpush3.bf16.msra.mxu1 %v15730_v23 }
 0x8c6   : > { %6352 = vmatmul.mubr.bf16.gmra.mxu1 %v5692_v7 }
 0x8c7   : > { %8649 = vmatprep.mubr.msk.bf16.mxu1 %vm775_vm2, %v5548_v25 }
 0x8c8   : > { %9895 = vmatmul.mubr.msk.bf16.gmra.mxu0 %vm1101_vm3, %v13454_v14 }
 0x8c9   : > { %9898 = vmatprep.mubr.msk.bf16.mxu0 %vm1101_vm3, %v13461_v49 }
 0x8ce   : > { %6360 = vmatmul.mubr.bf16.gmra.mxu1 %v5695_v6 }
 0x8d0   : > { %9899 = vmatmul.mubr.msk.bf16.gmra.mxu0 %vm1101_vm3, %v13469_v41 }
 0x8d1   : > { %9910 = vmatprep.mubr.msk.bf16.mxu0 %vm1101_vm3, %v13063_v3 }
 0x8d8   : > { %9911 = vmatmul.mubr.msk.bf16.vlgmr.msra.gmra.mxu0 %vm1101_vm3, %v13146_v47 }
 0x8d9   : > { %9914 = vmatprep.mubr.msk.bf16.mxu0 %vm1101_vm3, %v13155_v8 }
 0x8e0   : > { %9915 = vmatmul.mubr.msk.bf16.gmra.mxu0 %vm1101_vm3, %v13172_v52 }
 0x8e1   : > { %9918 = vmatprep.mubr.msk.bf16.mxu0 %vm1101_vm3, %v13180_v28 }
 0x8e8   : > { %9919 = vmatmul.mubr.msk.bf16.gmra.mxu0 %vm1101_vm3, %v13190_v55 }
 0x8e9   : > { %9922 = vmatprep.mubr.msk.bf16.mxu0 %vm1101_vm3, %v13197_v18 }
 0x8f0   : > { %9923 = vmatmul.mubr.msk.bf16.gmra.mxu0 %vm1101_vm3, %v13204_v10 }
 0x8f1   : > { %9926 = vmatprep.mubr.msk.bf16.mxu0 %vm1101_vm3, %v13211_v38 }
 0x8f8   : > { %9927 = vmatmul.mubr.msk.bf16.gmra.mxu0 %vm1101_vm3, %v13218_v53 }
 0x8f9   : > { %9930 = vmatprep.mubr.msk.bf16.mxu0 %vm1101_vm3, %v13225_v58 }
 0x900   : > { %9931 = vmatmul.mubr.msk.bf16.gmra.mxu0 %vm1101_vm3, %v13232_v56  ;;  %v511_v56 = vld [vmem:[%s15273_s5 + $0x108] sm:$0xff] }
 0x901   : > { %9934 = vmatprep.mubr.msk.bf16.mxu0 %vm1101_vm3, %v13239_v5 }
 0x908   : > { %v13499_v3 = vpop.f32.mrf.mxu0  ;;  %9935 = vmatmul.mubr.msk.bf16.gmra.mxu0 %vm1101_vm3, %v13248_v24 }
 0x909   : > { %9938 = vmatprep.mubr.msk.bf16.mxu0 %vm1101_vm3, %v13257_v63 }
 0x90a   : > { %v13505_v47 = vpop.f32.mrf.mxu0 }
 0x90c   : > { %v13507_v8 = vpop.f32.mrf.mxu0 }
 0x90e   : > { %v13511_v28 = vpop.f32.mrf.mxu0 }
 0x90f   : > { %v6018_v55 = vpack.c.bf16 %v13511_v28, %v13505_v47 }
 0x910   : > { %v13515_v18 = vpop.f32.mrf.mxu0  ;;  %9939 = vmatmul.mubr.msk.bf16.gmra.mxu0 %vm1101_vm3, %v13266_v48 }
 0x911   : > { %9942 = vmatprep.mubr.msk.bf16.mxu0 %vm1101_vm3, %v13273_v46 }
 0x912   : > { %v13521_v10 = vpop.f32.mrf.mxu0 }
 0x914   : > { %v13523_v38 = vpop.f32.mrf.mxu0 }
 0x916   : > { %v13527_v58 = vpop.f32.mrf.mxu0 }
 0x918   : > { %v9840_v5 = vpop.f32.mrf.mxu0  ;;  %9943 = vmatmul.mubr.msk.bf16.gmra.mxu0 %vm1101_vm3, %v13280_v59 }
 0x919   : > { %9946 = vmatprep.mubr.msk.bf16.mxu0 %vm1101_vm3, %v13287_v62 }
 0x91a   : > { %v5763_v24 = vpop.f32.mrf.mxu0 }
 0x91c   : > { %v9841_v63 = vpop.f32.mrf.mxu0 }
 0x91d   : > { %v6023_v48 = vpack.c.bf16 %v9841_v63, %v9840_v5 }
 0x91e   : > { %v5766_v46 = vpop.f32.mrf.mxu0 }
 0x91f   : > { %v6022_v36 = vpack.c.bf16 %v5766_v46, %v5763_v24  ;;  %6060 = vrot.lane.b32.xlu1 %v6023_v48, %s15721_s21 }
 0x920   : > { %v13536_v54 = vpop.f32.mrf.mxu0  ;;  %9947 = vmatmul.mubr.msk.bf16.gmra.mxu0 %vm1101_vm3, %v13294_v40 }
 0x921   : > { %6058 = vrot.lane.b32.xlu0 %v6022_v36, %s15721_s21  ;;  %9950 = vmatprep.mubr.msk.bf16.mxu0 %vm1101_vm3, %v13303_v13 }
 0x922   : > { %v5779_v59 = vpop.f32.mrf.mxu0 }
 0x924   : > { %v13543_v29 = vpop.f32.mrf.mxu0 }
 0x925   : > { %v6025_v62 = vpack.c.bf16 %v13543_v29, %v13536_v54 }
 0x926   : > { %v5782_v45 = vpop.f32.mrf.mxu0 }
 0x927   : > { %v6024_v51 = vpack.c.bf16 %v5782_v45, %v5779_v59 }
 0x928   : > { %v9848_v61 = vpop.f32.mrf.mxu0  ;;  %9951 = vmatmul.mubr.msk.bf16.gmra.mxu0 %vm1101_vm3, %v13312_v44 }
 0x929   : > { %6062 = vrot.lane.b32.xlu0 %v6024_v51, %s15721_s21  ;;  %9954 = vmatprep.mubr.msk.bf16.mxu0 %vm1101_vm3, %v13319_v22 }
 0x92a   : > { %v5795_v40 = vpop.f32.mrf.mxu0 }
 0x92c   : > { %v9849_v21 = vpop.f32.mrf.mxu0 }
 0x92d   : > { %v6027_v13 = vpack.c.bf16 %v9849_v21, %v9848_v61 }
 0x92e   : > { %v5798_v39 = vpop.f32.mrf.mxu0 }
 0x92f   : > { %v6026_v42 = vpack.c.bf16 %v5798_v39, %v5795_v40  ;;  %6072 = vrot.lane.b32.xlu0 %v6027_v13, %s15722_s25 }
 0x930   : > { %v13553_v34 = vpop.f32.mrf.mxu0  ;;  %9955 = vmatmul.mubr.msk.bf16.gmra.mxu0 %vm1101_vm3, %v13328_v31 }
 0x931   : > { %6070 = vrot.lane.b32.xlu1 %v6026_v42, %s15722_s25  ;;  %9958 = vmatprep.mubr.msk.bf16.mxu0 %vm1101_vm3, %v13335_v17 }
 0x932   : > { %v5811_v44 = vpop.f32.mrf.mxu0 }
 0x934   : > { %v13560_v9 = vpop.f32.mrf.mxu0 }
 0x935   : > { %v6029_v22 = vpack.c.bf16 %v13560_v9, %v13553_v34 }
 0x936   : > { %v5814_v26 = vpop.f32.mrf.mxu0 }
 0x937   : > { %v6028_v35 = vpack.c.bf16 %v5814_v26, %v5811_v44 }
 0x938   : > { %v9856_v50 = vpop.f32.mrf.mxu0  ;;  %9959 = vmatmul.mubr.msk.bf16.gmra.mxu0 %vm1101_vm3, %v13344_v11 }
 0x939   : > { %6074 = vrot.lane.b32.xlu1 %v6028_v35, %s15722_s25  ;;  %9962 = vmatprep.mubr.msk.bf16.mxu0 %vm1101_vm3, %v13358_v43 }
 0x93a   : > { %v5827_v31 = vpop.f32.mrf.mxu0 }
 0x93c   : > { %v9857_v32 = vpop.f32.mrf.mxu0 }
 0x93d   : > { %v6031_v17 = vpack.c.bf16 %v9857_v32, %v9856_v50 }
 0x93e   : > { %v5830_v4 = vpop.f32.mrf.mxu0 }
 0x93f   : > { %v6030_v2 = vpack.c.bf16 %v5830_v4, %v5827_v31  ;;  %6084 = vrot.lane.b32.xlu1 %v6031_v17, %s15693_s26 }
 0x940   : > { %v13570_v23 = vpop.f32.mrf.mxu0  ;;  %9963 = vmatmul.mubr.msk.bf16.gmra.mxu0 %vm1101_vm3, %v13371_v33 }
 0x941   : > { %6082 = vrot.lane.b32.xlu0 %v6030_v2, %s15693_s26  ;;  %9966 = vmatprep.mubr.msk.bf16.mxu0 %vm1101_vm3, %v13380_v12 }
 0x942   : > { %v13577_v11 = vpop.f32.mrf.mxu0 }
 0x944   : > { %v13579_v43 = vpop.f32.mrf.mxu0 }
 0x945   : > { %v6033_v30 = vpack.c.bf16 %v13579_v43, %v13570_v23 }
 0x946   : > { %v13583_v15 = vpop.f32.mrf.mxu0 }
 0x948   : > { %v9864_v19 = vpop.f32.mrf.mxu0  ;;  %9967 = vmatmul.mubr.msk.bf16.gmra.mxu0 %vm1101_vm3, %v13400_v57 }
 0x949   : > { %9970 = vmatprep.mubr.msk.bf16.mxu0 %vm1101_vm3, %v13412_v37 }
 0x94a   : > { %v5859_v33 = vpop.f32.mrf.mxu0 }
 0x94c   : > { %v9865_v25 = vpop.f32.mrf.mxu0 }
 0x94d   : > { %v6035_v7 = vpack.c.bf16 %v9865_v25, %v9864_v19 }
 0x94e   : > { %v5862_v12 = vpop.f32.mrf.mxu0 }
 0x94f   : > { %v6034_v0 = vpack.c.bf16 %v5862_v12, %v5859_v33  ;;  %6096 = vrot.lane.b32.xlu0 %v6035_v7, %s15694_s30 }
 0x950   : > { %v13590_v20 = vpop.f32.mrf.mxu0  ;;  %9971 = vmatmul.mubr.msk.bf16.gmra.mxu0 %vm1101_vm3, %v13431_v16 }
 0x951   : > { %6094 = vrot.lane.b32.xlu1 %v6034_v0, %s15694_s30  ;;  %9974 = vmatprep.mubr.msk.bf16.mxu0 %vm1101_vm3, %v13439_v60  ;;  %v10337_v60 = vld [vmem:[%s15271_s3] sm:$0xff]  }
 0x952   : > { %v5875_v57 = vpop.f32.mrf.mxu0 }
 0x954   : > { %v13597_v1 = vpop.f32.mrf.mxu0 }
 0x955   : > { %v6037_v9 = vpack.c.bf16 %v13597_v1, %v13590_v20  ;;  %v470_v20 = vld [vmem:[%s15272_s4] sm:$0xff]  ;;  %v472_v1 = vld [vmem:[%s15272_s4 + $0x10] sm:$0xff] }
 0x956   : > { %v5878_v37 = vpop.f32.mrf.mxu0 }
 0x957   : > { %v6036_v12 = vpack.c.bf16 %v5878_v37, %v5875_v57 }
 0x958   : > { %v9872_v6 = vpop.f32.mrf.mxu0  ;;  %9975 = vmatmul.mubr.msk.bf16.gmra.mxu0 %vm1101_vm3, %v13454_v14 }
 0x959   : > { %9978 = vmatprep.mubr.msk.bf16.mxu0 %vm1101_vm3, %v13461_v49 }
 0x95a   : > { %v5891_v5 = vpop.f32.mrf.mxu0 }
 0x95c   : > { %v9873_v24 = vpop.f32.mrf.mxu0 }
 0x95d   : > { %v6039_v63 = vpack.c.bf16 %v9873_v24, %v9872_v6 }
 0x95e   : > { %v5894_v16 = vpop.f32.mrf.mxu0 }
 0x95f   : > { %v6038_v48 = vpack.c.bf16 %v5894_v16, %v5891_v5  ;;  %6108 = vrot.lane.b32.xlu1 %v6039_v63, %s15580_s28  ;;  %v6032_v5 = vpack.c.bf16 %v13583_v15, %v13577_v11 }
 0x960   : > { %v13604_v46 = vpop.f32.mrf.mxu0  ;;  %9979 = vmatmul.mubr.msk.bf16.gmra.mxu0 %vm1101_vm3, %v13469_v41 }
 0x961   : > { %6106 = vrot.lane.b32.xlu0 %v6038_v48, %s15580_s28  ;;  %10070 = vmatprep.mubr.msk.bf16.mxu0 %vm1101_vm3, %v10337_v60 }
 0x962   : > { %v5907_v14 = vpop.f32.mrf.mxu0 }
 0x964   : > { %v13613_v49 = vpop.f32.mrf.mxu0 }
 0x966   : > { %v5910_v36 = vpop.f32.mrf.mxu0 }
 0x968   : > { %v9880_v59 = vpop.f32.mrf.mxu0 }
 0x96a   : > { %v5923_v45 = vpop.f32.mrf.mxu0 }
 0x96c   : > { %v9881_v51 = vpop.f32.mrf.mxu0 }
 0x96d   : > { %v6043_v61 = vpack.c.bf16 %v9881_v51, %v9880_v59  ;;  %v6040_v59 = vpack.c.bf16 %v5910_v36, %v5907_v14 }
 0x96e   : > { %v5926_v40 = vpop.f32.mrf.mxu0 }
 0x96f   : > { %v6042_v21 = vpack.c.bf16 %v5926_v40, %v5923_v45  ;;  %6120 = vrot.lane.b32.xlu0 %v6043_v61, %s15581_s18 }
 0x970   : > { %v9884_v41 = vpop.f32.mrf.mxu0 }
 0x971   : > { %6118 = vrot.lane.b32.xlu1 %v6042_v21, %s15581_s18 }
 0x972   : > { %v5939_v13 = vpop.f32.mrf.mxu0 }
 0x974   : > { %v9885_v39 = vpop.f32.mrf.mxu0 }
 0x975   : > { %v6045_v43 = vpack.c.bf16 %v9885_v39, %v9884_v41  ;;  %v473_v41 = vld [vmem:[%s15272_s4 + $0x18] sm:$0xff] }
 0x976   : > { %v5942_v42 = vpop.f32.mrf.mxu0  ;;  %v13617_v44 = vpop.f32.mrf.mxu1 }
 0x977   : > { %v6044_v16 = vpack.c.bf16 %v5942_v42, %v5939_v13  ;;  %v474_v13 = vld [vmem:[%s15272_s4 + $0x20] sm:$0xff]  ;;  %v475_v42 = vld [vmem:[%s15272_s4 + $0x28] sm:$0xff] }
 0x978   : > { %v9888_v26 = vpop.f32.mrf.mxu0  ;;  %v6339_v35 = vpop.f32.mrf.mxu1 }
 0x979   : > { %v476_v35 = vld [vmem:[%s15272_s4 + $0x30] sm:$0xff] }
 0x97a   : > { %v5955_v50 = vpop.f32.mrf.mxu0  ;;  %v13619_v31 = vpop.f32.mrf.mxu1 }
 0x97c   : > { %v9889_v32 = vpop.f32.mrf.mxu0  ;;  %v6342_v17 = vpop.f32.mrf.mxu1 }
 0x97d   : > { %v6047_v4 = vpack.c.bf16 %v9889_v32, %v9888_v26  ;;  %v477_v32 = vld [vmem:[%s15272_s4 + $0x38] sm:$0xff] }
 0x97e   : > { %v5958_v2 = vpop.f32.mrf.mxu0  ;;  %v13621_v19 = vpop.f32.mrf.mxu1 }
 0x97f   : > { %v6046_v33 = vpack.c.bf16 %v5958_v2, %v5955_v50  ;;  %6132 = vrot.lane.b32.xlu1 %v6047_v4, %s15582_s29  ;;  %v478_v4 = vld [vmem:[%s15273_s5] sm:$0xff] }
 0x980   : > { %v9892_v25 = vpop.f32.mrf.mxu0  ;;  %v6347_v7 = vpop.f32.mrf.mxu1 }
 0x981   : > { %6130 = vrot.lane.b32.xlu0 %v6046_v33, %s15582_s29  ;;  %v479_v33 = vld [vmem:[%s15273_s5 + $0x8] sm:$0xff]  ;;  %v480_v7 = vld [vmem:[%s15273_s5 + $0x10] sm:$0xff] }
 0x982   : > { %v5971_v0 = vpop.f32.mrf.mxu0  ;;  %v13625_v6 = vpop.f32.mrf.mxu1 }
 0x983   : > { %6098 = vrot.lane.b32.xlu1 %v6036_v12, %s15694_s30 }
 0x984   : > { %v9893_v24 = vpop.f32.mrf.mxu0  ;;  %v6350_v63 = vpop.f32.mrf.mxu1 }
 0x985   : > { %6086 = vrot.lane.b32.xlu0 %v6032_v5, %s15693_s26  ;;  %v6049_v21 = vpack.c.bf16 %v9893_v24, %v9892_v25  ;;  %v482_v24 = vld [vmem:[%s15273_s5 + $0x20] sm:$0xff] }
 0x986   : > { %v5974_v48 = vpop.f32.mrf.mxu0  ;;  %v13631_v60 = vpop.f32.mrf.mxu1 }
 0x987   : > { %6122 = vrot.lane.b32.xlu1 %v6044_v16, %s15581_s18  ;;  %v6048_v40 = vpack.c.bf16 %v5974_v48, %v5971_v0  ;;  %v481_v0 = vld [vmem:[%s15273_s5 + $0x18] sm:$0xff]  ;;  %v483_v16 = vld [vmem:[%s15273_s5 + $0x28] sm:$0xff] }
 0x988   : > { %v6355_v57 = vpop.f32.mrf.mxu1  ;;  %v13634_v37 = vpop.f32.mrf.mxu0 }
 0x989   : > { %6110 = vrot.lane.b32.xlu0 %v6040_v59, %s15580_s28  ;;  %v484_v59 = vld [vmem:[%s15273_s5 + $0x30] sm:$0xff]  ;;  %v485_v57 = vld [vmem:[%s15273_s5 + $0x38] sm:$0xff] }
 0x98a   : > { %v13637_v45 = vpop.f32.mrf.mxu1  ;;  %v5987_v11 = vpop.f32.mrf.mxu0 }
 0x98b   : > { %6064 = vrot.lane.b32.xlu1 %v6025_v62, %s15721_s21  ;;  %v6041_v62 = vpack.c.bf16 %v13613_v49, %v13604_v46 }
 0x98c   : > { %v6358_v15 = vpop.f32.mrf.mxu1  ;;  %v13643_v51 = vpop.f32.mrf.mxu0 }
 0x98d   : > { %6076 = vrot.lane.b32.xlu0 %v6029_v22, %s15722_s25  ;;  %v486_v15 = vld [vmem:[%s15273_s5 + $0x40] sm:$0xff] }
 0x98e   : > { %v13651_v36 = vpop.f32.mrf.mxu1  ;;  %v5990_v61 = vpop.f32.mrf.mxu0 }
 0x98f   : > { %6088 = vrot.lane.b32.xlu1 %v6033_v30, %s15693_s26  ;;  %v6050_v54 = vpack.c.bf16 %v5990_v61, %v5987_v11  ;;  %v471_v30 = vld [vmem:[%s15272_s4 + $0x8] sm:$0xff] }
 0x990   : > { %v6363_v29 = vpop.f32.mrf.mxu1  ;;  %v13667_v23 = vpop.f32.mrf.mxu0  ;;  %v487_v61 = vld [vmem:[%s15273_s5 + $0x48] sm:$0xff] }
 0x991   : > { %6134 = vrot.lane.b32.xlu0 %v6048_v40, %s15582_s29  ;;  %8650 = vmatprep.mubr.msk.bf16.mxu1 %vm775_vm2, %v6050_v54  ;;  %v488_v54 = vld [vmem:[%s15273_s5 + $0x50] sm:$0xff]  ;;  %v489_v29 = vld [vmem:[%s15273_s5 + $0x58] sm:$0xff] }
 0x992   : > { %v13661_v34 = vpop.f32.mrf.mxu1  ;;  %v13674_v46 = vpop.f32.mrf.mxu0 }
 0x993   : > { %6112 = vrot.lane.b32.xlu1 %v6041_v62, %s15580_s28 }
 0x994   : > { %v6366_v22 = vpop.f32.mrf.mxu1  ;;  %v13682_v49 = vpop.f32.mrf.mxu0 }
 0x995   : > { %6100 = vrot.lane.b32.xlu0 %v6037_v9, %s15694_s30  ;;  %v490_v9 = vld [vmem:[%s15273_s5 + $0x60] sm:$0xff]  ;;  %v491_v22 = vld [vmem:[%s15273_s5 + $0x68] sm:$0xff] }
 0x996   : > { %v13690_v39 = vpop.f32.mrf.mxu0 }
 0x997   : > { %6136 = vrot.lane.b32.xlu1 %v6049_v21, %s15582_s29 }
 0x998   : > { %v13695_v26 = vpop.f32.mrf.mxu0 }
 0x999   : > { %6124 = vrot.lane.b32.xlu0 %v6045_v43, %s15581_s18  ;;  %v492_v43 = vld [vmem:[%s15273_s5 + $0x70] sm:$0xff]  ;;  %s10449_s18 = smov [#allocation2]  }
 0x99a   : > { %v13700_v50 = vpop.f32.mrf.mxu0  ;;  %s10383_s27 = sshll.u32 %s10449_s18, 4  ;;  %s10384_s27 = int_to_ptr.vmem [resolvable:$false] %s10383_s27 }
 0x99b   : > { %3782 = vperm.xlu1 %10145, %v471_v30   ;;  %v493_v30 = vld [vmem:[%s15273_s5 + $0x78] sm:$0xff]  ;;  %s10385_s1 = scalar_lea.vmem %s10384_s27, 4096 }
 0x99c   : > { %v13705_v17 = vpop.f32.mrf.mxu0 }
 0x99d   : > { %3777 = vperm.xlu0 %10144, %v470_v20  }
 0x99e   : > { %v13710_v2 = vpop.f32.mrf.mxu0 }
 0x99f   : > { %3787 = vperm.xlu1 %10145, %v472_v1   ;;  %v494_v1 = vld [vmem:[%s15273_s5 + $0x80] sm:$0xff] }
 0x9a0   : > { %v13715_v25 = vpop.f32.mrf.mxu0 }
 0x9a1   : > { %3792 = vperm.xlu0 %10144, %v473_v41   ;;  %v495_v41 = vld [vmem:[%s15273_s5 + $0x88] sm:$0xff] }
 0x9a2   : > { %v13720_v12 = vpop.f32.mrf.mxu0 }
 0x9a3   : > { %3797 = vperm.xlu1 %10145, %v474_v13  }
 0x9a4   : > { %v13725_v5 = vpop.f32.mrf.mxu0 }
 0x9a5   : > { %3802 = vperm.xlu0 %10144, %v475_v42   ;;  %v496_v42 = vld [vmem:[%s15273_s5 + $0x90] sm:$0xff] }
 0x9a6   : > { %v13730_v63 = vpop.f32.mrf.mxu0 }
 0x9a7   : > { %3807 = vperm.xlu1 %10145, %v476_v35   ;;  %v497_v35 = vld [vmem:[%s15273_s5 + $0x98] sm:$0xff] }
 0x9a8   : > { %v13735_v48 = vpop.f32.mrf.mxu0 }
 0x9a9   : > { %3812 = vperm.xlu0 %10144, %v477_v32  }
 0x9aa   : > { %v13743_v11 = vpop.f32.mrf.mxu0 }
 0x9ab   : > { %6426 = vperm.xlu1 %10145, %v478_v4   ;;  %v498_v4 = vld [vmem:[%s15273_s5 + $0xa0] sm:$0xff] }
 0x9ac   : > { %v13751_v40 = vpop.f32.mrf.mxu0 }
 0x9ad   : > { %6431 = vperm.xlu0 %10144, %v479_v33   ;;  %v499_v33 = vld [vmem:[%s15273_s5 + $0xa8] sm:$0xff] }
 0x9ae   : > { %v13759_v62 = vpop.f32.mrf.mxu0 }
 0x9af   : > { %6436 = vperm.xlu1 %10145, %v480_v7  }
 0x9b0   : > { %v13767_v21 = vpop.f32.mrf.mxu0 }
 0x9b1   : > { %6441 = vperm.xlu0 %10144, %v481_v0   ;;  %v500_v0 = vld [vmem:[%s15273_s5 + $0xb0] sm:$0xff] }
 0x9b2   : > { %v13775_v20 = vpop.f32.mrf.mxu0 }
 0x9b3   : > { %6446 = vperm.xlu1 %10145, %v482_v24   ;;  %v13804_v24 = vpop.permute.xlu1 %6060 }
 0x9b4   : > { %v13783_v13 = vpop.f32.mrf.mxu0 }
 0x9b5   : > { %6451 = vperm.xlu0 %10144, %v483_v16   ;;  %v501_v16 = vld [vmem:[%s15273_s5 + $0xb8] sm:$0xff] }
 0x9b6   : > { %v13791_v32 = vpop.f32.mrf.mxu0 }
 0x9b7   : > { %6456 = vperm.xlu1 %10145, %v484_v59   ;;  %v6059_v59 = vpop.permute.xlu0 %6058 }
 0x9b8   : > { %v13799_v7 = vpop.f32.mrf.mxu0 }
 0x9b9   : > { %6461 = vperm.xlu0 %10144, %v485_v57  }
 0x9ba   : > { %v13809_v57 = vpop.f32.mrf.mxu0 }
 0x9bb   : > { %6466 = vperm.xlu1 %10145, %v486_v15   ;;  %v502_v15 = vld [vmem:[%s15273_s5 + $0xc0] sm:$0xff] }
 0x9bd   : > { %6471 = vperm.xlu0 %10144, %v487_v61   ;;  %v6071_v61 = vpop.permute.xlu1 %6070 }
 0x9bf   : > { %6476 = vperm.xlu1 %10145, %v488_v54   ;;  %v503_v54 = vld [vmem:[%s15273_s5 + $0xc8] sm:$0xff] }
 0x9c1   : > { %6481 = vperm.xlu0 %10144, %v489_v29   ;;  %v13817_v29 = vpop.permute.xlu0 %6062 }
 0x9c3   : > { %6486 = vperm.xlu1 %10145, %v490_v9   ;;  %v13819_v9 = vpop.f32.mrf.mxu0 }
 0x9c4   : > { %15731 = vst [vmem:[#allocation27_spill] sm:$0xff] %v13819_v9 }
 0x9c5   : > { %6491 = vperm.xlu0 %10144, %v491_v22   ;;  %v504_v22 = vld [vmem:[%s15273_s5 + $0xd0] sm:$0xff] }
 0x9c7   : > { %6496 = vperm.xlu1 %10145, %v492_v43   ;;  %v13824_v43 = vpop.permute.xlu1 %6074 }
 0x9c9   : > { %6501 = vperm.xlu0 %10144, %v493_v30   ;;  %v505_v30 = vld [vmem:[%s15273_s5 + $0xd8] sm:$0xff] }
 0x9cb   : > { %6506 = vperm.xlu1 %10145, %v494_v1   ;;  %v6073_v1 = vpop.permute.xlu0 %6072 }
 0x9cd   : > { %6511 = vperm.xlu0 %10144, %v495_v41   ;;  %v13829_v41 = vpop.f32.mrf.mxu0 }
 0x9cf   : > { %6516 = vperm.xlu1 %10145, %v496_v42   ;;  %v506_v42 = vld [vmem:[%s15273_s5 + $0xe0] sm:$0xff] }
 0x9d1   : > { %6521 = vperm.xlu0 %10144, %v497_v35   ;;  %v6085_v35 = vpop.permute.xlu1 %6084 }
 0x9d3   : > { %6526 = vperm.xlu1 %10145, %v498_v4   ;;  %v507_v4 = vld [vmem:[%s15273_s5 + $0xe8] sm:$0xff] }
 0x9d5   : > { %6531 = vperm.xlu0 %10144, %v499_v33   ;;  %v6083_v33 = vpop.permute.xlu0 %6082 }
 0x9d7   : > { %6536 = vperm.xlu1 %10145, %v500_v0   ;;  %v13837_v0 = vpop.f32.mrf.mxu0 }
 0x9d8   : > { %15732 = vst [vmem:[#allocation43_spill] sm:$0xff] %v13837_v0  ;;  %v6140_v0 = vsel %vm775_vm2, %v6018_v55, %v6059_v59  ;;  %v515_v59 = vld [vmem:[%s15273_s5 + $0x128] sm:$0xff] }
 0x9d9   : > { %6541 = vperm.xlu0 %10144, %v501_v16   ;;  %v508_v16 = vld [vmem:[%s15273_s5 + $0xf0] sm:$0xff] }
 0x9db   : > { %6546 = vperm.xlu1 %10145, %v502_v15   ;;  %v6095_v15 = vpop.permute.xlu1 %6094 }
 0x9dd   : > { %6551 = vperm.xlu0 %10144, %v503_v54   ;;  %v509_v54 = vld [vmem:[%s15273_s5 + $0xf8] sm:$0xff] }
 0x9df   : > { %6556 = vperm.xlu1 %10145, %v504_v22   ;;  %v6097_v22 = vpop.permute.xlu0 %6096  ;;  %v6109_v53 = vpop.permute.xlu1 %6108 }
 0x9e1   : > { %6561 = vperm.xlu0 %10144, %v505_v30   ;;  %v13845_v30 = vpop.f32.mrf.mxu0 }
 0x9e2   : > { %15733 = vst [vmem:[#allocation26_spill] sm:$0xff] %v13845_v30  ;;  %v6151_v30 = vsel %vm1663_vm4, %v6140_v0, %v6071_v61 }
 0x9e3   : > { %6566 = vperm.xlu1 %10145, %v506_v42   ;;  %v510_v42 = vld [vmem:[%s15273_s5 + $0x100] sm:$0xff]  ;;  %v6107_v14 = vpop.permute.xlu0 %6106  ;;  %v6119_v52 = vpop.permute.xlu1 %6118  ;;  %v6159_v9 = vsel %vm1672_vm5, %v6151_v30, %v6083_v33 }
 0x9e4   : > { %v6167_v47 = vsel %vm1101_vm3, %v6159_v9, %v6095_v15  ;;  %v516_v9 = vld [vmem:[%s15273_s5 + $0x130] sm:$0xff] }
 0x9e5   : > { %6571 = vperm.xlu0 %10144, %v507_v4   ;;  %v13853_v4 = vpop.f32.mrf.mxu0  ;;  %v6175_v55 = vsel %vm1689_vm6, %v6167_v47, %v6107_v14  ;;  %v15735_v14 = vpack.c.bf16 %v13507_v8, %v13499_v3  ;;  %v518_v3 = vld [vmem:[%s15273_s5 + $0x140] sm:$0xff] }
 0x9e6   : > { %15734 = vst [vmem:[#allocation81_spill] sm:$0xff] %v13853_v4  ;;  %v6183_v61 = vsel %vm1698_vm7, %v6175_v55, %v6119_v52  ;;  %v15736_v52 = vpack.c.bf16 %v13643_v51, %v13634_v37  ;;  %v15737_v51 = vpack.c.bf16 %v13527_v58, %v13521_v10  ;;  %v520_v58 = vld [vmem:[%s15273_s5 + $0x150] sm:$0xff] }
 0x9e7   : > { %6576 = vperm.xlu1 %10145, %v508_v16   ;;  %v512_v16 = vld [vmem:[%s15273_s5 + $0x110] sm:$0xff]  ;;  %v13866_v4 = vpop.f32.mrf.mxu0  ;;  %v6143_v30 = vsel %vm775_vm2, %v15735_v14, %v13804_v24  ;;  %v522_v14 = vld [vmem:[%s15273_s5 + $0x160] sm:$0xff] }
 0x9e8   : > { %v6146_v24 = vsel %vm775_vm2, %v15737_v51, %v13817_v29 }
 0x9e9   : > { %6581 = vperm.xlu0 %10144, %v509_v54   ;;  %v513_v54 = vld [vmem:[%s15273_s5 + $0x118] sm:$0xff] }
 0x9eb   : > { %6586 = vperm.xlu1 %10145, %v510_v42   ;;  %v6121_v42 = vpop.permute.xlu0 %6120 }
 0x9ed   : > { %6591 = vperm.xlu0 %10144, %v511_v56   ;;  %v514_v56 = vld [vmem:[%s15273_s5 + $0x120] sm:$0xff] }
 0x9ef   : > { %6596 = vperm.xlu1 %10145, %v512_v16   ;;  %v13878_v16 = vpop.f32.mrf.mxu0 }
 0x9f1   : > { %v6133_v28 = vpop.permute.xlu1 %6132  ;;  %6601 = vperm.xlu0 %10144, %v513_v54   ;;  %v517_v54 = vld [vmem:[%s15273_s5 + $0x138] sm:$0xff]  ;;  %v13897_v55 = vpop.f32.mrf.mxu0 }
 0x9f3   : > { %v6131_v0 = vpop.permute.xlu0 %6130  ;;  %6606 = vperm.xlu1 %10145, %v514_v56   ;;  %v6153_v56 = vsel %vm1663_vm4, %v6143_v30, %v6073_v1  ;;  %v15738_v30 = vpack.c.bf16 %v13523_v38, %v13515_v18  ;;  %v524_v38 = vld [vmem:[%s15273_s5 + $0x170] sm:$0xff] }
 0x9f4   : > { %v6191_v33 = vsel %vm1707_vm8, %v6183_v61, %v6131_v0  ;;  %v6052_v61 = vpack.c.bf16 %v13690_v39, %v13674_v46  ;;  %v521_v39 = vld [vmem:[%s15273_s5 + $0x158] sm:$0xff] }
 0x9f5   : > { %v6099_v15 = vpop.permute.xlu1 %6098  ;;  %6611 = vperm.xlu0 %10144, %v515_v59   ;;  %6368 = vmatmul.mubr.bf16.gmra.mxu1 %v6191_v33  ;;  %v6161_v59 = vsel %vm1672_vm5, %v6153_v56, %v6085_v35  ;;  %v519_v35 = vld [vmem:[%s15273_s5 + $0x148] sm:$0xff] }
 0x9f6   : > { %8651 = vmatprep.mubr.msk.bf16.mxu1 %vm775_vm2, %v15736_v52  ;;  %v6169_v8 = vsel %vm1101_vm3, %v6161_v59, %v6097_v22  ;;  %v6155_v22 = vsel %vm1663_vm4, %v6146_v24, %v13824_v43 }
 0x9f7   : > { %v6087_v47 = vpop.permute.xlu0 %6086  ;;  %6616 = vperm.xlu1 %10145, %v516_v9   ;;  %v6177_v1 = vsel %vm1689_vm6, %v6169_v8, %v6109_v53  ;;  %v13918_v9 = vpop.f32.mrf.mxu0 }
 0x9f8   : > { %v6185_v0 = vsel %vm1698_vm7, %v6177_v1, %v6121_v42  ;;  %v6163_v53 = vsel %vm1672_vm5, %v6155_v22, %v6087_v47 }
 0x9f9   : > { %v6123_v37 = vpop.permute.xlu1 %6122  ;;  %6621 = vperm.xlu0 %10144, %v517_v54   ;;  %v6194_v10 = vsel %vm1707_vm8, %v6185_v0, %v6133_v28  ;;  %v6171_v29 = vsel %vm1101_vm3, %v6163_v53, %v6099_v15  ;;  %v13930_v42 = vpop.f32.mrf.mxu0  ;;  %v523_v15 = vld [vmem:[%s15273_s5 + $0x168] sm:$0xff] }
 0x9fb   : > { %v6111_v33 = vpop.permute.xlu0 %6110  ;;  %6626 = vperm.xlu1 %10145, %v518_v3   ;;  %v13944_v59 = vpop.f32.mrf.mxu0  ;;  %v6053_v3 = vpack.c.bf16 %v13682_v49, %v13667_v23 }
 0x9fc   : > { %v6179_v28 = vsel %vm1689_vm6, %v6171_v29, %v6111_v33  ;;  %15739 = vst [vmem:[#allocation22_spill] sm:$0xff] %v13944_v59  ;;  %v10338_v29 = vld [vmem:[%s15270_s2] sm:$0xff]  }
 0x9fd   : > { %v6065_v46 = vpop.permute.xlu1 %6064  ;;  %6631 = vperm.xlu0 %10144, %v519_v35   ;;  %6376 = vmatmul.mubr.bf16.gmra.mxu1 %v6194_v10  ;;  %v6187_v56 = vsel %vm1698_vm7, %v6179_v28, %v6123_v37  ;;  %v525_v37 = vld [vmem:[%s15273_s5 + $0x178] sm:$0xff]  ;;  %v13958_v49 = vpop.f32.mrf.mxu0  ;;  %v527_v35 = vld [vmem:[%s15273_s5 + $0x188] sm:$0xff]  ;;  %v530_v28 = vld [vmem:[%s15273_s5 + $0x1a0] sm:$0xff] }
 0x9fe   : > { %8652 = vmatprep.mubr.msk.bf16.mxu1 %vm775_vm2, %v6052_v61  ;;  %v6149_v52 = vsel %vm775_vm2, %v15738_v30, %v6065_v46  ;;  %15740 = vst [vmem:[#allocation38_spill] sm:$0xff] %v13958_v49  ;;  %v526_v61 = vld [vmem:[%s15273_s5 + $0x180] sm:$0xff]  ;;  %v6223_v30 = vsub.s32 7, %v15653_v27 }
 0x9ff   : > { %v6077_v43 = vpop.permute.xlu0 %6076  ;;  %6636 = vperm.xlu1 %10145, %v520_v58   ;;  %v13968_v33 = vpop.f32.mrf.mxu0  ;;  %v528_v58 = vld [vmem:[%s15273_s5 + $0x190] sm:$0xff] }
 0xa00   : > { %v6157_v8 = vsel %vm1663_vm4, %v6149_v52, %v6077_v43  ;;  %15741 = vst [vmem:[#allocation80_spill] sm:$0xff] %v13968_v33  ;;  %v531_v52 = vld [vmem:[%s15273_s5 + $0x1a8] sm:$0xff] }
 0xa01   : > { %v6089_v54 = vpop.permute.xlu1 %6088  ;;  %6641 = vperm.xlu0 %10144, %v521_v39   ;;  %v529_v39 = vld [vmem:[%s15273_s5 + $0x198] sm:$0xff]  ;;  %v13982_v43 = vpop.f32.mrf.mxu0 }
 0xa02   : > { %v6165_v24 = vsel %vm1672_vm5, %v6157_v8, %v6089_v54  ;;  %15742 = vst [vmem:[#allocation79_spill] sm:$0xff] %v13982_v43  ;;  %v3918_v54 = vsub.s32 5, %v15653_v27 }
 0xa03   : > { %6646 = vperm.xlu1 %10145, %v522_v14   ;;  %v6135_v47 = vpop.permute.xlu0 %6134  ;;  %v3898_v14 = vsub.s32 4, %v15653_v27 }
 0xa04   : > { %v6197_v18 = vsel %vm1707_vm8, %v6187_v56, %v6135_v47  ;;  %v532_v56 = vld [vmem:[%s15273_s5 + $0x1b0] sm:$0xff]  ;;  %v10339_v47 = vld [vmem:[%s15277_s9] sm:$0xff] }
 0xa05   : > { %6651 = vperm.xlu0 %10144, %v523_v15   ;;  %6384 = vmatmul.mubr.bf16.gmra.mxu1 %v6197_v18  ;;  %v6113_v51 = vpop.permute.xlu1 %6112  ;;  %v13993_v15 = vpop.f32.mrf.mxu0  ;;  %v14003_v8 = vrot.slane %v10339_v47, %v6223_v30 }
 0xa06   : > { %8653 = vmatprep.mubr.msk.bf16.mxu1 %vm775_vm2, %v6053_v3  ;;  %15743 = vst [vmem:[#allocation34_spill] sm:$0xff] %v13993_v15  ;;  %v14001_v3 = vrot.slane %v10339_v47, %v3898_v14 }
 0xa07   : > { %6656 = vperm.xlu1 %10145, %v524_v38   ;;  %v6101_v23 = vpop.permute.xlu0 %6100  ;;  %15744 = vst [vmem:[#allocation53_spill] sm:$0xff] %v14003_v8  ;;  %v10340_v38 = vld [vmem:[%s15270_s2 + $0x8] sm:$0xff]   ;;  %v6338_v14 = vadd.f32 %v13617_v44, %v14003_v8  ;;  %v6341_v44 = vadd.f32 %v13619_v31, %v14003_v8 }
 0xa08   : > { %v6173_v1 = vsel %vm1101_vm3, %v6165_v24, %v6101_v23  ;;  %v10341_v23 = vld [vmem:[%s15270_s2 + $0x10] sm:$0xff]   ;;  %v15757_v31 = vld [vmem:[#allocation46_spill] sm:$0xff] }
 0xa09   : > { %6661 = vperm.xlu0 %10144, %v525_v37   ;;  %v6181_v22 = vsel %vm1689_vm6, %v6173_v1, %v6113_v51  ;;  %v6137_v10 = vpop.permute.xlu1 %6136  ;;  %v533_v51 = vld [vmem:[%s15273_s5 + $0x1b8] sm:$0xff]  ;;  %v15746_v37 = vld [vmem:[#allocation47_spill] sm:$0xff]  ;;  %v14020_v1 = vrot.slane %v10339_v47, %v3918_v54 }
 0xa0a   : > { %v15752_v54 = vld [vmem:[#allocation44_spill] sm:$0xff] }
 0xa0b   : > { %6666 = vperm.xlu1 %10145, %v526_v61   ;;  %v6125_v0 = vpop.permute.xlu0 %6124  ;;  %v14022_v61 = vpop.f32.mrf.mxu0 }
 0xa0c   : > { %v6189_v53 = vsel %vm1698_vm7, %v6181_v22, %v6125_v0 }
 0xa0d   : > { %6671 = vperm.xlu0 %10144, %v527_v35   ;;  %v6200_v46 = vsel %vm1707_vm8, %v6189_v53, %v6137_v10  ;;  %v15747_v35 = vld [vmem:[#allocation74_spill] sm:$0xff]  ;;  %v534_v10 = vld [vmem:[%s15273_s5 + $0x1c0] sm:$0xff] }
 0xa0e   : > { %6392 = vmatmul.mubr.bf16.gmra.mxu1 %v6200_v46  ;;  %v15749_v53 = vld [vmem:[#allocation45_spill] sm:$0xff] }
 0xa0f   : > { %6676 = vperm.xlu1 %10145, %v528_v58   ;;  %9990 = vmatprep.mubr.msk.bf16.mxu1 %vm1101_vm3, %v10338_v29 }
 0xa11   : > { %6681 = vperm.xlu0 %10144, %v529_v39   ;;  %v15750_v39 = vld [vmem:[#allocation72_spill] sm:$0xff] }
 0xa13   : > { %6686 = vperm.xlu1 %10145, %v530_v28  }
 0xa15   : > { %6691 = vperm.xlu0 %10144, %v531_v52   ;;  %v535_v52 = vld [vmem:[%s15273_s5 + $0x1c8] sm:$0xff] }
 0xa16   : > { %v14005_v18 = vpop.permute.xlu1 %3782  ;;  %9991 = vmatmul.mubr.msk.bf16.vlgmr.msra.gmra.mxu1 %vm1101_vm3, %v10340_v38 }
 0xa17   : > { %15745 = vst [vmem:[#allocation55_spill] sm:$0xff] %v14005_v18  ;;  %v3816_v24 = vmul.f32 %v14005_v18, %v15746_v37  ;;  %6696 = vperm.xlu1 %10145, %v532_v56   ;;  %9994 = vmatprep.mubr.msk.bf16.mxu1 %vm1101_vm3, %v10341_v23  ;;  %v3889_v22 = vmul.f32 %v15747_v35, %v14005_v18  ;;  %v536_v35 = vld [vmem:[%s15273_s5 + $0x1d0] sm:$0xff] }
 0xa18   : > { %v14026_v0 = vpop.permute.xlu0 %3777 }
 0xa19   : > { %15748 = vst [vmem:[#allocation60_spill] sm:$0xff] %v14026_v0  ;;  %v3815_v58 = vmul.f32 %v14026_v0, %v15749_v53  ;;  %6701 = vperm.xlu0 %10144, %v533_v51   ;;  %v3901_v46 = vmul.f32 %v14001_v3, %v3816_v24  ;;  %v3888_v29 = vmul.f32 %v15750_v39, %v14026_v0  ;;  %v14048_v51 = vpop.f32.mrf.mxu0  ;;  %v15766_v0 = vld [vmem:[#allocation51_spill] sm:$0xff] }
 0xa1a   : > { %v3909_v28 = vmul.f32 %v14001_v3, %v3889_v22  ;;  %v14039_v30 = vpop.permute.xlu1 %3787  ;;  %15753 = vst [vmem:[#allocation52_spill] sm:$0xff] %v14048_v51  ;;  %v6346_v24 = vadd.f32 %v13621_v19, %v14003_v8 }
 0xa1b   : > { %15751 = vst [vmem:[#allocation54_spill] sm:$0xff] %v14039_v30  ;;  %v3817_v56 = vmul.f32 %v15752_v54, %v14039_v30  ;;  %6706 = vperm.xlu1 %10145, %v534_v10   ;;  %v3900_v47 = vmul.f32 %v14001_v3, %v3815_v58  ;;  %v3921_v38 = vadd.f32 %v14020_v1, %v3901_v46  ;;  %v15756_v10 = vld [vmem:[#allocation71_spill] sm:$0xff] }
 0xa1c   : > { %v3908_v37 = vmul.f32 %v14001_v3, %v3888_v29  ;;  %v14055_v23 = vpop.permute.xlu0 %3792  ;;  %v14061_v22 = vadd.f32 %v14020_v1, %v3909_v28  ;;  %v3890_v53 = vmul.f32 %v15756_v10, %v14039_v30  ;;  %v6349_v58 = vadd.f32 %v13625_v6, %v14003_v8  ;;  %v10342_v28 = vld [vmem:[%s15270_s2 + $0x18] sm:$0xff]  }
 0xa1d   : > { %15754 = vst [vmem:[#allocation57_spill] sm:$0xff] %v14055_v23  ;;  %v3818_v46 = vmul.f32 %v15757_v31, %v14055_v23  ;;  %6711 = vperm.xlu0 %10144, %v535_v52   ;;  %v3902_v19 = vmul.f32 %v14001_v3, %v3817_v56  ;;  %v3920_v39 = vadd.f32 %v14020_v1, %v3900_v47  ;;  %v537_v6 = vld [vmem:[%s15273_s5 + $0x1d8] sm:$0xff]  ;;  %v15760_v47 = vld [vmem:[#allocation73_spill] sm:$0xff] }
 0xa1e   : > { %15755 = vst [vmem:[#allocation59_spill] sm:$0xff] %v14061_v22  ;;  %v14071_v29 = vpop.permute.xlu1 %3797  ;;  %9995 = vmatmul.mubr.msk.bf16.gmra.mxu1 %vm1101_vm3, %v10342_v28  ;;  %v14080_v54 = vadd.f32 %v6341_v44, %v3921_v38  ;;  %v14083_v52 = vadd.f32 %v14020_v1, %v3908_v37  ;;  %v3910_v56 = vmul.f32 %v14001_v3, %v3890_v53  ;;  %v15761_v31 = vld [vmem:[#allocation49_spill] sm:$0xff]  ;;  %v14096_v44 = vpop.f32.mrf.mxu0 }
 0xa1f   : > { %15758 = vst [vmem:[#allocation56_spill] sm:$0xff] %v14071_v29  ;;  %v3891_v10 = vmul.f32 %v15760_v47, %v14055_v23  ;;  %v3819_v18 = vmul.f32 %v14071_v29, %v15761_v31  ;;  %6716 = vperm.xlu1 %10145, %v536_v35   ;;  %v10343_v28 = vld [vmem:[%s15270_s2 + $0x20] sm:$0xff]   ;;  %v3903_v38 = vmul.f32 %v14001_v3, %v3818_v46  ;;  %15762 = vst [vmem:[#allocation63_spill] sm:$0xff] %v14096_v44 }
 0xa20   : > { %15759 = vst [vmem:[#allocation61_spill] sm:$0xff] %v14083_v52  ;;  %9998 = vmatprep.mubr.msk.bf16.mxu1 %vm1101_vm3, %v10343_v28  ;;  %v3922_v37 = vadd.f32 %v14020_v1, %v3902_v19  ;;  %v14098_v53 = vpop.permute.xlu0 %3802  ;;  %v538_v47 = vld [vmem:[%s15273_s5 + $0x1e0] sm:$0xff]  ;;  %v14103_v31 = vadd.f32 %v6338_v14, %v3920_v39  ;;  %v14106_v35 = vadd.f32 %v14020_v1, %v3910_v56  ;;  %v15765_v28 = vld [vmem:[#allocation76_spill] sm:$0xff]  ;;  %v539_v56 = vld [vmem:[%s15273_s5 + $0x1e8] sm:$0xff]  ;;  %v14139_v27 = vpop.f32.mrf.mxu0 }
 0xa21   : > { %15763 = vst [vmem:[#allocation64_spill] sm:$0xff] %v14098_v53  ;;  %v3911_v23 = vmul.f32 %v14001_v3, %v3891_v10  ;;  %v3892_v46 = vmul.f32 %v15765_v28, %v14071_v29  ;;  %v6354_v19 = vadd.f32 %v13631_v60, %v14003_v8  ;;  %v3820_v30 = vmul.f32 %v14098_v53, %v15766_v0 }
 0xa22   : > { %15764 = vst [vmem:[#allocation66_spill] sm:$0xff] %v14106_v35  ;;  %6721 = vperm.xlu0 %10144, %v537_v6   ;;  %v3904_v22 = vmul.f32 %v14001_v3, %v3819_v18  ;;  %v3923_v14 = vadd.f32 %v14020_v1, %v3903_v38  ;;  %v14117_v39 = vpop.permute.xlu1 %3807  ;;  %v14124_v10 = vpack.c.bf16 %v14080_v54, %v14103_v31  ;;  %v15769_v6 = vld [vmem:[#allocation78_spill] sm:$0xff]  ;;  %v15770_v38 = vld [vmem:[#allocation48_spill] sm:$0xff]  ;;  %15771 = vst [vmem:[#allocation62_spill] sm:$0xff] %v14139_v27 }
 0xa23   : > { %15767 = vst [vmem:[#allocation67_spill] sm:$0xff] %v14117_v39  ;;  %v14127_v60 = vadd.f32 %v14020_v1, %v3911_v23  ;;  %v3912_v0 = vmul.f32 %v14001_v3, %v3892_v46  ;;  %v3893_v18 = vmul.f32 %v15769_v6, %v14098_v53  ;;  %v3821_v28 = vmul.f32 %v15770_v38, %v14117_v39  ;;  %v540_v23 = vld [vmem:[%s15273_s5 + $0x1f0] sm:$0xff] }
 0xa24   : > { %6726 = vperm.xlu1 %10145, %v538_v47   ;;  %v3905_v29 = vmul.f32 %v14001_v3, %v3820_v30  ;;  %v14135_v35 = vadd.f32 %v6346_v24, %v3922_v37  ;;  %v14137_v52 = vadd.f32 %v6349_v58, %v3923_v14  ;;  %v14141_v33 = vpop.permute.xlu0 %3812  ;;  %v3924_v46 = vadd.f32 %v14020_v1, %v3904_v22  ;;  %v15774_v30 = vld [vmem:[#allocation75_spill] sm:$0xff]  ;;  %v15775_v37 = vld [vmem:[#allocation50_spill] sm:$0xff] }
 0xa25   : > { %15768 = vst [vmem:[#allocation65_spill] sm:$0xff] %v14127_v60  ;;  %15772 = vst [vmem:[#allocation58_spill] sm:$0xff] %v14141_v33  ;;  %v14148_v6 = vadd.f32 %v14020_v1, %v3912_v0  ;;  %v3913_v47 = vmul.f32 %v14001_v3, %v3893_v18  ;;  %v3894_v24 = vmul.f32 %v15774_v30, %v14117_v39  ;;  %v10344_v0 = vld [vmem:[%s15270_s2 + $0x28] sm:$0xff]   ;;  %v14184_v60 = vpop.f32.mrf.mxu0 }
 0xa26   : > { %v6357_v58 = vadd.f32 %v13637_v45, %v14003_v8  ;;  %v3822_v14 = vmul.f32 %v15775_v37, %v14141_v33  ;;  %6731 = vperm.xlu0 %10144, %v539_v56   ;;  %v3906_v38 = vmul.f32 %v14001_v3, %v3821_v28  ;;  %v3925_v53 = vadd.f32 %v14020_v1, %v3905_v29  ;;  %v14159_v22 = vpop.permute.xlu1 %6426  ;;  %v541_v45 = vld [vmem:[%s15273_s5 + $0x1f8] sm:$0xff]  ;;  %v15778_v28 = vld [vmem:[#allocation77_spill] sm:$0xff]  ;;  %v10345_v37 = vld [vmem:[%s15270_s2 + $0x30] sm:$0xff]  }
 0xa27   : > { %15773 = vst [vmem:[#allocation70_spill] sm:$0xff] %v14148_v6  ;;  %15776 = vst [vmem:[#allocation69_spill] sm:$0xff] %v14159_v22  ;;  %9999 = vmatmul.mubr.msk.bf16.gmra.mxu1 %vm1101_vm3, %v10344_v0  ;;  %v14170_v18 = vpack.c.bf16 %v14137_v52, %v14135_v35  ;;  %v14173_v56 = vadd.f32 %v14020_v1, %v3913_v47  ;;  %v3914_v29 = vmul.f32 %v14001_v3, %v3894_v24  ;;  %v542_v24 = vld [vmem:[%s15273_s5 + $0x200] sm:$0xff] }
 0xa28   : > { %v3895_v30 = vmul.f32 %v15778_v28, %v14141_v33  ;;  %6736 = vperm.xlu1 %10145, %v540_v23   ;;  %10002 = vmatprep.mubr.msk.bf16.mxu1 %vm1101_vm3, %v10345_v37  ;;  %v3907_v0 = vmul.f32 %v14001_v3, %v3822_v14  ;;  %v3926_v39 = vadd.f32 %v14020_v1, %v3906_v38  ;;  %v14186_v47 = vpop.permute.xlu0 %6431 }
 0xa29   : > { %15777 = vst [vmem:[#allocation68_spill] sm:$0xff] %v14173_v56  ;;  %15779 = vst [vmem:[#allocation47_spill] sm:$0xff] %v14184_v60  ;;  %v14191_v28 = vadd.f32 %v6354_v19, %v3924_v46  ;;  %v14193_v23 = vadd.f32 %v6357_v58, %v3925_v53  ;;  %v14196_v33 = vadd.f32 %v14020_v1, %v3914_v29  ;;  %v543_v53 = vld [vmem:[%s15273_s5 + $0x208] sm:$0xff] }
 0xa2a   : > { %v3915_v37 = vmul.f32 %v14001_v3, %v3895_v30  ;;  %v6362_v14 = vadd.f32 %v13651_v36, %v14003_v8  ;;  %v6365_v38 = vadd.f32 %v13661_v34, %v14003_v8  ;;  %6741 = vperm.xlu0 %10144, %v541_v45   ;;  %v3927_v6 = vadd.f32 %v14020_v1, %v3907_v0  ;;  %v14204_v56 = vpop.permute.xlu1 %6436  ;;  %v14218_v34 = vpop.f32.mrf.mxu0  ;;  %v544_v45 = vld [vmem:[%s15273_s5 + $0x210] sm:$0xff] }
 0xa2b   : > { %15780 = vst [vmem:[#allocation74_spill] sm:$0xff] %v14196_v33  ;;  %v7612_v19 = vpack.c.bf16 %v14193_v23, %v14191_v28  ;;  %15782 = vst [vmem:[#allocation72_spill] sm:$0xff] %v14218_v34  ;;  %v10356_v8 = vld [vmem:[%s15270_s2 + $0x70] sm:$0xff]  }
 0xa2c   : > { %v14212_v3 = vadd.f32 %v14020_v1, %v3915_v37  ;;  %6746 = vperm.xlu1 %10145, %v542_v24   ;;  %v14214_v36 = vadd.f32 %v6362_v14, %v3926_v39  ;;  %v14216_v46 = vadd.f32 %v6365_v38, %v3927_v6  ;;  %v14220_v58 = vpop.permute.xlu0 %6441  ;;  %v10346_v1 = vld [vmem:[%s15270_s2 + $0x38] sm:$0xff]   ;;  %v14236_v6 = vpop.f32.mrf.mxu0  ;;  %v546_v24 = vld [vmem:[%s15273_s5 + $0x220] sm:$0xff]  ;;  %v547_v38 = vld [vmem:[%s15273_s5 + $0x228] sm:$0xff] }
 0xa2d   : > { %v545_v39 = vld [vmem:[%s15273_s5 + $0x218] sm:$0xff]  ;;  %15783 = vst [vmem:[#allocation44_spill] sm:$0xff] %v14236_v6  ;;  %v10347_v37 = vld [vmem:[%s15270_s2 + $0x40] sm:$0xff]  }
 0xa2e   : > { %15781 = vst [vmem:[#allocation45_spill] sm:$0xff] %v14212_v3  ;;  %6751 = vperm.xlu0 %10144, %v543_v53   ;;  %v7613_v29 = vpack.c.bf16 %v14216_v46, %v14214_v36  ;;  %v14227_v30 = vpop.permute.xlu1 %6446  ;;  %v14252_v53 = vpop.f32.mrf.mxu0 }
 0xa2f   : > { %10003 = vmatmul.mubr.msk.bf16.gmra.mxu1 %vm1101_vm3, %v10346_v1  ;;  %15785 = vst [vmem:[#allocation46_spill] sm:$0xff] %v14252_v53 }
 0xa30   : > { %6756 = vperm.xlu1 %10145, %v544_v45   ;;  %10062 = vmatprep.subr.bf16.mxu0 %v7613_v29  ;;  %v14238_v0 = vpop.permute.xlu0 %6451 }
 0xa31   : > { %15784 = vst [vmem:[#allocation71_spill] sm:$0xff] %v14238_v0  ;;  %10063 = vmatpush3.bf16.msra.mxu0 %v7613_v29  ;;  %10006 = vmatprep.mubr.msk.bf16.mxu1 %vm1101_vm3, %v10347_v37  ;;  %v548_v29 = vld [vmem:[%s15273_s5 + $0x230] sm:$0xff]  ;;  %v14273_v37 = vpop.f32.mrf.mxu0 }
 0xa32   : > { %6761 = vperm.xlu0 %10144, %v545_v39   ;;  %10064 = vmatprep.subr.bf16.mxu0 %v7612_v19  ;;  %v14247_v14 = vpop.permute.xlu1 %6456  ;;  %v10348_v39 = vld [vmem:[%s15270_s2 + $0x48] sm:$0xff]   ;;  %15787 = vst [vmem:[#allocation49_spill] sm:$0xff] %v14273_v37 }
 0xa34   : > { %6766 = vperm.xlu1 %10145, %v546_v24   ;;  %v14254_v45 = vpop.permute.xlu0 %6461  ;;  %v549_v24 = vld [vmem:[%s15273_s5 + $0x238] sm:$0xff] }
 0xa35   : > { %10065 = vmatpush3.bf16.msra.mxu0 %v7612_v19  ;;  %v10349_v19 = vld [vmem:[%s15270_s2 + $0x50] sm:$0xff]  }
 0xa36   : > { %6771 = vperm.xlu0 %10144, %v547_v38   ;;  %10066 = vmatprep.subr.bf16.mxu0 %v14170_v18  ;;  %v14260_v1 = vpop.permute.xlu1 %6466 }
 0xa37   : > { %15786 = vst [vmem:[#allocation73_spill] sm:$0xff] %v14260_v1  ;;  %10007 = vmatmul.mubr.msk.bf16.gmra.mxu1 %vm1101_vm3, %v10348_v39 }
 0xa38   : > { %6776 = vperm.xlu1 %10145, %v548_v29   ;;  %10010 = vmatprep.mubr.msk.bf16.mxu1 %vm1101_vm3, %v10349_v19  ;;  %v14275_v38 = vpop.permute.xlu0 %6471  ;;  %v14283_v29 = vpop.f32.mrf.mxu0 }
 0xa39   : > { %10067 = vmatpush3.bf16.msra.mxu0 %v14170_v18  ;;  %15788 = vst [vmem:[#allocation76_spill] sm:$0xff] %v14283_v29  ;;  %v10350_v18 = vld [vmem:[%s15270_s2 + $0x58] sm:$0xff]  }
 0xa3a   : > { %6781 = vperm.xlu0 %10144, %v549_v24   ;;  %10068 = vmatprep.subr.bf16.mxu0 %v14124_v10  ;;  %v14279_v39 = vpop.permute.xlu1 %6476  ;;  %v10352_v24 = vld [vmem:[%s15270_s2 + $0x60] sm:$0xff]  }
 0xa3c   : > { %7852 = vrot.lane.b32.xlu1 %v14103_v31, %s15721_s21  ;;  %v14285_v3 = vpop.permute.xlu0 %6481  ;;  %v14301_v31 = vld [vmem:[%s15271_s3 + $0x8] sm:$0xff]  }
 0xa3d   : > { %10069 = vmatpush3.bf16.msra.mxu0 %v14124_v10  ;;  %15789 = vst [vmem:[#allocation51_spill] sm:$0xff] %v14301_v31 }
 0xa3e   : > { %7854 = vrot.lane.b32.xlu0 %v14080_v54, %s15721_s21  ;;  %v14290_v19 = vpop.permute.xlu1 %6486  ;;  %v14305_v54 = vpop.f32.mrf.mxu0 }
 0xa3f   : > { %10011 = vmatmul.mubr.msk.bf16.gmra.mxu1 %vm1101_vm3, %v10350_v18  ;;  %15790 = vst [vmem:[#allocation78_spill] sm:$0xff] %v14305_v54 }
 0xa40   : > { %7856 = vrot.lane.b32.xlu1 %v14135_v35, %s15721_s21  ;;  %10071 = vmatmul.mubr.msk.bf16.vlgmr.msra.gmra.mxu0 %vm1101_vm3, %v14301_v31  ;;  %v14307_v10 = vpop.permute.xlu0 %6491  ;;  %v14316_v35 = vld [vmem:[%s15271_s3 + $0x10] sm:$0xff]   ;;  %v14326_v31 = vpop.f32.mrf.mxu0 }
 0xa41   : > { %15791 = vst [vmem:[#allocation48_spill] sm:$0xff] %v14307_v10  ;;  %10014 = vmatprep.mubr.msk.bf16.mxu1 %vm1101_vm3, %v10352_v24  ;;  %15792 = vst [vmem:[#allocation75_spill] sm:$0xff] %v14316_v35  ;;  %10074 = vmatprep.mubr.msk.bf16.mxu0 %vm1101_vm3, %v14316_v35  ;;  %v10354_v35 = vld [vmem:[%s15270_s2 + $0x68] sm:$0xff]  }
 0xa42   : > { %7858 = vrot.lane.b32.xlu0 %v14137_v52, %s15721_s21  ;;  %v14322_v18 = vpop.permute.xlu1 %6496  ;;  %15793 = vst [vmem:[#allocation50_spill] sm:$0xff] %v14326_v31  ;;  %v14343_v52 = vld [vmem:[%s15271_s3 + $0x18] sm:$0xff]  }
 0xa43   : > { %15795 = vst [vmem:[#allocation82_spill] sm:$0xff] %v14343_v52 }
 0xa44   : > { %7860 = vrot.lane.b32.xlu1 %v14191_v28, %s15721_s21  ;;  %v14328_v33 = vpop.permute.xlu0 %6501  ;;  %v14347_v28 = vpop.f32.mrf.mxu0 }
 0xa45   : > { %15796 = vst [vmem:[#allocation83_spill] sm:$0xff] %v14347_v28  ;;  %v10357_v28 = vld [vmem:[%s15270_s2 + $0x78] sm:$0xff]  }
 0xa46   : > { %7862 = vrot.lane.b32.xlu0 %v14193_v23, %s15721_s21  ;;  %v14332_v24 = vpop.permute.xlu1 %6506 }
 0xa47   : > { %15794 = vst [vmem:[#allocation77_spill] sm:$0xff] %v14332_v24  ;;  %10015 = vmatmul.mubr.msk.bf16.gmra.mxu1 %vm1101_vm3, %v10354_v35  ;;  %v14359_v35 = vpop.f32.mrf.mxu0 }
 0xa48   : > { %7864 = vrot.lane.b32.xlu1 %v14214_v36, %s15721_s21  ;;  %10075 = vmatmul.mubr.msk.bf16.gmra.mxu0 %vm1101_vm3, %v14343_v52  ;;  %v14349_v23 = vpop.permute.xlu0 %6511  ;;  %15798 = vst [vmem:[#allocation85_spill] sm:$0xff] %v14359_v35 }
 0xa49   : > { %15797 = vst [vmem:[#allocation84_spill] sm:$0xff] %v14349_v23  ;;  %10018 = vmatprep.mubr.msk.bf16.mxu1 %vm1101_vm3, %v10356_v8  ;;  %v10358_v8 = vld [vmem:[%s15270_s2 + $0x80] sm:$0xff]  }
 0xa4a   : > { %7866 = vrot.lane.b32.xlu0 %v14216_v46, %s15721_s21  ;;  %v14357_v36 = vpop.permute.xlu1 %6516  ;;  %v14373_v46 = vpop.f32.mrf.mxu0 }
 0xa4b   : > { %15801 = vst [vmem:[#allocation88_spill] sm:$0xff] %v14373_v46 }
 0xa4c   : > { %v14361_v31 = vpop.permute.xlu0 %6521  ;;  %v14379_v27 = vpop.f32.mrf.mxu0 }
 0xa4d   : > { %15799 = vst [vmem:[#allocation86_spill] sm:$0xff] %v14361_v31  ;;  %15804 = vst [vmem:[#allocation91_spill] sm:$0xff] %v14379_v27 }
 0xa4e   : > { %v14363_v52 = vpop.permute.xlu1 %6526  ;;  %v14393_v46 = vpop.f32.mrf.mxu0 }
 0xa4f   : > { %15800 = vst [vmem:[#allocation87_spill] sm:$0xff] %v14363_v52  ;;  %10019 = vmatmul.mubr.msk.bf16.gmra.mxu1 %vm1101_vm3, %v10357_v28  ;;  %v10359_v28 = vld [vmem:[%s15270_s2 + $0x88] sm:$0xff]   ;;  %15807 = vst [vmem:[#allocation94_spill] sm:$0xff] %v14393_v46 }
 0xa50   : > { %10022 = vmatprep.mubr.msk.bf16.mxu1 %vm1101_vm3, %v10358_v8  ;;  %v14375_v34 = vpop.permute.xlu0 %6531  ;;  %v10360_v8 = vld [vmem:[%s15270_s2 + $0x90] sm:$0xff]   ;;  %v14399_v6 = vpop.f32.mrf.mxu0 }
 0xa51   : > { %15802 = vst [vmem:[#allocation89_spill] sm:$0xff] %v14375_v34  ;;  %15810 = vst [vmem:[#allocation97_spill] sm:$0xff] %v14399_v6 }
 0xa52   : > { %v14377_v35 = vpop.permute.xlu1 %6536  ;;  %v14413_v46 = vpop.f32.mrf.mxu0 }
 0xa53   : > { %15803 = vst [vmem:[#allocation90_spill] sm:$0xff] %v14377_v35  ;;  %15813 = vst [vmem:[#allocation100_spill] sm:$0xff] %v14413_v46 }
 0xa54   : > { %v14381_v29 = vpop.permute.xlu0 %6541  ;;  %v14419_v37 = vpop.f32.mrf.mxu0 }
 0xa55   : > { %15805 = vst [vmem:[#allocation92_spill] sm:$0xff] %v14381_v29  ;;  %15816 = vst [vmem:[#allocation103_spill] sm:$0xff] %v14419_v37 }
 0xa56   : > { %v14383_v54 = vpop.permute.xlu1 %6546  ;;  %v14433_v46 = vpop.f32.mrf.mxu0 }
 0xa57   : > { %15806 = vst [vmem:[#allocation93_spill] sm:$0xff] %v14383_v54  ;;  %10023 = vmatmul.mubr.msk.bf16.gmra.mxu1 %vm1101_vm3, %v10359_v28  ;;  %v10361_v28 = vld [vmem:[%s15270_s2 + $0x98] sm:$0xff]   ;;  %15819 = vst [vmem:[#allocation106_spill] sm:$0xff] %v14433_v46 }
 0xa58   : > { %10026 = vmatprep.mubr.msk.bf16.mxu1 %vm1101_vm3, %v10360_v8  ;;  %v14395_v53 = vpop.permute.xlu0 %6551  ;;  %v10362_v8 = vld [vmem:[%s15270_s2 + $0xa0] sm:$0xff]  }
 0xa59   : > { %15808 = vst [vmem:[#allocation95_spill] sm:$0xff] %v14395_v53 }
 0xa5a   : > { %v14397_v27 = vpop.permute.xlu1 %6556 }
 0xa5b   : > { %15809 = vst [vmem:[#allocation96_spill] sm:$0xff] %v14397_v27 }
 0xa5c   : > { %v14401_v60 = vpop.permute.xlu0 %6561 }
 0xa5d   : > { %15811 = vst [vmem:[#allocation98_spill] sm:$0xff] %v14401_v60 }
 0xa5e   : > { %v14403_v51 = vpop.permute.xlu1 %6566 }
 0xa5f   : > { %15812 = vst [vmem:[#allocation99_spill] sm:$0xff] %v14403_v51  ;;  %10027 = vmatmul.mubr.msk.bf16.gmra.mxu1 %vm1101_vm3, %v10361_v28  ;;  %v10363_v28 = vld [vmem:[%s15270_s2 + $0xa8] sm:$0xff]  }
 0xa60   : > { %10030 = vmatprep.mubr.msk.bf16.mxu1 %vm1101_vm3, %v10362_v8  ;;  %v14415_v59 = vpop.permute.xlu0 %6571  ;;  %v10364_v8 = vld [vmem:[%s15270_s2 + $0xb0] sm:$0xff]  }
 0xa61   : > { %15814 = vst [vmem:[#allocation101_spill] sm:$0xff] %v14415_v59 }
 0xa62   : > { %v14417_v6 = vpop.permute.xlu1 %6576 }
 0xa63   : > { %15815 = vst [vmem:[#allocation102_spill] sm:$0xff] %v14417_v6 }
 0xa64   : > { %v14421_v44 = vpop.permute.xlu0 %6581 }
 0xa65   : > { %15817 = vst [vmem:[#allocation104_spill] sm:$0xff] %v14421_v44  ;;  %v14439_v44 = vpop.f32.mrf.mxu0 }
 0xa66   : > { %v14423_v15 = vpop.permute.xlu1 %6586  ;;  %15822 = vst [vmem:[#allocation109_spill] sm:$0xff] %v14439_v44 }
 0xa67   : > { %15818 = vst [vmem:[#allocation105_spill] sm:$0xff] %v14423_v15  ;;  %10031 = vmatmul.mubr.msk.bf16.gmra.mxu1 %vm1101_vm3, %v10363_v28  ;;  %v10365_v28 = vld [vmem:[%s15270_s2 + $0xb8] sm:$0xff]   ;;  %v14453_v46 = vpop.f32.mrf.mxu0 }
 0xa68   : > { %10034 = vmatprep.mubr.msk.bf16.mxu1 %vm1101_vm3, %v10364_v8  ;;  %v14435_v6 = vpop.permute.xlu0 %6591  ;;  %v10366_v8 = vld [vmem:[%s15270_s2 + $0xc0] sm:$0xff]   ;;  %15825 = vst [vmem:[#allocation112_spill] sm:$0xff] %v14453_v46 }
 0xa69   : > { %15820 = vst [vmem:[#allocation107_spill] sm:$0xff] %v14435_v6 }
 0xa6a   : > { %v14437_v37 = vpop.permute.xlu1 %6596 }
 0xa6b   : > { %15821 = vst [vmem:[#allocation108_spill] sm:$0xff] %v14437_v37 }
 0xa6c   : > { %v14441_v43 = vpop.permute.xlu0 %6601 }
 0xa6d   : > { %15823 = vst [vmem:[#allocation110_spill] sm:$0xff] %v14441_v43  ;;  %v14459_v43 = vpop.f32.mrf.mxu0 }
 0xa6e   : > { %v14443_v59 = vpop.permute.xlu1 %6606  ;;  %15828 = vst [vmem:[#allocation115_spill] sm:$0xff] %v14459_v43 }
 0xa6f   : > { %15824 = vst [vmem:[#allocation111_spill] sm:$0xff] %v14443_v59  ;;  %10035 = vmatmul.mubr.msk.bf16.gmra.mxu1 %vm1101_vm3, %v10365_v28  ;;  %v10367_v28 = vld [vmem:[%s15270_s2 + $0xc8] sm:$0xff]   ;;  %v14473_v46 = vpop.f32.mrf.mxu0 }
 0xa70   : > { %10038 = vmatprep.mubr.msk.bf16.mxu1 %vm1101_vm3, %v10366_v8  ;;  %v14455_v6 = vpop.permute.xlu0 %6611  ;;  %v10368_v8 = vld [vmem:[%s15270_s2 + $0xd0] sm:$0xff]   ;;  %15831 = vst [vmem:[#allocation118_spill] sm:$0xff] %v14473_v46 }
 0xa71   : > { %15826 = vst [vmem:[#allocation113_spill] sm:$0xff] %v14455_v6 }
 0xa72   : > { %v14457_v44 = vpop.permute.xlu1 %6616 }
 0xa73   : > { %15827 = vst [vmem:[#allocation114_spill] sm:$0xff] %v14457_v44 }
 0xa74   : > { %v14461_v59 = vpop.permute.xlu0 %6621 }
 0xa75   : > { %15829 = vst [vmem:[#allocation116_spill] sm:$0xff] %v14461_v59  ;;  %v14479_v59 = vpop.f32.mrf.mxu0 }
 0xa76   : > { %v14463_v37 = vpop.permute.xlu1 %6626  ;;  %15834 = vst [vmem:[#allocation121_spill] sm:$0xff] %v14479_v59 }
 0xa77   : > { %15830 = vst [vmem:[#allocation117_spill] sm:$0xff] %v14463_v37  ;;  %10039 = vmatmul.mubr.msk.bf16.gmra.mxu1 %vm1101_vm3, %v10367_v28  ;;  %v10369_v28 = vld [vmem:[%s15270_s2 + $0xd8] sm:$0xff]   ;;  %v14493_v46 = vpop.f32.mrf.mxu0 }
 0xa78   : > { %10042 = vmatprep.mubr.msk.bf16.mxu1 %vm1101_vm3, %v10368_v8  ;;  %v14475_v44 = vpop.permute.xlu0 %6631  ;;  %v10370_v8 = vld [vmem:[%s15270_s2 + $0xe0] sm:$0xff]   ;;  %15837 = vst [vmem:[#allocation124_spill] sm:$0xff] %v14493_v46 }
 0xa79   : > { %15832 = vst [vmem:[#allocation119_spill] sm:$0xff] %v14475_v44 }
 0xa7a   : > { %v14477_v43 = vpop.permute.xlu1 %6636 }
 0xa7b   : > { %15833 = vst [vmem:[#allocation120_spill] sm:$0xff] %v14477_v43 }
 0xa7c   : > { %v14481_v6 = vpop.permute.xlu0 %6641 }
 0xa7d   : > { %15835 = vst [vmem:[#allocation122_spill] sm:$0xff] %v14481_v6  ;;  %v14499_v6 = vpop.f32.mrf.mxu0 }
 0xa7e   : > { %v14483_v37 = vpop.permute.xlu1 %6646  ;;  %15840 = vst [vmem:[#allocation127_spill] sm:$0xff] %v14499_v6 }
 0xa7f   : > { %15836 = vst [vmem:[#allocation123_spill] sm:$0xff] %v14483_v37  ;;  %10043 = vmatmul.mubr.msk.bf16.gmra.mxu1 %vm1101_vm3, %v10369_v28  ;;  %v10371_v28 = vld [vmem:[%s15270_s2 + $0xe8] sm:$0xff]   ;;  %v14513_v46 = vpop.f32.mrf.mxu0 }
 0xa80   : > { %10046 = vmatprep.mubr.msk.bf16.mxu1 %vm1101_vm3, %v10370_v8  ;;  %v14495_v44 = vpop.permute.xlu0 %6651  ;;  %v10372_v8 = vld [vmem:[%s15270_s2 + $0xf0] sm:$0xff]   ;;  %15843 = vst [vmem:[#allocation130_spill] sm:$0xff] %v14513_v46 }
 0xa81   : > { %15838 = vst [vmem:[#allocation125_spill] sm:$0xff] %v14495_v44 }
 0xa82   : > { %v14497_v59 = vpop.permute.xlu1 %6656 }
 0xa83   : > { %15839 = vst [vmem:[#allocation126_spill] sm:$0xff] %v14497_v59 }
 0xa84   : > { %v14501_v37 = vpop.permute.xlu0 %6661 }
 0xa85   : > { %15841 = vst [vmem:[#allocation128_spill] sm:$0xff] %v14501_v37  ;;  %v14519_v37 = vpop.f32.mrf.mxu0 }
 0xa86   : > { %v14503_v43 = vpop.permute.xlu1 %6666  ;;  %15846 = vst [vmem:[#allocation133_spill] sm:$0xff] %v14519_v37  ;;  %v10374_v37 = vld [vmem:[%s15270_s2 + $0x100] sm:$0xff]  }
 0xa87   : > { %15842 = vst [vmem:[#allocation129_spill] sm:$0xff] %v14503_v43  ;;  %10047 = vmatmul.mubr.msk.bf16.gmra.mxu1 %vm1101_vm3, %v10371_v28  ;;  %v6819_v43 = vadd.f32 %v13700_v50, %v14159_v22  ;;  %v6851_v28 = vadd.f32 %v13743_v11, %v14260_v1  ;;  %v14537_v46 = vpop.f32.mrf.mxu0  ;;  %v6822_v11 = vadd.f32 %v13710_v2, %v14186_v47 }
 0xa88   : > { %10050 = vmatprep.mubr.msk.bf16.mxu1 %vm1101_vm3, %v10372_v8  ;;  %v14515_v59 = vpop.permute.xlu0 %6671  ;;  %v10373_v8 = vld [vmem:[%s15270_s2 + $0xf8] sm:$0xff]   ;;  %15849 = vst [vmem:[#allocation136_spill] sm:$0xff] %v14537_v46  ;;  %v6827_v1 = vadd.f32 %v13695_v26, %v14204_v56  ;;  %v6830_v22 = vadd.f32 %v13705_v17, %v14220_v58  ;;  %v6854_v46 = vadd.f32 %v13759_v62, %v14275_v38 }
 0xa89   : > { %15844 = vst [vmem:[#allocation131_spill] sm:$0xff] %v14515_v59  ;;  %v6838_v26 = vadd.f32 %v13730_v63, %v14238_v0  ;;  %v6843_v17 = vadd.f32 %v13715_v25, %v14247_v14  ;;  %v6846_v62 = vadd.f32 %v13725_v5, %v14254_v45  ;;  %v6875_v63 = vadd.f32 %v13767_v21, %v14322_v18  ;;  %v10375_v21 = vld [vmem:[%s15270_s2 + $0x108] sm:$0xff]  }
 0xa8a   : > { %v14517_v6 = vpop.permute.xlu1 %6676  ;;  %v6878_v25 = vadd.f32 %v13783_v13, %v14328_v33  ;;  %v6886_v5 = vadd.f32 %v13829_v41, %v14349_v23  ;;  %v10376_v41 = vld [vmem:[%s15270_s2 + $0x110] sm:$0xff]  }
 0xa8b   : > { %15845 = vst [vmem:[#allocation132_spill] sm:$0xff] %v14517_v6 }
 0xa8c   : > { %v14521_v44 = vpop.permute.xlu0 %6681 }
 0xa8d   : > { %15847 = vst [vmem:[#allocation134_spill] sm:$0xff] %v14521_v44 }
 0xa8e   : > { %v14527_v49 = vpop.permute.xlu1 %6686 }
 0xa8f   : > { %15848 = vst [vmem:[#allocation135_spill] sm:$0xff] %v14527_v49  ;;  %10051 = vmatmul.mubr.msk.bf16.gmra.mxu1 %vm1101_vm3, %v10373_v8  ;;  %v6859_v8 = vadd.f32 %v13735_v48, %v14279_v39  ;;  %v6835_v49 = vadd.f32 %v13720_v12, %v14227_v30  ;;  %v6862_v48 = vadd.f32 %v13751_v40, %v14285_v3 }
 0xa90   : > { %10054 = vmatprep.mubr.msk.bf16.mxu1 %vm1101_vm3, %v10374_v37  ;;  %v14539_v50 = vpop.permute.xlu0 %6691  ;;  %v7105_v37 = vmax.f32 %v6819_v43, %v6851_v28  ;;  %v6867_v12 = vadd.f32 %v13775_v20, %v14290_v19  ;;  %v14565_v43 = vpop.f32.mrf.mxu0  ;;  %v6891_v20 = vadd.f32 %v13799_v7, %v14357_v36  ;;  %v15854_v7 = vld [vmem:[#allocation27_spill] sm:$0xff] }
 0xa91   : > { %15850 = vst [vmem:[#allocation137_spill] sm:$0xff] %v14539_v50  ;;  %v6883_v50 = vadd.f32 %v13809_v57, %v14332_v24  ;;  %v6870_v57 = vadd.f32 %v13791_v32, %v14307_v10  ;;  %v7107_v40 = vmax.f32 %v6827_v1, %v6859_v8  ;;  %v7106_v24 = vmax.f32 %v6822_v11, %v6854_v46 }
 0xa92   : > { %v14555_v2 = vpop.permute.xlu1 %6696  ;;  %v6915_v32 = vadd.f32 %v13897_v55, %v14383_v54  ;;  %v7108_v13 = vmax.f32 %v6830_v22, %v6862_v48  ;;  %v7109_v1 = vmax.f32 %v6835_v49, %v6867_v12  ;;  %v6894_v46 = vadd.f32 %v15854_v7, %v14361_v31  ;;  %v14597_v55 = vpop.f32.mrf.mxu0  ;;  %v15857_v12 = vld [vmem:[#allocation43_spill] sm:$0xff]  ;;  %v15858_v7 = vld [vmem:[#allocation81_spill] sm:$0xff]  ;;  %v15895_v31 = vld [vmem:[#allocation76_spill] sm:$0xff] }
 0xa93   : > { %15851 = vst [vmem:[#allocation138_spill] sm:$0xff] %v14555_v2  ;;  %v7113_v0 = vmax.f32 %v7105_v37, %v6883_v50  ;;  %v15855_v50 = vld [vmem:[#allocation26_spill] sm:$0xff]  ;;  %v7110_v8 = vmax.f32 %v6838_v26, %v6870_v57  ;;  %v7111_v37 = vmax.f32 %v6843_v17, %v6875_v63  ;;  %v7112_v54 = vmax.f32 %v6846_v62, %v6878_v25 }
 0xa94   : > { %v14575_v28 = vpop.permute.xlu0 %6701  ;;  %v6899_v11 = vadd.f32 %v15855_v50, %v14363_v52  ;;  %v6902_v49 = vadd.f32 %v13866_v4, %v14375_v34  ;;  %v7115_v48 = vmax.f32 %v7107_v40, %v6891_v20  ;;  %v6910_v50 = vadd.f32 %v15858_v7, %v14381_v29  ;;  %v15860_v25 = vld [vmem:[#allocation38_spill] sm:$0xff]  ;;  %v14619_v20 = vpop.f32.mrf.mxu0  ;;  %v15863_v7 = vld [vmem:[#allocation108_spill] sm:$0xff] }
 0xa95   : > { %15852 = vst [vmem:[#allocation139_spill] sm:$0xff] %v14575_v28  ;;  %v7114_v52 = vmax.f32 %v7106_v24, %v6886_v5  ;;  %v7121_v23 = vmax.f32 %v7113_v0, %v6915_v32  ;;  %v6918_v26 = vadd.f32 %v13930_v42, %v14395_v53  ;;  %v6947_v4 = vadd.f32 %v14022_v61, %v14423_v15  ;;  %v15861_v0 = vld [vmem:[#allocation101_spill] sm:$0xff]  ;;  %v15862_v24 = vld [vmem:[#allocation79_spill] sm:$0xff] }
 0xa96   : > { %v14583_v10 = vpop.permute.xlu1 %6706  ;;  %v7116_v62 = vmax.f32 %v7108_v13, %v6894_v46  ;;  %v7117_v57 = vmax.f32 %v7109_v1, %v6899_v11  ;;  %v6926_v63 = vadd.f32 %v13918_v9, %v14401_v60  ;;  %v6931_v40 = vadd.f32 %v15860_v25, %v14403_v51  ;;  %v15864_v13 = vld [vmem:[#allocation34_spill] sm:$0xff]  ;;  %v15866_v25 = vld [vmem:[#allocation107_spill] sm:$0xff]  ;;  %v15868_v15 = vld [vmem:[#allocation117_spill] sm:$0xff] }
 0xa97   : > { %15853 = vst [vmem:[#allocation140_spill] sm:$0xff] %v14583_v10  ;;  %10055 = vmatmul.mubr.msk.bf16.gmra.mxu1 %vm1101_vm3, %v10375_v21  ;;  %v6907_v21 = vadd.f32 %v15857_v12, %v14377_v35  ;;  %v6934_v5 = vadd.f32 %v15862_v24, %v15861_v0  ;;  %v7120_v61 = vmax.f32 %v7112_v54, %v6910_v50  ;;  %v14630_v9 = vld [vmem:[%s15277_s9 + $0x8] sm:$0xf]  ;;  %v15869_v24 = vld [vmem:[#allocation49_spill] sm:$0xff]  ;;  %v10377_v54 = vld [vmem:[%s15270_s2 + $0x118] sm:$0xff]  }
 0xa98   : > { %10058 = vmatprep.mubr.msk.bf16.mxu1 %vm1101_vm3, %v10376_v41  ;;  %v14601_v22 = vpop.permute.xlu0 %6711  ;;  %v6923_v41 = vadd.f32 %v13878_v16, %v14397_v27  ;;  %v7118_v16 = vmax.f32 %v7110_v8, %v6902_v49  ;;  %v6955_v1 = vadd.f32 %v15864_v13, %v15863_v7  ;;  %15865 = vst [vmem:[#allocation43_spill] sm:$0xff] %v14630_v9  ;;  %v15867_v8 = vld [vmem:[#allocation63_spill] sm:$0xff]  ;;  %v15872_v50 = vld [vmem:[#allocation22_spill] sm:$0xff]  ;;  %v10378_v13 = vld [vmem:[%s15271_s3] sm:$0xff]  }
 0xa99   : > { %15856 = vst [vmem:[#allocation27_spill] sm:$0xff] %v14601_v22  ;;  %v7119_v32 = vmax.f32 %v7111_v37, %v6907_v21  ;;  %v7122_v46 = vmax.f32 %v7114_v52, %v6918_v26  ;;  %v7129_v11 = vmax.f32 %v7121_v23, %v6947_v4  ;;  %v6950_v49 = vadd.f32 %v15867_v8, %v15866_v25  ;;  %v15871_v21 = vld [vmem:[#allocation102_spill] sm:$0xff]  ;;  %v7077_v4 = vpop.f32.mrf.mxu0  ;;  %v15885_v60 = vld [vmem:[#allocation120_spill] sm:$0xff] }
 0xa9a   : > { %v14613_v17 = vpop.permute.xlu1 %6716  ;;  %v7123_v12 = vmax.f32 %v7115_v48, %v6923_v41  ;;  %v6979_v0 = vadd.f32 %v15869_v24, %v15868_v15  ;;  %v7124_v37 = vmax.f32 %v7116_v62, %v6926_v63  ;;  %v7125_v48 = vmax.f32 %v7117_v57, %v6931_v40  ;;  %v15873_v23 = vld [vmem:[#allocation110_spill] sm:$0xff]  ;;  %v15874_v41 = vld [vmem:[#allocation52_spill] sm:$0xff]  ;;  %v15878_v62 = vld [vmem:[#allocation47_spill] sm:$0xff] }
 0xa9b   : > { %15859 = vst [vmem:[#allocation26_spill] sm:$0xff] %v14613_v17  ;;  %v6939_v52 = vadd.f32 %v15872_v50, %v15871_v21  ;;  %v6958_v26 = vadd.f32 %v15874_v41, %v15873_v23  ;;  %v7126_v8 = vmax.f32 %v7118_v16, %v6934_v5  ;;  %v15875_v24 = vld [vmem:[#allocation104_spill] sm:$0xff]  ;;  %v15879_v63 = vld [vmem:[#allocation113_spill] sm:$0xff]  ;;  %v7130_v5 = vmax.f32 %v7122_v46, %v6950_v49  ;;  %v14678_v46 = vpop.f32.mrf.mxu0 }
 0xa9c   : > { %v15876_v15 = vld [vmem:[#allocation80_spill] sm:$0xff]  ;;  %v15882_v41 = vld [vmem:[#allocation5_spill] sm:$0xff]  ;;  %v7131_v53 = vmax.f32 %v7123_v12, %v6955_v1  ;;  %v7137_v27 = vmax.f32 %v7129_v11, %v6979_v0  ;;  %v15894_v1 = vld [vmem:[#allocation122_spill] sm:$0xff] }
 0xa9d   : > { %v14623_v42 = vpop.permute.xlu0 %6721  ;;  %v6942_v25 = vadd.f32 %v15876_v15, %v15875_v24  ;;  %v15880_v40 = vld [vmem:[#allocation44_spill] sm:$0xff]  ;;  %v15883_v23 = vsub.s32 0, %v15882_v41  ;;  %v15887_v15 = vld [vmem:[#allocation119_spill] sm:$0xff]  ;;  %v15888_v24 = vld [vmem:[#allocation78_spill] sm:$0xff]  ;;  %v7132_v12 = vmax.f32 %v7124_v37, %v6958_v26 }
 0xa9e   : > { %v6966_v50 = vadd.f32 %v15880_v40, %v15879_v63  ;;  %v6982_v34 = vadd.f32 %v15888_v24, %v15887_v15  ;;  %v15892_v63 = vsub.s32 1, %v15882_v41  ;;  %v15896_v24 = vld [vmem:[#allocation114_spill] sm:$0xff]  ;;  %v15900_v41 = vld [vmem:[#allocation72_spill] sm:$0xff]  ;;  %v15902_v37 = vld [vmem:[#allocation83_spill] sm:$0xff] }
 0xa9f   : > { %v14636_v51 = vpop.permute.xlu1 %6726  ;;  %10059 = vmatmul.mubr.msk.bf16.gmra.mxu1 %vm1101_vm3, %v10377_v54  ;;  %v15877_v54 = vld [vmem:[#allocation111_spill] sm:$0xff]  ;;  %v14661_v21 = vrot.slane %v14630_v9, %v15883_v23  ;;  %v7127_v23 = vmax.f32 %v7119_v32, %v6939_v52  ;;  %v7128_v0 = vmax.f32 %v7120_v61, %v6942_v25  ;;  %v15904_v25 = vld [vmem:[#allocation100_spill] sm:$0xff] }
 0xaa0   : > { %15870 = vst [vmem:[#allocation81_spill] sm:$0xff] %v14636_v51  ;;  %10086 = vmatprep.mubr.msk.bf16.mxu1 %vm1101_vm3, %v10378_v13  ;;  %v6963_v57 = vadd.f32 %v15878_v62, %v15877_v54  ;;  %v15886_v13 = vld [vmem:[#allocation46_spill] sm:$0xff]  ;;  %v15889_v62 = vld [vmem:[#allocation129_spill] sm:$0xff]  ;;  %v14674_v35 = vrot.slane %v14630_v9, %v15892_v63  ;;  %v14680_v49 = vmax.f32 %v7126_v8, %v6966_v50  ;;  %v15901_v32 = vld [vmem:[#allocation123_spill] sm:$0xff] }
 0xaa1   : > { %v14656_v7 = vpop.permute.xlu0 %6731  ;;  %15884 = vst [vmem:[#allocation79_spill] sm:$0xff] %v14661_v21  ;;  %v6987_v16 = vadd.f32 %v15886_v13, %v15885_v60  ;;  %v15890_v54 = vld [vmem:[#allocation94_spill] sm:$0xff]  ;;  %v6990_v13 = vadd.f32 %v15895_v31, %v15894_v1  ;;  %v15899_v60 = vld [vmem:[#allocation116_spill] sm:$0xff]  ;;  %v6995_v52 = vadd.f32 %v15902_v37, %v15901_v32  ;;  %v15903_v31 = vld [vmem:[#allocation91_spill] sm:$0xff]  ;;  %v7138_v1 = vmax.f32 %v7130_v5, %v6982_v34  ;;  %v7090_v34 = vpop.f32.mrf.mxu0 }
 0xaa2   : > { %15881 = vst [vmem:[#allocation38_spill] sm:$0xff] %v14656_v7  ;;  %v7011_v29 = vadd.f32 %v15890_v54, %v15889_v62  ;;  %15893 = vst [vmem:[#allocation63_spill] sm:$0xff] %v14674_v35  ;;  %v7133_v11 = vmax.f32 %v7125_v48, %v6963_v57  ;;  %v15897_v54 = vld [vmem:[#allocation62_spill] sm:$0xff]  ;;  %v6974_v63 = vadd.f32 %v15900_v41, %v15899_v60  ;;  %v15908_v41 = vld [vmem:[#allocation88_spill] sm:$0xff] }
 0xaa3   : > { %v14669_v40 = vpop.permute.xlu1 %6736  ;;  %v6971_v62 = vadd.f32 %v15897_v54, %v15896_v24  ;;  %v7139_v9 = vmax.f32 %v7131_v53, %v6987_v16  ;;  %v7019_v26 = vadd.f32 %v15903_v31, %v14517_v6  ;;  %v7014_v48 = vadd.f32 %v15904_v25, %v14515_v59  ;;  %v15905_v8 = vld [vmem:[#allocation118_spill] sm:$0xff]  ;;  %v15907_v24 = vld [vmem:[#allocation125_spill] sm:$0xff]  ;;  %v15910_v32 = vld [vmem:[#allocation115_spill] sm:$0xff] }
 0xaa4   : > { %15891 = vst [vmem:[#allocation34_spill] sm:$0xff] %v14669_v40  ;;  %v7145_v61 = vmax.f32 %v7137_v27, %v7011_v29  ;;  %v7043_v57 = vadd.f32 %v15905_v8, %v14583_v10  ;;  %v7140_v54 = vmax.f32 %v7132_v12, %v6990_v13  ;;  %v6998_v53 = vadd.f32 %v15908_v41, %v15907_v24  ;;  %v15909_v16 = vld [vmem:[#allocation97_spill] sm:$0xff]  ;;  %v15911_v29 = vld [vmem:[#allocation126_spill] sm:$0xff]  ;;  %v15913_v59 = vld [vmem:[#allocation124_spill] sm:$0xff] }
 0xaa5   : > { %v14684_v15 = vpop.permute.xlu0 %6741  ;;  %v7022_v37 = vadd.f32 %v15909_v16, %v14521_v44  ;;  %v7051_v31 = vadd.f32 %v15910_v32, %v14613_v17  ;;  %v7135_v27 = vmax.f32 %v7127_v23, %v6971_v62  ;;  %v15912_v5 = vld [vmem:[#allocation50_spill] sm:$0xff]  ;;  %v7046_v8 = vadd.f32 %v15913_v59, %v14601_v22  ;;  %v15915_v16 = vld [vmem:[#allocation121_spill] sm:$0xff]  ;;  %v15916_v32 = vld [vmem:[#allocation128_spill] sm:$0xff] }
 0xaa6   : > { %15898 = vst [vmem:[#allocation49_spill] sm:$0xff] %v14684_v15  ;;  %v7003_v25 = vadd.f32 %v15912_v5, %v15911_v29  ;;  %v7136_v41 = vmax.f32 %v7128_v0, %v6974_v63  ;;  %v7141_v24 = vmax.f32 %v7133_v11, %v6995_v52  ;;  %v7147_v10 = vmax.f32 %v7139_v9, %v7019_v26  ;;  %v15917_v17 = vld [vmem:[#allocation85_spill] sm:$0xff]  ;;  %v9981_v9 = vpop.f32.mrf.mxu0  ;;  %v15918_v63 = vld [vmem:[#allocation135_spill] sm:$0xff]  ;;  %v15919_v52 = vld [vmem:[#allocation106_spill] sm:$0xff] }
 0xaa7   : > { %v14696_v50 = vpop.permute.xlu1 %6746  ;;  %v7054_v44 = vadd.f32 %v15915_v16, %v14623_v42  ;;  %v7006_v62 = vadd.f32 %v15917_v17, %v15916_v32  ;;  %v7146_v23 = vmax.f32 %v7138_v1, %v7014_v48  ;;  %v7153_v6 = vmax.f32 %v7145_v61, %v7043_v57  ;;  %v16002_v22 = vld [vmem:[#allocation120_spill] sm:$0xff] }
 0xaa8   : > { %15906 = vst [vmem:[#allocation22_spill] sm:$0xff] %v14696_v50  ;;  %v7075_v12 = vadd.f32 %v14597_v55, %v14696_v50  ;;  %v7142_v59 = vmax.f32 %v14680_v49, %v6998_v53  ;;  %v7148_v55 = vmax.f32 %v7140_v54, %v7022_v37  ;;  %v7155_v50 = vmax.f32 %v7147_v10, %v7051_v31  ;;  %v15923_v54 = vld [vmem:[#allocation112_spill] sm:$0xff]  ;;  %v15924_v37 = vld [vmem:[#allocation130_spill] sm:$0xff] }
 0xaa9   : > { %v14710_v13 = vpop.permute.xlu0 %6751  ;;  %v7143_v11 = vmax.f32 %v7135_v27, %v7003_v25  ;;  %v7027_v26 = vadd.f32 %v15919_v52, %v15918_v63  ;;  %v7154_v16 = vmax.f32 %v7146_v23, %v7046_v8  ;;  %v7144_v57 = vmax.f32 %v7136_v41, %v7006_v62  ;;  %v15926_v25 = vld [vmem:[#allocation109_spill] sm:$0xff]  ;;  %v15928_v62 = vld [vmem:[#allocation136_spill] sm:$0xff] }
 0xaaa   : > { %15914 = vst [vmem:[#allocation52_spill] sm:$0xff] %v14710_v13  ;;  %v7078_v5 = vadd.f32 %v7077_v4, %v14710_v13  ;;  %v7161_v17 = vmax.f32 %v7153_v6, %v7075_v12  ;;  %v15921_v4 = vld [vmem:[#allocation103_spill] sm:$0xff]  ;;  %v7156_v48 = vmax.f32 %v7148_v55, %v7054_v44  ;;  %v7059_v31 = vadd.f32 %v15924_v37, %v14636_v51  ;;  %v15999_v51 = vld [vmem:[#allocation114_spill] sm:$0xff] }
 0xaab   : > { %v14717_v29 = vpop.permute.xlu1 %6756  ;;  %v7035_v61 = vadd.f32 %v15921_v4, %v14555_v2  ;;  %v7038_v8 = vadd.f32 %v15926_v25, %v14575_v28  ;;  %v15927_v12 = vld [vmem:[#allocation127_spill] sm:$0xff]  ;;  %v7149_v41 = vmax.f32 %v7141_v24, %v7027_v26  ;;  %v7062_v55 = vadd.f32 %v15928_v62, %v14656_v7  ;;  %v15930_v4 = vld [vmem:[#allocation133_spill] sm:$0xff] }
 0xaac   : > { %v7083_v0 = vadd.f32 %v14565_v43, %v14717_v29  ;;  %v15922_v43 = vld [vmem:[#allocation137_spill] sm:$0xff]  ;;  %v7162_v27 = vmax.f32 %v7154_v16, %v7078_v5  ;;  %v7067_v44 = vadd.f32 %v15927_v12, %v14669_v40 }
 0xaad   : > { %v14724_v1 = vpop.permute.xlu0 %6761  ;;  %v7030_v53 = vadd.f32 %v15923_v54, %v15922_v43  ;;  %v7151_v16 = vmax.f32 %v7143_v11, %v7035_v61  ;;  %v7070_v54 = vadd.f32 %v15930_v4, %v14684_v15  ;;  %v15934_v62 = vld [vmem:[#allocation9_spill] sm:$0xff]  ;;  %v15997_v43 = vld [vmem:[#allocation110_spill] sm:$0xff] }
 0xaae   : > { %15920 = vst [vmem:[#allocation80_spill] sm:$0xff] %v14724_v1  ;;  %v7163_v49 = vmax.f32 %v7155_v50, %v7083_v0  ;;  %v7086_v10 = vadd.f32 %v14619_v20, %v14724_v1  ;;  %v7093_v20 = vpop.f32.mrf.mxu0  ;;  %v7558_v0 = vmul.f32 %v14661_v21, %v7161_v17  ;;  %v7559_v24 = vmul.f32 %v14661_v21, %v7162_v27 }
 0xaaf   : > { %v14734_v6 = vpop.permute.xlu1 %6766  ;;  %v7152_v17 = vmax.f32 %v7144_v57, %v7038_v8 }
 0xab0   : > { %15925 = vst [vmem:[#allocation47_spill] sm:$0xff] %v14734_v6  ;;  %v7560_v50 = vmul.f32 %v14661_v21, %v7163_v49  ;;  %v7164_v23 = vmax.f32 %v7156_v48, %v7086_v10  ;;  %v7091_v5 = vadd.f32 %v7090_v34, %v14734_v6  ;;  %v7150_v48 = vmax.f32 %v7142_v59, %v7030_v53  ;;  %v15933_v53 = vld [vmem:[#allocation11_spill] sm:$0xff] }
 0xab1   : > { %v14745_v52 = vpop.permute.xlu0 %6771  ;;  %v7157_v10 = vmax.f32 %v7149_v41, %v7059_v31  ;;  %v7159_v34 = vmax.f32 %v7151_v16, %v7067_v44  ;;  %v7160_v27 = vmax.f32 %v7152_v17, %v7070_v54  ;;  %v7579_v8 = vadd.f32 %v14674_v35, %v7559_v24 }
 0xab2   : > { %15929 = vst [vmem:[#allocation44_spill] sm:$0xff] %v14745_v52  ;;  %v7580_v37 = vadd.f32 %v14674_v35, %v7560_v50  ;;  %v7561_v49 = vmul.f32 %v14661_v21, %v7164_v23  ;;  %v7094_v26 = vadd.f32 %v7093_v20, %v14745_v52  ;;  %v7158_v61 = vmax.f32 %v7150_v48, %v7062_v55 }
 0xab3   : > { %v14753_v25 = vpop.permute.xlu1 %6776  ;;  %v7578_v50 = vadd.f32 %v14674_v35, %v7558_v0  ;;  %v7165_v23 = vmax.f32 %v7157_v10, %v7091_v5 }
 0xab4   : > { %15931 = vst [vmem:[#allocation46_spill] sm:$0xff] %v14753_v25  ;;  %v7581_v12 = vadd.f32 %v14674_v35, %v7561_v49  ;;  %v7099_v11 = vadd.f32 %v14678_v46, %v14753_v25  ;;  %v7596_v31 = vadd.f32 %v7580_v37, %v15933_v53  ;;  %v7166_v44 = vmax.f32 %v7158_v61, %v7094_v26  ;;  %v15936_v49 = vld [vmem:[#allocation13_spill] sm:$0xff]  ;;  %v15938_v53 = vld [vmem:[#allocation6_spill] sm:$0xff] }
 0xab5   : > { %v14759_v59 = vpop.permute.xlu0 %6781  ;;  %v6369_v57 = vpop.f32.mrf.mxu1  ;;  %v7562_v4 = vmul.f32 %v14661_v21, %v7165_v23  ;;  %v7594_v48 = vadd.f32 %v7578_v50, %v15936_v49  ;;  %v15996_v25 = vld [vmem:[#allocation105_spill] sm:$0xff] }
 0xab6   : > { %15932 = vst [vmem:[#allocation78_spill] sm:$0xff] %v14759_v59  ;;  %v7167_v20 = vmax.f32 %v7159_v34, %v7099_v11  ;;  %v7102_v41 = vadd.f32 %v9981_v9, %v14759_v59  ;;  %7937 = vrot.lane.b32.xlu1 %v7596_v31, %s15722_s25  ;;  %v7597_v55 = vadd.f32 %v7581_v12, %v15934_v62  ;;  %v15935_v9 = vld [vmem:[#allocation53_spill] sm:$0xff]  ;;  %v15937_v11 = vld [vmem:[#allocation12_spill] sm:$0xff] }
 0xab7   : > { %v7853_v46 = vpop.permute.xlu1 %7852  ;;  %v6371_v16 = vpop.f32.mrf.mxu1  ;;  %v6370_v54 = vadd.f32 %v6369_v57, %v15935_v9  ;;  %v7563_v17 = vmul.f32 %v14661_v21, %v7166_v44  ;;  %v7595_v61 = vadd.f32 %v7579_v8, %v15937_v11  ;;  %v15940_v57 = vld [vmem:[#allocation59_spill] sm:$0xff]  ;;  %v15941_v62 = vld [vmem:[#allocation8_spill] sm:$0xff] }
 0xab8   : > { %v7564_v0 = vmul.f32 %v14661_v21, %v7167_v20  ;;  %v7168_v5 = vmax.f32 %v7160_v27, %v7102_v41  ;;  %7901 = vst.msk [vmem:[%s12654_s11] sm:$0xff] %vm7900_vm9, %v7853_v46  ;;  %7939 = vrot.lane.b32.xlu0 %v7597_v55, %s15722_s25  ;;  %v7582_v27 = vadd.f32 %v14674_v35, %v7562_v4  ;;  %v15939_v20 = vld [vmem:[#allocation61_spill] sm:$0xff] }
 0xab9   : > { %v7855_v37 = vpop.permute.xlu0 %7854  ;;  %v6372_v26 = vpop.f32.mrf.mxu1  ;;  %v14787_v41 = vadd.f32 %v6370_v54, %v15939_v20 }
 0xaba   : > { %v7584_v10 = vadd.f32 %v14674_v35, %v7564_v0  ;;  %v7565_v24 = vmul.f32 %v14661_v21, %v7168_v5  ;;  %7902 = vst.msk [vmem:[%s12654_s11 + $0x8] sm:$0xff] %vm7900_vm9, %v7855_v37  ;;  %v6373_v34 = vadd.f32 %v6372_v26, %v15935_v9  ;;  %7933 = vrot.lane.b32.xlu1 %v7594_v48, %s15722_s25  ;;  %v15942_v37 = vld [vmem:[#allocation7_spill] sm:$0xff] }
 0xabb   : > { %v7857_v12 = vpop.permute.xlu1 %7856  ;;  %v6374_v50 = vpop.f32.mrf.mxu1  ;;  %v7583_v0 = vadd.f32 %v14674_v35, %v7563_v17  ;;  %v7598_v49 = vadd.f32 %v7582_v27, %v15942_v37  ;;  %v15946_v37 = vld [vmem:[#allocation45_spill] sm:$0xff] }
 0xabc   : > { %v7585_v23 = vadd.f32 %v14674_v35, %v7565_v24  ;;  %7903 = vst.msk [vmem:[%s12654_s11 + $0x10] sm:$0xff] %vm7900_vm9, %v7857_v12  ;;  %v7600_v31 = vadd.f32 %v7584_v10, %v15938_v53  ;;  %v14790_v44 = vadd.f32 %v6373_v34, %v15940_v57  ;;  %7935 = vrot.lane.b32.xlu0 %v7595_v61, %s15722_s25  ;;  %v15943_v24 = vld [vmem:[#allocation10_spill] sm:$0xff]  ;;  %v15998_v35 = vld [vmem:[#allocation107_spill] sm:$0xff] }
 0xabd   : > { %v7859_v8 = vpop.permute.xlu0 %7858  ;;  %v6377_v46 = vpop.f32.mrf.mxu1  ;;  %v7599_v26 = vadd.f32 %v7583_v0, %v15943_v24  ;;  %v15944_v0 = vld [vmem:[#allocation68_spill] sm:$0xff] }
 0xabe   : > { %7904 = vst.msk [vmem:[%s12654_s11 + $0x18] sm:$0xff] %vm7900_vm9, %v7859_v8  ;;  %v7601_v55 = vadd.f32 %v7585_v23, %v15941_v62  ;;  %7945 = vrot.lane.b32.xlu1 %v7600_v31, %s15722_s25  ;;  %v7614_v16 = vpack.c.bf16 %v14790_v44, %v14787_v41  ;;  %v6378_v24 = vadd.f32 %v6377_v46, %v15935_v9 }
 0xabf   : > { %v7861_v5 = vpop.permute.xlu1 %7860  ;;  %v6379_v4 = vpop.f32.mrf.mxu1 }
 0xac0   : > { %7905 = vst.msk [vmem:[%s12654_s11 + $0x20] sm:$0xff] %vm7900_vm9, %v7861_v5  ;;  %7947 = vrot.lane.b32.xlu0 %v7601_v55, %s15722_s25  ;;  %v15945_v4 = vld [vmem:[#allocation74_spill] sm:$0xff] }
 0xac1   : > { %v7863_v54 = vpop.permute.xlu0 %7862  ;;  %v6380_v48 = vpop.f32.mrf.mxu1 }
 0xac2   : > { %7906 = vst.msk [vmem:[%s12654_s11 + $0x28] sm:$0xff] %vm7900_vm9, %v7863_v54  ;;  %7941 = vrot.lane.b32.xlu1 %v7598_v49, %s15722_s25  ;;  %v6381_v55 = vadd.f32 %v6380_v48, %v15935_v9  ;;  %v15948_v48 = vld [vmem:[#allocation65_spill] sm:$0xff] }
 0xac3   : > { %v7865_v10 = vpop.permute.xlu1 %7864  ;;  %v6382_v17 = vpop.f32.mrf.mxu1 }
 0xac4   : > { %7907 = vst.msk [vmem:[%s12654_s11 + $0x30] sm:$0xff] %vm7900_vm9, %v7865_v10  ;;  %7943 = vrot.lane.b32.xlu0 %v7599_v26, %s15722_s25  ;;  %v15947_v26 = vld [vmem:[#allocation70_spill] sm:$0xff] }
 0xac5   : > { %v7867_v34 = vpop.permute.xlu0 %7866  ;;  %v6385_v12 = vpop.f32.mrf.mxu1 }
 0xac6   : > { %7908 = vst.msk [vmem:[%s12654_s11 + $0x38] sm:$0xff] %vm7900_vm9, %v7867_v34  ;;  %v6386_v57 = vadd.f32 %v6385_v12, %v15935_v9 }
 0xac7   : > { %v6387_v11 = vpop.f32.mrf.mxu1 }
 0xac8   : > { %v14829_v17 = vadd.f32 %v6386_v57, %v15947_v26  ;;  %v14834_v11 = vadd.f32 %v6381_v55, %v15948_v48  ;;  %v15951_v26 = vld [vmem:[#allocation73_spill] sm:$0xff]  ;;  %v15952_v48 = vld [vmem:[#allocation51_spill] sm:$0xff] }
 0xac9   : > { %v6388_v61 = vpop.f32.mrf.mxu1 }
 0xaca   : > { %v6389_v31 = vadd.f32 %v6388_v61, %v15935_v9 }
 0xacb   : > { %v6390_v23 = vpop.f32.mrf.mxu1 }
 0xacc   : > { %v14819_v5 = vadd.f32 %v6389_v31, %v15944_v0 }
 0xace   : > { %v6393_v50 = vpop.f32.mrf.mxu1  ;;  %v7616_v61 = vpack.c.bf16 %v14819_v5, %v14829_v17 }
 0xacf   : > { %v6394_v27 = vadd.f32 %v6393_v50, %v15935_v9  ;;  %v15949_v50 = vld [vmem:[#allocation66_spill] sm:$0xff] }
 0xad0   : > { %v6395_v53 = vpop.f32.mrf.mxu1 }
 0xad1   : > { %v14822_v54 = vadd.f32 %v6394_v27, %v15945_v4  ;;  %v14839_v53 = vadd.f32 %v6378_v24, %v15949_v50  ;;  %v15950_v4 = vld [vmem:[#allocation69_spill] sm:$0xff]  ;;  %v15953_v50 = vld [vmem:[#allocation75_spill] sm:$0xff] }
 0xad2   : > { %v6396_v20 = vpop.f32.mrf.mxu1 }
 0xad3   : > { %v6397_v8 = vadd.f32 %v6396_v20, %v15935_v9  ;;  %v7615_v46 = vpack.c.bf16 %v14834_v11, %v14839_v53 }
 0xad4   : > { %v6398_v62 = vpop.f32.mrf.mxu1 }
 0xad5   : > { %v14825_v49 = vadd.f32 %v6397_v8, %v15946_v37 }
 0xad6   : > { %v9992_v10 = vpop.f32.mrf.mxu1 }
 0xad7   : > { %v7617_v34 = vpack.c.bf16 %v14825_v49, %v14822_v54  ;;  %v7212_v62 = vadd.f32 %v9992_v10, %v14204_v56 }
 0xad8   : > { %v7203_v12 = vpop.f32.mrf.mxu1 }
 0xad9   : > { %10078 = vmatprep.subr.bf16.mxu1 %v7617_v34  ;;  %v7204_v37 = vadd.f32 %v7203_v12, %v15950_v4 }
 0xada   : > { %v9993_v23 = vpop.f32.mrf.mxu1  ;;  %10079 = vmatpush3.bf16.msra.mxu1 %v7617_v34 }
 0xadb   : > { %10080 = vmatprep.subr.bf16.mxu1 %v7616_v61 }
 0xadc   : > { %v7206_v9 = vpop.f32.mrf.mxu1 }
 0xade   : > { %v9996_v31 = vpop.f32.mrf.mxu1  ;;  %10081 = vmatpush3.bf16.msra.mxu1 %v7616_v61 }
 0xadf   : > { %10082 = vmatprep.subr.bf16.mxu1 %v7615_v46 }
 0xae0   : > { %v7219_v27 = vpop.f32.mrf.mxu1 }
 0xae2   : > { %v9997_v20 = vpop.f32.mrf.mxu1  ;;  %10083 = vmatpush3.bf16.msra.mxu1 %v7615_v46  ;;  %v7215_v46 = vadd.f32 %v9993_v23, %v14220_v58  ;;  %v15954_v23 = vld [vmem:[#allocation82_spill] sm:$0xff] }
 0xae3   : > { %10084 = vmatprep.subr.bf16.mxu1 %v7614_v16 }
 0xae4   : > { %v7222_v57 = vpop.f32.mrf.mxu1 }
 0xae6   : > { %10085 = vmatpush3.bf16.msra.mxu1 %v7614_v16 }
 0xae7   : > { %v10000_v8 = vpop.f32.mrf.mxu1 }
 0xae8   : > { %v7244_v55 = vadd.f32 %v10000_v8, %v14279_v39  ;;  %v7207_v39 = vadd.f32 %v7206_v9, %v14186_v47  ;;  %v7231_v47 = vadd.f32 %v9997_v20, %v14254_v45  ;;  %v15958_v20 = vld [vmem:[#allocation86_spill] sm:$0xff] }
 0xae9   : > { %v7235_v0 = vpop.f32.mrf.mxu1  ;;  %10087 = vmatmul.mubr.msk.bf16.vlgmr.msra.gmra.mxu1 %vm1101_vm3, %v15952_v48  ;;  %v7220_v48 = vadd.f32 %v7219_v27, %v14227_v30 }
 0xaea   : > { %v7492_v24 = vmax.f32 %v7212_v62, %v7244_v55  ;;  %v7236_v34 = vadd.f32 %v7235_v0, %v15951_v26  ;;  %10090 = vmatprep.mubr.msk.bf16.mxu1 %vm1101_vm3, %v15953_v50  ;;  %v7228_v55 = vadd.f32 %v9996_v31, %v14247_v14  ;;  %v15955_v14 = vld [vmem:[#allocation71_spill] sm:$0xff] }
 0xaeb   : > { %v10001_v61 = vpop.f32.mrf.mxu1  ;;  %v7223_v31 = vadd.f32 %v7222_v57, %v15955_v14  ;;  %v15959_v57 = vld [vmem:[#allocation84_spill] sm:$0xff] }
 0xaec   : > { %v7490_v16 = vmax.f32 %v7204_v37, %v7236_v34  ;;  %v7247_v56 = vadd.f32 %v10001_v61, %v14285_v3 }
 0xaed   : > { %v7238_v10 = vpop.f32.mrf.mxu1 }
 0xaee   : > { %v7493_v8 = vmax.f32 %v7215_v46, %v7247_v56  ;;  %v7239_v12 = vadd.f32 %v7238_v10, %v14275_v38  ;;  %v15957_v10 = vld [vmem:[#allocation77_spill] sm:$0xff] }
 0xaef   : > { %v10004_v62 = vpop.f32.mrf.mxu1 }
 0xaf0   : > { %v7491_v0 = vmax.f32 %v7207_v39, %v7239_v12  ;;  %v7260_v4 = vadd.f32 %v10004_v62, %v14322_v18  ;;  %v15956_v18 = vld [vmem:[#allocation48_spill] sm:$0xff] }
 0xaf1   : > { %v7251_v26 = vpop.f32.mrf.mxu1  ;;  %10091 = vmatmul.mubr.msk.bf16.gmra.mxu1 %vm1101_vm3, %v15954_v23  ;;  %v15962_v23 = vld [vmem:[#allocation43_spill] sm:$0xff] }
 0xaf2   : > { %v7496_v50 = vmax.f32 %v7228_v55, %v7260_v4  ;;  %v7252_v58 = vadd.f32 %v7251_v26, %v14290_v19 }
 0xaf3   : > { %v10005_v3 = vpop.f32.mrf.mxu1 }
 0xaf4   : > { %v7494_v9 = vmax.f32 %v7220_v48, %v7252_v58  ;;  %v7263_v38 = vadd.f32 %v10005_v3, %v14328_v33  ;;  %v15960_v48 = vld [vmem:[#allocation5_spill] sm:$0xff]  ;;  %v15964_v3 = vld [vmem:[#allocation90_spill] sm:$0xff] }
 0xaf5   : > { %v7254_v37 = vpop.f32.mrf.mxu1  ;;  %v15961_v58 = vsub.s32 2, %v15960_v48  ;;  %v15966_v14 = vsub.s32 3, %v15960_v48 }
 0xaf6   : > { %v7497_v34 = vmax.f32 %v7231_v47, %v7263_v38  ;;  %v7255_v61 = vadd.f32 %v7254_v37, %v15956_v18 }
 0xaf7   : > { %v10008_v46 = vpop.f32.mrf.mxu1 }
 0xaf8   : > { %v7495_v30 = vmax.f32 %v7223_v31, %v7255_v61  ;;  %v7276_v27 = vadd.f32 %v10008_v46, %v14357_v36  ;;  %v14878_v36 = vrot.slane %v15962_v23, %v15961_v58  ;;  %v15968_v61 = vld [vmem:[#allocation87_spill] sm:$0xff] }
 0xaf9   : > { %v7267_v19 = vpop.f32.mrf.mxu1 }
 0xafa   : > { %v14866_v56 = vmax.f32 %v7492_v24, %v7276_v27  ;;  %v7268_v39 = vadd.f32 %v7267_v19, %v15957_v10  ;;  %15963 = vst [vmem:[#allocation94_spill] sm:$0xff] %v14878_v36 }
 0xafb   : > { %v10009_v12 = vpop.f32.mrf.mxu1 }
 0xafc   : > { %v14869_v45 = vmax.f32 %v7490_v16, %v7268_v39  ;;  %v7279_v33 = vadd.f32 %v10009_v12, %v15958_v20  ;;  %v15965_v16 = vld [vmem:[#allocation54_spill] sm:$0xff]  ;;  %v15970_v20 = vld [vmem:[#allocation92_spill] sm:$0xff] }
 0xafd   : > { %v7270_v62 = vpop.f32.mrf.mxu1 }
 0xafe   : > { %v14872_v55 = vmax.f32 %v7493_v8, %v7279_v33  ;;  %v7271_v4 = vadd.f32 %v7270_v62, %v15959_v57  ;;  %v14887_v8 = vrot.slane %v15962_v23, %v15966_v14  ;;  %v15972_v23 = vld [vmem:[#allocation89_spill] sm:$0xff]  ;;  %v15974_v14 = vld [vmem:[#allocation55_spill] sm:$0xff] }
 0xaff   : > { %v10012_v26 = vpop.f32.mrf.mxu1 }
 0xb00   : > { %v14880_v24 = vmax.f32 %v7491_v0, %v7271_v4  ;;  %v7292_v47 = vadd.f32 %v10012_v26, %v15964_v3  ;;  %v10072_v38 = vpop.f32.mrf.mxu0  ;;  %15967 = vst [vmem:[#allocation76_spill] sm:$0xff] %v14887_v8  ;;  %v15969_v0 = vld [vmem:[#allocation60_spill] sm:$0xff]  ;;  %v15971_v26 = vld [vmem:[#allocation57_spill] sm:$0xff] }
 0xb01   : > { %v7685_v37 = vmul.f32 %v10072_v38, %v15965_v16  ;;  %v7283_v31 = vpop.f32.mrf.mxu1  ;;  %v15973_v38 = vld [vmem:[#allocation23_spill] sm:$0xff] }
 0xb02   : > { %v14889_v18 = vmax.f32 %v7496_v50, %v7292_v47  ;;  %v7284_v46 = vadd.f32 %v7283_v31, %v15968_v61  ;;  %v7652_v27 = vpop.f32.mrf.mxu0 }
 0xb03   : > { %v7770_v19 = vmul.f32 %v14878_v36, %v7685_v37  ;;  %v7683_v10 = vmul.f32 %v7652_v27, %v15969_v0  ;;  %v10013_v39 = vpop.f32.mrf.mxu1 }
 0xb04   : > { %v14894_v12 = vmax.f32 %v7494_v9, %v7284_v46  ;;  %v7295_v33 = vadd.f32 %v10013_v39, %v15970_v20  ;;  %v10073_v62 = vpop.f32.mrf.mxu0 }
 0xb05   : > { %v7790_v57 = vadd.f32 %v14887_v8, %v7770_v19  ;;  %v7768_v4 = vmul.f32 %v14878_v36, %v7683_v10  ;;  %v7686_v50 = vmul.f32 %v10073_v62, %v15971_v26  ;;  %v7286_v48 = vpop.f32.mrf.mxu1  ;;  %v15975_v19 = vld [vmem:[#allocation96_spill] sm:$0xff]  ;;  %v15987_v26 = vld [vmem:[#allocation102_spill] sm:$0xff] }
 0xb06   : > { %v14900_v58 = vmax.f32 %v7497_v34, %v7295_v33  ;;  %v7287_v3 = vadd.f32 %v7286_v48, %v15972_v23  ;;  %v7655_v47 = vpop.f32.mrf.mxu0  ;;  %v15976_v33 = vld [vmem:[#allocation67_spill] sm:$0xff]  ;;  %v15977_v48 = vld [vmem:[#allocation93_spill] sm:$0xff] }
 0xb07   : > { %v7806_v37 = vadd.f32 %v7790_v57, %v15973_v38  ;;  %v7771_v9 = vmul.f32 %v14878_v36, %v7686_v50  ;;  %v7684_v31 = vmul.f32 %v7655_v47, %v15974_v14  ;;  %v10016_v61 = vpop.f32.mrf.mxu1  ;;  %v7788_v46 = vadd.f32 %v14887_v8, %v7768_v4  ;;  %v15978_v23 = vld [vmem:[#allocation25_spill] sm:$0xff] }
 0xb08   : > { %v14907_v27 = vmax.f32 %v7495_v30, %v7287_v3  ;;  %v14910_v10 = vadd.f32 %v10016_v61, %v15975_v19  ;;  %v10076_v39 = vpop.f32.mrf.mxu0  ;;  %v15980_v19 = vld [vmem:[#allocation24_spill] sm:$0xff] }
 0xb09   : > { %v7791_v34 = vadd.f32 %v14887_v8, %v7771_v9  ;;  %v7769_v20 = vmul.f32 %v14878_v36, %v7684_v31  ;;  %v7689_v62 = vmul.f32 %v10076_v39, %v15976_v33  ;;  %v7299_v57 = vpop.f32.mrf.mxu1  ;;  %8018 = vrot.lane.b32.xlu1 %v7806_v37, %s15693_s26  ;;  %v15979_v9 = vld [vmem:[#allocation56_spill] sm:$0xff]  ;;  %v7804_v39 = vadd.f32 %v7788_v46, %v15980_v19  ;;  %v15981_v33 = vld [vmem:[#allocation98_spill] sm:$0xff]  ;;  %v15983_v46 = vld [vmem:[#allocation95_spill] sm:$0xff] }
 0xb0a   : > { %v14919_v4 = vadd.f32 %v7299_v57, %v15977_v48  ;;  %v7668_v30 = vpop.f32.mrf.mxu0  ;;  %v15985_v37 = vld [vmem:[#allocation40_spill] sm:$0xff]  ;;  %v16000_v40 = vmax.f32 %v14866_v56, %v14910_v10 }
 0xb0b   : > { %v7807_v3 = vadd.f32 %v7791_v34, %v15978_v23  ;;  %v7789_v47 = vadd.f32 %v14887_v8, %v7769_v20  ;;  %v7774_v38 = vmul.f32 %v14878_v36, %v7689_v62  ;;  %v7687_v31 = vmul.f32 %v7668_v30, %v15979_v9  ;;  %v10017_v61 = vpop.f32.mrf.mxu1  ;;  %v15982_v23 = vld [vmem:[#allocation58_spill] sm:$0xff]  ;;  %v15986_v9 = vld [vmem:[#allocation64_spill] sm:$0xff] }
 0xb0c   : > { %v14929_v50 = vadd.f32 %v10017_v61, %v15981_v33  ;;  %v10077_v57 = vpop.f32.mrf.mxu0  ;;  %v15984_v61 = vld [vmem:[#allocation39_spill] sm:$0xff]  ;;  %v15991_v62 = vld [vmem:[#allocation104_spill] sm:$0xff] }
 0xb0d   : > { %v7794_v48 = vadd.f32 %v14887_v8, %v7774_v38  ;;  %v7772_v34 = vmul.f32 %v14878_v36, %v7687_v31  ;;  %v7690_v20 = vmul.f32 %v10077_v57, %v15982_v23  ;;  %v7302_v14 = vpop.f32.mrf.mxu1  ;;  %8020 = vrot.lane.b32.xlu0 %v7807_v3, %s15693_s26  ;;  %8014 = vrot.lane.b32.xlu1 %v7804_v39, %s15693_s26  ;;  %v16009_v10 = vld [vmem:[#allocation132_spill] sm:$0xff] }
 0xb0e   : > { %v14938_v30 = vadd.f32 %v7302_v14, %v15983_v46  ;;  %v7671_v33 = vpop.f32.mrf.mxu0  ;;  %v7805_v19 = vadd.f32 %v7789_v47, %v15984_v61  ;;  %v15990_v61 = vld [vmem:[#allocation28_spill] sm:$0xff] }
 0xb0f   : > { %v7810_v38 = vadd.f32 %v7794_v48, %v15985_v37  ;;  %v7775_v31 = vmul.f32 %v14878_v36, %v7690_v20  ;;  %v7688_v57 = vmul.f32 %v7671_v33, %v15986_v9  ;;  %v10020_v23 = vpop.f32.mrf.mxu1  ;;  %v7792_v3 = vadd.f32 %v14887_v8, %v7772_v34  ;;  %v15988_v48 = vld [vmem:[#allocation99_spill] sm:$0xff]  ;;  %v15989_v34 = vld [vmem:[#allocation42_spill] sm:$0xff] }
 0xb10   : > { %v14949_v14 = vadd.f32 %v10020_v23, %v15987_v26 }
 0xb11   : > { %v7795_v39 = vadd.f32 %v14887_v8, %v7775_v31  ;;  %v7773_v46 = vmul.f32 %v14878_v36, %v7688_v57  ;;  %v7315_v47 = vpop.f32.mrf.mxu1  ;;  %8016 = vrot.lane.b32.xlu0 %v7805_v19, %s15693_s26  ;;  %8026 = vrot.lane.b32.xlu1 %v7810_v38, %s15693_s26  ;;  %v7808_v31 = vadd.f32 %v7792_v3, %v15990_v61  ;;  %v15992_v38 = vld [vmem:[#allocation101_spill] sm:$0xff] }
 0xb12   : > { %v14957_v20 = vadd.f32 %v7315_v47, %v15988_v48 }
 0xb13   : > { %v7811_v33 = vadd.f32 %v7795_v39, %v15989_v34  ;;  %v7793_v26 = vadd.f32 %v14887_v8, %v7773_v46  ;;  %v10021_v23 = vpop.f32.mrf.mxu1  ;;  %v15993_v39 = vld [vmem:[#allocation41_spill] sm:$0xff] }
 0xb14   : > { %v14966_v19 = vadd.f32 %v10021_v23, %v15991_v62 }
 0xb15   : > { %v7318_v9 = vpop.f32.mrf.mxu1  ;;  %8028 = vrot.lane.b32.xlu0 %v7811_v33, %s15693_s26  ;;  %8022 = vrot.lane.b32.xlu1 %v7808_v31, %s15693_s26  ;;  %v7809_v46 = vadd.f32 %v7793_v26, %v15993_v39 }
 0xb16   : > { %v14972_v48 = vadd.f32 %v7318_v9, %v15992_v38 }
 0xb17   : > { %v10024_v3 = vpop.f32.mrf.mxu1 }
 0xb19   : > { %v7331_v61 = vpop.f32.mrf.mxu1  ;;  %8024 = vrot.lane.b32.xlu0 %v7809_v46, %s15693_s26  ;;  %7868 = vrot.lane.b32.xlu1 %v14787_v41, %s15721_s21 }
 0xb1a   : > { %v7332_v15 = vadd.f32 %v7331_v61, %v15996_v25 }
 0xb1b   : > { %v10025_v62 = vpop.f32.mrf.mxu1 }
 0xb1c   : > { %v7343_v13 = vadd.f32 %v10025_v62, %v15997_v43  ;;  %v16004_v43 = vld [vmem:[#allocation113_spill] sm:$0xff] }
 0xb1d   : > { %v7334_v33 = vpop.f32.mrf.mxu1  ;;  %7870 = vrot.lane.b32.xlu0 %v14790_v44, %s15721_s21  ;;  %7872 = vrot.lane.b32.xlu1 %v14839_v53, %s15721_s21 }
 0xb1f   : > { %v10028_v9 = vpop.f32.mrf.mxu1 }
 0xb20   : > { %v7356_v1 = vadd.f32 %v10028_v9, %v15999_v51  ;;  %v16006_v9 = vmax.f32 %v14872_v55, %v14929_v50 }
 0xb21   : > { %v7347_v26 = vpop.f32.mrf.mxu1  ;;  %7874 = vrot.lane.b32.xlu0 %v14834_v11, %s15721_s21  ;;  %7876 = vrot.lane.b32.xlu1 %v14829_v17, %s15721_s21 }
 0xb22   : > { %v7517_v56 = vmax.f32 %v16006_v9, %v7343_v13  ;;  %v16014_v13 = vmax.f32 %v14894_v12, %v14957_v20  ;;  %v16020_v20 = vld [vmem:[#allocation140_spill] sm:$0xff] }
 0xb23   : > { %v10029_v41 = vpop.f32.mrf.mxu1 }
 0xb24   : > { %v7359_v61 = vadd.f32 %v10029_v41, %v15899_v60  ;;  %v16010_v60 = vmax.f32 %v14889_v18, %v14949_v14  ;;  %v16012_v41 = vld [vmem:[#allocation126_spill] sm:$0xff]  ;;  %v16017_v18 = vmax.f32 %v14900_v58, %v14966_v19  ;;  %v16018_v14 = vmax.f32 %v14907_v27, %v14972_v48  ;;  %v16021_v58 = vld [vmem:[#allocation131_spill] sm:$0xff] }
 0xb25   : > { %v7350_v23 = vpop.f32.mrf.mxu1  ;;  %7878 = vrot.lane.b32.xlu0 %v14819_v5, %s15721_s21  ;;  %7880 = vrot.lane.b32.xlu1 %v14822_v54, %s15721_s21 }
 0xb26   : > { %v7351_v62 = vadd.f32 %v7350_v23, %v16004_v43 }
 0xb27   : > { %v10032_v44 = vpop.f32.mrf.mxu1 }
 0xb28   : > { %v7938_v53 = vpop.permute.xlu1 %7937  ;;  %v7372_v2 = vadd.f32 %v10032_v44, %v16002_v22  ;;  %v16008_v22 = vld [vmem:[#allocation122_spill] sm:$0xff]  ;;  %v16013_v44 = vld [vmem:[#allocation123_spill] sm:$0xff] }
 0xb29   : > { %v7363_v31 = vpop.f32.mrf.mxu1  ;;  %7882 = vrot.lane.b32.xlu0 %v14825_v49, %s15721_s21  ;;  %7984 = vst.msk [vmem:[%s12654_s11 + $0x10] sm:$0xff] %vm7981_vm10, %v7938_v53  ;;  %s8094_s21 = sshll.u32 %s12654_s11, 4  ;;  %s15222_s21 = int_to_ptr.vmem [resolvable:$true] %s8094_s21 }
 0xb2a   : > { %v7940_v17 = vpop.permute.xlu0 %7939  ;;  %s10379_s12 = scalar_lea.vmem %s15222_s21, 2048  ;;  %p10386_p0 = scmp.lt.s32.totalorder %s15222_s21, %s10384_s27 }
 0xb2b   : > { %v10033_v11 = vpop.f32.mrf.mxu1  ;;  %7985 = vst.msk [vmem:[%s12654_s11 + $0x18] sm:$0xff] %vm7981_vm10, %v7940_v17  ;;  %p10380_p11 = scmp.ne.s32.totalorder %s15222_s21, %s10379_s12  ;;  %p10387_p1 = scmp.lt.s32.totalorder %s10385_s1, %s10379_s12 }
 0xb2c   : > { %v7934_v5 = vpop.permute.xlu1 %7933 }
 0xb2d   : > { %v7366_v38 = vpop.f32.mrf.mxu1  ;;  %7982 = vst.msk [vmem:[%s12654_s11] sm:$0xff] %vm7981_vm10, %v7934_v5  ;;  %p10381_p12 = pnand %p10380_p11, %p10545_p5  ;;  %p10388_p2 = por %p10387_p1, %p10386_p0 }
 0xb2e   : > { %v7936_v54 = vpop.permute.xlu0 %7935 }
 0xb2f   : > { %v10036_v39 = vpop.f32.mrf.mxu1  ;;  %7983 = vst.msk [vmem:[%s12654_s11 + $0x8] sm:$0xff] %vm7981_vm10, %v7936_v54  ;;  %p10382_p13 = pneg %p10381_p12 }
 0xb30   : > { %v7946_v46 = vpop.permute.xlu1 %7945  ;;  %v7388_v23 = vadd.f32 %v10036_v39, %v16012_v41 }
 0xb31   : > { %v7379_v34 = vpop.f32.mrf.mxu1  ;;  %7988 = vst.msk [vmem:[%s12654_s11 + $0x30] sm:$0xff] %vm7981_vm10, %v7946_v46  ;;  %p10389_p3 = pnand %p10388_p2, %p10382_p13 }
 0xb32   : > { %v7948_v49 = vpop.permute.xlu0 %7947 }
 0xb33   : > { %v10037_v53 = vpop.f32.mrf.mxu1  ;;  %7989 = vst.msk [vmem:[%s12654_s11 + $0x38] sm:$0xff] %vm7981_vm10, %v7948_v49  ;;  %v15995_v49 = vld [vmem:[#allocation108_spill] sm:$0xff] }
 0xb34   : > { %v7942_v47 = vpop.permute.xlu1 %7941  ;;  %v7340_v7 = vadd.f32 %v10024_v3, %v15995_v49  ;;  %v16003_v3 = vmax.f32 %v14869_v45, %v14919_v4  ;;  %v16011_v4 = vld [vmem:[#allocation119_spill] sm:$0xff]  ;;  %v16016_v49 = vld [vmem:[#allocation26_spill] sm:$0xff]  ;;  %v7391_v39 = vadd.f32 %v10037_v53, %v15916_v32  ;;  %v16022_v53 = vld [vmem:[#allocation125_spill] sm:$0xff] }
 0xb35   : > { %v7382_v57 = vpop.f32.mrf.mxu1  ;;  %7986 = vst.msk [vmem:[%s12654_s11 + $0x20] sm:$0xff] %vm7981_vm10, %v7942_v47 }
 0xb36   : > { %v7944_v17 = vpop.permute.xlu0 %7943  ;;  %v7516_v28 = vmax.f32 %v16000_v40, %v7340_v7  ;;  %v7514_v25 = vmax.f32 %v16003_v3, %v7332_v15  ;;  %v16007_v7 = vmax.f32 %v14880_v24, %v14938_v30  ;;  %v7520_v15 = vmax.f32 %v16010_v60, %v7356_v1  ;;  %v16015_v30 = vld [vmem:[#allocation129_spill] sm:$0xff] }
 0xb37   : > { %v10040_v37 = vpop.f32.mrf.mxu1  ;;  %7987 = vst.msk [vmem:[%s12654_s11 + $0x28] sm:$0xff] %vm7981_vm10, %v7944_v17  ;;  %v7335_v17 = vadd.f32 %v7334_v33, %v15998_v35  ;;  %v16005_v35 = vld [vmem:[#allocation117_spill] sm:$0xff]  ;;  %v7521_v1 = vmax.f32 %v16017_v18, %v7359_v61 }
 0xb38   : > { %v7364_v33 = vadd.f32 %v7363_v31, %v16005_v35  ;;  %v7404_v45 = vadd.f32 %v10040_v37, %v16009_v10  ;;  %v7380_v31 = vadd.f32 %v7379_v34, %v16013_v44  ;;  %v7524_v50 = vmax.f32 %v7516_v28, %v7372_v2  ;;  %v16019_v2 = vld [vmem:[#allocation134_spill] sm:$0xff] }
 0xb39   : > { %v7395_v5 = vpop.f32.mrf.mxu1  ;;  %v7515_v40 = vmax.f32 %v16007_v7, %v7335_v17  ;;  %v7528_v3 = vmax.f32 %v7520_v15, %v7388_v23  ;;  %v7529_v32 = vmax.f32 %v7521_v1, %v7391_v39  ;;  %v16027_v15 = vld [vmem:[#allocation139_spill] sm:$0xff]  ;;  %v16030_v23 = vld [vmem:[#allocation80_spill] sm:$0xff] }
 0xb3a   : > { %v7522_v34 = vmax.f32 %v7514_v25, %v7364_v33  ;;  %v16023_v33 = vld [vmem:[#allocation138_spill] sm:$0xff] }
 0xb3b   : > { %v10041_v8 = vpop.f32.mrf.mxu1 }
 0xb3c   : > { %v7407_v28 = vadd.f32 %v10041_v8, %v16019_v2  ;;  %v16024_v8 = vld [vmem:[#allocation27_spill] sm:$0xff] }
 0xb3d   : > { %v7398_v0 = vpop.f32.mrf.mxu1 }
 0xb3e   : > { %v7399_v19 = vadd.f32 %v7398_v0, %v16021_v58 }
 0xb3f   : > { %v10044_v54 = vpop.f32.mrf.mxu1 }
 0xb40   : > { %v7420_v9 = vadd.f32 %v10044_v54, %v16023_v33 }
 0xb41   : > { %v7411_v36 = vpop.f32.mrf.mxu1 }
 0xb43   : > { %v10045_v16 = vpop.f32.mrf.mxu1 }
 0xb45   : > { %v15011_v52 = vpop.f32.mrf.mxu1 }
 0xb46   : > { %15994 = vst [vmem:[#allocation62_spill] sm:$0xff] %v15011_v52  ;;  %v16001_v52 = vld [vmem:[#allocation111_spill] sm:$0xff] }
 0xb47   : > { %v10048_v46 = vpop.f32.mrf.mxu1  ;;  %v7348_v63 = vadd.f32 %v7347_v26, %v16001_v52  ;;  %v7375_v52 = vadd.f32 %v10033_v11, %v16008_v22  ;;  %v7367_v26 = vadd.f32 %v7366_v38, %v16011_v4  ;;  %v7396_v11 = vadd.f32 %v7395_v5, %v16015_v30 }
 0xb48   : > { %v7436_v37 = vadd.f32 %v10048_v46, %v16016_v49  ;;  %v15054_v38 = vmax.f32 %v16018_v14, %v7351_v62  ;;  %v7383_v62 = vadd.f32 %v7382_v57, %v16022_v53  ;;  %v16029_v57 = vld [vmem:[#allocation79_spill] sm:$0xff]  ;;  %v16034_v14 = vld [vmem:[#allocation137_spill] sm:$0xff] }
 0xb49   : > { %v7427_v59 = vpop.f32.mrf.mxu1  ;;  %v7518_v24 = vmax.f32 %v16014_v13, %v7348_v63  ;;  %v7525_v12 = vmax.f32 %v7517_v56, %v7375_v52  ;;  %v7532_v63 = vmax.f32 %v7524_v50, %v7404_v45  ;;  %v7523_v46 = vmax.f32 %v7515_v40, %v7367_v26  ;;  %v16025_v52 = vld [vmem:[#allocation22_spill] sm:$0xff]  ;;  %v16026_v45 = vld [vmem:[#allocation135_spill] sm:$0xff] }
 0xb4a   : > { %v7428_v5 = vadd.f32 %v7427_v59, %v16020_v20  ;;  %v7530_v35 = vmax.f32 %v7522_v34, %v7396_v11  ;;  %v7412_v60 = vadd.f32 %v7411_v36, %v16026_v45  ;;  %v7527_v44 = vmax.f32 %v15054_v38, %v7383_v62  ;;  %v16032_v11 = vld [vmem:[#allocation63_spill] sm:$0xff]  ;;  %v16036_v38 = vld [vmem:[#allocation49_spill] sm:$0xff]  ;;  %v16037_v20 = vld [vmem:[#allocation46_spill] sm:$0xff] }
 0xb4b   : > { %v10049_v6 = vpop.f32.mrf.mxu1  ;;  %v7526_v43 = vmax.f32 %v7518_v24, %v7380_v31  ;;  %v7540_v27 = vmax.f32 %v7532_v63, %v7436_v37  ;;  %v7533_v7 = vmax.f32 %v7525_v12, %v7407_v28  ;;  %v7531_v10 = vmax.f32 %v7523_v46, %v7399_v19  ;;  %v16031_v24 = vld [vmem:[#allocation81_spill] sm:$0xff] }
 0xb4c   : > { %v7439_v48 = vadd.f32 %v10049_v6, %v14623_v42  ;;  %v7538_v40 = vmax.f32 %v7530_v35, %v7428_v5  ;;  %v7423_v42 = vadd.f32 %v10045_v16, %v16027_v15  ;;  %v16028_v6 = vld [vmem:[#allocation34_spill] sm:$0xff]  ;;  %v7536_v31 = vmax.f32 %v7528_v3, %v7420_v9 }
 0xb4d   : > { %v7430_v47 = vpop.f32.mrf.mxu1  ;;  %v7534_v18 = vmax.f32 %v7526_v43, %v7412_v60  ;;  %v16035_v34 = vld [vmem:[#allocation62_spill] sm:$0xff]  ;;  %v16039_v43 = vld [vmem:[#allocation17_spill] sm:$0xff] }
 0xb4e   : > { %v7431_v56 = vadd.f32 %v7430_v47, %v16024_v8  ;;  %v7541_v26 = vmax.f32 %v7533_v7, %v7439_v48  ;;  %v7537_v1 = vmax.f32 %v7529_v32, %v7423_v42  ;;  %v7415_v39 = vadd.f32 %v16035_v34, %v16034_v14  ;;  %v16038_v3 = vld [vmem:[#allocation38_spill] sm:$0xff]  ;;  %v16040_v32 = vld [vmem:[#allocation47_spill] sm:$0xff]  ;;  %v16044_v42 = vld [vmem:[#allocation44_spill] sm:$0xff] }
 0xb4f   : > { %v10052_v21 = vpop.f32.mrf.mxu1  ;;  %v16041_v8 = vld [vmem:[#allocation78_spill] sm:$0xff] }
 0xb50   : > { %v7539_v13 = vmax.f32 %v7531_v10, %v7431_v56  ;;  %v7535_v53 = vmax.f32 %v7527_v44, %v7415_v39 }
 0xb51   : > { %v7443_v51 = vpop.f32.mrf.mxu1 }
 0xb52   : > { %v7444_v50 = vadd.f32 %v7443_v51, %v16031_v24 }
 0xb53   : > { %v10053_v55 = vpop.f32.mrf.mxu1 }
 0xb54   : > { %v7455_v2 = vadd.f32 %v10053_v55, %v16036_v38  ;;  %v7542_v46 = vmax.f32 %v7534_v18, %v7444_v50 }
 0xb55   : > { %v7446_v17 = vpop.f32.mrf.mxu1 }
 0xb56   : > { %v7447_v58 = vadd.f32 %v7446_v17, %v16038_v3  ;;  %v7545_v33 = vmax.f32 %v7537_v1, %v7455_v2 }
 0xb57   : > { %v10056_v61 = vpop.f32.mrf.mxu1 }
 0xb58   : > { %v7468_v25 = vadd.f32 %v10056_v61, %v14717_v29  ;;  %v7452_v29 = vadd.f32 %v10052_v21, %v16028_v6  ;;  %v16033_v21 = vld [vmem:[#allocation52_spill] sm:$0xff] }
 0xb59   : > { %v7459_v59 = vpop.f32.mrf.mxu1 }
 0xb5a   : > { %v7548_v22 = vmax.f32 %v7540_v27, %v7468_v25  ;;  %v7460_v0 = vadd.f32 %v7459_v59, %v16025_v52  ;;  %v7544_v12 = vmax.f32 %v7536_v31, %v7452_v29  ;;  %v7543_v59 = vmax.f32 %v7535_v53, %v7447_v58 }
 0xb5b   : > { %v10057_v4 = vpop.f32.mrf.mxu1 }
 0xb5c   : > { %v7568_v41 = vmul.f32 %v16029_v57, %v7548_v22  ;;  %v7546_v54 = vmax.f32 %v7538_v40, %v7460_v0  ;;  %v7471_v47 = vadd.f32 %v10057_v4, %v16030_v23  ;;  %v16042_v22 = vld [vmem:[#allocation18_spill] sm:$0xff]  ;;  %v16043_v0 = vld [vmem:[#allocation20_spill] sm:$0xff]  ;;  %v16046_v23 = vld [vmem:[#allocation21_spill] sm:$0xff] }
 0xb5d   : > { %v7462_v30 = vpop.f32.mrf.mxu1 }
 0xb5e   : > { %v7588_v36 = vadd.f32 %v16032_v11, %v7568_v41  ;;  %v7566_v16 = vmul.f32 %v16029_v57, %v7546_v54  ;;  %v7549_v49 = vmax.f32 %v7541_v26, %v7471_v47  ;;  %v7463_v37 = vadd.f32 %v7462_v30, %v16033_v21  ;;  %v16045_v26 = vld [vmem:[#allocation14_spill] sm:$0xff]  ;;  %v16048_v30 = vld [vmem:[#allocation15_spill] sm:$0xff] }
 0xb5f   : > { %v10060_v63 = vpop.f32.mrf.mxu1 }
 0xb60   : > { %v7569_v28 = vmul.f32 %v16029_v57, %v7549_v49  ;;  %v7547_v51 = vmax.f32 %v7539_v13, %v7463_v37  ;;  %v7484_v5 = vadd.f32 %v10060_v63, %v16037_v20  ;;  %v7586_v19 = vadd.f32 %v16032_v11, %v7566_v16  ;;  %v16047_v13 = vld [vmem:[#allocation16_spill] sm:$0xff]  ;;  %v16049_v16 = vld [vmem:[#allocation19_spill] sm:$0xff] }
 0xb61   : > { %v7475_v61 = vpop.f32.mrf.mxu1  ;;  %v7604_v35 = vadd.f32 %v7588_v36, %v16039_v43  ;;  %v16052_v43 = vld [vmem:[#allocation60_spill] sm:$0xff] }
 0xb62   : > { %v7589_v27 = vadd.f32 %v16032_v11, %v7569_v28  ;;  %v7567_v48 = vmul.f32 %v16029_v57, %v7547_v51  ;;  %v7552_v25 = vmax.f32 %v7544_v12, %v7484_v5  ;;  %v7476_v55 = vadd.f32 %v7475_v61, %v16040_v32 }
 0xb63   : > { %7953 = vrot.lane.b32.xlu1 %v7604_v35, %s15722_s25  ;;  %v10061_v62 = vpop.f32.mrf.mxu1  ;;  %v7602_v10 = vadd.f32 %v7586_v19, %v16043_v0  ;;  %v16051_v19 = vld [vmem:[#allocation94_spill] sm:$0xff] }
 0xb64   : > { %v7572_v9 = vmul.f32 %v16029_v57, %v7552_v25  ;;  %v7550_v17 = vmax.f32 %v7542_v46, %v7476_v55  ;;  %v7487_v56 = vadd.f32 %v10061_v62, %v16041_v8  ;;  %v7587_v7 = vadd.f32 %v16032_v11, %v7567_v48  ;;  %v16050_v46 = vld [vmem:[#allocation54_spill] sm:$0xff]  ;;  %v16053_v48 = vld [vmem:[#allocation76_spill] sm:$0xff]  ;;  %v16054_v55 = vld [vmem:[#allocation57_spill] sm:$0xff] }
 0xb65   : > { %v7478_v40 = vpop.f32.mrf.mxu1  ;;  %v7605_v52 = vadd.f32 %v7589_v27, %v16042_v22  ;;  %v16056_v8 = vld [vmem:[#allocation55_spill] sm:$0xff] }
 0xb66   : > { %v7592_v45 = vadd.f32 %v16032_v11, %v7572_v9  ;;  %v7570_v60 = vmul.f32 %v16029_v57, %v7550_v17  ;;  %v7553_v15 = vmax.f32 %v7545_v33, %v7487_v56  ;;  %v7479_v6 = vadd.f32 %v7478_v40, %v16044_v42  ;;  %v16055_v33 = vld [vmem:[#allocation31_spill] sm:$0xff]  ;;  %v16059_v42 = vld [vmem:[#allocation56_spill] sm:$0xff] }
 0xb67   : > { %7955 = vrot.lane.b32.xlu0 %v7605_v52, %s15722_s25  ;;  %7949 = vrot.lane.b32.xlu1 %v7602_v10, %s15722_s25  ;;  %v7603_v47 = vadd.f32 %v7587_v7, %v16046_v23  ;;  %v16057_v52 = vld [vmem:[#allocation67_spill] sm:$0xff]  ;;  %v16061_v23 = vld [vmem:[#allocation58_spill] sm:$0xff] }
 0xb68   : > { %v7573_v29 = vmul.f32 %v16029_v57, %v7553_v15  ;;  %v7551_v4 = vmax.f32 %v7543_v59, %v7479_v6  ;;  %v7608_v41 = vadd.f32 %v7592_v45, %v16045_v26  ;;  %v7590_v54 = vadd.f32 %v16032_v11, %v7570_v60  ;;  %v16058_v45 = vld [vmem:[#allocation33_spill] sm:$0xff] }
 0xb6a   : > { %v7593_v44 = vadd.f32 %v16032_v11, %v7573_v29  ;;  %v7571_v31 = vmul.f32 %v16029_v57, %v7551_v4  ;;  %v7606_v36 = vadd.f32 %v7590_v54, %v16048_v30  ;;  %v16060_v29 = vld [vmem:[#allocation32_spill] sm:$0xff] }
 0xb6b   : > { %7951 = vrot.lane.b32.xlu0 %v7603_v47, %s15722_s25  ;;  %7961 = vrot.lane.b32.xlu1 %v7608_v41, %s15722_s25 }
 0xb6c   : > { %v7609_v24 = vadd.f32 %v7593_v44, %v16047_v13  ;;  %v7591_v50 = vadd.f32 %v16032_v11, %v7571_v31  ;;  %v16062_v31 = vld [vmem:[#allocation30_spill] sm:$0xff] }
 0xb6e   : > { %v7607_v57 = vadd.f32 %v7591_v50, %v16049_v16  ;;  %v16063_v50 = vld [vmem:[#allocation64_spill] sm:$0xff] }
 0xb6f   : > { %7963 = vrot.lane.b32.xlu0 %v7609_v24, %s15722_s25  ;;  %7957 = vrot.lane.b32.xlu1 %v7606_v36, %s15722_s25  ;;  %v16064_v16 = vld [vmem:[#allocation36_spill] sm:$0xff] }
 0xb73   : > { %7959 = vrot.lane.b32.xlu0 %v7607_v57, %s15722_s25 }
 0xb7b   : > { %v8019_v49 = vpop.permute.xlu1 %8018 }
 0xb7c   : > { %8065 = vst.msk [vmem:[%s12654_s11 + $0x10] sm:$0xff] %vm8062_vm11, %v8019_v49 }
 0xb7f   : > { %v8021_v11 = vpop.permute.xlu0 %8020  ;;  %v8015_v21 = vpop.permute.xlu1 %8014 }
 0xb80   : > { %8066 = vst.msk [vmem:[%s12654_s11 + $0x18] sm:$0xff] %vm8062_vm11, %v8021_v11  ;;  %8063 = vst.msk [vmem:[%s12654_s11] sm:$0xff] %vm8062_vm11, %v8015_v21 }
 0xb83   : > { %v8017_v37 = vpop.permute.xlu0 %8016  ;;  %v8027_v18 = vpop.permute.xlu1 %8026 }
 0xb84   : > { %8064 = vst.msk [vmem:[%s12654_s11 + $0x8] sm:$0xff] %vm8062_vm11, %v8017_v37  ;;  %8069 = vst.msk [vmem:[%s12654_s11 + $0x30] sm:$0xff] %vm8062_vm11, %v8027_v18  ;;  %v16065_v37 = vld [vmem:[#allocation35_spill] sm:$0xff] }
 0xb87   : > { %v8029_v1 = vpop.permute.xlu0 %8028  ;;  %v8023_v14 = vpop.permute.xlu1 %8022 }
 0xb88   : > { %8070 = vst.msk [vmem:[%s12654_s11 + $0x38] sm:$0xff] %vm8062_vm11, %v8029_v1  ;;  %8067 = vst.msk [vmem:[%s12654_s11 + $0x20] sm:$0xff] %vm8062_vm11, %v8023_v14  ;;  %v16066_v14 = vld [vmem:[#allocation29_spill] sm:$0xff] }
 0xb8b   : > { %v8025_v34 = vpop.permute.xlu0 %8024  ;;  %v7869_v39 = vpop.permute.xlu1 %7868 }
 0xb8c   : > { %8068 = vst.msk [vmem:[%s12654_s11 + $0x28] sm:$0xff] %vm8062_vm11, %v8025_v34 }
 0xb8d   : > { %7909 = vst.msk [vmem:[%s12654_s11 + $0x40] sm:$0xff] %vm7900_vm9, %v7869_v39  ;;  %v16067_v39 = vld [vmem:[#allocation37_spill] sm:$0xff] }
 0xb8f   : > { %v7871_v12 = vpop.permute.xlu0 %7870  ;;  %v7873_v63 = vpop.permute.xlu1 %7872 }
 0xb90   : > { %7910 = vst.msk [vmem:[%s12654_s11 + $0x48] sm:$0xff] %vm7900_vm9, %v7871_v12  ;;  %7911 = vst.msk [vmem:[%s12654_s11 + $0x50] sm:$0xff] %vm7900_vm9, %v7873_v63 }
 0xb93   : > { %v7875_v38 = vpop.permute.xlu0 %7874  ;;  %v7877_v2 = vpop.permute.xlu1 %7876 }
 0xb94   : > { %7912 = vst.msk [vmem:[%s12654_s11 + $0x58] sm:$0xff] %vm7900_vm9, %v7875_v38  ;;  %7913 = vst.msk [vmem:[%s12654_s11 + $0x60] sm:$0xff] %vm7900_vm9, %v7877_v2 }
 0xb97   : > { %v7879_v28 = vpop.permute.xlu0 %7878  ;;  %v7881_v51 = vpop.permute.xlu1 %7880 }
 0xb98   : > { %7914 = vst.msk [vmem:[%s12654_s11 + $0x68] sm:$0xff] %vm7900_vm9, %v7879_v28  ;;  %7915 = vst.msk [vmem:[%s12654_s11 + $0x70] sm:$0xff] %vm7900_vm9, %v7881_v51 }
 0xb9b   : > { %v7883_v20 = vpop.permute.xlu0 %7882 }
 0xb9c   : > { %7916 = vst.msk [vmem:[%s12654_s11 + $0x78] sm:$0xff] %vm7900_vm9, %v7883_v20 }
 0xba9   : > { %v10088_v5 = vpop.f32.mrf.mxu1 }
 0xbaa   : > { %v7758_v3 = vmul.f32 %v10088_v5, %v16050_v46 }
 0xbab   : > { %v7725_v58 = vpop.f32.mrf.mxu1 }
 0xbac   : > { %v7778_v61 = vmul.f32 %v16051_v19, %v7758_v3  ;;  %v7756_v35 = vmul.f32 %v7725_v58, %v16052_v43 }
 0xbad   : > { %v10089_v27 = vpop.f32.mrf.mxu1 }
 0xbae   : > { %v7798_v25 = vadd.f32 %v16053_v48, %v7778_v61  ;;  %v7776_v32 = vmul.f32 %v16051_v19, %v7756_v35  ;;  %v7759_v53 = vmul.f32 %v10089_v27, %v16054_v55 }
 0xbaf   : > { %v7728_v62 = vpop.f32.mrf.mxu1 }
 0xbb0   : > { %v7814_v9 = vadd.f32 %v7798_v25, %v16055_v33  ;;  %v7779_v17 = vmul.f32 %v16051_v19, %v7759_v53  ;;  %v7757_v56 = vmul.f32 %v7728_v62, %v16056_v8  ;;  %v7796_v59 = vadd.f32 %v16053_v48, %v7776_v32 }
 0xbb1   : > { %v10092_v7 = vpop.f32.mrf.mxu1 }
 0xbb2   : > { %v7799_v40 = vadd.f32 %v16053_v48, %v7779_v17  ;;  %v7777_v22 = vmul.f32 %v16051_v19, %v7757_v56  ;;  %v7762_v0 = vmul.f32 %v10092_v7, %v16057_v52  ;;  %8034 = vrot.lane.b32.xlu1 %v7814_v9, %s15693_s26  ;;  %v7812_v4 = vadd.f32 %v7796_v59, %v16060_v29 }
 0xbb3   : > { %v7741_v10 = vpop.f32.mrf.mxu1 }
 0xbb4   : > { %v7815_v60 = vadd.f32 %v7799_v40, %v16058_v45  ;;  %v7797_v15 = vadd.f32 %v16053_v48, %v7777_v22  ;;  %v7760_v6 = vmul.f32 %v7741_v10, %v16059_v42  ;;  %v7782_v41 = vmul.f32 %v16051_v19, %v7762_v0 }
 0xbb5   : > { %v10093_v26 = vpop.f32.mrf.mxu1 }
 0xbb6   : > { %v7780_v54 = vmul.f32 %v16051_v19, %v7760_v6  ;;  %v7763_v47 = vmul.f32 %v10093_v26, %v16061_v23  ;;  %8036 = vrot.lane.b32.xlu0 %v7815_v60, %s15693_s26  ;;  %8030 = vrot.lane.b32.xlu1 %v7812_v4, %s15693_s26  ;;  %v7813_v13 = vadd.f32 %v7797_v15, %v16062_v31 }
 0xbb7   : > { %v7744_v44 = vpop.f32.mrf.mxu1  ;;  %v7802_v36 = vadd.f32 %v16053_v48, %v7782_v41 }
 0xbb8   : > { %v7800_v24 = vadd.f32 %v16053_v48, %v7780_v54  ;;  %v7761_v30 = vmul.f32 %v7744_v44, %v16063_v50  ;;  %v7783_v49 = vmul.f32 %v16051_v19, %v7763_v47 }
 0xbb9   : > { %v7818_v18 = vadd.f32 %v7802_v36, %v16065_v37 }
 0xbba   : > { %v7816_v57 = vadd.f32 %v7800_v24, %v16064_v16  ;;  %v7781_v11 = vmul.f32 %v16051_v19, %v7761_v30  ;;  %8032 = vrot.lane.b32.xlu0 %v7813_v13, %s15693_s26  ;;  %v7803_v1 = vadd.f32 %v16053_v48, %v7783_v49 }
 0xbbc   : > { %v7801_v21 = vadd.f32 %v16053_v48, %v7781_v11  ;;  %8038 = vrot.lane.b32.xlu1 %v7816_v57, %s15693_s26  ;;  %v7819_v12 = vadd.f32 %v7803_v1, %v16067_v39 }
 0xbbe   : > { %v7817_v34 = vadd.f32 %v7801_v21, %v16066_v14 }
 0xbc0   : > { %8040 = vrot.lane.b32.xlu0 %v7817_v34, %s15693_s26  ;;  %8042 = vrot.lane.b32.xlu1 %v7818_v18, %s15693_s26 }
 0xbc4   : > { %8044 = vrot.lane.b32.xlu0 %v7819_v12, %s15693_s26  ;;  %s8743_s26 = sshll.u32 %s10528_s17, 11  ;;  %s16068_s17 = sand.u32 1, %s10431_s14  }
 0xbc5   : > { %s15220_s30 = scalar_lea.hbm %s15278_s10, %s8743_s26  ;;  %s15228_s29 = scalar_lea.sflag [#allocation3], %s16068_s17 }
 0xbd5   : > { %v7954_v63 = vpop.permute.xlu1 %7953 }
 0xbd6   : > { %7992 = vst.msk [vmem:[%s12654_s11 + $0x50] sm:$0xff] %vm7981_vm10, %v7954_v63 }
 0xbd9   : > { %v7956_v38 = vpop.permute.xlu0 %7955  ;;  %v7950_v2 = vpop.permute.xlu1 %7949 }
 0xbda   : > { %7993 = vst.msk [vmem:[%s12654_s11 + $0x58] sm:$0xff] %vm7981_vm10, %v7956_v38  ;;  %7990 = vst.msk [vmem:[%s12654_s11 + $0x40] sm:$0xff] %vm7981_vm10, %v7950_v2 }
 0xbdd   : > { %v7952_v28 = vpop.permute.xlu0 %7951  ;;  %v7962_v51 = vpop.permute.xlu1 %7961 }
 0xbde   : > { %7991 = vst.msk [vmem:[%s12654_s11 + $0x48] sm:$0xff] %vm7981_vm10, %v7952_v28  ;;  %7996 = vst.msk [vmem:[%s12654_s11 + $0x70] sm:$0xff] %vm7981_vm10, %v7962_v51 }
 0xbe1   : > { %v7964_v20 = vpop.permute.xlu0 %7963  ;;  %v7958_v5 = vpop.permute.xlu1 %7957 }
 0xbe2   : > { %7997 = vst.msk [vmem:[%s12654_s11 + $0x78] sm:$0xff] %vm7981_vm10, %v7964_v20  ;;  %7994 = vst.msk [vmem:[%s12654_s11 + $0x60] sm:$0xff] %vm7981_vm10, %v7958_v5 }
 0xbe5   : > { %v7960_v46 = vpop.permute.xlu0 %7959 }
 0xbe6   : > { %7995 = vst.msk [vmem:[%s12654_s11 + $0x68] sm:$0xff] %vm7981_vm10, %v7960_v46 }
 0xc24   : > { %v8035_v3 = vpop.permute.xlu1 %8034 }
 0xc25   : > { %8073 = vst.msk [vmem:[%s12654_s11 + $0x50] sm:$0xff] %vm8062_vm11, %v8035_v3 }
 0xc28   : > { %v8037_v58 = vpop.permute.xlu0 %8036  ;;  %v8031_v19 = vpop.permute.xlu1 %8030 }
 0xc29   : > { %8074 = vst.msk [vmem:[%s12654_s11 + $0x58] sm:$0xff] %vm8062_vm11, %v8037_v58  ;;  %8071 = vst.msk [vmem:[%s12654_s11 + $0x40] sm:$0xff] %vm8062_vm11, %v8031_v19 }
 0xc2c   : > { %v8033_v61 = vpop.permute.xlu0 %8032 }
 0xc2d   : > { %8072 = vst.msk [vmem:[%s12654_s11 + $0x48] sm:$0xff] %vm8062_vm11, %v8033_v61 }
 0xc2e   : > { %v8039_v43 = vpop.permute.xlu1 %8038 }
 0xc2f   : > { %8075 = vst.msk [vmem:[%s12654_s11 + $0x60] sm:$0xff] %vm8062_vm11, %v8039_v43 }
 0xc32   : > { %v8041_v35 = vpop.permute.xlu0 %8040  ;;  %v8043_v27 = vpop.permute.xlu1 %8042 }
 0xc33   : > { %8076 = vst.msk [vmem:[%s12654_s11 + $0x68] sm:$0xff] %vm8062_vm11, %v8041_v35  ;;  %8077 = vst.msk [vmem:[%s12654_s11 + $0x70] sm:$0xff] %vm8062_vm11, %v8043_v27 }
 0xc36   : > { %v8045_v48 = vpop.permute.xlu0 %8044 }
 0xc37   : > { %8078 = vst.msk [vmem:[%s12654_s11 + $0x78] sm:$0xff] %vm8062_vm11, %v8045_v48 }
 0xc38   : > { %10392 = shalt.err (!%p10389_p3)
}
 0xc39   : > { %s10393_s11 = scalar_lea.hbm %s15220_s30, 2048  ;;  %s10397_s20 = scalar_lea.hbm %s15278_s10, 4096 }
 0xc3a   : > { %p10394_p4 = scmp.ne.s32.totalorder %s15220_s30, %s10393_s11  ;;  %p10398_p9 = scmp.lt.s32.totalorder %s15220_s30, %s15278_s10 }
 0xc3b   : > { %p10399_p10 = scmp.lt.s32.totalorder %s10397_s20, %s10393_s11 }
 0xc3c   : > { %p10395_p7 = pnand %p10394_p4, %p10545_p5 }
 0xc3d   : > { %p10400_p11 = por %p10399_p10, %p10398_p9 }
 0xc3e   : > { %p10396_p8 = pneg %p10395_p7 }
 0xc40   : > { %p10401_p12 = pnand %p10400_p11, %p10396_p8 }
 0xc42   : > { %10404 = shalt.err (!%p10401_p12)
}
 0xc43   : > { %s10450_s28 = smov 128   ;;  %s10451_s17 = smov 8  }
 0xc44   : > { %10095 = dma.vmem_to_hbm [thread:$0]  (%p10545_p5), %s15222_s21, 2048, %s15220_s30, %s15228_s29, %s10450_s28, %s10450_s28, %s10451_s17  }
 0xc45 PF: > { %p10101_p13 = scmp.ge.s32.totalorder %s10439_s16, 2  ;;  %s8109_s12 = sand.u32 1, %s10427_s13  }
 0xc46   : > { %s8110_s18 = scalar_lea.sflag [#allocation3], %s8109_s12 }
 0xc47   : > { %p10098_p0 = pnand %p10101_p13, %p10549_p6 }
 0xc49   : > { %p10099_p1 = pneg %p10098_p0 }
 0xc4b   : > { %10422 = dma.done.wait (%p10099_p1), %s8110_s18, 2048  }
 0xc4c   : > { %10424 = vsyncadd (%p10099_p1), %s8110_s18, 4294965248  ;;  %p20_p2 = scmp.ge.s32.totalorder %s10532_s19, 4   ;;  %s16069_s13 = smov %s10431_s14 }
 0xc4d   : > { %s16070_s14 = smov %s10435_s15  ;;  %s16071_s15 = smov %s10543_s22 }
 0xc4e   : > { %s16072_s16 = smov %s10532_s19  ;;  %22 = sbr.rel (!%p20_p2) target bundleno = 7 (0x7), region = 101 }
 0xc53   :  { %8115 = vsyncpa [#allocation3], 1 }
 0xc54   :  { %8117 = vsyncpa [#allocation3 + $0x1], 1 }

</bundles_post_ra>
